<compile_context>
chip_gen: v7x
topology: tpu7x:2x2x1
jax: 0.10.0
libtpu: 0.0.40
codegen_flags: <defaults>
</compile_context>

<pallas_src>
import jax
import jax.numpy as jnp
import numpy as np
from jax.experimental import pallas as pl
from jax.experimental.pallas import tpu as pltpu

MODEL_OUT_SIZE = 2048     # resnext feature size (self.model_out_size)
HIDDEN_HEAD_SIZE = 1024   # hidden_head_size


def head_kernel(x_ref, w1_ref, b1_ref, w2_ref, b2_ref, o_ref):
    """AdaptiveAvgPool2d((1,1)) + Flatten + Linear + ReLU + Linear + Sigmoid.

    x_ref : (TB, C, HW) f32   backbone feature-map tile (NCHW, spatial flattened)
    w1_ref: (C, HID)    bf16  hid_linear weight (pre-transposed: in x out)
    b1_ref: (1, HID)    f32   hid_linear bias
    w2_ref: (1, HID)    f32   out_linear weight as a lane-resident row
    b2_ref: (1, 1)      f32   out_linear bias (SMEM scalar)
    o_ref : (TB, 1)     f32   sigmoid output tile
    """
    # Global average pool over the spatial (lane) axis -> (TB, C).
    feat = jnp.mean(x_ref[...], axis=-1)

    # hid_linear + ReLU: bf16 inputs on the MXU, f32 accumulation.
    h = jnp.dot(feat.astype(jnp.bfloat16), w1_ref[...],
                preferred_element_type=jnp.float32)
    h = jnp.maximum(h + b1_ref[...], 0.0)

    # out_linear (N=1): VPU multiply + XLU cross-lane reduce (cheaper than an
    # MXU matmul that would use a single output column).
    y = jnp.sum(h * w2_ref[...], axis=-1, keepdims=True) + b2_ref[0, 0]

    o_ref[...] = jax.nn.sigmoid(y).astype(o_ref.dtype)


def _batch_tile(B):
    """Pick a batch block: whole batch if small, else a multiple-of-8 tile."""
    if B <= 128:
        return B
    for tb in (128, 64, 32, 16, 8):
        if B % tb == 0:
            return tb
    return B  # irregular large batch: fall back to a single block


def model_head(x_nchw, w1, b1, w2, b2):
    """x_nchw: (B, C, H, W) backbone feature map. Returns (B,) sigmoid scores."""
    B, C, H, W = x_nchw.shape
    assert C == MODEL_OUT_SIZE
    HW = H * W

    x = x_nchw.reshape(B, C, HW)                 # free reshape, no transpose
    w1_bf = w1.astype(jnp.bfloat16)              # halve weight DMA / VMEM
    w2_row = w2.reshape(1, HIDDEN_HEAD_SIZE)     # out_linear weight on lanes

    tb = _batch_tile(B)
    grid = (B // tb,)

    out = pl.pallas_call(
        head_kernel,
        out_shape=jax.ShapeDtypeStruct((B, 1), jnp.float32),
        grid=grid,
        in_specs=[
            pl.BlockSpec((tb, C, HW), lambda b: (b, 0, 0)),          # feature tile
            pl.BlockSpec((C, HIDDEN_HEAD_SIZE), lambda b: (0, 0)),   # W1 (constant)
            pl.BlockSpec((1, HIDDEN_HEAD_SIZE), lambda b: (0, 0)),   # b1
            pl.BlockSpec((1, HIDDEN_HEAD_SIZE), lambda b: (0, 0)),   # W2 row
            pl.BlockSpec(memory_space=pltpu.MemorySpace.SMEM),       # b2 scalar
        ],
        out_specs=pl.BlockSpec((tb, 1), lambda b: (b, 0)),
        compiler_params=pltpu.CompilerParams(
            dimension_semantics=("parallel",),   # batch blocks are independent
            vmem_limit_bytes=24 << 20,           # working set + headroom (< v7x VMEM)
        ),
    )(x, w1_bf, b1, w2_row, b2)
    return out.reshape(-1)   # torch .flatten()


def reference_head(x_nchw, w1, b1, w2, b2):
    feat = jnp.mean(x_nchw, axis=(2, 3))                 # avgpool + flatten
    h = jnp.maximum(feat @ w1 + b1[0], 0.0)              # relu(hid_linear)
    y = h @ w2 + b2[0]                                   # out_linear
    return jax.nn.sigmoid(y).reshape(-1)


if __name__ == "__main__":
    key = jax.random.PRNGKey(0)
    k_x, k_w1, k_b1, k_w2, k_b2 = jax.random.split(key, 5)

    # Small shapes: B=2, the backbone's final feature map (C=2048, 4x4 spatial).
    B, C, H, W = 2, MODEL_OUT_SIZE, 4, 4
    x = jax.random.normal(k_x, (B, C, H, W), dtype=jnp.float32)

    # Head parameters (Linear weights stored pre-transposed: in x out).
    w1 = jax.random.normal(k_w1, (MODEL_OUT_SIZE, HIDDEN_HEAD_SIZE), jnp.float32) * 0.02
    b1 = jax.random.normal(k_b1, (1, HIDDEN_HEAD_SIZE), jnp.float32) * 0.02
    w2 = jax.random.normal(k_w2, (HIDDEN_HEAD_SIZE, 1), jnp.float32) * 0.02
    b2 = jax.random.normal(k_b2, (1, 1), jnp.float32) * 0.02

    out = jax.block_until_ready(model_head(x, w1, b1, w2, b2))
    ref = jax.block_until_ready(reference_head(x, w1, b1, w2, b2))

    assert out.shape == (B,), out.shape
    # Kernel uses bf16 weights/activations for the 2048-term hid_linear matmul
    # (f32 accumulate); compare to the f32 reference with bf16-sized tolerance.
    np.testing.assert_allclose(np.asarray(out), np.asarray(ref), rtol=1e-2, atol=5e-3)
    print("KERNEL_OK")
</pallas_src>

<mosaic_0001>
module attributes {stable_mosaic.version = 11 : i64} {
  func.func @head_kernel(%arg0: i32, %arg1: memref<2x2048x16xf32, #tpu.memory_space<vmem>>, %arg2: memref<2048x1024xbf16, #tpu.memory_space<vmem>>, %arg3: memref<1x1024xf32, #tpu.memory_space<vmem>>, %arg4: memref<1x1024xf32, #tpu.memory_space<vmem>>, %arg5: memref<1x1xf32, #tpu.memory_space<smem>>, %arg6: memref<2x1xf32, #tpu.memory_space<vmem>>) attributes {dimension_semantics = [#tpu.dimension_semantics<parallel>], iteration_bounds = array<i64: 1>, scalar_prefetch = 0 : i64, scratch_operands = 0 : i64, tpu.core_type = #tpu.core_type<tc>, window_params = [{transform_indices = @transform_0, window_bounds = array<i64: 2, 2048, 16>}, {pipeline_mode = #tpu.pipeline_mode<synchronous>, transform_indices = @transform_1, window_bounds = array<i64: 2048, 1024>}, {pipeline_mode = #tpu.pipeline_mode<synchronous>, transform_indices = @transform_2, window_bounds = array<i64: 1, 1024>}, {pipeline_mode = #tpu.pipeline_mode<synchronous>, transform_indices = @transform_3, window_bounds = array<i64: 1, 1024>}, {transform_indices = @transform_4, window_bounds = array<i64: 1, 1>}, {transform_indices = @transform_5, window_bounds = array<i64: 2, 1>}]} {
    %c0 = arith.constant 0 : index
    %c0_0 = arith.constant 0 : index
    %c0_1 = arith.constant 0 : index
    %0 = vector.load %arg1[%c0, %c0_0, %c0_1] : memref<2x2048x16xf32, #tpu.memory_space<vmem>>, vector<2x2048x16xf32>
    %cst = arith.constant dense<0.000000e+00> : vector<2x2048xf32>
    %1 = vector.multi_reduction <add>, %0, %cst [2] : vector<2x2048x16xf32> to vector<2x2048xf32>
    %cst_2 = arith.constant 1.600000e+01 : f32
    %2 = vector.broadcast %cst_2 : f32 to vector<2x2048xf32>
    %3 = arith.divf %1, %2 : vector<2x2048xf32>
    %4 = arith.truncf %3 : vector<2x2048xf32> to vector<2x2048xbf16>
    %c0_3 = arith.constant 0 : index
    %c0_4 = arith.constant 0 : index
    %5 = vector.load %arg2[%c0_3, %c0_4] : memref<2048x1024xbf16, #tpu.memory_space<vmem>>, vector<2048x1024xbf16>
    %cst_5 = arith.constant dense<0.000000e+00> : vector<2x1024xf32>
    %6 = tpu.matmul %4, %5, %cst_5 {dimension_numbers = #tpu.dot_dimension_numbers<[1], [0], [0], [1], [0, 0, 1, 1], [], []>} : vector<2x2048xbf16>, vector<2048x1024xbf16>, vector<2x1024xf32> -> vector<2x1024xf32>
    %c0_6 = arith.constant 0 : index
    %c0_7 = arith.constant 0 : index
    %7 = vector.load %arg3[%c0_6, %c0_7] : memref<1x1024xf32, #tpu.memory_space<vmem>>, vector<1x1024xf32>
    %8 = vector.broadcast %7 : vector<1x1024xf32> to vector<2x1024xf32>
    %9 = arith.addf %6, %8 : vector<2x1024xf32>
    %cst_8 = arith.constant 0.000000e+00 : f32
    %10 = vector.broadcast %cst_8 : f32 to vector<2x1024xf32>
    %11 = arith.maximumf %9, %10 : vector<2x1024xf32>
    %c0_9 = arith.constant 0 : index
    %c0_10 = arith.constant 0 : index
    %12 = vector.load %arg4[%c0_9, %c0_10] : memref<1x1024xf32, #tpu.memory_space<vmem>>, vector<1x1024xf32>
    %13 = vector.broadcast %12 : vector<1x1024xf32> to vector<2x1024xf32>
    %14 = arith.mulf %11, %13 : vector<2x1024xf32>
    %cst_11 = arith.constant dense<0.000000e+00> : vector<2xf32>
    %15 = vector.multi_reduction <add>, %14, %cst_11 [1] : vector<2x1024xf32> to vector<2xf32>
    %16 = vector.shape_cast %15 : vector<2xf32> to vector<2x1xf32>
    %c0_12 = arith.constant 0 : index
    %c0_13 = arith.constant 0 : index
    %17 = memref.load %arg5[%c0_12, %c0_13] : memref<1x1xf32, #tpu.memory_space<smem>>
    %18 = vector.broadcast %17 : f32 to vector<2x1xf32>
    %19 = arith.addf %16, %18 : vector<2x1xf32>
    %20 = arith.negf %19 : vector<2x1xf32>
    %21 = math.exp %20 : vector<2x1xf32>
    %cst_14 = arith.constant 1.000000e+00 : f32
    %22 = vector.broadcast %cst_14 : f32 to vector<2x1xf32>
    %23 = arith.addf %22, %21 : vector<2x1xf32>
    %24 = arith.divf %22, %23 : vector<2x1xf32>
    %c0_15 = arith.constant 0 : index
    %c0_16 = arith.constant 0 : index
    %25 = vector.load %arg6[%c0_15, %c0_16] : memref<2x1xf32, #tpu.memory_space<vmem>>, vector<2x1xf32>
    tpu.vector_store %arg6[%c0_15, %c0_16], %24 {strides = array<i32>} : memref<2x1xf32, #tpu.memory_space<vmem>>, vector<2x1xf32>,
    return
  }
  func.func @transform_0(%arg0: i32) -> (i32, i32, i32) {
    %c0_i32 = arith.constant 0 : i32
    %c0_i32_0 = arith.constant 0 : i32
    %c0_i32_1 = arith.constant 0 : i32
    return %arg0, %c0_i32, %c0_i32_0 : i32, i32, i32
  }
  func.func @transform_1(%arg0: i32) -> (i32, i32) {
    %c0_i32 = arith.constant 0 : i32
    %c0_i32_0 = arith.constant 0 : i32
    %c0_i32_1 = arith.constant 0 : i32
    return %c0_i32, %c0_i32_0 : i32, i32
  }
  func.func @transform_2(%arg0: i32) -> (i32, i32) {
    %c0_i32 = arith.constant 0 : i32
    %c0_i32_0 = arith.constant 0 : i32
    %c0_i32_1 = arith.constant 0 : i32
    return %c0_i32, %c0_i32_0 : i32, i32
  }
  func.func @transform_3(%arg0: i32) -> (i32, i32) {
    %c0_i32 = arith.constant 0 : i32
    %c0_i32_0 = arith.constant 0 : i32
    %c0_i32_1 = arith.constant 0 : i32
    return %c0_i32, %c0_i32_0 : i32, i32
  }
  func.func @transform_4(%arg0: i32) -> (i32, i32) {
    %c0_i32 = arith.constant 0 : i32
    %c0_i32_0 = arith.constant 0 : i32
    %c0_i32_1 = arith.constant 0 : i32
    return %c0_i32, %c0_i32_0 : i32, i32
  }
  func.func @transform_5(%arg0: i32) -> (i32, i32) {
    %c0_i32 = arith.constant 0 : i32
    %c0_i32_0 = arith.constant 0 : i32
    return %arg0, %c0_i32 : i32, i32
  }
}

</mosaic_0001>

<bundles_post_ra>
// kernel: tpu_custom_call.1
= control target key start
LH: loop header
LB: loop body
LE: loop exit
PB: predicated region body
PF: predicated region fallthrough
CT: control target
= control target key end

     0   :  { %11 = vsyncpa [#allocation4], 0  ;;  %s20918_s0 = inlined_call_operand.vmem [shape: f32[2,2048,16], index: 0, kind: input, shape index: {}]   ;;  %s20919_s1 = inlined_call_operand.hbm [shape: bf16[2048,1024], index: 1, kind: input, shape index: {}]   ;;  %s20920_s2 = inlined_call_operand.hbm [shape: f32[1,1024], index: 2, kind: input, shape index: {}]   ;;  %s20921_s3 = inlined_call_operand.hbm [shape: f32[1,1024], index: 3, kind: input, shape index: {}]   ;;  %s20922_s4 = inlined_call_operand.<no memory space> [shape: f32[1,1], index: 4, kind: input, shape index: {}]   ;;  %s20923_s5 = inlined_call_operand.vmem [shape: f32[2,1], index: 5, kind: output, shape index: {}]  }
   0x1   :  { %12 = vsyncpa [#allocation6], 0  ;;  %s15070_s18 = smov [#allocation5]   ;;  %s15071_s20 = smov [#allocation3]  }
   0x2   :  { %s33_s19 = sshll.u32 %s15070_s18, 4  ;;  %s20_s21 = sshll.u32 %s15071_s20, 4  ;;  %s34_s19 = int_to_ptr.vmem [resolvable:$true] %s33_s19  ;;  %s15105_s21 = int_to_ptr.vmem [resolvable:$true] %s20_s21 }
   0x3   :  { %s15000_s24 = scalar_lea.hbm %s20920_s2, 128 }
   0x4   :  { %p15001_p0 = scmp.ne.s32.totalorder %s20920_s2, %s15000_s24  ;;  %p15004_p1 = scmp.lt.u32.totalorder %s15000_s24, %s20920_s2 }
   0x6   :  { %p15006_p2 = pnand %p15004_p1, %p15001_p0 }
   0x8   :  { %15009 = shalt.err (!%p15006_p2)
}
   0x9   :  { %s15010_s29 = scalar_lea.vmem %s34_s19, 128  ;;  %p15015_p4 = scmp.lt.s32.totalorder %s34_s19, %s34_s19 }
   0xa   :  { %p15011_p3 = scmp.ne.s32.totalorder %s34_s19, %s15010_s29  ;;  %p15016_p5 = scmp.lt.s32.totalorder %s15010_s29, %s15010_s29 }
   0xc   :  { %p15017_p6 = por %p15016_p5, %p15015_p4 }
   0xe   :  { %p15018_p7 = pnand %p15017_p6, %p15011_p3 }
  0x10   :  { %15021 = shalt.err (!%p15018_p7)
}
  0x11   :  { %36 = dma.hbm_to_vmem [thread:$0]  %s20920_s2, 128, %s34_s19, [#allocation6]  }
  0x12   :  { %s15022_s9 = scalar_lea.hbm %s20919_s1, 131072 }
  0x13   :  { %p15023_p8 = scmp.ne.s32.totalorder %s20919_s1, %s15022_s9  ;;  %p15026_p9 = scmp.lt.u32.totalorder %s15022_s9, %s20919_s1 }
  0x15   :  { %p15028_p10 = pnand %p15026_p9, %p15023_p8 }
  0x17   :  { %15031 = shalt.err (!%p15028_p10)
}
  0x18   :  { %s15032_s14 = scalar_lea.vmem %s15105_s21, 131072  ;;  %p15037_p12 = scmp.lt.s32.totalorder %s15105_s21, %s15105_s21 }
  0x19   :  { %p15033_p11 = scmp.ne.s32.totalorder %s15105_s21, %s15032_s14  ;;  %p15038_p13 = scmp.lt.s32.totalorder %s15032_s14, %s15032_s14 }
  0x1b   :  { %p15039_p0 = por %p15038_p13, %p15037_p12 }
  0x1d   :  { %p15040_p1 = pnand %p15039_p0, %p15033_p11 }
  0x1f   :  { %15043 = shalt.err (!%p15040_p1)
}
  0x20   :  { %s15072_s2 = smov 512   ;;  %s15073_s15 = smov 32  }
  0x21   :  { %26 = dma.hbm_to_vmem [thread:$0]  %s20919_s1, 131072, %s15105_s21, [#allocation4], %s15072_s2, %s15072_s2, %s15073_s15  }
  0x22   :  { %s15074_s18 = smov [#allocation7]   ;;  %s15044_s23 = scalar_lea.hbm %s20921_s3, 128 }
  0x23   :  { %s43_s19 = sshll.u32 %s15074_s18, 4  ;;  %p15045_p2 = scmp.ne.s32.totalorder %s20921_s3, %s15044_s23  ;;  %s44_s19 = int_to_ptr.vmem [resolvable:$true] %s43_s19 }
  0x24   :  { %p15048_p3 = scmp.lt.u32.totalorder %s15044_s23, %s20921_s3 }
  0x26   :  { %p15050_p4 = pnand %p15048_p3, %p15045_p2 }
  0x28   :  { %15053 = shalt.err (!%p15050_p4)
}
  0x29   :  { %s15054_s28 = scalar_lea.vmem %s44_s19, 128  ;;  %p15059_p6 = scmp.lt.s32.totalorder %s44_s19, %s44_s19 }
  0x2a   :  { %p15055_p5 = scmp.ne.s32.totalorder %s44_s19, %s15054_s28  ;;  %p15060_p7 = scmp.lt.s32.totalorder %s15054_s28, %s15054_s28 }
  0x2c   :  { %p15061_p8 = por %p15060_p7, %p15059_p6 }
  0x2e   :  { %p15062_p9 = pnand %p15061_p8, %p15055_p5 }
  0x30   :  { %15065 = shalt.err (!%p15062_p9)
}
  0x31   :  { %46 = dma.hbm_to_vmem [thread:$0]  %s20921_s3, 128, %s44_s19, [#allocation6]  }
  0x32   :  { %15066 = dma.done.wait [#allocation4], 131072  }
  0x33   :  { %15067 = vsyncadd [#allocation4], 4294836224 }
  0x34   :  { %15068 = dma.done.wait [#allocation6], 256  }
  0x35   :  { %15069 = vsyncadd [#allocation6], 4294967040  ;;  %vm570_vm0 = vcmask 130048   ;;  %v330_v0 = vld [vmem:[%s20918_s0 + $0x880] sm:$0xff]  ;;  %v331_v2 = vld [vmem:[%s20918_s0 + $0x888] sm:$0xff]  ;;  %vm4721_vm1 = vcmask 130112  }
  0x36   :  { %v74_v1 = vld [vmem:[%s20918_s0 + $0x80] sm:$0xff]  ;;  %v1387_v3 = vsel %vm570_vm0, %v330_v0, 0.0  ;;  %v75_v5 = vld [vmem:[%s20918_s0 + $0x88] sm:$0xff]  ;;  %v1390_v6 = vsel %vm570_vm0, %v331_v2, 0.0  ;;  %v77_v12 = vld [vmem:[%s20918_s0 + $0x98] sm:$0xff]  ;;  %vm4728_vm2 = vcmask 195712  }
  0x37   :  { %v619_v4 = vsel %vm570_vm0, %v74_v1, 0.0  ;;  %1388 = vadd.xlane.f32.xlu1 %v1387_v3  ;;  %v622_v7 = vsel %vm570_vm0, %v75_v5, 0.0  ;;  %v59_v8 = vld [vmem:[%s20918_s0 + $0x8] sm:$0xff]  ;;  %v58_v9 = vld [vmem:[%s20918_s0] sm:$0xff]  ;;  %v76_v13 = vld [vmem:[%s20918_s0 + $0x90] sm:$0xff]  ;;  %v628_v14 = vsel %vm570_vm0, %v77_v12, 0.0 }
  0x38   :  { %620 = vadd.xlane.f32.xlu0 %v619_v4  ;;  %v574_v10 = vsel %vm570_vm0, %v59_v8, 0.0  ;;  %v571_v11 = vsel %vm570_vm0, %v58_v9, 0.0  ;;  %v625_v15 = vsel %vm570_vm0, %v76_v13, 0.0  ;;  %v315_v16 = vld [vmem:[%s20918_s0 + $0x808] sm:$0xff]  ;;  %v314_v17 = vld [vmem:[%s20918_s0 + $0x800] sm:$0xff]  ;;  %v333_v20 = vld [vmem:[%s20918_s0 + $0x898] sm:$0xff] }
  0x39   :  { %v1342_v18 = vsel %vm570_vm0, %v315_v16, 0.0  ;;  %v1339_v19 = vsel %vm570_vm0, %v314_v17, 0.0  ;;  %v332_v21 = vld [vmem:[%s20918_s0 + $0x890] sm:$0xff]  ;;  %v1396_v22 = vsel %vm570_vm0, %v333_v20, 0.0  ;;  %v61_v24 = vld [vmem:[%s20918_s0 + $0x18] sm:$0xff]  ;;  %v79_v32 = vld [vmem:[%s20918_s0 + $0xa8] sm:$0xff] }
  0x3a   :  { %v1393_v23 = vsel %vm570_vm0, %v332_v21, 0.0  ;;  %v60_v25 = vld [vmem:[%s20918_s0 + $0x10] sm:$0xff]  ;;  %v580_v26 = vsel %vm570_vm0, %v61_v24, 0.0  ;;  %v317_v28 = vld [vmem:[%s20918_s0 + $0x818] sm:$0xff]  ;;  %v78_v33 = vld [vmem:[%s20918_s0 + $0xa0] sm:$0xff]  ;;  %v634_v34 = vsel %vm570_vm0, %v79_v32, 0.0 }
  0x3b   :  { %1391 = vadd.xlane.f32.xlu1 %v1390_v6  ;;  %v577_v27 = vsel %vm570_vm0, %v60_v25, 0.0  ;;  %v316_v29 = vld [vmem:[%s20918_s0 + $0x810] sm:$0xff]  ;;  %v1348_v30 = vsel %vm570_vm0, %v317_v28, 0.0  ;;  %v631_v35 = vsel %vm570_vm0, %v78_v33, 0.0  ;;  %v335_v36 = vld [vmem:[%s20918_s0 + $0x8a8] sm:$0xff]  ;;  %v334_v37 = vld [vmem:[%s20918_s0 + $0x8a0] sm:$0xff] }
  0x3c   :  { %623 = vadd.xlane.f32.xlu0 %v622_v7  ;;  %v1345_v31 = vsel %vm570_vm0, %v316_v29, 0.0  ;;  %v1402_v38 = vsel %vm570_vm0, %v335_v36, 0.0  ;;  %v1399_v39 = vsel %vm570_vm0, %v334_v37, 0.0  ;;  %v63_v40 = vld [vmem:[%s20918_s0 + $0x28] sm:$0xff]  ;;  %v62_v41 = vld [vmem:[%s20918_s0 + $0x20] sm:$0xff]  ;;  %v81_v48 = vld [vmem:[%s20918_s0 + $0xb8] sm:$0xff] }
  0x3d   :  { %v586_v42 = vsel %vm570_vm0, %v63_v40, 0.0  ;;  %v583_v43 = vsel %vm570_vm0, %v62_v41, 0.0  ;;  %v319_v44 = vld [vmem:[%s20918_s0 + $0x828] sm:$0xff]  ;;  %v318_v45 = vld [vmem:[%s20918_s0 + $0x820] sm:$0xff]  ;;  %v80_v49 = vld [vmem:[%s20918_s0 + $0xb0] sm:$0xff]  ;;  %v640_v50 = vsel %vm570_vm0, %v81_v48, 0.0 }
  0x3e   :  { %v1354_v46 = vsel %vm570_vm0, %v319_v44, 0.0  ;;  %v1351_v47 = vsel %vm570_vm0, %v318_v45, 0.0  ;;  %v637_v51 = vsel %vm570_vm0, %v80_v49, 0.0  ;;  %v337_v52 = vld [vmem:[%s20918_s0 + $0x8b8] sm:$0xff]  ;;  %v336_v53 = vld [vmem:[%s20918_s0 + $0x8b0] sm:$0xff]  ;;  %v83_v0 = vld [vmem:[%s20918_s0 + $0xc8] sm:$0xff] }
  0x3f   :  { %575 = vadd.xlane.f32.xlu1 %v574_v10  ;;  %v1408_v54 = vsel %vm570_vm0, %v337_v52, 0.0  ;;  %v1405_v55 = vsel %vm570_vm0, %v336_v53, 0.0  ;;  %v65_v56 = vld [vmem:[%s20918_s0 + $0x38] sm:$0xff]  ;;  %v64_v57 = vld [vmem:[%s20918_s0 + $0x30] sm:$0xff]  ;;  %v82_v1 = vld [vmem:[%s20918_s0 + $0xc0] sm:$0xff]  ;;  %v646_v2 = vsel %vm570_vm0, %v83_v0, 0.0 }
  0x40   :  { %572 = vadd.xlane.f32.xlu0 %v571_v11  ;;  %v592_v58 = vsel %vm570_vm0, %v65_v56, 0.0  ;;  %v589_v59 = vsel %vm570_vm0, %v64_v57, 0.0  ;;  %v321_v60 = vld [vmem:[%s20918_s0 + $0x838] sm:$0xff]  ;;  %v320_v61 = vld [vmem:[%s20918_s0 + $0x830] sm:$0xff]  ;;  %v643_v3 = vsel %vm570_vm0, %v82_v1, 0.0  ;;  %v339_v4 = vld [vmem:[%s20918_s0 + $0x8c8] sm:$0xff] }
  0x41   :  { %v1360_v62 = vsel %vm570_vm0, %v321_v60, 0.0  ;;  %v1357_v63 = vsel %vm570_vm0, %v320_v61, 0.0  ;;  %v338_v5 = vld [vmem:[%s20918_s0 + $0x8c0] sm:$0xff]  ;;  %v1414_v6 = vsel %vm570_vm0, %v339_v4, 0.0  ;;  %v67_v8 = vld [vmem:[%s20918_s0 + $0x48] sm:$0xff]  ;;  %v85_v16 = vld [vmem:[%s20918_s0 + $0xd8] sm:$0xff] }
  0x42   :  { %v1411_v7 = vsel %vm570_vm0, %v338_v5, 0.0  ;;  %v66_v9 = vld [vmem:[%s20918_s0 + $0x40] sm:$0xff]  ;;  %v598_v10 = vsel %vm570_vm0, %v67_v8, 0.0  ;;  %v323_v12 = vld [vmem:[%s20918_s0 + $0x848] sm:$0xff]  ;;  %v84_v17 = vld [vmem:[%s20918_s0 + $0xd0] sm:$0xff]  ;;  %vm20974_vm3 = vcmask 261312  }
  0x43   :  { %629 = vadd.xlane.f32.xlu1 %v628_v14  ;;  %v595_v11 = vsel %vm570_vm0, %v66_v9, 0.0  ;;  %v322_v13 = vld [vmem:[%s20918_s0 + $0x840] sm:$0xff]  ;;  %v1366_v14 = vsel %vm570_vm0, %v323_v12, 0.0  ;;  %v341_v20 = vld [vmem:[%s20918_s0 + $0x8d8] sm:$0xff]  ;;  %v340_v21 = vld [vmem:[%s20918_s0 + $0x8d0] sm:$0xff]  ;;  %vm20973_vm4 = vcmask 326912  }
  0x44   :  { %626 = vadd.xlane.f32.xlu0 %v625_v15  ;;  %v1363_v15 = vsel %vm570_vm0, %v322_v13, 0.0  ;;  %v69_v24 = vld [vmem:[%s20918_s0 + $0x58] sm:$0xff]  ;;  %v68_v25 = vld [vmem:[%s20918_s0 + $0x50] sm:$0xff]  ;;  %v2876_v28 = vld [vmem:[#allocation3] sm:$0xff]  ;;  %vm20957_vm5 = vcmask 392512   ;;  %vm21023_vm6 = vcmask 458112  }
  0x45   :  { %v2880_v29 = vld [vmem:[#allocation3 + $0x20] sm:$0xff]  ;;  %v324_v32 = vld [vmem:[%s20918_s0 + $0x850] sm:$0xff]  ;;  %vm20958_vm7 = vcmask 523712   ;;  %vm20942_vm8 = vcmask 589312   ;;  %vm4777_vm9 = vcmask 654912   ;;  %vm4784_vm10 = vcmask 720512  }
  0x46   :  { %v13845_v33 = vcombine.high %v2876_v28, %v2880_v29  ;;  %v13844_v36 = vcombine.low %v2876_v28, %v2880_v29  ;;  %v2884_v40 = vld [vmem:[#allocation3 + $0x40] sm:$0xff]  ;;  %v88_v28 = vld [vmem:[%s20918_s0 + $0xf0] sm:$0xff]  ;;  %vm4791_vm11 = vcmask 786112   ;;  %vm4798_vm12 = vcmask 851712  }
  0x47   :  { %1343 = vadd.xlane.f32.xlu1 %v1342_v18  ;;  %v652_v18 = vsel %vm570_vm0, %v85_v16, 0.0  ;;  %v2888_v41 = vld [vmem:[#allocation3 + $0x60] sm:$0xff]  ;;  %vm4805_vm13 = vcmask 917312   ;;  %vm4812_vm14 = vcmask 982912   ;;  %vm4819_vm15 = vcmask 1048512  }
  0x48   :  { %1340 = vadd.xlane.f32.xlu0 %v1339_v19  ;;  %v649_v19 = vsel %vm570_vm0, %v84_v17, 0.0  ;;  %12439 = vmatprep.subr.bf16.mxu0 %v13845_v33  ;;  %v86_v44 = vld [vmem:[%s20918_s0 + $0xe0] sm:$0xff]  ;;  %v13853_v45 = vcombine.high %v2884_v40, %v2888_v41  ;;  %v13852_v48 = vcombine.low %v2884_v40, %v2888_v41  ;;  %v344_v40 = vld [vmem:[%s20918_s0 + $0x8f0] sm:$0xff] }
  0x49   :  { %12440 = vmatpush1.bf16.msra.mxu0 %v13844_v36  ;;  %v2892_v52 = vld [vmem:[#allocation3 + $0x80] sm:$0xff] }
  0x4a   :  { %12441 = vmatprep.subr.bf16.mxu0 %v13853_v45  ;;  %v2896_v53 = vld [vmem:[#allocation3 + $0xa0] sm:$0xff] }
  0x4b   :  { %1397 = vadd.xlane.f32.xlu1 %v1396_v22  ;;  %v1420_v22 = vsel %vm570_vm0, %v341_v20, 0.0  ;;  %v342_v56 = vld [vmem:[%s20918_s0 + $0x8e0] sm:$0xff]  ;;  %v13861_v57 = vcombine.high %v2892_v52, %v2896_v53  ;;  %v13860_v60 = vcombine.low %v2892_v52, %v2896_v53  ;;  %v72_v52 = vld [vmem:[%s20918_s0 + $0x70] sm:$0xff] }
  0x4c   :  { %1394 = vadd.xlane.f32.xlu0 %v1393_v23  ;;  %v1417_v23 = vsel %vm570_vm0, %v340_v21, 0.0  ;;  %v2900_v0 = vld [vmem:[#allocation3 + $0xc0] sm:$0xff] }
  0x4d   :  { %12442 = vmatpush1.bf16.msra.mxu0 %v13852_v48  ;;  %v2904_v1 = vld [vmem:[#allocation3 + $0xe0] sm:$0xff] }
  0x4e   :  { %12443 = vmatprep.subr.bf16.mxu0 %v13861_v57  ;;  %v70_v4 = vld [vmem:[%s20918_s0 + $0x60] sm:$0xff]  ;;  %v13869_v5 = vcombine.high %v2900_v0, %v2904_v1  ;;  %v13868_v8 = vcombine.low %v2900_v0, %v2904_v1  ;;  %v328_v0 = vld [vmem:[%s20918_s0 + $0x870] sm:$0xff] }
  0x4f   :  { %581 = vadd.xlane.f32.xlu1 %v580_v26  ;;  %v604_v26 = vsel %vm570_vm0, %v69_v24, 0.0  ;;  %v2908_v12 = vld [vmem:[#allocation3 + $0x100] sm:$0xff] }
  0x50   :  { %578 = vadd.xlane.f32.xlu0 %v577_v27  ;;  %v601_v27 = vsel %vm570_vm0, %v68_v25, 0.0  ;;  %v2912_v13 = vld [vmem:[#allocation3 + $0x120] sm:$0xff] }
  0x51   :  { %12444 = vmatpush1.bf16.msra.mxu0 %v13860_v60  ;;  %v326_v16 = vld [vmem:[%s20918_s0 + $0x860] sm:$0xff]  ;;  %v13877_v17 = vcombine.high %v2908_v12, %v2912_v13  ;;  %v13876_v20 = vcombine.low %v2908_v12, %v2912_v13 }
  0x52   :  { %12445 = vmatprep.subr.bf16.mxu0 %v13869_v5  ;;  %v2916_v24 = vld [vmem:[#allocation3 + $0x140] sm:$0xff] }
  0x53   :  { %1349 = vadd.xlane.f32.xlu1 %v1348_v30  ;;  %v2877_v30 = vld [vmem:[#allocation3 + $0x8] sm:$0xff]  ;;  %v2920_v25 = vld [vmem:[#allocation3 + $0x160] sm:$0xff] }
  0x54   :  { %1346 = vadd.xlane.f32.xlu0 %v1345_v31  ;;  %v325_v31 = vld [vmem:[%s20918_s0 + $0x858] sm:$0xff]  ;;  %v13885_v29 = vcombine.high %v2916_v24, %v2920_v25  ;;  %v2924_v36 = vld [vmem:[#allocation3 + $0x180] sm:$0xff] }
  0x55   :  { %12446 = vmatpush1.bf16.msra.mxu0 %v13868_v8  ;;  %v2932_v48 = vld [vmem:[#allocation3 + $0x1c0] sm:$0xff] }
  0x56   :  { %12447 = vmatprep.subr.bf16.mxu0 %v13877_v17  ;;  %v2940_v60 = vld [vmem:[#allocation3 + $0x200] sm:$0xff] }
  0x57   :  { %635 = vadd.xlane.f32.xlu1 %v634_v34  ;;  %v2881_v34 = vld [vmem:[#allocation3 + $0x28] sm:$0xff]  ;;  %v2948_v8 = vld [vmem:[#allocation3 + $0x240] sm:$0xff] }
  0x58   :  { %632 = vadd.xlane.f32.xlu0 %v631_v35  ;;  %v13847_v35 = vcombine.high %v2877_v30, %v2881_v34  ;;  %v13846_v37 = vcombine.low %v2877_v30, %v2881_v34  ;;  %v2921_v30 = vld [vmem:[#allocation3 + $0x168] sm:$0xff]  ;;  %v106_v12 = vld [vmem:[%s20918_s0 + $0x180] sm:$0xff] }
  0x59   :  { %12448 = vmatpush1.bf16.msra.mxu0 %v13876_v20  ;;  %v2956_v20 = vld [vmem:[#allocation3 + $0x280] sm:$0xff] }
  0x5a   :  { %12767 = vmatprep.subr.bf16.mxu1 %v13847_v35  ;;  %v661_v35 = vsel %vm570_vm0, %v88_v28, 0.0  ;;  %12449 = vmatprep.subr.bf16.mxu0 %v13885_v29 }
  0x5b   :  { %1403 = vadd.xlane.f32.xlu1 %v1402_v38  ;;  %v1372_v38 = vsel %vm570_vm0, %v325_v31, 0.0  ;;  %12768 = vmatpush1.bf16.msra.mxu1 %v13846_v37  ;;  %v2928_v37 = vld [vmem:[#allocation3 + $0x1a0] sm:$0xff] }
  0x5c   :  { %1400 = vadd.xlane.f32.xlu0 %v1399_v39  ;;  %v1369_v39 = vsel %vm570_vm0, %v324_v32, 0.0  ;;  %v13884_v32 = vcombine.low %v2916_v24, %v2920_v25  ;;  %v13893_v41 = vcombine.high %v2924_v36, %v2928_v37  ;;  %v362_v24 = vld [vmem:[%s20918_s0 + $0x980] sm:$0xff] }
  0x5e   :  { %12450 = vmatpush1.bf16.msra.mxu0 %v13884_v32  ;;  %v2964_v32 = vld [vmem:[#allocation3 + $0x2c0] sm:$0xff] }
  0x5f   :  { %587 = vadd.xlane.f32.xlu1 %v586_v42  ;;  %v2885_v42 = vld [vmem:[#allocation3 + $0x48] sm:$0xff]  ;;  %12451 = vmatprep.subr.bf16.mxu0 %v13893_v41 }
  0x60   :  { %584 = vadd.xlane.f32.xlu0 %v583_v43  ;;  %v87_v43 = vld [vmem:[%s20918_s0 + $0xe8] sm:$0xff] }
  0x63   :  { %1355 = vadd.xlane.f32.xlu1 %v1354_v46  ;;  %v2889_v46 = vld [vmem:[#allocation3 + $0x68] sm:$0xff] }
  0x64   :  { %1352 = vadd.xlane.f32.xlu0 %v1351_v47  ;;  %v13855_v47 = vcombine.high %v2885_v42, %v2889_v46  ;;  %v13854_v49 = vcombine.low %v2885_v42, %v2889_v46  ;;  %v2929_v42 = vld [vmem:[#allocation3 + $0x1a8] sm:$0xff] }
  0x66   :  { %12769 = vmatprep.subr.bf16.mxu1 %v13855_v47  ;;  %v1429_v47 = vsel %vm570_vm0, %v344_v40, 0.0 }
  0x67   :  { %641 = vadd.xlane.f32.xlu1 %v640_v50  ;;  %v658_v50 = vsel %vm570_vm0, %v87_v43, 0.0  ;;  %12770 = vmatpush1.bf16.msra.mxu1 %v13854_v49  ;;  %v2936_v49 = vld [vmem:[#allocation3 + $0x1e0] sm:$0xff] }
  0x68   :  { %638 = vadd.xlane.f32.xlu0 %v637_v51  ;;  %v655_v51 = vsel %vm570_vm0, %v86_v44, 0.0  ;;  %v13892_v44 = vcombine.low %v2924_v36, %v2928_v37  ;;  %v13901_v53 = vcombine.high %v2932_v48, %v2936_v49  ;;  %v90_v36 = vld [vmem:[%s20918_s0 + $0x100] sm:$0xff] }
  0x6a   :  { %12452 = vmatpush1.bf16.msra.mxu0 %v13892_v44  ;;  %v2972_v44 = vld [vmem:[#allocation3 + $0x300] sm:$0xff] }
  0x6b   :  { %1409 = vadd.xlane.f32.xlu1 %v1408_v54  ;;  %v2893_v54 = vld [vmem:[#allocation3 + $0x88] sm:$0xff]  ;;  %12453 = vmatprep.subr.bf16.mxu0 %v13901_v53 }
  0x6c   :  { %1406 = vadd.xlane.f32.xlu0 %v1405_v55  ;;  %v343_v55 = vld [vmem:[%s20918_s0 + $0x8e8] sm:$0xff] }
  0x6f   :  { %593 = vadd.xlane.f32.xlu1 %v592_v58  ;;  %v2897_v58 = vld [vmem:[#allocation3 + $0xa8] sm:$0xff] }
  0x70   :  { %590 = vadd.xlane.f32.xlu0 %v589_v59  ;;  %v13863_v59 = vcombine.high %v2893_v54, %v2897_v58  ;;  %v13862_v61 = vcombine.low %v2893_v54, %v2897_v58  ;;  %v2937_v54 = vld [vmem:[#allocation3 + $0x1e8] sm:$0xff] }
  0x72   :  { %12771 = vmatprep.subr.bf16.mxu1 %v13863_v59  ;;  %v613_v59 = vsel %vm570_vm0, %v72_v52, 0.0 }
  0x73   :  { %1361 = vadd.xlane.f32.xlu1 %v1360_v62  ;;  %v1426_v62 = vsel %vm570_vm0, %v343_v55, 0.0  ;;  %12772 = vmatpush1.bf16.msra.mxu1 %v13862_v61  ;;  %v2944_v61 = vld [vmem:[#allocation3 + $0x220] sm:$0xff] }
  0x74   :  { %1358 = vadd.xlane.f32.xlu0 %v1357_v63  ;;  %v1423_v63 = vsel %vm570_vm0, %v342_v56, 0.0  ;;  %v13900_v56 = vcombine.low %v2932_v48, %v2936_v49  ;;  %v13909_v1 = vcombine.high %v2940_v60, %v2944_v61  ;;  %v108_v48 = vld [vmem:[%s20918_s0 + $0x190] sm:$0xff] }
  0x76   :  { %12454 = vmatpush1.bf16.msra.mxu0 %v13900_v56  ;;  %v2980_v56 = vld [vmem:[#allocation3 + $0x340] sm:$0xff] }
  0x77   :  { %647 = vadd.xlane.f32.xlu1 %v646_v2  ;;  %v2901_v2 = vld [vmem:[#allocation3 + $0xc8] sm:$0xff]  ;;  %12455 = vmatprep.subr.bf16.mxu0 %v13909_v1 }
  0x78   :  { %644 = vadd.xlane.f32.xlu0 %v643_v3  ;;  %v71_v3 = vld [vmem:[%s20918_s0 + $0x68] sm:$0xff] }
  0x7b   :  { %1415 = vadd.xlane.f32.xlu1 %v1414_v6  ;;  %v2905_v6 = vld [vmem:[#allocation3 + $0xe8] sm:$0xff] }
  0x7c   :  { %1412 = vadd.xlane.f32.xlu0 %v1411_v7  ;;  %v13871_v7 = vcombine.high %v2901_v2, %v2905_v6  ;;  %v13870_v9 = vcombine.low %v2901_v2, %v2905_v6  ;;  %v2945_v2 = vld [vmem:[#allocation3 + $0x228] sm:$0xff] }
  0x7e   :  { %12773 = vmatprep.subr.bf16.mxu1 %v13871_v7  ;;  %v1381_v7 = vsel %vm570_vm0, %v328_v0, 0.0 }
  0x7f   :  { %599 = vadd.xlane.f32.xlu1 %v598_v10  ;;  %v610_v10 = vsel %vm570_vm0, %v71_v3, 0.0  ;;  %12774 = vmatpush1.bf16.msra.mxu1 %v13870_v9  ;;  %v2952_v9 = vld [vmem:[#allocation3 + $0x260] sm:$0xff] }
  0x80   :  { %596 = vadd.xlane.f32.xlu0 %v595_v11  ;;  %v607_v11 = vsel %vm570_vm0, %v70_v4, 0.0  ;;  %v13908_v4 = vcombine.low %v2940_v60, %v2944_v61  ;;  %v13917_v13 = vcombine.high %v2948_v8, %v2952_v9  ;;  %v346_v60 = vld [vmem:[%s20918_s0 + $0x900] sm:$0xff] }
  0x82   :  { %12456 = vmatpush1.bf16.msra.mxu0 %v13908_v4 }
  0x83   :  { %1367 = vadd.xlane.f32.xlu1 %v1366_v14  ;;  %v2909_v14 = vld [vmem:[#allocation3 + $0x108] sm:$0xff]  ;;  %12457 = vmatprep.subr.bf16.mxu0 %v13917_v13 }
  0x84   :  { %1364 = vadd.xlane.f32.xlu0 %v1363_v15  ;;  %v327_v15 = vld [vmem:[%s20918_s0 + $0x868] sm:$0xff] }
  0x85   :  { %v2993_v13 = vld [vmem:[#allocation3 + $0x3a8] sm:$0xff] }
  0x87   :  { %653 = vadd.xlane.f32.xlu1 %v652_v18  ;;  %v2913_v18 = vld [vmem:[#allocation3 + $0x128] sm:$0xff] }
  0x88   :  { %650 = vadd.xlane.f32.xlu0 %v649_v19  ;;  %v13879_v19 = vcombine.high %v2909_v14, %v2913_v18  ;;  %v13878_v21 = vcombine.low %v2909_v14, %v2913_v18  ;;  %v2953_v14 = vld [vmem:[#allocation3 + $0x268] sm:$0xff] }
  0x8a   :  { %12775 = vmatprep.subr.bf16.mxu1 %v13879_v19  ;;  %v715_v19 = vsel %vm570_vm0, %v106_v12, 0.0  ;;  %v2989_v12 = vld [vmem:[#allocation3 + $0x388] sm:$0xff] }
  0x8b   :  { %1421 = vadd.xlane.f32.xlu1 %v1420_v22  ;;  %v1378_v22 = vsel %vm570_vm0, %v327_v15, 0.0  ;;  %12776 = vmatpush1.bf16.msra.mxu1 %v13878_v21  ;;  %v2960_v21 = vld [vmem:[#allocation3 + $0x2a0] sm:$0xff] }
  0x8c   :  { %1418 = vadd.xlane.f32.xlu0 %v1417_v23  ;;  %v1375_v23 = vsel %vm570_vm0, %v326_v16, 0.0  ;;  %v13916_v16 = vcombine.low %v2948_v8, %v2952_v9  ;;  %v13925_v25 = vcombine.high %v2956_v20, %v2960_v21  ;;  %v13924_v28 = vcombine.low %v2956_v20, %v2960_v21  ;;  %v2988_v8 = vld [vmem:[#allocation3 + $0x380] sm:$0xff] }
  0x8d   :  { %v2992_v9 = vld [vmem:[#allocation3 + $0x3a0] sm:$0xff] }
  0x8e   :  { %12458 = vmatpush1.bf16.msra.mxu0 %v13916_v16  ;;  %v13956_v16 = vcombine.low %v2988_v8, %v2992_v9 }
  0x8f   :  { %605 = vadd.xlane.f32.xlu1 %v604_v26  ;;  %v2917_v26 = vld [vmem:[#allocation3 + $0x148] sm:$0xff]  ;;  %12459 = vmatprep.subr.bf16.mxu0 %v13925_v25 }
  0x90   :  { %602 = vadd.xlane.f32.xlu0 %v601_v27  ;;  %v89_v27 = vld [vmem:[%s20918_s0 + $0xf8] sm:$0xff]  ;;  %v13887_v31 = vcombine.high %v2917_v26, %v2921_v30  ;;  %v13886_v33 = vcombine.low %v2917_v26, %v2921_v30  ;;  %v2961_v26 = vld [vmem:[#allocation3 + $0x2a8] sm:$0xff] }
  0x91   :  { %v664_v34 = vsel %vm570_vm0, %v89_v27, 0.0 }
  0x92   :  { %12777 = vmatprep.subr.bf16.mxu1 %v13887_v31  ;;  %v1483_v31 = vsel %vm570_vm0, %v362_v24, 0.0  ;;  %12460 = vmatpush1.bf16.msra.mxu0 %v13924_v28  ;;  %v3000_v28 = vld [vmem:[#allocation3 + $0x3e0] sm:$0xff] }
  0x93   :  { %1373 = vadd.xlane.f32.xlu1 %v1372_v38  ;;  %v2925_v38 = vld [vmem:[#allocation3 + $0x188] sm:$0xff]  ;;  %12778 = vmatpush1.bf16.msra.mxu1 %v13886_v33  ;;  %v2968_v33 = vld [vmem:[#allocation3 + $0x2e0] sm:$0xff] }
  0x94   :  { %1370 = vadd.xlane.f32.xlu0 %v1369_v39  ;;  %v345_v39 = vld [vmem:[%s20918_s0 + $0x8f8] sm:$0xff]  ;;  %v13895_v43 = vcombine.high %v2925_v38, %v2929_v42  ;;  %v13894_v45 = vcombine.low %v2925_v38, %v2929_v42  ;;  %v13933_v37 = vcombine.high %v2964_v32, %v2968_v33  ;;  %v2969_v38 = vld [vmem:[#allocation3 + $0x2e8] sm:$0xff]  ;;  %v13932_v40 = vcombine.low %v2964_v32, %v2968_v33 }
  0x95   :  { %v1432_v46 = vsel %vm570_vm0, %v345_v39, 0.0  ;;  %v3001_v33 = vld [vmem:[#allocation3 + $0x3e8] sm:$0xff] }
  0x96   :  { %12779 = vmatprep.subr.bf16.mxu1 %v13895_v43  ;;  %v667_v43 = vsel %vm570_vm0, %v90_v36, 0.0  ;;  %12461 = vmatprep.subr.bf16.mxu0 %v13933_v37 }
  0x97   :  { %659 = vadd.xlane.f32.xlu1 %v658_v50  ;;  %v2933_v50 = vld [vmem:[#allocation3 + $0x1c8] sm:$0xff]  ;;  %12780 = vmatpush1.bf16.msra.mxu1 %v13894_v45  ;;  %v2976_v45 = vld [vmem:[#allocation3 + $0x320] sm:$0xff] }
  0x98   :  { %656 = vadd.xlane.f32.xlu0 %v655_v51  ;;  %v73_v51 = vld [vmem:[%s20918_s0 + $0x78] sm:$0xff]  ;;  %v13903_v55 = vcombine.high %v2933_v50, %v2937_v54  ;;  %v13902_v57 = vcombine.low %v2933_v50, %v2937_v54  ;;  %12462 = vmatpush1.bf16.msra.mxu0 %v13932_v40  ;;  %v13941_v49 = vcombine.high %v2972_v44, %v2976_v45  ;;  %v2977_v50 = vld [vmem:[#allocation3 + $0x328] sm:$0xff] }
  0x99   :  { %v616_v58 = vsel %vm570_vm0, %v73_v51, 0.0  ;;  %v13940_v52 = vcombine.low %v2972_v44, %v2976_v45  ;;  %v349_v44 = vld [vmem:[%s20918_s0 + $0x918] sm:$0xff] }
  0x9a   :  { %12781 = vmatprep.subr.bf16.mxu1 %v13903_v55  ;;  %v721_v55 = vsel %vm570_vm0, %v108_v48, 0.0  ;;  %12463 = vmatprep.subr.bf16.mxu0 %v13941_v49 }
  0x9b   :  { %1427 = vadd.xlane.f32.xlu1 %v1426_v62  ;;  %v2941_v62 = vld [vmem:[#allocation3 + $0x208] sm:$0xff]  ;;  %12782 = vmatpush1.bf16.msra.mxu1 %v13902_v57  ;;  %v2984_v57 = vld [vmem:[#allocation3 + $0x360] sm:$0xff] }
  0x9c   :  { %1424 = vadd.xlane.f32.xlu0 %v1423_v63  ;;  %v329_v63 = vld [vmem:[%s20918_s0 + $0x878] sm:$0xff]  ;;  %v13911_v3 = vcombine.high %v2941_v62, %v2945_v2  ;;  %v13910_v5 = vcombine.low %v2941_v62, %v2945_v2  ;;  %12464 = vmatpush1.bf16.msra.mxu0 %v13940_v52  ;;  %v13949_v61 = vcombine.high %v2980_v56, %v2984_v57  ;;  %v2985_v62 = vld [vmem:[#allocation3 + $0x368] sm:$0xff]  ;;  %v3902_v2 = vlaneseq }
  0x9d   :  { %v1384_v6 = vsel %vm570_vm0, %v329_v63, 0.0  ;;  %v13948_v0 = vcombine.low %v2980_v56, %v2984_v57  ;;  %v1444_v57 = vsel %vm570_vm0, %v349_v44, 0.0 }
  0x9e   :  { %12783 = vmatprep.subr.bf16.mxu1 %v13911_v3  ;;  %12465 = vmatprep.subr.bf16.mxu0 %v13949_v61  ;;  %v111_v61 = vld [vmem:[%s20918_s0 + $0x1a8] sm:$0xff] }
  0x9f   :  { %611 = vadd.xlane.f32.xlu1 %v610_v10  ;;  %v2949_v10 = vld [vmem:[#allocation3 + $0x248] sm:$0xff]  ;;  %12784 = vmatpush1.bf16.msra.mxu1 %v13910_v5 }
  0xa0   :  { %608 = vadd.xlane.f32.xlu0 %v607_v11  ;;  %v107_v11 = vld [vmem:[%s20918_s0 + $0x188] sm:$0xff]  ;;  %v13919_v15 = vcombine.high %v2949_v10, %v2953_v14  ;;  %v13918_v17 = vcombine.low %v2949_v10, %v2953_v14  ;;  %v364_v10 = vld [vmem:[%s20918_s0 + $0x990] sm:$0xff]  ;;  %12466 = vmatpush1.bf16.msra.mxu0 %v13948_v0  ;;  %v13959_v14 = vcombine.high %v2989_v12, %v2993_v13 }
  0xa1   :  { %v718_v18 = vsel %vm570_vm0, %v107_v11, 0.0  ;;  %v13957_v11 = vcombine.high %v2988_v8, %v2992_v9 }
  0xa2   :  { %12785 = vmatprep.subr.bf16.mxu1 %v13919_v15  ;;  %v15450_v15 = vand.u32 127, %v3902_v2 }
  0xa3   :  { %1379 = vadd.xlane.f32.xlu1 %v1378_v22  ;;  %v2957_v22 = vld [vmem:[#allocation3 + $0x288] sm:$0xff]  ;;  %12786 = vmatpush1.bf16.msra.mxu1 %v13918_v17  ;;  %v13958_v17 = vcombine.low %v2989_v12, %v2993_v13 }
  0xa4   :  { %1376 = vadd.xlane.f32.xlu0 %v1375_v23  ;;  %v363_v23 = vld [vmem:[%s20918_s0 + $0x988] sm:$0xff]  ;;  %v13927_v27 = vcombine.high %v2957_v22, %v2961_v26  ;;  %v13926_v29 = vcombine.low %v2957_v22, %v2961_v26  ;;  %v1489_v22 = vsel %vm570_vm0, %v364_v10, 0.0  ;;  %12467 = vmatprep.subr.bf16.mxu0 %v13957_v11 }
  0xa5   :  { %v1486_v30 = vsel %vm570_vm0, %v363_v23, 0.0  ;;  %v93_v23 = vld [vmem:[%s20918_s0 + $0x118] sm:$0xff]  ;;  %12468 = vmatpush1.bf16.msra.mxu0 %v13956_v16  ;;  %v367_v12 = vld [vmem:[%s20918_s0 + $0x9a8] sm:$0xff] }
  0xa6   :  { %12787 = vmatprep.subr.bf16.mxu1 %v13927_v27  ;;  %v2996_v27 = vld [vmem:[#allocation3 + $0x3c0] sm:$0xff]  ;;  %v676_v40 = vsel %vm570_vm0, %v93_v23, 0.0  ;;  %v1498_v23 = vsel %vm570_vm0, %v367_v12, 0.0 }
  0xa7   :  { %665 = vadd.xlane.f32.xlu1 %v664_v34  ;;  %v2965_v34 = vld [vmem:[#allocation3 + $0x2c8] sm:$0xff]  ;;  %12788 = vmatpush1.bf16.msra.mxu1 %v13926_v29  ;;  %v13965_v32 = vcombine.high %v2996_v27, %v3000_v28 }
  0xa8   :  { %662 = vadd.xlane.f32.xlu0 %v661_v35  ;;  %v91_v35 = vld [vmem:[%s20918_s0 + $0x108] sm:$0xff]  ;;  %v13935_v39 = vcombine.high %v2965_v34, %v2969_v38  ;;  %v13934_v41 = vcombine.low %v2965_v34, %v2969_v38  ;;  %v4716_v34 = vadd.s32 4294967288, %v15450_v15 }
  0xa9   :  { %v670_v42 = vsel %vm570_vm0, %v91_v35, 0.0  ;;  %v2997_v29 = vld [vmem:[#allocation3 + $0x3c8] sm:$0xff]  ;;  %12469 = vmatprep.subr.bf16.mxu0 %v13965_v32 }
  0xaa   :  { %12789 = vmatprep.subr.bf16.mxu1 %v13935_v39  ;;  %v13967_v37 = vcombine.high %v2997_v29, %v3001_v33 }
  0xab   :  { %1433 = vadd.xlane.f32.xlu1 %v1432_v46  ;;  %v2973_v46 = vld [vmem:[#allocation3 + $0x308] sm:$0xff]  ;;  %12790 = vmatpush1.bf16.msra.mxu1 %v13934_v41  ;;  %v13964_v41 = vcombine.low %v2996_v27, %v3000_v28 }
  0xac   :  { %1430 = vadd.xlane.f32.xlu0 %v1429_v47  ;;  %v109_v47 = vld [vmem:[%s20918_s0 + $0x198] sm:$0xff]  ;;  %v13943_v51 = vcombine.high %v2973_v46, %v2977_v50  ;;  %v13942_v53 = vcombine.low %v2973_v46, %v2977_v50  ;;  %v4723_v50 = vadd.s32 4294967280, %v15450_v15  ;;  %v95_v27 = vld [vmem:[%s20918_s0 + $0x128] sm:$0xff] }
  0xad   :  { %v724_v54 = vsel %vm570_vm0, %v109_v47, 0.0  ;;  %v348_v47 = vld [vmem:[%s20918_s0 + $0x910] sm:$0xff]  ;;  %12470 = vmatpush1.bf16.msra.mxu0 %v13964_v41  ;;  %v682_v41 = vsel %vm570_vm0, %v95_v27, 0.0 }
  0xae   :  { %12791 = vmatprep.subr.bf16.mxu1 %v13943_v51  ;;  %v4730_v51 = vadd.s32 4294967272, %v15450_v15  ;;  %v368_v27 = vld [vmem:[%s20918_s0 + $0x9b0] sm:$0xff] }
  0xaf   :  { %617 = vadd.xlane.f32.xlu1 %v616_v58  ;;  %v2981_v58 = vld [vmem:[#allocation3 + $0x348] sm:$0xff]  ;;  %12792 = vmatpush1.bf16.msra.mxu1 %v13942_v53 }
  0xb0   :  { %614 = vadd.xlane.f32.xlu0 %v613_v59  ;;  %v347_v59 = vld [vmem:[%s20918_s0 + $0x908] sm:$0xff]  ;;  %v13951_v63 = vcombine.high %v2981_v58, %v2985_v62  ;;  %v13950_v1 = vcombine.low %v2981_v58, %v2985_v62  ;;  %v110_v62 = vld [vmem:[%s20918_s0 + $0x1a0] sm:$0xff] }
  0xb1   :  { %v1438_v5 = vsel %vm570_vm0, %v347_v59, 0.0 }
  0xb2   :  { %12793 = vmatprep.subr.bf16.mxu1 %v13951_v63 }
  0xb3   :  { %1385 = vadd.xlane.f32.xlu1 %v1384_v6  ;;  %v1435_v6 = vsel %vm570_vm0, %v346_v60, 0.0  ;;  %12794 = vmatpush1.bf16.msra.mxu1 %v13950_v1  ;;  %v1441_v60 = vsel %vm570_vm0, %v348_v47, 0.0 }
  0xb4   :  { %1382 = vadd.xlane.f32.xlu0 %v1381_v7  ;;  %v365_v7 = vld [vmem:[%s20918_s0 + $0x998] sm:$0xff]  ;;  %12795 = vmatprep.subr.bf16.mxu1 %v13959_v14  ;;  %v366_v14 = vld [vmem:[%s20918_s0 + $0x9a0] sm:$0xff] }
  0xb5   :  { %v1492_v21 = vsel %vm570_vm0, %v365_v7, 0.0  ;;  %v727_v7 = vsel %vm570_vm0, %v110_v62, 0.0 }
  0xb7   :  { %719 = vadd.xlane.f32.xlu1 %v718_v18  ;;  %12796 = vmatpush1.bf16.msra.mxu1 %v13958_v17 }
  0xb8   :  { %716 = vadd.xlane.f32.xlu0 %v715_v19  ;;  %12797 = vmatprep.subr.bf16.mxu1 %v13967_v37  ;;  %v350_v37 = vld [vmem:[%s20918_s0 + $0x920] sm:$0xff] }
  0xbb   :  { %1487 = vadd.xlane.f32.xlu1 %v1486_v30  ;;  %v15457_v30 = vshrl.u32 %v3902_v2, 7 }
  0xbc   :  { %1484 = vadd.xlane.f32.xlu0 %v1483_v31  ;;  %v92_v31 = vld [vmem:[%s20918_s0 + $0x110] sm:$0xff] }
  0xbd   :  { %21024 = vst [vmem:[#allocation10_spill] sm:$0xff] %v15457_v30  ;;  %v15475_v48 = vsub.s32 %v15450_v15, %v15457_v30  ;;  %v15478_v49 = vsub.s32 %v4716_v34, %v15457_v30  ;;  %v15493_v63 = vsub.s32 %v4723_v50, %v15457_v30  ;;  %v15496_v0 = vsub.s32 %v4730_v51, %v15457_v30 }
  0xbe   :  { %v1447_v50 = vsel %vm570_vm0, %v350_v37, 0.0 }
  0xbf   :  { %671 = vadd.xlane.f32.xlu1 %v670_v42  ;;  %v13966_v42 = vcombine.low %v2997_v29, %v3001_v33  ;;  %21025 = vst [vmem:[#allocation11_spill] sm:$0xff] %v15475_v48  ;;  %21026 = vst [vmem:[#allocation12_spill] sm:$0xff] %v15478_v49 }
  0xc0   :  { %668 = vadd.xlane.f32.xlu0 %v667_v43  ;;  %v673_v43 = vsel %vm570_vm0, %v92_v31, 0.0  ;;  %21027 = vst [vmem:[#allocation13_spill] sm:$0xff] %v15493_v63  ;;  %21028 = vst [vmem:[#allocation14_spill] sm:$0xff] %v15496_v0  ;;  %v94_v31 = vld [vmem:[%s20918_s0 + $0x120] sm:$0xff] }
  0xc1   :  { %12798 = vmatpush1.bf16.msra.mxu1 %v13966_v42  ;;  %v679_v44 = vsel %vm570_vm0, %v94_v31, 0.0 }
  0xc3   :  { %725 = vadd.xlane.f32.xlu1 %v724_v54 }
  0xc4   :  { %722 = vadd.xlane.f32.xlu0 %v721_v55  ;;  %v1389_v3 = vpop.xlane.xlu1 %1388 }
  0xc5   :  { %v621_v4 = vpop.xlane.xlu0 %620  ;;  %v2380_v18 = vmul.f32 0.0625, %v1389_v3 }
  0xc6   :  { %v2124_v24 = vmul.f32 0.0625, %v621_v4 }
  0xc7   :  { %1439 = vadd.xlane.f32.xlu1 %v1438_v5 }
  0xc8   :  { %1436 = vadd.xlane.f32.xlu0 %v1435_v6  ;;  %v1392_v19 = vpop.xlane.xlu1 %1391  ;;  %v730_v6 = vsel %vm570_vm0, %v111_v61, 0.0 }
  0xc9   :  { %v624_v20 = vpop.xlane.xlu0 %623  ;;  %v2381_v25 = vmul.f32 0.0625, %v1392_v19 }
  0xca   :  { %v2125_v26 = vmul.f32 0.0625, %v624_v20 }
  0xcb   :  { %v15463_v35 = vpack.c.bf16 %v2381_v25, %v2380_v18  ;;  %1493 = vadd.xlane.f32.xlu1 %v1492_v21 }
  0xcc   :  { %v2628_v36 = vpack.c.bf16 %v2125_v26, %v2124_v24  ;;  %1490 = vadd.xlane.f32.xlu0 %v1489_v22  ;;  %v576_v38 = vpop.xlane.xlu1 %575  ;;  %v1495_v26 = vsel %vm570_vm0, %v366_v14, 0.0 }
  0xcd   :  { %v573_v39 = vpop.xlane.xlu0 %572  ;;  %v2109_v45 = vmul.f32 0.0625, %v576_v38  ;;  %v4470_v13 = vunpack.c.l.b16 %v15463_v35  ;;  %v4471_v16 = vunpack.c.h.b16 %v15463_v35 }
  0xce   :  { %v2108_v46 = vmul.f32 0.0625, %v573_v39  ;;  %v4214_v52 = vunpack.c.l.b16 %v2628_v36  ;;  %v4215_v53 = vunpack.c.h.b16 %v2628_v36  ;;  %v351_v36 = vld [vmem:[%s20918_s0 + $0x928] sm:$0xff] }
  0xcf   :  { %677 = vadd.xlane.f32.xlu1 %v676_v40  ;;  %v6088_v32 = vrot.slane %v4470_v13, %v15475_v48  ;;  %v6092_v33 = vrot.slane %v4471_v16, %v15478_v49  ;;  %v1450_v47 = vsel %vm570_vm0, %v351_v36, 0.0 }
  0xd0   :  { %v15482_v54 = vpack.c.bf16 %v2109_v45, %v2108_v46  ;;  %674 = vadd.xlane.f32.xlu0 %v673_v43  ;;  %v630_v55 = vpop.xlane.xlu1 %629  ;;  %v4824_v2 = vrot.slane %v4214_v52, %v15475_v48  ;;  %v4828_v3 = vrot.slane %v4215_v53, %v15478_v49 }
  0xd1   :  { %v627_v56 = vpop.xlane.xlu0 %626  ;;  %v2127_v58 = vmul.f32 0.0625, %v630_v55  ;;  %v6093_v51 = vsel %vm4721_vm1, %v6092_v33, %v6088_v32  ;;  %v113_v55 = vld [vmem:[%s20918_s0 + $0x1b8] sm:$0xff] }
  0xd2   :  { %v2126_v59 = vmul.f32 0.0625, %v627_v56  ;;  %v4829_v20 = vsel %vm4721_vm1, %v4828_v3, %v4824_v2  ;;  %v4198_v34 = vunpack.c.l.b16 %v15482_v54  ;;  %v4199_v35 = vunpack.c.h.b16 %v15482_v54  ;;  %v112_v56 = vld [vmem:[%s20918_s0 + $0x1b0] sm:$0xff] }
  0xd3   :  { %1445 = vadd.xlane.f32.xlu1 %v1444_v57 }
  0xd4   :  { %v2629_v1 = vpack.c.bf16 %v2127_v58, %v2126_v59  ;;  %1442 = vadd.xlane.f32.xlu0 %v1441_v60  ;;  %v1344_v4 = vpop.xlane.xlu1 %1343  ;;  %v4715_v52 = vrot.slane %v4198_v34, %v15475_v48  ;;  %v4720_v53 = vrot.slane %v4199_v35, %v15478_v49 }
  0xd5   :  { %v1341_v5 = vpop.xlane.xlu0 %1340  ;;  %v2365_v10 = vmul.f32 0.0625, %v1344_v4 }
  0xd6   :  { %v4216_v8 = vunpack.c.l.b16 %v2629_v1  ;;  %v4217_v9 = vunpack.c.h.b16 %v2629_v1  ;;  %v2364_v11 = vmul.f32 0.0625, %v1341_v5  ;;  %v4722_v13 = vsel %vm4721_vm1, %v4720_v53, %v4715_v52 }
  0xd7   :  { %731 = vadd.xlane.f32.xlu1 %v730_v6  ;;  %v4737_v6 = vadd.s32 4294967264, %v15450_v15 }
  0xd8   :  { %v4833_v17 = vrot.slane %v4216_v8, %v15493_v63  ;;  %v4838_v18 = vrot.slane %v4217_v9, %v15496_v0  ;;  %v15512_v19 = vpack.c.bf16 %v2365_v10, %v2364_v11  ;;  %728 = vadd.xlane.f32.xlu0 %v727_v7  ;;  %v1398_v21 = vpop.xlane.xlu1 %1397  ;;  %v736_v7 = vsel %vm570_vm0, %v113_v55, 0.0 }
  0xd9   :  { %v1395_v22 = vpop.xlane.xlu0 %1394  ;;  %v2383_v25 = vmul.f32 0.0625, %v1398_v21  ;;  %v733_v8 = vsel %vm570_vm0, %v112_v56, 0.0  ;;  %v15580_v32 = vsub.s32 %v4737_v6, %v15457_v30 }
  0xda   :  { %v4834_v24 = vsel %vm4728_vm2, %v4833_v17, %v4829_v20  ;;  %v2382_v29 = vmul.f32 0.0625, %v1395_v22  ;;  %v4454_v57 = vunpack.c.l.b16 %v15512_v19  ;;  %v4455_v58 = vunpack.c.h.b16 %v15512_v19 }
  0xdb   :  { %v15522_v28 = vsel %vm20974_vm3, %v4838_v18, %v4834_v24  ;;  %1499 = vadd.xlane.f32.xlu1 %v1498_v23  ;;  %v4744_v18 = vadd.s32 4294967256, %v15450_v15  ;;  %v369_v24 = vld [vmem:[%s20918_s0 + $0x9b8] sm:$0xff]  ;;  %21029 = vst [vmem:[#allocation15_spill] sm:$0xff] %v15580_v32 }
  0xdc   :  { %v2757_v38 = vpack.c.bf16 %v2383_v25, %v2382_v29  ;;  %1496 = vadd.xlane.f32.xlu0 %v1495_v26  ;;  %v582_v39 = vpop.xlane.xlu1 %581  ;;  %v6009_v14 = vrot.slane %v4454_v57, %v15475_v48  ;;  %v6013_v16 = vrot.slane %v4455_v58, %v15478_v49 }
  0xdd   :  { %v579_v40 = vpop.xlane.xlu0 %578  ;;  %v2111_v42 = vmul.f32 0.0625, %v582_v39  ;;  %v15584_v34 = vsub.s32 %v4744_v18, %v15457_v30  ;;  %v114_v18 = vld [vmem:[%s20918_s0 + $0x1c0] sm:$0xff] }
  0xde   :  { %v2110_v43 = vmul.f32 0.0625, %v579_v40  ;;  %v4472_v45 = vunpack.c.l.b16 %v2757_v38  ;;  %v4473_v46 = vunpack.c.h.b16 %v2757_v38  ;;  %v6014_v33 = vsel %vm4721_vm1, %v6013_v16, %v6009_v14  ;;  %v115_v14 = vld [vmem:[%s20918_s0 + $0x1c8] sm:$0xff] }
  0xdf   :  { %683 = vadd.xlane.f32.xlu1 %v682_v41  ;;  %21030 = vst [vmem:[#allocation16_spill] sm:$0xff] %v15584_v34  ;;  %v1504_v38 = vsel %vm570_vm0, %v369_v24, 0.0 }
  0xe0   :  { %v2621_v54 = vpack.c.bf16 %v2111_v42, %v2110_v43  ;;  %v6097_v59 = vrot.slane %v4472_v45, %v15493_v63  ;;  %v6102_v60 = vrot.slane %v4473_v46, %v15496_v0  ;;  %680 = vadd.xlane.f32.xlu0 %v679_v44  ;;  %v1350_v61 = vpop.xlane.xlu1 %1349  ;;  %v1501_v42 = vsel %vm570_vm0, %v368_v27, 0.0  ;;  %v97_v43 = vld [vmem:[%s20918_s0 + $0x138] sm:$0xff]  ;;  %v96_v44 = vld [vmem:[%s20918_s0 + $0x130] sm:$0xff]  ;;  %v371_v27 = vld [vmem:[%s20918_s0 + $0x9c8] sm:$0xff] }
  0xe1   :  { %v1347_v62 = vpop.xlane.xlu0 %1346  ;;  %v2367_v3 = vmul.f32 0.0625, %v1350_v61  ;;  %v688_v55 = vsel %vm570_vm0, %v97_v43, 0.0  ;;  %v685_v56 = vsel %vm570_vm0, %v96_v44, 0.0  ;;  %v353_v61 = vld [vmem:[%s20918_s0 + $0x938] sm:$0xff]  ;;  %v98_v43 = vld [vmem:[%s20918_s0 + $0x140] sm:$0xff] }
  0xe2   :  { %v4200_v1 = vunpack.c.l.b16 %v2621_v54  ;;  %v4201_v2 = vunpack.c.h.b16 %v2621_v54  ;;  %v2366_v4 = vmul.f32 0.0625, %v1347_v62  ;;  %v6098_v5 = vsel %vm4728_vm2, %v6097_v59, %v6093_v51  ;;  %v352_v62 = vld [vmem:[%s20918_s0 + $0x930] sm:$0xff] }
  0xe3   :  { %v15559_v9 = vsel %vm20974_vm3, %v6102_v60, %v6098_v5  ;;  %1451 = vadd.xlane.f32.xlu1 %v1450_v47 }
  0xe4   :  { %v4727_v10 = vrot.slane %v4200_v1, %v15493_v63  ;;  %v4734_v11 = vrot.slane %v4201_v2, %v15496_v0  ;;  %v2749_v12 = vpack.c.bf16 %v2367_v3, %v2366_v4  ;;  %1448 = vadd.xlane.f32.xlu0 %v1447_v50  ;;  %v636_v17 = vpop.xlane.xlu1 %635 }
  0xe5   :  { %v633_v19 = vpop.xlane.xlu0 %632  ;;  %v2129_v23 = vmul.f32 0.0625, %v636_v17 }
  0xe6   :  { %v4729_v20 = vsel %vm4728_vm2, %v4727_v10, %v4722_v13  ;;  %v4456_v21 = vunpack.c.l.b16 %v2749_v12  ;;  %v4457_v22 = vunpack.c.h.b16 %v2749_v12  ;;  %v2128_v26 = vmul.f32 0.0625, %v633_v19 }
  0xe7   :  { %v15572_v25 = vsel %vm20974_vm3, %v4734_v11, %v4729_v20  ;;  %737 = vadd.xlane.f32.xlu1 %v736_v7  ;;  %v1453_v10 = vsel %vm570_vm0, %v352_v62, 0.0 }
  0xe8   :  { %v6018_v29 = vrot.slane %v4456_v21, %v15493_v63  ;;  %v6023_v31 = vrot.slane %v4457_v22, %v15496_v0  ;;  %v2630_v35 = vpack.c.bf16 %v2129_v23, %v2128_v26  ;;  %734 = vadd.xlane.f32.xlu0 %v733_v8  ;;  %v1404_v36 = vpop.xlane.xlu1 %1403  ;;  %v1456_v8 = vsel %vm570_vm0, %v353_v61, 0.0 }
  0xe9   :  { %v1401_v37 = vpop.xlane.xlu0 %1400  ;;  %v2385_v40 = vmul.f32 0.0625, %v1404_v36  ;;  %v742_v23 = vsel %vm570_vm0, %v115_v14, 0.0  ;;  %v739_v26 = vsel %vm570_vm0, %v114_v18, 0.0  ;;  %v4765_v18 = vadd.s32 4294967232, %v15450_v15 }
  0xea   :  { %v6019_v39 = vsel %vm4728_vm2, %v6018_v29, %v6014_v33  ;;  %v2384_v41 = vmul.f32 0.0625, %v1401_v37  ;;  %v4218_v46 = vunpack.c.l.b16 %v2630_v35  ;;  %v4219_v47 = vunpack.c.h.b16 %v2630_v35  ;;  %v370_v35 = vld [vmem:[%s20918_s0 + $0x9c0] sm:$0xff] }
  0xeb   :  { %v15596_v45 = vsel %vm20974_vm3, %v6023_v31, %v6019_v39  ;;  %1505 = vadd.xlane.f32.xlu1 %v1504_v38  ;;  %v1510_v39 = vsel %vm570_vm0, %v371_v27, 0.0  ;;  %v4779_v27 = vadd.s32 4294967216, %v15450_v15 }
  0xec   :  { %v2758_v50 = vpack.c.bf16 %v2385_v40, %v2384_v41  ;;  %v4843_v51 = vrot.slane %v4218_v46, %v15580_v32  ;;  %v4848_v52 = vrot.slane %v4219_v47, %v15584_v34  ;;  %1502 = vadd.xlane.f32.xlu0 %v1501_v42  ;;  %v588_v53 = vpop.xlane.xlu1 %587  ;;  %v1507_v40 = vsel %vm570_vm0, %v370_v35, 0.0  ;;  %v99_v41 = vld [vmem:[%s20918_s0 + $0x148] sm:$0xff] }
  0xed   :  { %v585_v54 = vpop.xlane.xlu0 %584  ;;  %v2113_v59 = vmul.f32 0.0625, %v588_v53  ;;  %v4786_v35 = vadd.s32 4294967208, %v15450_v15 }
  0xee   :  { %v4474_v57 = vunpack.c.l.b16 %v2758_v50  ;;  %v4475_v58 = vunpack.c.h.b16 %v2758_v50  ;;  %v2112_v60 = vmul.f32 0.0625, %v585_v54  ;;  %v4844_v1 = vsel %vm20973_vm4, %v4843_v51, %v15522_v28 }
  0xef   :  { %v15611_v2 = vsel %vm20957_vm5, %v4848_v52, %v4844_v1  ;;  %689 = vadd.xlane.f32.xlu1 %v688_v55  ;;  %v694_v50 = vsel %vm570_vm0, %v99_v41, 0.0  ;;  %v691_v51 = vsel %vm570_vm0, %v98_v43, 0.0  ;;  %v354_v52 = vld [vmem:[%s20918_s0 + $0x940] sm:$0xff]  ;;  %v373_v1 = vld [vmem:[%s20918_s0 + $0x9d8] sm:$0xff] }
  0xf0   :  { %v6107_v3 = vrot.slane %v4474_v57, %v15580_v32  ;;  %v6112_v4 = vrot.slane %v4475_v58, %v15584_v34  ;;  %v2622_v5 = vpack.c.bf16 %v2113_v59, %v2112_v60  ;;  %686 = vadd.xlane.f32.xlu0 %v685_v56  ;;  %v1356_v6 = vpop.xlane.xlu1 %1355  ;;  %v1459_v56 = vsel %vm570_vm0, %v354_v52, 0.0  ;;  %v117_v57 = vld [vmem:[%s20918_s0 + $0x1d8] sm:$0xff]  ;;  %v116_v58 = vld [vmem:[%s20918_s0 + $0x1d0] sm:$0xff] }
  0xf1   :  { %v1353_v7 = vpop.xlane.xlu0 %1352  ;;  %v2369_v13 = vmul.f32 0.0625, %v1356_v6  ;;  %v748_v61 = vsel %vm570_vm0, %v117_v57, 0.0  ;;  %v745_v62 = vsel %vm570_vm0, %v116_v58, 0.0  ;;  %v1516_v6 = vsel %vm570_vm0, %v373_v1, 0.0  ;;  %v374_v58 = vld [vmem:[%s20918_s0 + $0x9e0] sm:$0xff] }
  0xf2   :  { %v6108_v11 = vsel %vm20973_vm4, %v6107_v3, %v15559_v9  ;;  %v4202_v28 = vunpack.c.l.b16 %v2622_v5  ;;  %v4203_v12 = vunpack.c.h.b16 %v2622_v5  ;;  %v2368_v17 = vmul.f32 0.0625, %v1353_v7  ;;  %v372_v3 = vld [vmem:[%s20918_s0 + $0x9d0] sm:$0xff] }
  0xf3   :  { %v15623_v16 = vsel %vm20957_vm5, %v6112_v4, %v6108_v11  ;;  %1457 = vadd.xlane.f32.xlu1 %v1456_v8  ;;  %v1513_v7 = vsel %vm570_vm0, %v372_v3, 0.0  ;;  %v101_v8 = vld [vmem:[%s20918_s0 + $0x158] sm:$0xff]  ;;  %v4751_v11 = vadd.s32 4294967248, %v15450_v15 }
  0xf4   :  { %v4741_v19 = vrot.slane %v4202_v28, %v15580_v32  ;;  %v4748_v20 = vrot.slane %v4203_v12, %v15584_v34  ;;  %v2750_v9 = vpack.c.bf16 %v2369_v13, %v2368_v17  ;;  %1454 = vadd.xlane.f32.xlu0 %v1453_v10  ;;  %v15630_v21 = vpop.xlane.xlu1 %641  ;;  %v100_v10 = vld [vmem:[%s20918_s0 + $0x150] sm:$0xff]  ;;  %v4758_v28 = vadd.s32 4294967240, %v15450_v15  ;;  %v357_v17 = vld [vmem:[%s20918_s0 + $0x958] sm:$0xff] }
  0xf5   :  { %v15632_v22 = vpop.xlane.xlu0 %638  ;;  %v700_v14 = vsel %vm570_vm0, %v101_v8, 0.0  ;;  %v2131_v1 = vmul.f32 0.0625, %v15630_v21  ;;  %v359_v8 = vld [vmem:[%s20918_s0 + $0x968] sm:$0xff]  ;;  %v15798_v21 = vsub.s32 %v4786_v35, %v15457_v30 }
  0xf6   :  { %v4743_v24 = vsel %vm20973_vm4, %v4741_v19, %v15572_v25  ;;  %v4458_v31 = vunpack.c.l.b16 %v2750_v9  ;;  %v4459_v33 = vunpack.c.h.b16 %v2750_v9  ;;  %v4772_v19 = vadd.s32 4294967224, %v15450_v15  ;;  %v15727_v9 = vld [vmem:[#allocation3 + $0x400] sm:$0xff] }
  0xf7   :  { %v15642_v29 = vsel %vm20957_vm5, %v4748_v20, %v4743_v24  ;;  %743 = vadd.xlane.f32.xlu1 %v742_v23  ;;  %v697_v20 = vsel %vm570_vm0, %v100_v10, 0.0  ;;  %21031 = vst [vmem:[#allocation17_spill] sm:$0xff] %v15727_v9  ;;  %v15729_v23 = vld [vmem:[#allocation3 + $0x420] sm:$0xff]  ;;  %v15731_v24 = vld [vmem:[#allocation3 + $0x408] sm:$0xff]  ;;  %v15766_v52 = vsub.s32 %v4758_v28, %v15457_v30  ;;  %v2130_v3 = vmul.f32 0.0625, %v15632_v22 }
  0xf8   :  { %v6028_v36 = vrot.slane %v4458_v31, %v15580_v32  ;;  %v6033_v25 = vrot.slane %v4459_v33, %v15584_v34  ;;  %740 = vadd.xlane.f32.xlu0 %v739_v26  ;;  %v15649_v37 = vpop.xlane.xlu1 %1409  ;;  %21032 = vst [vmem:[#allocation18_spill] sm:$0xff] %v15729_v23  ;;  %21033 = vst [vmem:[#allocation19_spill] sm:$0xff] %v15731_v24  ;;  %v356_v26 = vld [vmem:[%s20918_s0 + $0x950] sm:$0xff]  ;;  %v13973_v31 = vcombine.high %v15727_v9, %v15729_v23  ;;  %v15739_v33 = vld [vmem:[#allocation3 + $0x428] sm:$0xff] }
  0xf9   :  { %v15651_v38 = vpop.xlane.xlu0 %1406  ;;  %21034 = vst [vmem:[#allocation20_spill] sm:$0xff] %v15739_v33  ;;  %v13975_v41 = vcombine.high %v15731_v24, %v15739_v33  ;;  %v1465_v57 = vsel %vm570_vm0, %v356_v26, 0.0  ;;  %v358_v10 = vld [vmem:[%s20918_s0 + $0x960] sm:$0xff]  ;;  %v4793_v28 = vadd.s32 4294967200, %v15450_v15  ;;  %v2387_v35 = vmul.f32 0.0625, %v15649_v37 }
  0xfa   :  { %v6029_v42 = vsel %vm20973_vm4, %v6028_v36, %v15596_v45  ;;  %v355_v45 = vld [vmem:[%s20918_s0 + $0x948] sm:$0xff]  ;;  %12480 = vmatprep.subr.bf16.mxu0 %v13973_v31  ;;  %v120_v31 = vld [vmem:[%s20918_s0 + $0x1f0] sm:$0xff] }
  0xfb   :  { %v15664_v44 = vsel %vm20957_vm5, %v6033_v25, %v6029_v42  ;;  %1511 = vadd.xlane.f32.xlu1 %v1510_v39  ;;  %v1462_v55 = vsel %vm570_vm0, %v355_v45, 0.0  ;;  %v119_v36 = vld [vmem:[%s20918_s0 + $0x1e8] sm:$0xff]  ;;  %v118_v25 = vld [vmem:[%s20918_s0 + $0x1e0] sm:$0xff]  ;;  %v15755_v42 = vsub.s32 %v4751_v11, %v15457_v30  ;;  %12808 = vmatprep.subr.bf16.mxu1 %v13975_v41  ;;  %v15795_v11 = vsub.s32 %v4779_v27, %v15457_v30 }
  0xfc   :  { %1508 = vadd.xlane.f32.xlu0 %v1507_v40  ;;  %v15666_v46 = vpop.xlane.xlu1 %593  ;;  %v375_v45 = vld [vmem:[%s20918_s0 + $0x9e8] sm:$0xff]  ;;  %v4800_v27 = vadd.s32 4294967192, %v15450_v15  ;;  %v15826_v41 = vsel %vm570_vm0, %v358_v10, 0.0  ;;  %v360_v10 = vld [vmem:[%s20918_s0 + $0x970] sm:$0xff] }
  0xfd   :  { %v15668_v47 = vpop.xlane.xlu0 %590  ;;  %v1522_v22 = vsel %vm570_vm0, %v375_v45, 0.0  ;;  %v15831_v45 = vpack.c.bf16 %v2131_v1, %v2130_v3  ;;  %v15850_v1 = vsub.s32 %v4793_v28, %v15457_v30  ;;  %v15853_v3 = vsel %vm570_vm0, %v120_v31, 0.0  ;;  %v139_v40 = vld [vmem:[%s20918_s0 + $0x288] sm:$0xff] }
  0xfe   :  { %v4807_v28 = vadd.s32 4294967184, %v15450_v15  ;;  %v4814_v31 = vadd.s32 4294967176, %v15450_v15 }
  0xff   :  { %695 = vadd.xlane.f32.xlu1 %v694_v50  ;;  %v4220_v15 = vunpack.c.l.b16 %v15831_v45 }
 0x100   :  { %692 = vadd.xlane.f32.xlu0 %v691_v51  ;;  %v15678_v53 = vpop.xlane.xlu1 %1361  ;;  %v1468_v51 = vsel %vm570_vm0, %v357_v17, 0.0  ;;  %v15911_v63 = vsub.s32 %v4807_v28, %v15457_v30  ;;  %v15914_v49 = vsub.s32 %v4814_v31, %v15457_v30  ;;  %v141_v28 = vld [vmem:[%s20918_s0 + $0x298] sm:$0xff]  ;;  %v140_v31 = vld [vmem:[%s20918_s0 + $0x290] sm:$0xff] }
 0x101   :  { %v15680_v54 = vpop.xlane.xlu0 %1358 }
 0x102   :  { %21035 = vst [vmem:[#allocation21_spill] sm:$0xff] %v15914_v49 }
 0x103   :  { %1463 = vadd.xlane.f32.xlu1 %v1462_v55  ;;  %v15769_v55 = vsub.s32 %v4765_v18, %v15457_v30 }
 0x104   :  { %1460 = vadd.xlane.f32.xlu0 %v1459_v56  ;;  %v15690_v59 = vpop.xlane.xlu1 %647  ;;  %v15772_v56 = vsub.s32 %v4772_v19, %v15457_v30  ;;  %v1519_v19 = vsel %vm570_vm0, %v374_v58, 0.0  ;;  %v2114_v58 = vmul.f32 0.0625, %v15668_v47  ;;  %v2370_v47 = vmul.f32 0.0625, %v15680_v54 }
 0x105   :  { %v15692_v60 = vpop.xlane.xlu0 %644  ;;  %v15866_v54 = vsub.s32 %v4800_v27, %v15457_v30 }
 0x106   :  { %v2132_v0 = vmul.f32 0.0625, %v15692_v60  ;;  %v123_v60 = vld [vmem:[%s20918_s0 + $0x208] sm:$0xff] }
 0x107   :  { %749 = vadd.xlane.f32.xlu1 %v748_v61  ;;  %v103_v61 = vld [vmem:[%s20918_s0 + $0x168] sm:$0xff]  ;;  %v15952_v24 = vsel %vm570_vm0, %v123_v60, 0.0 }
 0x108   :  { %746 = vadd.xlane.f32.xlu0 %v745_v62  ;;  %v15702_v4 = vpop.xlane.xlu1 %1415  ;;  %v102_v62 = vld [vmem:[%s20918_s0 + $0x160] sm:$0xff] }
 0x109   :  { %v15704_v5 = vpop.xlane.xlu0 %1412  ;;  %v15814_v26 = vsel %vm570_vm0, %v102_v62, 0.0  ;;  %v104_v62 = vld [vmem:[%s20918_s0 + $0x170] sm:$0xff] }
 0x10a   :  { %v15885_v27 = vsel %vm570_vm0, %v104_v62, 0.0  ;;  %v2133_v62 = vmul.f32 0.0625, %v15690_v59  ;;  %v394_v59 = vld [vmem:[%s20918_s0 + $0xa80] sm:$0xff] }
 0x10b   :  { %1517 = vadd.xlane.f32.xlu1 %v1516_v6  ;;  %v754_v6 = vsel %vm570_vm0, %v119_v36, 0.0  ;;  %v2386_v36 = vmul.f32 0.0625, %v15651_v38  ;;  %v376_v38 = vld [vmem:[%s20918_s0 + $0x9f0] sm:$0xff]  ;;  %v15949_v33 = vsel %vm570_vm0, %v394_v59, 0.0 }
 0x10c   :  { %1514 = vadd.xlane.f32.xlu0 %v1513_v7  ;;  %v15716_v12 = vpop.xlane.xlu1 %599  ;;  %v751_v7 = vsel %vm570_vm0, %v118_v25, 0.0  ;;  %v15823_v25 = vsel %vm570_vm0, %v359_v8, 0.0  ;;  %v361_v8 = vld [vmem:[%s20918_s0 + $0x978] sm:$0xff]  ;;  %v15945_v48 = vpack.c.bf16 %v2133_v62, %v2132_v0  ;;  %v15967_v62 = vsel %vm570_vm0, %v140_v31, 0.0 }
 0x10d   :  { %v15718_v13 = vpop.xlane.xlu0 %596  ;;  %v15876_v39 = vpack.c.bf16 %v2387_v35, %v2386_v36  ;;  %v15894_v35 = vsel %vm570_vm0, %v361_v8, 0.0  ;;  %v15897_v36 = vsel %vm570_vm0, %v360_v10, 0.0 }
 0x10e   :  { %v4222_v31 = vunpack.c.l.b16 %v15945_v48 }
 0x10f   :  { %701 = vadd.xlane.f32.xlu1 %v700_v14  ;;  %v121_v14 = vld [vmem:[%s20918_s0 + $0x1f8] sm:$0xff]  ;;  %v4477_v59 = vunpack.c.h.b16 %v15876_v39 }
 0x110   :  { %698 = vadd.xlane.f32.xlu0 %v697_v20  ;;  %v15757_v43 = vpop.xlane.xlu1 %1367  ;;  %v15811_v20 = vsel %vm570_vm0, %v103_v61, 0.0  ;;  %v15836_v37 = vsel %vm570_vm0, %v121_v14, 0.0  ;;  %v105_v61 = vld [vmem:[%s20918_s0 + $0x178] sm:$0xff] }
 0x111   :  { %v15759_v50 = vpop.xlane.xlu0 %1364  ;;  %v15882_v34 = vsel %vm570_vm0, %v105_v61, 0.0 }
 0x113   :  { %1469 = vadd.xlane.f32.xlu1 %v1468_v51  ;;  %v377_v51 = vld [vmem:[%s20918_s0 + $0x9f8] sm:$0xff] }
 0x114   :  { %1466 = vadd.xlane.f32.xlu0 %v1465_v57  ;;  %v15805_v17 = vpop.xlane.xlu1 %653  ;;  %v2115_v57 = vmul.f32 0.0625, %v15666_v46  ;;  %v2371_v46 = vmul.f32 0.0625, %v15678_v53 }
 0x115   :  { %v15807_v18 = vpop.xlane.xlu0 %650 }
 0x116   :  { %v15891_v32 = vpack.c.bf16 %v2115_v57, %v2114_v58  ;;  %v15902_v61 = vpack.c.bf16 %v2371_v46, %v2370_v47  ;;  %v15907_v57 = vsel %vm570_vm0, %v139_v40, 0.0  ;;  %v4221_v58 = vunpack.c.h.b16 %v15831_v45  ;;  %v122_v47 = vld [vmem:[%s20918_s0 + $0x200] sm:$0xff] }
 0x117   :  { %755 = vadd.xlane.f32.xlu1 %v754_v6  ;;  %v15869_v6 = vsel %vm570_vm0, %v377_v51, 0.0  ;;  %v138_v51 = vld [vmem:[%s20918_s0 + $0x280] sm:$0xff]  ;;  %v4476_v40 = vunpack.c.l.b16 %v15876_v39  ;;  %v15961_v0 = vsel %vm570_vm0, %v122_v47, 0.0  ;;  %v2373_v39 = vmul.f32 0.0625, %v15757_v43 }
 0x118   :  { %752 = vadd.xlane.f32.xlu0 %v751_v7  ;;  %v15861_v14 = vpop.xlane.xlu1 %1421  ;;  %v15879_v7 = vsel %vm570_vm0, %v376_v38, 0.0  ;;  %v395_v38 = vld [vmem:[%s20918_s0 + $0xa88] sm:$0xff]  ;;  %v15917_v46 = vsel %vm570_vm0, %v138_v51, 0.0  ;;  %v2117_v51 = vmul.f32 0.0625, %v15716_v12  ;;  %v4460_v30 = vunpack.c.l.b16 %v15902_v61  ;;  %21036 = vst [vmem:[#allocation22_spill] sm:$0xff] %v15961_v0 }
 0x119   :  { %v15863_v53 = vpop.xlane.xlu0 %1418  ;;  %v15929_v45 = vsel %vm570_vm0, %v395_v38, 0.0  ;;  %v2116_v38 = vmul.f32 0.0625, %v15718_v13  ;;  %v4205_v60 = vunpack.c.h.b16 %v15891_v32  ;;  %v4461_v47 = vunpack.c.h.b16 %v15902_v61 }
 0x11a   :  { %v2390_v61 = vmul.f32 0.0625, %v15863_v53  ;;  %v6122_v43 = vrot.slane %v4477_v59, %v15766_v52 }
 0x11b   :  { %1523 = vadd.xlane.f32.xlu1 %v1522_v22  ;;  %v2389_v22 = vmul.f32 0.0625, %v15702_v4  ;;  %v4853_v4 = vrot.slane %v4220_v15, %v15755_v42  ;;  %v4858_v15 = vrot.slane %v4221_v58, %v15766_v52  ;;  %v6117_v58 = vrot.slane %v4476_v40, %v15755_v42 }
 0x11c   :  { %1520 = vadd.xlane.f32.xlu0 %v1519_v19  ;;  %v606_v8 = vpop.xlane.xlu1 %605  ;;  %v2388_v19 = vmul.f32 0.0625, %v15704_v5  ;;  %v4204_v5 = vunpack.c.l.b16 %v15891_v32  ;;  %v15976_v0 = vpack.c.bf16 %v2117_v51, %v2116_v38  ;;  %v2372_v40 = vmul.f32 0.0625, %v15759_v50 }
 0x11d   :  { %v603_v10 = vpop.xlane.xlu0 %602  ;;  %v4854_v23 = vsel %vm21023_vm6, %v4853_v4, %v15611_v2  ;;  %v2135_v32 = vmul.f32 0.0625, %v15805_v17  ;;  %v2134_v2 = vmul.f32 0.0625, %v15807_v18  ;;  %v6118_v4 = vsel %vm21023_vm6, %v6117_v58, %v15623_v16  ;;  %v379_v17 = vld [vmem:[%s20918_s0 + $0xa08] sm:$0xff] }
 0x11e   :  { %v4755_v9 = vrot.slane %v4204_v5, %v15755_v42  ;;  %v4762_v50 = vrot.slane %v4205_v60, %v15766_v52  ;;  %v2118_v53 = vmul.f32 0.0625, %v603_v10  ;;  %v6043_v5 = vrot.slane %v4461_v47, %v15766_v52 }
 0x11f   :  { %707 = vadd.xlane.f32.xlu1 %v15811_v20  ;;  %v15964_v20 = vsel %vm570_vm0, %v141_v28, 0.0  ;;  %v6038_v28 = vrot.slane %v4460_v30, %v15755_v42  ;;  %v4223_v16 = vunpack.c.h.b16 %v15945_v48  ;;  %v4863_v51 = vrot.slane %v4222_v31, %v15769_v55 }
 0x120   :  { %704 = vadd.xlane.f32.xlu0 %v15814_v26  ;;  %v15956_v12 = vpop.xlane.xlu1 %1373  ;;  %v2760_v26 = vpack.c.bf16 %v2389_v22, %v2388_v19  ;;  %v2391_v22 = vmul.f32 0.0625, %v15861_v14  ;;  %v4757_v18 = vsel %vm21023_vm6, %v4755_v9, %v15642_v29  ;;  %v2119_v14 = vmul.f32 0.0625, %v606_v8 }
 0x121   :  { %v15958_v13 = vpop.xlane.xlu0 %1370  ;;  %v2752_v38 = vpack.c.bf16 %v2373_v39, %v2372_v40  ;;  %v6039_v59 = vsel %vm21023_vm6, %v6038_v28, %v15664_v44  ;;  %v2633_v58 = vpack.c.bf16 %v2135_v32, %v2134_v2  ;;  %v16008_v8 = vsel %vm570_vm0, %v379_v17, 0.0 }
 0x122   :  { %v16004_v60 = vpack.c.bf16 %v2391_v22, %v2390_v61  ;;  %v4859_v48 = vsel %vm20958_vm7, %v4858_v15, %v4854_v23  ;;  %v6123_v10 = vsel %vm20958_vm7, %v6122_v43, %v6118_v4  ;;  %v4479_v47 = vunpack.c.h.b16 %v2760_v26 }
 0x123   :  { %1475 = vadd.xlane.f32.xlu1 %v15823_v25  ;;  %v4478_v25 = vunpack.c.l.b16 %v2760_v26  ;;  %v4764_v44 = vsel %vm20958_vm7, %v4762_v50, %v4757_v18  ;;  %v4207_v28 = vunpack.c.h.b16 %v15976_v0  ;;  %v6044_v39 = vsel %vm20958_vm7, %v6043_v5, %v6039_v59 }
 0x124   :  { %1472 = vadd.xlane.f32.xlu0 %v15826_v41  ;;  %v660_v19 = vpop.xlane.xlu1 %659  ;;  %v4206_v41 = vunpack.c.l.b16 %v15976_v0  ;;  %v4864_v40 = vsel %vm20942_vm8, %v4863_v51, %v4859_v48  ;;  %v4868_v32 = vrot.slane %v4223_v16, %v15772_v56  ;;  %v4462_v23 = vunpack.c.l.b16 %v2752_v38 }
 0x125   :  { %v657_v30 = vpop.xlane.xlu0 %656  ;;  %v4224_v15 = vunpack.c.l.b16 %v2633_v58  ;;  %v4480_v26 = vunpack.c.l.b16 %v16004_v60  ;;  %v2137_v2 = vmul.f32 0.0625, %v660_v19  ;;  %v6132_v43 = vrot.slane %v4479_v47, %v15772_v56 }
 0x126   :  { %v4769_v31 = vrot.slane %v4206_v41, %v15769_v55  ;;  %v2136_v22 = vmul.f32 0.0625, %v657_v30  ;;  %v4463_v18 = vunpack.c.h.b16 %v2752_v38  ;;  %v6048_v19 = vrot.slane %v4462_v23, %v15769_v55 }
 0x127   :  { %761 = vadd.xlane.f32.xlu1 %v15836_v37  ;;  %v6127_v37 = vrot.slane %v4478_v25, %v15769_v55  ;;  %v4225_v30 = vunpack.c.h.b16 %v2633_v58  ;;  %v4481_v5 = vunpack.c.h.b16 %v16004_v60  ;;  %v6137_v16 = vrot.slane %v4480_v26, %v15795_v11 }
 0x128   :  { %758 = vadd.xlane.f32.xlu0 %v15853_v3  ;;  %v1428_v29 = vpop.xlane.xlu1 %1427  ;;  %v2625_v3 = vpack.c.bf16 %v2119_v14, %v2118_v53  ;;  %v4771_v17 = vsel %vm20942_vm8, %v4769_v31, %v4764_v44  ;;  %v2374_v14 = vmul.f32 0.0625, %v15958_v13  ;;  %v4873_v53 = vrot.slane %v4224_v15, %v15795_v11 }
 0x129   :  { %v1425_v9 = vpop.xlane.xlu0 %1424  ;;  %v6128_v4 = vsel %vm20942_vm8, %v6127_v37, %v6123_v10  ;;  %v2393_v50 = vmul.f32 0.0625, %v1428_v29  ;;  %v2634_v51 = vpack.c.bf16 %v2137_v2, %v2136_v22  ;;  %v4869_v29 = vsel %vm4777_vm9, %v4868_v32, %v4864_v40 }
 0x12a   :  { %v2392_v25 = vmul.f32 0.0625, %v1425_v9  ;;  %v4208_v41 = vunpack.c.l.b16 %v2625_v3  ;;  %v6133_v58 = vsel %vm4777_vm9, %v6132_v43, %v6128_v4  ;;  %v6049_v10 = vsel %vm20942_vm8, %v6048_v19, %v6044_v39 }
 0x12b   :  { %1529 = vadd.xlane.f32.xlu1 %v15869_v6  ;;  %v4776_v6 = vrot.slane %v4207_v28, %v15772_v56  ;;  %v6053_v47 = vrot.slane %v4463_v18, %v15772_v56  ;;  %v4874_v44 = vsel %vm4784_vm10, %v4873_v53, %v4869_v29  ;;  %v6138_v28 = vsel %vm4784_vm10, %v6137_v16, %v6133_v58 }
 0x12c   :  { %1526 = vadd.xlane.f32.xlu0 %v15879_v7  ;;  %v612_v0 = vpop.xlane.xlu1 %611  ;;  %v2375_v7 = vmul.f32 0.0625, %v15956_v12  ;;  %v4209_v12 = vunpack.c.h.b16 %v2625_v3  ;;  %v2762_v13 = vpack.c.bf16 %v2393_v50, %v2392_v25  ;;  %v4783_v9 = vrot.slane %v4208_v41, %v15795_v11 }
 0x12d   :  { %v609_v61 = vpop.xlane.xlu0 %608  ;;  %v2121_v48 = vmul.f32 0.0625, %v612_v0  ;;  %v6142_v31 = vrot.slane %v4481_v5, %v15798_v21  ;;  %v4226_v3 = vunpack.c.l.b16 %v2634_v51  ;;  %v4227_v43 = vunpack.c.h.b16 %v2634_v51 }
 0x12e   :  { %v2120_v60 = vmul.f32 0.0625, %v609_v61  ;;  %v2753_v37 = vpack.c.bf16 %v2375_v7, %v2374_v14  ;;  %v4790_v39 = vrot.slane %v4209_v12, %v15798_v21  ;;  %v4482_v23 = vunpack.c.l.b16 %v2762_v13 }
 0x12f   :  { %713 = vadd.xlane.f32.xlu1 %v15882_v34  ;;  %v4778_v34 = vsel %vm4777_vm9, %v4776_v6, %v4771_v17  ;;  %v4883_v17 = vrot.slane %v4226_v3, %v15850_v1  ;;  %v4483_v6 = vunpack.c.h.b16 %v2762_v13  ;;  %v6143_v19 = vsel %vm4791_vm11, %v6142_v31, %v6138_v28 }
 0x130   :  { %710 = vadd.xlane.f32.xlu0 %v15885_v27  ;;  %v1380_v38 = vpop.xlane.xlu1 %1379  ;;  %v4878_v27 = vrot.slane %v4225_v30, %v15798_v21  ;;  %v16048_v2 = vpack.c.bf16 %v2121_v48, %v2120_v60  ;;  %v4464_v61 = vunpack.c.l.b16 %v2753_v37  ;;  %v4465_v4 = vunpack.c.h.b16 %v2753_v37 }
 0x131   :  { %v1377_v59 = vpop.xlane.xlu0 %1376  ;;  %v2377_v22 = vmul.f32 0.0625, %v1380_v38  ;;  %v6147_v30 = vrot.slane %v4482_v23, %v15850_v1  ;;  %vm7270_vm8 = vcmask 1041409   ;;  %v4888_v38 = vrot.slane %v4227_v43, %v15866_v54  ;;  %v21037_v23 = vld [vmem:[#allocation22_spill] sm:$0xff] }
 0x132   :  { %v2376_v0 = vmul.f32 0.0625, %v1377_v59  ;;  %v4879_v25 = vsel %vm4791_vm11, %v4878_v27, %v4874_v44  ;;  %v4210_v53 = vunpack.c.l.b16 %v16048_v2  ;;  %v6058_v51 = vrot.slane %v4464_v61, %v15795_v11 }
 0x133   :  { %1481 = vadd.xlane.f32.xlu1 %v15894_v35  ;;  %v4785_v35 = vsel %vm4784_vm10, %v4783_v9, %v4778_v34  ;;  %v4884_v29 = vsel %vm4798_vm12, %v4883_v17, %v4879_v25  ;;  %v6152_v58 = vrot.slane %v4483_v6, %v15866_v54  ;;  %v6148_v48 = vsel %vm4798_vm12, %v6147_v30, %v6143_v19 }
 0x134   :  { %1478 = vadd.xlane.f32.xlu0 %v15897_v36  ;;  %v666_v40 = vpop.xlane.xlu1 %665  ;;  %v6054_v36 = vsel %vm4777_vm9, %v6053_v47, %v6049_v10  ;;  %v2754_v5 = vpack.c.bf16 %v2377_v22, %v2376_v0  ;;  %v4211_v60 = vunpack.c.h.b16 %v16048_v2  ;;  %v4797_v27 = vrot.slane %v4210_v53, %v15850_v1 }
 0x135   :  { %v663_v32 = vpop.xlane.xlu0 %662  ;;  %v2139_v15 = vmul.f32 0.0625, %v666_v40  ;;  %v6059_v28 = vsel %vm4784_vm10, %v6058_v51, %v6054_v36  ;;  %v4889_v31 = vsel %vm4805_vm13, %v4888_v38, %v4884_v29  ;;  %v6153_v2 = vsel %vm4805_vm13, %v6152_v58, %v6148_v48  ;;  %v397_v51 = vld [vmem:[%s20918_s0 + $0xa98] sm:$0xff] }
 0x136   :  { %v2138_v26 = vmul.f32 0.0625, %v663_v32  ;;  %v4467_v40 = vunpack.c.h.b16 %v2754_v5 }
 0x137   :  { %815 = vadd.xlane.f32.xlu1 %v15907_v57  ;;  %v4792_v57 = vsel %vm4791_vm11, %v4790_v39, %v4785_v35 }
 0x138   :  { %v2635_v50 = vpack.c.bf16 %v2139_v15, %v2138_v26  ;;  %812 = vadd.xlane.f32.xlu0 %v15917_v46  ;;  %v1434_v18 = vpop.xlane.xlu1 %1433  ;;  %v6063_v46 = vrot.slane %v4465_v4, %v15798_v21  ;;  %v4799_v4 = vsel %vm4798_vm12, %v4797_v27, %v4792_v57  ;;  %v6073_v19 = vrot.slane %v4467_v40, %v15866_v54  ;;  %v16128_v40 = vld [vmem:[#allocation3 + $0x440] sm:$0xff] }
 0x139   :  { %v1431_v41 = vpop.xlane.xlu0 %1430  ;;  %v2395_v14 = vmul.f32 0.0625, %v1434_v18  ;;  %v378_v18 = vld [vmem:[%s20918_s0 + $0xa00] sm:$0xff] }
 0x13a   :  { %v4228_v7 = vunpack.c.l.b16 %v2635_v50  ;;  %v2394_v16 = vmul.f32 0.0625, %v1431_v41  ;;  %v4229_v59 = vunpack.c.h.b16 %v2635_v50  ;;  %v6064_v41 = vsel %vm4791_vm11, %v6063_v46, %v6059_v28 }
 0x13b   :  { %1583 = vadd.xlane.f32.xlu1 %v15929_v45  ;;  %v4466_v45 = vunpack.c.l.b16 %v2754_v5 }
 0x13c   :  { %v4893_v12 = vrot.slane %v4228_v7, %v15911_v63  ;;  %v2763_v13 = vpack.c.bf16 %v2395_v14, %v2394_v16  ;;  %1580 = vadd.xlane.f32.xlu0 %v15949_v33  ;;  %v618_v34 = vpop.xlane.xlu1 %617  ;;  %v4898_v3 = vrot.slane %v4229_v59, %v15914_v49 }
 0x13d   :  { %v615_v9 = vpop.xlane.xlu0 %614  ;;  %v2123_v10 = vmul.f32 0.0625, %v618_v34  ;;  %v6068_v43 = vrot.slane %v4466_v45, %v15850_v1  ;;  %v396_v34 = vld [vmem:[%s20918_s0 + $0xa90] sm:$0xff] }
 0x13e   :  { %v2122_v47 = vmul.f32 0.0625, %v615_v9  ;;  %v4484_v37 = vunpack.c.l.b16 %v2763_v13  ;;  %v4485_v44 = vunpack.c.h.b16 %v2763_v13  ;;  %v4894_v35 = vsel %vm4812_vm14, %v4893_v12, %v4889_v31 }
 0x13f   :  { %767 = vadd.xlane.f32.xlu1 %v15952_v24  ;;  %v4804_v24 = vrot.slane %v4211_v60, %v15866_v54  ;;  %v4899_v17 = vsel %vm4819_vm15, %v4898_v3, %v4894_v35  ;;  %v6069_v38 = vsel %vm4798_vm12, %v6068_v43, %v6064_v41  ;;  %v1588_v60 = vsel %vm570_vm0, %v397_v51, 0.0  ;;  %v16134_v35 = vld [vmem:[#allocation3 + $0x448] sm:$0xff]  ;;  %v380_v43 = vld [vmem:[%s20918_s0 + $0xa10] sm:$0xff] }
 0x140   :  { %v2627_v33 = vpack.c.bf16 %v2123_v10, %v2122_v47  ;;  %v6157_v32 = vrot.slane %v4484_v37, %v15911_v63  ;;  %v6162_v39 = vrot.slane %v4485_v44, %v15914_v49  ;;  %764 = vadd.xlane.f32.xlu0 %v21037_v23  ;;  %v1386_v15 = vpop.xlane.xlu1 %1385  ;;  %v6074_v47 = vsel %vm4805_vm13, %v6073_v19, %v6069_v38  ;;  %v21040_v38 = vld [vmem:[#allocation17_spill] sm:$0xff] }
 0x141   :  { %v1383_v26 = vpop.xlane.xlu0 %1382  ;;  %v2379_v0 = vmul.f32 0.0625, %v1386_v15  ;;  %v4806_v46 = vsel %vm4805_vm13, %v4804_v24, %v4799_v4  ;;  %v1585_v37 = vsel %vm570_vm0, %v396_v34, 0.0  ;;  %v21043_v34 = vld [vmem:[#allocation19_spill] sm:$0xff] }
 0x142   :  { %v4212_v22 = vunpack.c.l.b16 %v2627_v33  ;;  %v2378_v61 = vmul.f32 0.0625, %v1383_v26  ;;  %v6158_v50 = vsel %vm4812_vm14, %v6157_v32, %v6153_v2  ;;  %v4213_v36 = vunpack.c.h.b16 %v2627_v33  ;;  %v124_v33 = vld [vmem:[%s20918_s0 + $0x210] sm:$0xff]  ;;  %v16130_v32 = vld [vmem:[#allocation3 + $0x460] sm:$0xff]  ;;  %v16136_v2 = vld [vmem:[#allocation3 + $0x468] sm:$0xff] }
 0x143   :  { %821 = vadd.xlane.f32.xlu1 %v15964_v20  ;;  %v6163_v6 = vsel %vm4819_vm15, %v6162_v39, %v6158_v50  ;;  %v769_v24 = vsel %vm570_vm0, %v124_v33, 0.0  ;;  %v143_v50 = vld [vmem:[%s20918_s0 + $0x2a8] sm:$0xff]  ;;  %v21046_v33 = vld [vmem:[#allocation11_spill] sm:$0xff] }
 0x144   :  { %v2755_v25 = vpack.c.bf16 %v2379_v0, %v2378_v61  ;;  %v4811_v30 = vrot.slane %v4212_v22, %v15911_v63  ;;  %818 = vadd.xlane.f32.xlu0 %v15967_v62  ;;  %v720_v7 = vpop.xlane.xlu1 %719  ;;  %v7272_v20 = vsel %vm7270_vm8, %v6163_v6, %v4899_v17  ;;  %v1531_v62 = vsel %vm570_vm0, %v378_v18, 0.0  ;;  %v381_v0 = vld [vmem:[%s20918_s0 + $0xa18] sm:$0xff]  ;;  %v16157_v6 = vld [vmem:[#allocation3 + $0x480] sm:$0xff] }
 0x145   :  { %v717_v14 = vpop.xlane.xlu0 %716  ;;  %v2157_v5 = vmul.f32 0.0625, %v720_v7  ;;  %v16099_v59 = vpack.c.b16 %v7272_v20, %v7272_v20  ;;  %v4818_v29 = vrot.slane %v4213_v36, %v15914_v49  ;;  %v13981_v36 = vcombine.high %v16128_v40, %v16130_v32  ;;  %v16159_v18 = vld [vmem:[#allocation3 + $0x4a0] sm:$0xff] }
 0x146   :  { %v4468_v57 = vunpack.c.l.b16 %v2755_v25  ;;  %v4469_v53 = vunpack.c.h.b16 %v2755_v25  ;;  %v2156_v16 = vmul.f32 0.0625, %v717_v14  ;;  %v4813_v10 = vsel %vm4812_vm14, %v4811_v30, %v4806_v46  ;;  %v142_v25 = vld [vmem:[%s20918_s0 + $0x2a0] sm:$0xff] }
 0x147   :  { %21038 = vst [vmem:[#allocation22_spill] sm:$0xff] %v16099_v59  ;;  %1535 = vadd.xlane.f32.xlu1 %v16008_v8  ;;  %12471 = vmatprep.mubr.bf16.mxu0 %v16099_v59  ;;  %v125_v8 = vld [vmem:[%s20918_s0 + $0x218] sm:$0xff]  ;;  %v4820_v31 = vsel %vm4819_vm15, %v4818_v29, %v4813_v10  ;;  %v13983_v17 = vcombine.high %v16134_v35, %v16136_v2  ;;  %v1540_v20 = vsel %vm570_vm0, %v381_v0, 0.0  ;;  %v398_v46 = vld [vmem:[%s20918_s0 + $0xaa0] sm:$0xff] }
 0x148   :  { %v6078_v58 = vrot.slane %v4468_v57, %v15911_v63  ;;  %v6083_v12 = vrot.slane %v4469_v53, %v15914_v49  ;;  %v16105_v13 = vpack.c.bf16 %v2157_v5, %v2156_v16  ;;  %12799 = vmatprep.mubr.bf16.mxu1 %v16099_v59  ;;  %v1488_v9 = vpop.xlane.xlu1 %1487  ;;  %1532 = vadd.xlane.f32.xlu0 %v1531_v62  ;;  %v772_v26 = vsel %vm570_vm0, %v125_v8, 0.0  ;;  %v399_v57 = vld [vmem:[%s20918_s0 + $0xaa8] sm:$0xff]  ;;  %v21041_v62 = vld [vmem:[#allocation18_spill] sm:$0xff] }
 0x149   :  { %v1485_v48 = vpop.xlane.xlu0 %1484  ;;  %v2413_v27 = vmul.f32 0.0625, %v1488_v9  ;;  %v16171_v53 = vld [vmem:[#allocation3 + $0x488] sm:$0xff]  ;;  %v21042_v29 = vcombine.low %v21040_v38, %v21041_v62  ;;  %v21044_v9 = vld [vmem:[#allocation20_spill] sm:$0xff]  ;;  %v13989_v10 = vcombine.high %v16157_v6, %v16159_v18  ;;  %v1594_v8 = vsel %vm570_vm0, %v399_v57, 0.0 }
 0x14a   :  { %v2412_v45 = vmul.f32 0.0625, %v1485_v48  ;;  %v6079_v44 = vsel %vm4812_vm14, %v6078_v58, %v6074_v47  ;;  %v4246_v41 = vunpack.c.l.b16 %v16105_v13  ;;  %v4247_v19 = vunpack.c.h.b16 %v16105_v13  ;;  %v16173_v5 = vld [vmem:[#allocation3 + $0x4a8] sm:$0xff]  ;;  %v16192_v47 = vld [vmem:[#allocation3 + $0x4c0] sm:$0xff] }
 0x14b   :  { %1589 = vadd.xlane.f32.xlu1 %v1588_v60  ;;  %v6084_v3 = vsel %vm4819_vm15, %v6083_v12, %v6079_v44  ;;  %v13980_v58 = vcombine.low %v16128_v40, %v16130_v32  ;;  %v1537_v12 = vsel %vm570_vm0, %v380_v43, 0.0  ;;  %v826_v13 = vsel %vm570_vm0, %v143_v50, 0.0  ;;  %v16198_v44 = vld [vmem:[#allocation3 + $0x4e0] sm:$0xff]  ;;  %v383_v50 = vld [vmem:[%s20918_s0 + $0xa28] sm:$0xff] }
 0x14c   :  { %v16121_v28 = vpack.c.bf16 %v2413_v27, %v2412_v45  ;;  %v672_v39 = vpop.xlane.xlu1 %671  ;;  %v7271_v15 = vsel %vm7270_vm8, %v6084_v3, %v4820_v31  ;;  %1586 = vadd.xlane.f32.xlu0 %v1585_v37  ;;  %v21045_v48 = vcombine.low %v21043_v34, %v21044_v9  ;;  %v13982_v60 = vcombine.low %v16134_v35, %v16136_v2  ;;  %v16200_v31 = vld [vmem:[#allocation3 + $0x4c8] sm:$0xff]  ;;  %v21047_v32 = vld [vmem:[#allocation12_spill] sm:$0xff] }
 0x14d   :  { %v669_v23 = vpop.xlane.xlu0 %668  ;;  %v2141_v22 = vmul.f32 0.0625, %v672_v39  ;;  %v16141_v4 = vpack.c.b16 %v7271_v15, %v7271_v15  ;;  %v823_v45 = vsel %vm570_vm0, %v142_v25, 0.0  ;;  %v13991_v37 = vcombine.high %v16171_v53, %v16173_v5  ;;  %v16202_v3 = vld [vmem:[#allocation3 + $0x4e8] sm:$0xff]  ;;  %v126_v43 = vld [vmem:[%s20918_s0 + $0x220] sm:$0xff] }
 0x14e   :  { %v2140_v61 = vmul.f32 0.0625, %v669_v23  ;;  %v4982_v40 = vrot.slane %v4246_v41, %v21046_v33  ;;  %v4986_v39 = vrot.slane %v4247_v19, %v21047_v32  ;;  %v13988_v35 = vcombine.low %v16157_v6, %v16159_v18  ;;  %v21048_v41 = vld [vmem:[#allocation13_spill] sm:$0xff]  ;;  %v16232_v57 = vld [vmem:[#allocation3 + $0x500] sm:$0xff] }
 0x14f   :  { %21039 = vst [vmem:[#allocation23_spill] sm:$0xff] %v16141_v4  ;;  %773 = vadd.xlane.f32.xlu1 %v772_v26  ;;  %12472 = vmatmul.mubr.bf16.vlgmr.msra.gmra.mrb[0].mxu0 %v16141_v4  ;;  %v16207_v26 = vsel %vm570_vm0, %v398_v46, 0.0  ;;  %v13990_v25 = vcombine.low %v16171_v53, %v16173_v5  ;;  %v13999_v6 = vcombine.high %v16200_v31, %v16202_v3  ;;  %v4503_v18 = vunpack.c.h.b16 %v16121_v28  ;;  %v382_v62 = vld [vmem:[%s20918_s0 + $0xa20] sm:$0xff] }
 0x150   :  { %v16163_v30 = vpack.c.bf16 %v2141_v22, %v2140_v61  ;;  %12800 = vmatmul.mubr.bf16.vlgmr.msra.gmra.mrb[0].mxu1 %v16141_v4  ;;  %v726_v7 = vpop.xlane.xlu1 %725  ;;  %770 = vadd.xlane.f32.xlu0 %v769_v24  ;;  %v127_v24 = vld [vmem:[%s20918_s0 + $0x228] sm:$0xff]  ;;  %v4987_v53 = vsel %vm4721_vm1, %v4986_v39, %v4982_v40  ;;  %v16242_v38 = vsel %vm570_vm0, %v383_v50, 0.0  ;;  %v13996_v34 = vcombine.low %v16192_v47, %v16198_v44 }
 0x151   :  { %v723_v14 = vpop.xlane.xlu0 %722  ;;  %v2159_v16 = vmul.f32 0.0625, %v726_v7  ;;  %12481 = vmatpush1.bf16.msra.mxu0 %v21042_v29  ;;  %12809 = vmatpush1.bf16.msra.mxu1 %v21045_v48  ;;  %v21049_v7 = vld [vmem:[#allocation14_spill] sm:$0xff]  ;;  %v778_v46 = vsel %vm570_vm0, %v127_v24, 0.0  ;;  %v16247_v29 = vld [vmem:[#allocation3 + $0x508] sm:$0xff]  ;;  %v13998_v9 = vcombine.low %v16200_v31, %v16202_v3  ;;  %v16256_v48 = vld [vmem:[#allocation3 + $0x540] sm:$0xff]  ;;  %v6250_v3 = vrot.slane %v4503_v18, %v21047_v32 }
 0x152   :  { %v2158_v51 = vmul.f32 0.0625, %v723_v14  ;;  %12482 = vmatprep.subr.bf16.mxu0 %v13981_v36  ;;  %12810 = vmatprep.subr.bf16.mxu1 %v13983_v17  ;;  %v4502_v36 = vunpack.c.l.b16 %v16121_v28  ;;  %v13997_v17 = vcombine.high %v16192_v47, %v16198_v44  ;;  %v16239_v28 = vsel %vm570_vm0, %v126_v43, 0.0  ;;  %v16267_v47 = vld [vmem:[#allocation3 + $0x548] sm:$0xff] }
 0x153   :  { %1541 = vadd.xlane.f32.xlu1 %v1540_v20  ;;  %v16269_v44 = vld [vmem:[#allocation3 + $0x568] sm:$0xff]  ;;  %v16274_v40 = vsel %vm570_vm0, %v382_v62, 0.0  ;;  %v4231_v24 = vunpack.c.h.b16 %v16163_v30 }
 0x154   :  { %v2645_v27 = vpack.c.bf16 %v2159_v16, %v2158_v51  ;;  %v1440_v23 = vpop.xlane.xlu1 %1439  ;;  %1538 = vadd.xlane.f32.xlu0 %v1537_v12  ;;  %v16234_v16 = vld [vmem:[#allocation3 + $0x520] sm:$0xff]  ;;  %v6246_v31 = vrot.slane %v4502_v36, %v21046_v33 }
 0x155   :  { %v1437_v15 = vpop.xlane.xlu0 %1436  ;;  %v2397_v0 = vmul.f32 0.0625, %v1440_v23  ;;  %12483 = vmatpush1.bf16.msra.mxu0 %v13980_v58  ;;  %12811 = vmatpush1.bf16.msra.mxu1 %v13982_v60  ;;  %v16249_v58 = vld [vmem:[#allocation3 + $0x528] sm:$0xff]  ;;  %v16258_v60 = vld [vmem:[#allocation3 + $0x560] sm:$0xff]  ;;  %v4230_v23 = vunpack.c.l.b16 %v16163_v30 }
 0x156   :  { %v4248_v2 = vunpack.c.l.b16 %v2645_v27  ;;  %v4249_v22 = vunpack.c.h.b16 %v2645_v27  ;;  %v2396_v61 = vmul.f32 0.0625, %v1437_v15  ;;  %12484 = vmatprep.subr.bf16.mxu0 %v13989_v10  ;;  %12812 = vmatprep.subr.bf16.mxu1 %v13991_v37  ;;  %v14005_v37 = vcombine.high %v16232_v57, %v16234_v16 }
 0x157   :  { %827 = vadd.xlane.f32.xlu1 %v826_v13  ;;  %v14007_v39 = vcombine.high %v16247_v29, %v16249_v58  ;;  %v14012_v36 = vcombine.low %v16256_v48, %v16258_v60  ;;  %v6251_v30 = vsel %vm4721_vm1, %v6250_v3, %v6246_v31 }
 0x158   :  { %v4991_v19 = vrot.slane %v4248_v2, %v21048_v41  ;;  %v4996_v14 = vrot.slane %v4249_v22, %v21049_v7  ;;  %v16230_v20 = vpack.c.bf16 %v2397_v0, %v2396_v61  ;;  %v1494_v5 = vpop.xlane.xlu1 %1493  ;;  %824 = vadd.xlane.f32.xlu0 %v823_v45  ;;  %v14004_v45 = vcombine.low %v16232_v57, %v16234_v16  ;;  %v145_v2 = vld [vmem:[%s20918_s0 + $0x2b8] sm:$0xff]  ;;  %v16286_v0 = vld [vmem:[#allocation3 + $0x580] sm:$0xff] }
 0x159   :  { %v1491_v51 = vpop.xlane.xlu0 %1490  ;;  %v2415_v13 = vmul.f32 0.0625, %v1494_v5  ;;  %12485 = vmatpush1.bf16.msra.mxu0 %v13988_v35  ;;  %12813 = vmatpush1.bf16.msra.mxu1 %v13990_v25  ;;  %v14006_v22 = vcombine.low %v16247_v29, %v16249_v58  ;;  %v16288_v61 = vld [vmem:[#allocation3 + $0x5a0] sm:$0xff]  ;;  %v14014_v25 = vcombine.low %v16267_v47, %v16269_v44  ;;  %v4903_v16 = vrot.slane %v4230_v23, %v21046_v33  ;;  %v16310_v29 = vld [vmem:[#allocation3 + $0x588] sm:$0xff] }
 0x15a   :  { %v4992_v12 = vsel %vm4728_vm2, %v4991_v19, %v4987_v53  ;;  %v2414_v27 = vmul.f32 0.0625, %v1491_v51  ;;  %12486 = vmatprep.subr.bf16.mxu0 %v13997_v17  ;;  %12814 = vmatprep.subr.bf16.mxu1 %v13999_v6  ;;  %v14015_v19 = vcombine.high %v16267_v47, %v16269_v44  ;;  %v14021_v57 = vcombine.high %v16286_v0, %v16288_v61  ;;  %v16312_v58 = vld [vmem:[#allocation3 + $0x5a8] sm:$0xff] }
 0x15b   :  { %v16261_v10 = vsel %vm20974_vm3, %v4996_v14, %v4992_v12  ;;  %1595 = vadd.xlane.f32.xlu1 %v1594_v8  ;;  %v14013_v8 = vcombine.high %v16256_v48, %v16258_v60  ;;  %v14020_v14 = vcombine.low %v16286_v0, %v16288_v61  ;;  %v4907_v12 = vrot.slane %v4231_v24, %v21047_v32  ;;  %v16318_v60 = vld [vmem:[#allocation3 + $0x5c0] sm:$0xff]  ;;  %v16344_v24 = vld [vmem:[#allocation3 + $0x5e8] sm:$0xff] }
 0x15c   :  { %v2773_v15 = vpack.c.bf16 %v2415_v13, %v2414_v27  ;;  %v678_v35 = vpop.xlane.xlu1 %677  ;;  %1592 = vadd.xlane.f32.xlu0 %v16207_v26  ;;  %v832_v26 = vsel %vm570_vm0, %v145_v2, 0.0  ;;  %v4486_v13 = vunpack.c.l.b16 %v16230_v20  ;;  %v16320_v27 = vld [vmem:[#allocation3 + $0x5e0] sm:$0xff] }
 0x15d   :  { %v2143_v43 = vmul.f32 0.0625, %v678_v35  ;;  %v675_v50 = vpop.xlane.xlu0 %674  ;;  %12487 = vmatpush1.bf16.msra.mxu0 %v13996_v34  ;;  %12815 = vmatpush1.bf16.msra.mxu1 %v13998_v9  ;;  %v4487_v34 = vunpack.c.h.b16 %v16230_v20 }
 0x15e   :  { %v4504_v17 = vunpack.c.l.b16 %v2773_v15  ;;  %v4505_v6 = vunpack.c.h.b16 %v2773_v15  ;;  %v2142_v18 = vmul.f32 0.0625, %v675_v50  ;;  %12488 = vmatprep.subr.bf16.mxu0 %v14005_v37  ;;  %12816 = vmatprep.subr.bf16.mxu1 %v14007_v39  ;;  %v14023_v39 = vcombine.high %v16310_v29, %v16312_v58 }
 0x15f   :  { %779 = vadd.xlane.f32.xlu1 %v778_v46  ;;  %v144_v46 = vld [vmem:[%s20918_s0 + $0x2b0] sm:$0xff]  ;;  %v6167_v50 = vrot.slane %v4486_v13, %v21046_v33  ;;  %v16369_v13 = vld [vmem:[#allocation3 + $0x608] sm:$0xff] }
 0x160   :  { %v6255_v53 = vrot.slane %v4504_v17, %v21048_v41  ;;  %v6260_v5 = vrot.slane %v4505_v6, %v21049_v7  ;;  %v2637_v51 = vpack.c.bf16 %v2143_v43, %v2142_v18  ;;  %v1446_v62 = vpop.xlane.xlu1 %1445  ;;  %776 = vadd.xlane.f32.xlu0 %v16239_v28  ;;  %v829_v20 = vsel %vm570_vm0, %v144_v46, 0.0  ;;  %v401_v28 = vld [vmem:[%s20918_s0 + $0xab8] sm:$0xff] }
 0x161   :  { %v2399_v9 = vmul.f32 0.0625, %v1446_v62  ;;  %v1443_v48 = vpop.xlane.xlu0 %1442  ;;  %12489 = vmatpush1.bf16.msra.mxu0 %v14004_v45  ;;  %12817 = vmatpush1.bf16.msra.mxu1 %v14006_v22  ;;  %v14022_v45 = vcombine.low %v16310_v29, %v16312_v58  ;;  %v14029_v22 = vcombine.high %v16318_v60, %v16320_v27  ;;  %v4908_v43 = vsel %vm4721_vm1, %v4907_v12, %v4903_v16  ;;  %v16353_v62 = vld [vmem:[#allocation3 + $0x620] sm:$0xff]  ;;  %v129_v12 = vld [vmem:[%s20918_s0 + $0x238] sm:$0xff] }
 0x162   :  { %v6256_v37 = vsel %vm4728_vm2, %v6255_v53, %v6251_v30  ;;  %v4232_v47 = vunpack.c.l.b16 %v2637_v51  ;;  %v4233_v44 = vunpack.c.h.b16 %v2637_v51  ;;  %v2398_v31 = vmul.f32 0.0625, %v1443_v48  ;;  %12490 = vmatprep.subr.bf16.mxu0 %v14013_v8  ;;  %12818 = vmatprep.subr.bf16.mxu1 %v14015_v19  ;;  %v16342_v8 = vld [vmem:[#allocation3 + $0x5c8] sm:$0xff]  ;;  %v16351_v51 = vld [vmem:[#allocation3 + $0x600] sm:$0xff] }
 0x163   :  { %v16324_v3 = vsel %vm20974_vm3, %v6260_v5, %v6256_v37  ;;  %1547 = vadd.xlane.f32.xlu1 %v16242_v38  ;;  %v400_v38 = vld [vmem:[%s20918_s0 + $0xab0] sm:$0xff]  ;;  %v6171_v17 = vrot.slane %v4487_v34, %v21047_v32  ;;  %v16371_v34 = vld [vmem:[#allocation3 + $0x628] sm:$0xff]  ;;  %v784_v61 = vsel %vm570_vm0, %v129_v12, 0.0 }
 0x164   :  { %v4912_v23 = vrot.slane %v4232_v47, %v21048_v41  ;;  %v4917_v15 = vrot.slane %v4233_v44, %v21049_v7  ;;  %v2765_v35 = vpack.c.bf16 %v2399_v9, %v2398_v31  ;;  %v732_v2 = vpop.xlane.xlu1 %731  ;;  %1544 = vadd.xlane.f32.xlu0 %v16274_v40  ;;  %v1600_v40 = vsel %vm570_vm0, %v401_v28, 0.0  ;;  %v128_v47 = vld [vmem:[%s20918_s0 + $0x230] sm:$0xff] }
 0x165   :  { %v2161_v6 = vmul.f32 0.0625, %v732_v2  ;;  %v729_v18 = vpop.xlane.xlu0 %728  ;;  %12491 = vmatpush1.bf16.msra.mxu0 %v14012_v36  ;;  %12819 = vmatpush1.bf16.msra.mxu1 %v14014_v25  ;;  %v1597_v46 = vsel %vm570_vm0, %v400_v38, 0.0  ;;  %v14031_v36 = vcombine.high %v16342_v8, %v16344_v24  ;;  %v6172_v9 = vsel %vm4721_vm1, %v6171_v17, %v6167_v50  ;;  %v21051_v2 = vld [vmem:[#allocation16_spill] sm:$0xff]  ;;  %v16403_v50 = vld [vmem:[#allocation3 + $0x668] sm:$0xff] }
 0x166   :  { %v4913_v19 = vsel %vm4728_vm2, %v4912_v23, %v4908_v43  ;;  %v4488_v30 = vunpack.c.l.b16 %v2765_v35  ;;  %v4489_v53 = vunpack.c.h.b16 %v2765_v35  ;;  %v2160_v5 = vmul.f32 0.0625, %v729_v18  ;;  %12492 = vmatprep.subr.bf16.mxu0 %v14021_v57  ;;  %12820 = vmatprep.subr.bf16.mxu1 %v14023_v39  ;;  %v16385_v39 = vld [vmem:[#allocation3 + $0x640] sm:$0xff]  ;;  %v16401_v43 = vld [vmem:[#allocation3 + $0x648] sm:$0xff]  ;;  %v384_v18 = vld [vmem:[%s20918_s0 + $0xa30] sm:$0xff] }
 0x167   :  { %v16356_v16 = vsel %vm20974_vm3, %v4917_v15, %v4913_v19  ;;  %833 = vadd.xlane.f32.xlu1 %v832_v26  ;;  %v14028_v26 = vcombine.low %v16318_v60, %v16320_v27  ;;  %v14030_v60 = vcombine.low %v16342_v8, %v16344_v24  ;;  %v14037_v27 = vcombine.high %v16351_v51, %v16353_v62  ;;  %v16387_v23 = vld [vmem:[#allocation3 + $0x660] sm:$0xff]  ;;  %v21050_v15 = vld [vmem:[#allocation15_spill] sm:$0xff] }
 0x168   :  { %v6176_v29 = vrot.slane %v4488_v30, %v21048_v41  ;;  %v6181_v25 = vrot.slane %v4489_v53, %v21049_v7  ;;  %v2646_v57 = vpack.c.bf16 %v2161_v6, %v2160_v5  ;;  %v1500_v58 = vpop.xlane.xlu1 %1499  ;;  %830 = vadd.xlane.f32.xlu0 %v829_v20  ;;  %v781_v8 = vsel %vm570_vm0, %v128_v47, 0.0  ;;  %v385_v24 = vld [vmem:[%s20918_s0 + $0xa38] sm:$0xff]  ;;  %v147_v47 = vld [vmem:[%s20918_s0 + $0x2c8] sm:$0xff] }
 0x169   :  { %v2417_v48 = vmul.f32 0.0625, %v1500_v58  ;;  %v1497_v37 = vpop.xlane.xlu0 %1496  ;;  %12493 = vmatpush1.bf16.msra.mxu0 %v14020_v14  ;;  %12821 = vmatpush1.bf16.msra.mxu1 %v14022_v45  ;;  %v14039_v14 = vcombine.high %v16369_v13, %v16371_v34  ;;  %v14036_v19 = vcombine.low %v16351_v51, %v16353_v62  ;;  %v14038_v30 = vcombine.low %v16369_v13, %v16371_v34  ;;  %v16429_v34 = vld [vmem:[#allocation3 + $0x688] sm:$0xff] }
 0x16a   :  { %v6177_v44 = vsel %vm4728_vm2, %v6176_v29, %v6172_v9  ;;  %v4250_v31 = vunpack.c.l.b16 %v2646_v57  ;;  %v4251_v20 = vunpack.c.h.b16 %v2646_v57  ;;  %v2416_v28 = vmul.f32 0.0625, %v1497_v37  ;;  %12494 = vmatprep.subr.bf16.mxu0 %v14029_v22  ;;  %12822 = vmatprep.subr.bf16.mxu1 %v14031_v36  ;;  %v16416_v29 = vld [vmem:[#allocation3 + $0x680] sm:$0xff]  ;;  %v3089_v9 = vld [vmem:[#allocation3 + $0x6a8] sm:$0xff] }
 0x16b   :  { %v16390_v0 = vsel %vm20974_vm3, %v6181_v25, %v6177_v44  ;;  %1601 = vadd.xlane.f32.xlu1 %v1600_v40  ;;  %v14045_v53 = vcombine.high %v16385_v39, %v16387_v23  ;;  %v16418_v25 = vld [vmem:[#allocation3 + $0x6a0] sm:$0xff]  ;;  %v1552_v62 = vsel %vm570_vm0, %v385_v24, 0.0  ;;  %v14047_v57 = vcombine.high %v16401_v43, %v16403_v50 }
 0x16c   :  { %v5001_v35 = vrot.slane %v4250_v31, %v21050_v15  ;;  %v5006_v38 = vrot.slane %v4251_v20, %v21051_v2  ;;  %v2774_v45 = vpack.c.bf16 %v2417_v48, %v2416_v28  ;;  %v684_v22 = vpop.xlane.xlu1 %683  ;;  %1598 = vadd.xlane.f32.xlu0 %v1597_v46  ;;  %v1549_v13 = vsel %vm570_vm0, %v384_v18, 0.0  ;;  %v403_v18 = vld [vmem:[%s20918_s0 + $0xac8] sm:$0xff] }
 0x16d   :  { %v2145_v17 = vmul.f32 0.0625, %v684_v22  ;;  %v681_v6 = vpop.xlane.xlu0 %680  ;;  %12495 = vmatpush1.bf16.msra.mxu0 %v14028_v26  ;;  %12823 = vmatpush1.bf16.msra.mxu1 %v14030_v60  ;;  %v14044_v60 = vcombine.low %v16385_v39, %v16387_v23  ;;  %v14053_v44 = vcombine.high %v16416_v29, %v16418_v25  ;;  %v14055_v23 = vcombine.high %v16429_v34, %v3089_v9 }
 0x16e   :  { %v5002_v5 = vsel %vm20973_vm4, %v5001_v35, %v16261_v10  ;;  %v4506_v40 = vunpack.c.l.b16 %v2774_v45  ;;  %v4507_v46 = vunpack.c.h.b16 %v2774_v45  ;;  %v2144_v36 = vmul.f32 0.0625, %v681_v6  ;;  %12496 = vmatprep.subr.bf16.mxu0 %v14037_v27  ;;  %12824 = vmatprep.subr.bf16.mxu1 %v14039_v14  ;;  %v146_v14 = vld [vmem:[%s20918_s0 + $0x2c0] sm:$0xff] }
 0x16f   :  { %v16421_v51 = vsel %vm20957_vm5, %v5006_v38, %v5002_v5  ;;  %785 = vadd.xlane.f32.xlu1 %v784_v61  ;;  %v14046_v27 = vcombine.low %v16401_v43, %v16403_v50  ;;  %v3092_v35 = vld [vmem:[#allocation3 + $0x6c0] sm:$0xff]  ;;  %v838_v24 = vsel %vm570_vm0, %v147_v47, 0.0  ;;  %v3093_v43 = vld [vmem:[#allocation3 + $0x6c8] sm:$0xff]  ;;  %v835_v6 = vsel %vm570_vm0, %v146_v14, 0.0 }
 0x170   :  { %v6265_v10 = vrot.slane %v4506_v40, %v21050_v15  ;;  %v6270_v58 = vrot.slane %v4507_v46, %v21051_v2  ;;  %v2638_v12 = vpack.c.bf16 %v2145_v17, %v2144_v36  ;;  %v1452_v26 = vpop.xlane.xlu1 %1451  ;;  %782 = vadd.xlane.f32.xlu0 %v781_v8  ;;  %v3096_v38 = vld [vmem:[#allocation3 + $0x6e0] sm:$0xff]  ;;  %v3097_v50 = vld [vmem:[#allocation3 + $0x6e8] sm:$0xff] }
 0x171   :  { %v2401_v48 = vmul.f32 0.0625, %v1452_v26  ;;  %v1449_v37 = vpop.xlane.xlu0 %1448  ;;  %12497 = vmatpush1.bf16.msra.mxu0 %v14036_v19  ;;  %12825 = vmatpush1.bf16.msra.mxu1 %v14038_v30  ;;  %v14052_v19 = vcombine.low %v16416_v29, %v16418_v25  ;;  %v14054_v30 = vcombine.low %v16429_v34, %v3089_v9  ;;  %v14061_v46 = vcombine.high %v3092_v35, %v3096_v38  ;;  %v3100_v25 = vld [vmem:[#allocation3 + $0x700] sm:$0xff]  ;;  %v3101_v26 = vld [vmem:[#allocation3 + $0x708] sm:$0xff] }
 0x172   :  { %v6266_v31 = vsel %vm20973_vm4, %v6265_v10, %v16324_v3  ;;  %v4234_v20 = vunpack.c.l.b16 %v2638_v12  ;;  %v4235_v28 = vunpack.c.h.b16 %v2638_v12  ;;  %v2400_v61 = vmul.f32 0.0625, %v1449_v37  ;;  %12498 = vmatprep.subr.bf16.mxu0 %v14045_v53  ;;  %12826 = vmatprep.subr.bf16.mxu1 %v14047_v57  ;;  %v3104_v57 = vld [vmem:[#allocation3 + $0x720] sm:$0xff]  ;;  %v131_v9 = vld [vmem:[%s20918_s0 + $0x248] sm:$0xff] }
 0x173   :  { %v16446_v39 = vsel %vm20957_vm5, %v6270_v58, %v6266_v31  ;;  %1553 = vadd.xlane.f32.xlu1 %v1552_v62  ;;  %v402_v62 = vld [vmem:[%s20918_s0 + $0xac0] sm:$0xff]  ;;  %v14063_v29 = vcombine.high %v3093_v43, %v3097_v50  ;;  %v1606_v12 = vsel %vm570_vm0, %v403_v18, 0.0 }
 0x174   :  { %v4922_v3 = vrot.slane %v4234_v20, %v21050_v15  ;;  %v4927_v45 = vrot.slane %v4235_v28, %v21051_v2  ;;  %v2766_v22 = vpack.c.bf16 %v2401_v48, %v2400_v61  ;;  %v16451_v8 = vpop.xlane.xlu1 %737  ;;  %1550 = vadd.xlane.f32.xlu0 %v1549_v13  ;;  %v3105_v13 = vld [vmem:[#allocation3 + $0x728] sm:$0xff]  ;;  %v14060_v48 = vcombine.low %v3092_v35, %v3096_v38  ;;  %v130_v31 = vld [vmem:[%s20918_s0 + $0x240] sm:$0xff] }
 0x175   :  { %v16454_v17 = vpop.xlane.xlu0 %734  ;;  %12499 = vmatpush1.bf16.msra.mxu0 %v14044_v60  ;;  %12827 = vmatpush1.bf16.msra.mxu1 %v14046_v27  ;;  %v1603_v47 = vsel %vm570_vm0, %v402_v62, 0.0  ;;  %v14062_v60 = vcombine.low %v3093_v43, %v3097_v50  ;;  %v14069_v27 = vcombine.high %v3100_v25, %v3104_v57  ;;  %v14071_v20 = vcombine.high %v3101_v26, %v3105_v13  ;;  %v3108_v28 = vld [vmem:[#allocation3 + $0x740] sm:$0xff]  ;;  %v3113_v35 = vld [vmem:[#allocation3 + $0x768] sm:$0xff]  ;;  %v149_v62 = vld [vmem:[%s20918_s0 + $0x2d8] sm:$0xff] }
 0x176   :  { %v4923_v53 = vsel %vm20973_vm4, %v4922_v3, %v16356_v16  ;;  %v4490_v5 = vunpack.c.l.b16 %v2766_v22  ;;  %v4491_v40 = vunpack.c.h.b16 %v2766_v22  ;;  %12500 = vmatprep.subr.bf16.mxu0 %v14053_v44  ;;  %12828 = vmatprep.subr.bf16.mxu1 %v14055_v23  ;;  %v3112_v61 = vld [vmem:[#allocation3 + $0x760] sm:$0xff]  ;;  %v3109_v23 = vld [vmem:[#allocation3 + $0x748] sm:$0xff]  ;;  %v787_v22 = vsel %vm570_vm0, %v130_v31, 0.0 }
 0x177   :  { %v16466_v36 = vsel %vm20957_vm5, %v4927_v45, %v4923_v53  ;;  %839 = vadd.xlane.f32.xlu1 %v838_v24  ;;  %v387_v3 = vld [vmem:[%s20918_s0 + $0xa48] sm:$0xff]  ;;  %v14068_v45 = vcombine.low %v3100_v25, %v3104_v57  ;;  %v14070_v24 = vcombine.low %v3101_v26, %v3105_v13  ;;  %v14077_v43 = vcombine.high %v3108_v28, %v3112_v61  ;;  %v386_v50 = vld [vmem:[%s20918_s0 + $0xa40] sm:$0xff] }
 0x178   :  { %v6186_v10 = vrot.slane %v4490_v5, %v21050_v15  ;;  %v6191_v16 = vrot.slane %v4491_v40, %v21051_v2  ;;  %v16473_v58 = vpop.xlane.xlu1 %1505  ;;  %836 = vadd.xlane.f32.xlu0 %v835_v6  ;;  %v14079_v6 = vcombine.high %v3109_v23, %v3113_v35  ;;  %v3116_v18 = vld [vmem:[#allocation3 + $0x780] sm:$0xff]  ;;  %v1558_v53 = vsel %vm570_vm0, %v387_v3, 0.0  ;;  %v3117_v5 = vld [vmem:[#allocation3 + $0x788] sm:$0xff]  ;;  %v172_v15 = vld [vmem:[%s20918_s0 + $0x390] sm:$0xff] }
 0x179   :  { %v16476_v34 = vpop.xlane.xlu0 %1502  ;;  %12501 = vmatpush1.bf16.msra.mxu0 %v14052_v19  ;;  %12829 = vmatpush1.bf16.msra.mxu1 %v14054_v30  ;;  %v3120_v19 = vld [vmem:[#allocation3 + $0x7a0] sm:$0xff]  ;;  %v3121_v40 = vld [vmem:[#allocation3 + $0x7a8] sm:$0xff]  ;;  %v1555_v25 = vsel %vm570_vm0, %v386_v50, 0.0  ;;  %v14078_v57 = vcombine.low %v3109_v23, %v3113_v35 }
 0x17a   :  { %v6187_v37 = vsel %vm20973_vm4, %v6186_v10, %v16390_v0  ;;  %12502 = vmatprep.subr.bf16.mxu0 %v14061_v46  ;;  %12830 = vmatprep.subr.bf16.mxu1 %v14063_v29  ;;  %v790_v0 = vsel %vm570_vm0, %v131_v9, 0.0  ;;  %v14076_v29 = vcombine.low %v3108_v28, %v3112_v61  ;;  %v14085_v10 = vcombine.high %v3116_v18, %v3120_v19  ;;  %v3124_v26 = vld [vmem:[#allocation3 + $0x7c0] sm:$0xff] }
 0x17b   :  { %v16485_v44 = vsel %vm20957_vm5, %v6191_v16, %v6187_v37  ;;  %1607 = vadd.xlane.f32.xlu1 %v1606_v12  ;;  %v148_v16 = vld [vmem:[%s20918_s0 + $0x2d0] sm:$0xff]  ;;  %v14087_v12 = vcombine.high %v3117_v5, %v3121_v40  ;;  %v3128_v13 = vld [vmem:[#allocation3 + $0x7e0] sm:$0xff]  ;;  %v3125_v37 = vld [vmem:[#allocation3 + $0x7c8] sm:$0xff]  ;;  %v14084_v31 = vcombine.low %v3116_v18, %v3120_v19  ;;  %v14086_v28 = vcombine.low %v3117_v5, %v3121_v40 }
 0x17c   :  { %v16490_v14 = vpop.xlane.xlu1 %689  ;;  %1604 = vadd.xlane.f32.xlu0 %v1603_v47  ;;  %v3129_v47 = vld [vmem:[#allocation3 + $0x7e8] sm:$0xff]  ;;  %v14093_v61 = vcombine.high %v3124_v26, %v3128_v13  ;;  %v16546_v40 = vld [vmem:[#allocation3 + $0x800] sm:$0xff]  ;;  %vm21059_vm5 = vcmask 589312  }
 0x17d   :  { %v16493_v38 = vpop.xlane.xlu0 %686  ;;  %12503 = vmatpush1.bf16.msra.mxu0 %v14060_v48  ;;  %12831 = vmatpush1.bf16.msra.mxu1 %v14062_v60  ;;  %v844_v48 = vsel %vm570_vm0, %v149_v62, 0.0  ;;  %v14095_v23 = vcombine.high %v3125_v37, %v3129_v47  ;;  %v14094_v50 = vcombine.low %v3125_v37, %v3129_v47  ;;  %21052 = vst [vmem:[#allocation17_spill] sm:$0xff] %v16546_v40  ;;  %v16548_v62 = vld [vmem:[#allocation3 + $0x820] sm:$0xff]  ;;  %v151_v37 = vld [vmem:[%s20918_s0 + $0x2e8] sm:$0xff] }
 0x17e   :  { %12504 = vmatprep.subr.bf16.mxu0 %v14069_v27  ;;  %12832 = vmatprep.subr.bf16.mxu1 %v14071_v20  ;;  %v405_v27 = vld [vmem:[%s20918_s0 + $0xad8] sm:$0xff]  ;;  %v841_v20 = vsel %vm570_vm0, %v148_v16, 0.0  ;;  %21053 = vst [vmem:[#allocation18_spill] sm:$0xff] %v16548_v62  ;;  %v14101_v16 = vcombine.high %v16546_v40, %v16548_v62  ;;  %v16731_v40 = vsel %vm570_vm0, %v172_v15, 0.0  ;;  %v411_v15 = vld [vmem:[%s20918_s0 + $0xb08] sm:$0xff] }
 0x17f   :  { %791 = vadd.xlane.f32.xlu1 %v790_v0  ;;  %v404_v0 = vld [vmem:[%s20918_s0 + $0xad0] sm:$0xff]  ;;  %v1612_v3 = vsel %vm570_vm0, %v405_v27, 0.0  ;;  %v150_v27 = vld [vmem:[%s20918_s0 + $0x2e0] sm:$0xff]  ;;  %21058 = vst [vmem:[#allocation26_spill] sm:$0xff] %v16731_v40 }
 0x180   :  { %v16502_v30 = vpop.xlane.xlu1 %1457  ;;  %788 = vadd.xlane.f32.xlu0 %v787_v22  ;;  %v133_v22 = vld [vmem:[%s20918_s0 + $0x258] sm:$0xff] }
 0x181   :  { %v16505_v46 = vpop.xlane.xlu0 %1454  ;;  %12505 = vmatpush1.bf16.msra.mxu0 %v14068_v45  ;;  %12833 = vmatpush1.bf16.msra.mxu1 %v14070_v24  ;;  %v14092_v24 = vcombine.low %v3124_v26, %v3128_v13  ;;  %v796_v19 = vsel %vm570_vm0, %v133_v22, 0.0  ;;  %v850_v22 = vsel %vm570_vm0, %v151_v37, 0.0 }
 0x182   :  { %12506 = vmatprep.subr.bf16.mxu0 %v14077_v43  ;;  %12834 = vmatprep.subr.bf16.mxu1 %v14079_v6  ;;  %v1609_v43 = vsel %vm570_vm0, %v404_v0, 0.0  ;;  %v132_v6 = vld [vmem:[%s20918_s0 + $0x250] sm:$0xff]  ;;  %v2163_v0 = vmul.f32 0.0625, %v16451_v8  ;;  %v2419_v8 = vmul.f32 0.0625, %v16473_v58 }
 0x183   :  { %1559 = vadd.xlane.f32.xlu1 %v1558_v53  ;;  %v389_v53 = vld [vmem:[%s20918_s0 + $0xa58] sm:$0xff] }
 0x184   :  { %v16514_v9 = vpop.xlane.xlu1 %743  ;;  %1556 = vadd.xlane.f32.xlu0 %v1555_v25  ;;  %v793_v25 = vsel %vm570_vm0, %v132_v6, 0.0  ;;  %v1564_v26 = vsel %vm570_vm0, %v389_v53, 0.0  ;;  %v2147_v6 = vmul.f32 0.0625, %v16490_v14 }
 0x185   :  { %v16517_v60 = vpop.xlane.xlu0 %740  ;;  %12507 = vmatpush1.bf16.msra.mxu0 %v14076_v29  ;;  %12835 = vmatpush1.bf16.msra.mxu1 %v14078_v57  ;;  %v16550_v29 = vld [vmem:[#allocation3 + $0x808] sm:$0xff] }
 0x186   :  { %12508 = vmatprep.subr.bf16.mxu0 %v14085_v10  ;;  %12836 = vmatprep.subr.bf16.mxu1 %v14087_v12  ;;  %21054 = vst [vmem:[#allocation19_spill] sm:$0xff] %v16550_v29  ;;  %v16553_v57 = vld [vmem:[#allocation3 + $0x828] sm:$0xff]  ;;  %v388_v10 = vld [vmem:[%s20918_s0 + $0xa50] sm:$0xff]  ;;  %v2164_v2 = vmul.f32 0.0625, %v16517_v60 }
 0x187   :  { %845 = vadd.xlane.f32.xlu1 %v844_v48  ;;  %21055 = vst [vmem:[#allocation20_spill] sm:$0xff] %v16553_v57  ;;  %v14103_v13 = vcombine.high %v16550_v29, %v16553_v57  ;;  %v1561_v47 = vsel %vm570_vm0, %v388_v10, 0.0  ;;  %v409_v10 = vld [vmem:[%s20918_s0 + $0xaf8] sm:$0xff] }
 0x188   :  { %v16526_v35 = vpop.xlane.xlu1 %1511  ;;  %842 = vadd.xlane.f32.xlu0 %v841_v20  ;;  %v406_v20 = vld [vmem:[%s20918_s0 + $0xae0] sm:$0xff] }
 0x189   :  { %v16529_v45 = vpop.xlane.xlu0 %1508  ;;  %12509 = vmatpush1.bf16.msra.mxu0 %v14084_v31  ;;  %12837 = vmatpush1.bf16.msra.mxu1 %v14086_v28  ;;  %v407_v31 = vld [vmem:[%s20918_s0 + $0xae8] sm:$0xff] }
 0x18a   :  { %12510 = vmatprep.subr.bf16.mxu0 %v14093_v61  ;;  %12838 = vmatprep.subr.bf16.mxu1 %v14095_v23  ;;  %v135_v28 = vld [vmem:[%s20918_s0 + $0x268] sm:$0xff]  ;;  %v134_v61 = vld [vmem:[%s20918_s0 + $0x260] sm:$0xff]  ;;  %v2162_v23 = vmul.f32 0.0625, %v16454_v17  ;;  %v2418_v17 = vmul.f32 0.0625, %v16476_v34  ;;  %v1618_v58 = vsel %vm570_vm0, %v407_v31, 0.0  ;;  %v1615_v34 = vsel %vm570_vm0, %v406_v20, 0.0 }
 0x18b   :  { %1613 = vadd.xlane.f32.xlu1 %v1612_v3  ;;  %v802_v14 = vsel %vm570_vm0, %v135_v28, 0.0  ;;  %v393_v31 = vld [vmem:[%s20918_s0 + $0xa78] sm:$0xff] }
 0x18c   :  { %v16538_v18 = vpop.xlane.xlu1 %695  ;;  %1610 = vadd.xlane.f32.xlu0 %v1609_v43  ;;  %v390_v43 = vld [vmem:[%s20918_s0 + $0xa60] sm:$0xff]  ;;  %v16637_v20 = vpack.c.bf16 %v2163_v0, %v2162_v23  ;;  %v16653_v4 = vpack.c.bf16 %v2419_v8, %v2418_v17  ;;  %v2403_v0 = vmul.f32 0.0625, %v16502_v30  ;;  %v2402_v23 = vmul.f32 0.0625, %v16505_v46  ;;  %v427_v8 = vld [vmem:[%s20918_s0 + $0xb88] sm:$0xff] }
 0x18d   :  { %v16544_v5 = vpop.xlane.xlu0 %692  ;;  %12511 = vmatpush1.bf16.msra.mxu0 %v14092_v24  ;;  %12839 = vmatpush1.bf16.msra.mxu1 %v14094_v50  ;;  %v391_v24 = vld [vmem:[%s20918_s0 + $0xa68] sm:$0xff]  ;;  %v153_v50 = vld [vmem:[%s20918_s0 + $0x2f8] sm:$0xff]  ;;  %v16626_v37 = vsel %vm570_vm0, %v390_v43, 0.0  ;;  %v392_v43 = vld [vmem:[%s20918_s0 + $0xa70] sm:$0xff] }
 0x18e   :  { %12521 = vmatprep.subr.bf16.mxu0 %v14101_v16  ;;  %12849 = vmatprep.subr.bf16.mxu1 %v14103_v13  ;;  %v847_v16 = vsel %vm570_vm0, %v150_v27, 0.0  ;;  %v16623_v13 = vsel %vm570_vm0, %v391_v24, 0.0  ;;  %v136_v27 = vld [vmem:[%s20918_s0 + $0x270] sm:$0xff]  ;;  %v16648_v24 = vsel %vm570_vm0, %v409_v10, 0.0  ;;  %v170_v10 = vld [vmem:[%s20918_s0 + $0x380] sm:$0xff]  ;;  %v4508_v41 = vunpack.c.l.b16 %v16653_v4 }
 0x18f   :  { %797 = vadd.xlane.f32.xlu1 %v796_v19  ;;  %v2146_v19 = vmul.f32 0.0625, %v16493_v38  ;;  %v408_v38 = vld [vmem:[%s20918_s0 + $0xaf0] sm:$0xff]  ;;  %v16677_v46 = vsel %vm570_vm0, %v136_v27, 0.0  ;;  %v154_v27 = vld [vmem:[%s20918_s0 + $0x300] sm:$0xff]  ;;  %v16716_v33 = vpack.c.bf16 %v2403_v0, %v2402_v23  ;;  %v4253_v0 = vunpack.c.h.b16 %v16637_v20 }
 0x190   :  { %v16560_v12 = vpop.xlane.xlu1 %1463  ;;  %794 = vadd.xlane.f32.xlu0 %v793_v25  ;;  %v152_v25 = vld [vmem:[%s20918_s0 + $0x2f0] sm:$0xff]  ;;  %v16671_v17 = vsel %vm570_vm0, %v408_v38, 0.0  ;;  %v2165_v38 = vmul.f32 0.0625, %v16514_v9  ;;  %v4252_v9 = vunpack.c.l.b16 %v16637_v20  ;;  %v4509_v62 = vunpack.c.h.b16 %v16653_v4 }
 0x191   :  { %v16565_v48 = vpop.xlane.xlu0 %1460  ;;  %v16655_v59 = vpack.c.bf16 %v2147_v6, %v2146_v19  ;;  %v16680_v6 = vsel %vm570_vm0, %v393_v31, 0.0  ;;  %v426_v19 = vld [vmem:[%s20918_s0 + $0xb80] sm:$0xff]  ;;  %v173_v31 = vld [vmem:[%s20918_s0 + $0x398] sm:$0xff] }
 0x192   :  { %v16719_v57 = vsel %vm570_vm0, %v426_v19, 0.0  ;;  %v2648_v23 = vpack.c.bf16 %v2165_v38, %v2164_v2  ;;  %v2420_v19 = vmul.f32 0.0625, %v16529_v45  ;;  %v410_v2 = vld [vmem:[%s20918_s0 + $0xb00] sm:$0xff]  ;;  %v2404_v20 = vmul.f32 0.0625, %v16565_v48 }
 0x193   :  { %1565 = vadd.xlane.f32.xlu1 %v1564_v26  ;;  %v16620_v26 = vsel %vm570_vm0, %v134_v61, 0.0  ;;  %v16642_v61 = vsel %vm570_vm0, %v153_v50, 0.0  ;;  %v4236_v32 = vunpack.c.l.b16 %v16655_v59  ;;  %v4237_v45 = vunpack.c.h.b16 %v16655_v59 }
 0x194   :  { %v16588_v3 = vpop.xlane.xlu1 %749  ;;  %1562 = vadd.xlane.f32.xlu0 %v1561_v47  ;;  %v137_v47 = vld [vmem:[%s20918_s0 + $0x278] sm:$0xff]  ;;  %v4254_v40 = vunpack.c.l.b16 %v2648_v23  ;;  %v16761_v59 = vsel %vm570_vm0, %v411_v15, 0.0  ;;  %v6280_v48 = vrot.slane %v4509_v62, %v15766_v52 }
 0x195   :  { %v16604_v53 = vpop.xlane.xlu0 %746  ;;  %v16674_v30 = vsel %vm570_vm0, %v137_v47, 0.0  ;;  %v16691_v47 = vsel %vm570_vm0, %v392_v43, 0.0  ;;  %v16712_v43 = vsel %vm570_vm0, %v427_v8, 0.0  ;;  %v16728_v8 = vsel %vm570_vm0, %v173_v31, 0.0 }
 0x196   :  { %21057 = vst [vmem:[#allocation25_spill] sm:$0xff] %v16728_v8  ;;  %v2148_v31 = vmul.f32 0.0625, %v16544_v5  ;;  %v4932_v4 = vrot.slane %v4236_v32, %v15755_v42  ;;  %v2167_v38 = vmul.f32 0.0625, %v16588_v3  ;;  %v16764_v32 = vsel %vm570_vm0, %v410_v2, 0.0 }
 0x197   :  { %851 = vadd.xlane.f32.xlu1 %v850_v22  ;;  %v16645_v22 = vsel %vm570_vm0, %v152_v25, 0.0  ;;  %v171_v25 = vld [vmem:[%s20918_s0 + $0x388] sm:$0xff] }
 0x198   :  { %v16639_v28 = vpop.xlane.xlu1 %1517  ;;  %848 = vadd.xlane.f32.xlu0 %v847_v16  ;;  %v155_v16 = vld [vmem:[%s20918_s0 + $0x308] sm:$0xff]  ;;  %v16706_v60 = vsel %vm570_vm0, %v171_v25, 0.0 }
 0x199   :  { %v16659_v50 = vpop.xlane.xlu0 %1514  ;;  %v16722_v25 = vsel %vm570_vm0, %v155_v16, 0.0  ;;  %v5011_v16 = vrot.slane %v4252_v9, %v15755_v42  ;;  %v2166_v9 = vmul.f32 0.0625, %v16604_v53 }
 0x19a   :  { %v2422_v2 = vmul.f32 0.0625, %v16659_v50 }
 0x19b   :  { %1619 = vadd.xlane.f32.xlu1 %v1618_v58  ;;  %v16709_v58 = vsel %vm570_vm0, %v170_v10, 0.0  ;;  %v16725_v10 = vsel %vm570_vm0, %v154_v27, 0.0  ;;  %v2149_v27 = vmul.f32 0.0625, %v16538_v18  ;;  %v4492_v18 = vunpack.c.l.b16 %v16716_v33 }
 0x19c   :  { %v16703_v7 = vpop.xlane.xlu1 %701  ;;  %1616 = vadd.xlane.f32.xlu0 %v1615_v34  ;;  %21056 = vst [vmem:[#allocation24_spill] sm:$0xff] %v16725_v10  ;;  %v2421_v34 = vmul.f32 0.0625, %v16526_v35  ;;  %v6275_v35 = vrot.slane %v4508_v41, %v15755_v42  ;;  %v2649_v62 = vpack.c.bf16 %v2167_v38, %v2166_v9 }
 0x19d   :  { %v699_v29 = vpop.xlane.xlu0 %698  ;;  %v2640_v3 = vpack.c.bf16 %v2149_v27, %v2148_v31  ;;  %v5021_v27 = vrot.slane %v4254_v40, %v15769_v55 }
 0x19e   :  { %v2776_v41 = vpack.c.bf16 %v2421_v34, %v2420_v19  ;;  %v6276_v53 = vsel %vm21023_vm6, %v6275_v35, %v16446_v39  ;;  %v4493_v34 = vunpack.c.h.b16 %v16716_v33  ;;  %v6196_v19 = vrot.slane %v4492_v18, %v15755_v42 }
 0x19f   :  { %803 = vadd.xlane.f32.xlu1 %v802_v14  ;;  %v2405_v14 = vmul.f32 0.0625, %v16560_v12  ;;  %v5016_v12 = vrot.slane %v4253_v0, %v15766_v52  ;;  %v4255_v0 = vunpack.c.h.b16 %v2648_v23  ;;  %v2423_v39 = vmul.f32 0.0625, %v16639_v28 }
 0x1a0   :  { %v16740_v8 = vpop.xlane.xlu1 %1469  ;;  %800 = vadd.xlane.f32.xlu0 %v16620_v26  ;;  %v5012_v26 = vsel %vm21023_vm6, %v5011_v16, %v16421_v51  ;;  %v4933_v51 = vsel %vm21023_vm6, %v4932_v4, %v16466_v36  ;;  %v4510_v31 = vunpack.c.l.b16 %v2776_v41  ;;  %v4238_v35 = vunpack.c.l.b16 %v2640_v3 }
 0x1a1   :  { %v16753_v5 = vpop.xlane.xlu0 %1466  ;;  %v2768_v16 = vpack.c.bf16 %v2405_v14, %v2404_v20  ;;  %v5017_v33 = vsel %vm20958_vm7, %v5016_v12, %v5012_v26  ;;  %v6281_v36 = vsel %vm20958_vm7, %v6280_v48, %v6276_v53  ;;  %v6197_v40 = vsel %vm21023_vm6, %v6196_v19, %v16485_v44 }
 0x1a2   :  { %v6201_v28 = vrot.slane %v4493_v34, %v15766_v52  ;;  %v4511_v4 = vunpack.c.h.b16 %v2776_v41  ;;  %v4256_v20 = vunpack.c.l.b16 %v2649_v62  ;;  %v4239_v38 = vunpack.c.h.b16 %v2640_v3 }
 0x1a3   :  { %1571 = vadd.xlane.f32.xlu1 %v16623_v13  ;;  %v4937_v13 = vrot.slane %v4237_v45, %v15766_v52  ;;  %v2150_v45 = vmul.f32 0.0625, %v699_v29  ;;  %v4494_v14 = vunpack.c.l.b16 %v2768_v16  ;;  %v6285_v29 = vrot.slane %v4510_v31, %v15769_v55 }
 0x1a4   :  { %v756_v10 = vpop.xlane.xlu1 %755  ;;  %1568 = vadd.xlane.f32.xlu0 %v16626_v37  ;;  %v2151_v37 = vmul.f32 0.0625, %v16703_v7  ;;  %v5022_v7 = vsel %vm21059_vm5, %v5021_v27, %v5017_v33  ;;  %v2777_v9 = vpack.c.bf16 %v2423_v39, %v2422_v2  ;;  %v4942_v44 = vrot.slane %v4238_v35, %v15769_v55 }
 0x1a5   :  { %v753_v15 = vpop.xlane.xlu0 %752  ;;  %v4938_v23 = vsel %vm20958_vm7, %v4937_v13, %v4933_v51  ;;  %v2169_v12 = vmul.f32 0.0625, %v756_v10  ;;  %v4495_v53 = vunpack.c.h.b16 %v2768_v16  ;;  %v4257_v13 = vunpack.c.h.b16 %v2649_v62 }
 0x1a6   :  { %v2641_v26 = vpack.c.bf16 %v2151_v37, %v2150_v45  ;;  %v2168_v48 = vmul.f32 0.0625, %v753_v15  ;;  %v6202_v51 = vsel %vm20958_vm7, %v6201_v28, %v6197_v40  ;;  %v6290_v3 = vrot.slane %v4511_v4, %v15772_v56  ;;  %vm21060_vm7 = vmmov %vm21059_vm5 }
 0x1a7   :  { %857 = vadd.xlane.f32.xlu1 %v16642_v61  ;;  %v5026_v61 = vrot.slane %v4255_v0, %v15772_v56  ;;  %v6206_v0 = vrot.slane %v4494_v14, %v15769_v55  ;;  %v6286_v10 = vsel %vm21059_vm5, %v6285_v29, %v6281_v36  ;;  %v4947_v15 = vrot.slane %v4239_v38, %v15772_v56 }
 0x1a8   :  { %v1524_v18 = vpop.xlane.xlu1 %1523  ;;  %854 = vadd.xlane.f32.xlu0 %v16645_v22  ;;  %v4512_v16 = vunpack.c.l.b16 %v2777_v9  ;;  %v4240_v62 = vunpack.c.l.b16 %v2641_v26  ;;  %v2406_v31 = vmul.f32 0.0625, %v16753_v5  ;;  %v2650_v39 = vpack.c.bf16 %v2169_v12, %v2168_v48 }
 0x1a9   :  { %v1521_v50 = vpop.xlane.xlu0 %1520  ;;  %v2425_v34 = vmul.f32 0.0625, %v1524_v18  ;;  %v5027_v27 = vsel %vm4777_vm9, %v5026_v61, %v5022_v7  ;;  %v4943_v33 = vsel %vm21060_vm7, %v4942_v44, %v4938_v23  ;;  %v6211_v35 = vrot.slane %v4495_v53, %v15772_v56 }
 0x1aa   :  { %v2424_v41 = vmul.f32 0.0625, %v1521_v50  ;;  %v5036_v37 = vrot.slane %v4257_v13, %v15798_v21  ;;  %v6291_v36 = vsel %vm4777_vm9, %v6290_v3, %v6286_v10  ;;  %v4513_v40 = vunpack.c.h.b16 %v2777_v9 }
 0x1ab   :  { %1625 = vadd.xlane.f32.xlu1 %v16648_v24  ;;  %v5031_v24 = vrot.slane %v4256_v20, %v15795_v11  ;;  %v6295_v5 = vrot.slane %v4512_v16, %v15795_v11  ;;  %v4241_v28 = vunpack.c.h.b16 %v2641_v26  ;;  %v4948_v61 = vsel %vm4777_vm9, %v4947_v15, %v4943_v33 }
 0x1ac   :  { %v708_v22 = vpop.xlane.xlu1 %707  ;;  %1622 = vadd.xlane.f32.xlu0 %v16671_v17  ;;  %v2407_v17 = vmul.f32 0.0625, %v16740_v8  ;;  %v2778_v45 = vpack.c.bf16 %v2425_v34, %v2424_v41  ;;  %v4952_v4 = vrot.slane %v4240_v62, %v15795_v11  ;;  %v4258_v14 = vunpack.c.l.b16 %v2650_v39 }
 0x1ad   :  { %v705_v19 = vpop.xlane.xlu0 %704  ;;  %v5032_v8 = vsel %vm4784_vm10, %v5031_v24, %v5027_v27  ;;  %v2153_v50 = vmul.f32 0.0625, %v708_v22  ;;  %v6300_v26 = vrot.slane %v4513_v40, %v15798_v21  ;;  %v6296_v22 = vsel %vm4784_vm10, %v6295_v5, %v6291_v36 }
 0x1ae   :  { %v2152_v23 = vmul.f32 0.0625, %v705_v19  ;;  %v5037_v29 = vsel %vm4791_vm11, %v5036_v37, %v5032_v8  ;;  %v4514_v38 = vunpack.c.l.b16 %v2778_v45  ;;  %v4957_v53 = vrot.slane %v4241_v28, %v15798_v21 }
 0x1af   :  { %809 = vadd.xlane.f32.xlu1 %v16674_v30  ;;  %v6207_v30 = vsel %vm21059_vm5, %v6206_v0, %v6202_v51  ;;  %v4259_v13 = vunpack.c.h.b16 %v2650_v39  ;;  %v4953_v41 = vsel %vm4784_vm10, %v4952_v4, %v4948_v61  ;;  %v4515_v24 = vunpack.c.h.b16 %v2778_v45 }
 0x1b0   :  { %v1476_v2 = vpop.xlane.xlu1 %1475  ;;  %806 = vadd.xlane.f32.xlu0 %v16677_v46  ;;  %v2769_v46 = vpack.c.bf16 %v2407_v17, %v2406_v31  ;;  %v6212_v7 = vsel %vm4777_vm9, %v6211_v35, %v6207_v30  ;;  %v2642_v34 = vpack.c.bf16 %v2153_v50, %v2152_v23  ;;  %v6305_v27 = vrot.slane %v4514_v38, %v15850_v1 }
 0x1b1   :  { %v1473_v18 = vpop.xlane.xlu0 %1472  ;;  %v2409_v12 = vmul.f32 0.0625, %v1476_v2  ;;  %v6301_v16 = vsel %vm4791_vm11, %v6300_v26, %v6296_v22  ;;  %v4958_v31 = vsel %vm4791_vm11, %v4957_v53, %v4953_v41  ;;  %v5046_v39 = vrot.slane %v4259_v13, %v15866_v54 }
 0x1b2   :  { %v4496_v19 = vunpack.c.l.b16 %v2769_v46  ;;  %v4497_v0 = vunpack.c.h.b16 %v2769_v46  ;;  %v4242_v2 = vunpack.c.l.b16 %v2642_v34  ;;  %v6306_v30 = vsel %vm4798_vm12, %v6305_v27, %v6301_v16 }
 0x1b3   :  { %1577 = vadd.xlane.f32.xlu1 %v16680_v6  ;;  %v2408_v6 = vmul.f32 0.0625, %v1473_v18  ;;  %v6310_v8 = vrot.slane %v4515_v24, %v15866_v54  ;;  %v4243_v4 = vunpack.c.h.b16 %v2642_v34  ;;  %vm21076_vm7 = vcmask 392512  }
 0x1b4   :  { %v762_v20 = vpop.xlane.xlu1 %761  ;;  %1574 = vadd.xlane.f32.xlu0 %v16691_v47  ;;  %v5041_v47 = vrot.slane %v4258_v14, %v15850_v1  ;;  %v6216_v35 = vrot.slane %v4496_v19, %v15795_v11  ;;  %v6221_v36 = vrot.slane %v4497_v0, %v15798_v21  ;;  %v4962_v46 = vrot.slane %v4242_v2, %v15850_v1  ;;  %vm21077_vm5 = vmmov %vm21076_vm7 }
 0x1b5   :  { %v2171_v9 = vmul.f32 0.0625, %v762_v20  ;;  %v759_v44 = vpop.xlane.xlu0 %758  ;;  %v2770_v62 = vpack.c.bf16 %v2409_v12, %v2408_v6  ;;  %v6311_v26 = vsel %vm4805_vm13, %v6310_v8, %v6306_v30  ;;  %v21061_v6 = vld [vmem:[#allocation24_spill] sm:$0xff]  ;;  %v4967_v41 = vrot.slane %v4243_v4, %v15866_v54 }
 0x1b6   :  { %v2170_v48 = vmul.f32 0.0625, %v759_v44  ;;  %v5042_v37 = vsel %vm4798_vm12, %v5041_v47, %v5037_v29  ;;  %v6217_v44 = vsel %vm4784_vm10, %v6216_v35, %v6212_v7  ;;  %v21062_v47 = vld [vmem:[#allocation25_spill] sm:$0xff] }
 0x1b7   :  { %911 = vadd.xlane.f32.xlu1 %v16706_v60  ;;  %v4498_v28 = vunpack.c.l.b16 %v2770_v62  ;;  %v5047_v61 = vsel %vm4805_vm13, %v5046_v39, %v5042_v37  ;;  %v4499_v12 = vunpack.c.h.b16 %v2770_v62  ;;  %v21063_v62 = vld [vmem:[#allocation26_spill] sm:$0xff]  ;;  %v429_v37 = vld [vmem:[%s20918_s0 + $0xb98] sm:$0xff] }
 0x1b8   :  { %v2651_v51 = vpack.c.bf16 %v2171_v9, %v2170_v48  ;;  %v1530_v3 = vpop.xlane.xlu1 %1529  ;;  %908 = vadd.xlane.f32.xlu0 %v16709_v58 }
 0x1b9   :  { %v2427_v10 = vmul.f32 0.0625, %v1530_v3  ;;  %v1527_v15 = vpop.xlane.xlu0 %1526  ;;  %v6226_v53 = vrot.slane %v4498_v28, %v15850_v1  ;;  %v4963_v3 = vsel %vm4798_vm12, %v4962_v46, %v4958_v31  ;;  %v6231_v16 = vrot.slane %v4499_v12, %v15866_v54 }
 0x1ba   :  { %v4260_v17 = vunpack.c.l.b16 %v2651_v51  ;;  %v2426_v60 = vmul.f32 0.0625, %v1527_v15  ;;  %v4261_v33 = vunpack.c.h.b16 %v2651_v51  ;;  %v6222_v15 = vsel %vm4791_vm11, %v6221_v36, %v6217_v44 }
 0x1bb   :  { %1679 = vadd.xlane.f32.xlu1 %v16712_v43  ;;  %v6227_v2 = vsel %vm4798_vm12, %v6226_v53, %v6222_v15  ;;  %v16923_v15 = vld [vmem:[#allocation3 + $0x8a0] sm:$0xff] }
 0x1bc   :  { %v5051_v58 = vrot.slane %v4260_v17, %v15911_v63  ;;  %v2779_v45 = vpack.c.bf16 %v2427_v10, %v2426_v60  ;;  %v714_v18 = vpop.xlane.xlu1 %713  ;;  %1676 = vadd.xlane.f32.xlu0 %v16719_v57  ;;  %v5056_v14 = vrot.slane %v4261_v33, %v15914_v49  ;;  %v6232_v28 = vsel %vm4805_vm13, %v6231_v16, %v6227_v2  ;;  %v16925_v16 = vld [vmem:[#allocation3 + $0x888] sm:$0xff] }
 0x1bd   :  { %v2155_v40 = vmul.f32 0.0625, %v714_v18  ;;  %v711_v5 = vpop.xlane.xlu0 %710  ;;  %v428_v18 = vld [vmem:[%s20918_s0 + $0xb90] sm:$0xff] }
 0x1be   :  { %v4516_v43 = vunpack.c.l.b16 %v2779_v45  ;;  %v4517_v50 = vunpack.c.h.b16 %v2779_v45  ;;  %v2154_v23 = vmul.f32 0.0625, %v711_v5  ;;  %v5052_v9 = vsel %vm4812_vm14, %v5051_v58, %v5047_v61 }
 0x1bf   :  { %863 = vadd.xlane.f32.xlu1 %v16722_v25  ;;  %v5057_v7 = vsel %vm4819_vm15, %v5056_v14, %v5052_v9  ;;  %v4968_v58 = vsel %vm4805_vm13, %v4967_v41, %v4963_v3  ;;  %v1681_v4 = vsel %vm570_vm0, %v428_v18, 0.0  ;;  %v156_v14 = vld [vmem:[%s20918_s0 + $0x310] sm:$0xff]  ;;  %v16897_v9 = vld [vmem:[#allocation3 + $0x868] sm:$0xff]  ;;  %v413_v41 = vld [vmem:[%s20918_s0 + $0xb18] sm:$0xff] }
 0x1c0   :  { %v6315_v20 = vrot.slane %v4516_v43, %v15911_v63  ;;  %v6320_v29 = vrot.slane %v4517_v50, %v15914_v49  ;;  %v2643_v57 = vpack.c.bf16 %v2155_v40, %v2154_v23  ;;  %v1482_v38 = vpop.xlane.xlu1 %1481  ;;  %860 = vadd.xlane.f32.xlu0 %v21061_v6  ;;  %v1684_v23 = vsel %vm570_vm0, %v429_v37, 0.0  ;;  %v21065_v6 = vld [vmem:[#allocation18_spill] sm:$0xff]  ;;  %v174_v18 = vld [vmem:[%s20918_s0 + $0x3a0] sm:$0xff] }
 0x1c1   :  { %v2411_v48 = vmul.f32 0.0625, %v1482_v38  ;;  %v1479_v22 = vpop.xlane.xlu0 %1478  ;;  %v16895_v38 = vld [vmem:[#allocation3 + $0x848] sm:$0xff]  ;;  %v865_v3 = vsel %vm570_vm0, %v156_v14, 0.0  ;;  %v1636_v2 = vsel %vm570_vm0, %v413_v41, 0.0  ;;  %v919_v14 = vsel %vm570_vm0, %v174_v18, 0.0  ;;  %v17007_v18 = vld [vmem:[#allocation3 + $0x940] sm:$0xff] }
 0x1c2   :  { %v4244_v25 = vunpack.c.l.b16 %v2643_v57  ;;  %v2410_v13 = vmul.f32 0.0625, %v1479_v22  ;;  %v6316_v34 = vsel %vm4812_vm14, %v6315_v20, %v6311_v26  ;;  %v4245_v19 = vunpack.c.h.b16 %v2643_v57  ;;  %v16891_v20 = vld [vmem:[#allocation3 + $0x840] sm:$0xff] }
 0x1c3   :  { %917 = vadd.xlane.f32.xlu1 %v21062_v47  ;;  %v6321_v51 = vsel %vm4819_vm15, %v6320_v29, %v6316_v34  ;;  %v3144_v57 = vld [vmem:[#allocation3 + $0x860] sm:$0xff]  ;;  %v21069_v47 = vld [vmem:[#allocation19_spill] sm:$0xff] }
 0x1c4   :  { %v4972_v0 = vrot.slane %v4244_v25, %v15911_v63  ;;  %v2771_v24 = vpack.c.bf16 %v2411_v48, %v2410_v13  ;;  %v816_v27 = vpop.xlane.xlu1 %815  ;;  %v7274_v10 = vsel %vm7270_vm8, %v6321_v51, %v5057_v7  ;;  %914 = vadd.xlane.f32.xlu0 %v21063_v62  ;;  %v4977_v45 = vrot.slane %v4245_v19, %v15914_v49  ;;  %v21066_v48 = vld [vmem:[#allocation17_spill] sm:$0xff]  ;;  %v21068_v19 = vld [vmem:[#allocation20_spill] sm:$0xff] }
 0x1c5   :  { %v2189_v17 = vmul.f32 0.0625, %v816_v27  ;;  %v813_v60 = vpop.xlane.xlu0 %812  ;;  %v16861_v39 = vpack.c.b16 %v7274_v10, %v7274_v10  ;;  %v14100_v22 = vcombine.low %v21066_v48, %v21065_v6  ;;  %v14102_v7 = vcombine.low %v21069_v47, %v21068_v19  ;;  %v16919_v10 = vld [vmem:[#allocation3 + $0x880] sm:$0xff]  ;;  %v16927_v62 = vld [vmem:[#allocation3 + $0x8a8] sm:$0xff] }
 0x1c6   :  { %v4500_v33 = vunpack.c.l.b16 %v2771_v24  ;;  %v4501_v31 = vunpack.c.h.b16 %v2771_v24  ;;  %v2188_v35 = vmul.f32 0.0625, %v813_v60  ;;  %v4973_v5 = vsel %vm4812_vm14, %v4972_v0, %v4968_v58  ;;  %v412_v0 = vld [vmem:[%s20918_s0 + $0xb10] sm:$0xff]  ;;  %v16981_v47 = vld [vmem:[#allocation3 + $0x900] sm:$0xff] }
 0x1c7   :  { %21064 = vst [vmem:[#allocation24_spill] sm:$0xff] %v16861_v39  ;;  %12512 = vmatprep.mubr.bf16.mxu0 %v16861_v39  ;;  %12840 = vmatprep.mubr.bf16.mxu1 %v16861_v39  ;;  %v14109_v24 = vcombine.high %v16891_v20, %v3144_v57  ;;  %v14111_v27 = vcombine.high %v16895_v38, %v16897_v9 }
 0x1c8   :  { %v6236_v36 = vrot.slane %v4500_v33, %v15911_v63  ;;  %v6241_v30 = vrot.slane %v4501_v31, %v15914_v49  ;;  %v16876_v8 = vpack.c.bf16 %v2189_v17, %v2188_v35  ;;  %1631 = vadd.xlane.f32.xlu1 %v16761_v59  ;;  %v1584_v40 = vpop.xlane.xlu1 %1583  ;;  %1628 = vadd.xlane.f32.xlu0 %v16764_v32  ;;  %v157_v59 = vld [vmem:[%s20918_s0 + $0x318] sm:$0xff]  ;;  %v175_v33 = vld [vmem:[%s20918_s0 + $0x3a8] sm:$0xff] }
 0x1c9   :  { %v2445_v43 = vmul.f32 0.0625, %v1584_v40  ;;  %v1581_v50 = vpop.xlane.xlu0 %1580  ;;  %v4978_v32 = vsel %vm4819_vm15, %v4977_v45, %v4973_v5  ;;  %v868_v34 = vsel %vm570_vm0, %v157_v59, 0.0  ;;  %v14108_v31 = vcombine.low %v16891_v20, %v3144_v57 }
 0x1ca   :  { %v2444_v61 = vmul.f32 0.0625, %v1581_v50  ;;  %v6237_v46 = vsel %vm4812_vm14, %v6236_v36, %v6232_v28  ;;  %v4278_v35 = vunpack.c.l.b16 %v16876_v8  ;;  %v4279_v37 = vunpack.c.h.b16 %v16876_v8  ;;  %v431_v36 = vld [vmem:[%s20918_s0 + $0xba8] sm:$0xff] }
 0x1cb   :  { %v6242_v29 = vsel %vm4819_vm15, %v6241_v30, %v6237_v46  ;;  %v14110_v30 = vcombine.low %v16895_v38, %v16897_v9  ;;  %v1633_v5 = vsel %vm570_vm0, %v412_v0, 0.0  ;;  %v14117_v8 = vcombine.high %v16919_v10, %v16923_v15  ;;  %v21070_v38 = vld [vmem:[#allocation11_spill] sm:$0xff] }
 0x1cc   :  { %v16899_v44 = vpack.c.bf16 %v2445_v43, %v2444_v61  ;;  %1685 = vadd.xlane.f32.xlu1 %v1684_v23  ;;  %v768_v26 = vpop.xlane.xlu1 %767  ;;  %v7273_v12 = vsel %vm7270_vm8, %v6242_v29, %v4978_v32  ;;  %1682 = vadd.xlane.f32.xlu0 %v1681_v4  ;;  %v14119_v28 = vcombine.high %v16925_v16, %v16927_v62  ;;  %v16951_v43 = vld [vmem:[#allocation3 + $0x8c0] sm:$0xff]  ;;  %v922_v50 = vsel %vm570_vm0, %v175_v33, 0.0  ;;  %v16956_v61 = vld [vmem:[#allocation3 + $0x8c8] sm:$0xff] }
 0x1cd   :  { %v2173_v53 = vmul.f32 0.0625, %v768_v26  ;;  %v765_v25 = vpop.xlane.xlu0 %764  ;;  %v16904_v13 = vpack.c.b16 %v7273_v12, %v7273_v12  ;;  %v16954_v23 = vld [vmem:[#allocation3 + $0x8e0] sm:$0xff]  ;;  %v16958_v4 = vld [vmem:[#allocation3 + $0x8e8] sm:$0xff]  ;;  %v1690_v20 = vsel %vm570_vm0, %v431_v36, 0.0  ;;  %v14116_v57 = vcombine.low %v16919_v10, %v16923_v15 }
 0x1ce   :  { %v2172_v51 = vmul.f32 0.0625, %v765_v25  ;;  %v430_v32 = vld [vmem:[%s20918_s0 + $0xba0] sm:$0xff]  ;;  %v159_v29 = vld [vmem:[%s20918_s0 + $0x328] sm:$0xff]  ;;  %v5140_v9 = vrot.slane %v4278_v35, %v21070_v38  ;;  %v14118_v48 = vcombine.low %v16925_v16, %v16927_v62  ;;  %v14125_v41 = vcombine.high %v16951_v43, %v16954_v23 }
 0x1cf   :  { %21067 = vst [vmem:[#allocation25_spill] sm:$0xff] %v16904_v13  ;;  %12513 = vmatmul.mubr.bf16.vlgmr.msra.gmra.mrb[0].mxu0 %v16904_v13  ;;  %12841 = vmatmul.mubr.bf16.vlgmr.msra.gmra.mrb[0].mxu1 %v16904_v13  ;;  %v21071_v26 = vld [vmem:[#allocation12_spill] sm:$0xff]  ;;  %v14127_v19 = vcombine.high %v16956_v61, %v16958_v4  ;;  %v14124_v0 = vcombine.low %v16951_v43, %v16954_v23  ;;  %v16993_v10 = vld [vmem:[#allocation3 + $0x928] sm:$0xff]  ;;  %v4534_v15 = vunpack.c.l.b16 %v16899_v44  ;;  %v4535_v16 = vunpack.c.h.b16 %v16899_v44 }
 0x1d0   :  { %v16929_v17 = vpack.c.bf16 %v2173_v53, %v2172_v51  ;;  %869 = vadd.xlane.f32.xlu1 %v868_v34  ;;  %v822_v60 = vpop.xlane.xlu1 %821  ;;  %12522 = vmatpush1.bf16.msra.mxu0 %v14100_v22  ;;  %v5144_v12 = vrot.slane %v4279_v37, %v21071_v26  ;;  %v158_v34 = vld [vmem:[%s20918_s0 + $0x320] sm:$0xff]  ;;  %v1687_v51 = vsel %vm570_vm0, %v430_v32, 0.0  ;;  %v21072_v62 = vld [vmem:[#allocation13_spill] sm:$0xff]  ;;  %v14126_v44 = vcombine.low %v16956_v61, %v16958_v4 }
 0x1d1   :  { %866 = vadd.xlane.f32.xlu0 %v865_v3  ;;  %v2191_v58 = vmul.f32 0.0625, %v822_v60  ;;  %v819_v45 = vpop.xlane.xlu0 %818  ;;  %12850 = vmatpush1.bf16.msra.mxu1 %v14102_v7  ;;  %v16985_v3 = vsel %vm570_vm0, %v159_v29, 0.0  ;;  %v17009_v36 = vld [vmem:[#allocation3 + $0x960] sm:$0xff]  ;;  %v17017_v43 = vld [vmem:[#allocation3 + $0x948] sm:$0xff]  ;;  %v6404_v32 = vrot.slane %v4534_v15, %v21070_v38  ;;  %v6408_v29 = vrot.slane %v4535_v16, %v21071_v26 }
 0x1d2   :  { %v2190_v40 = vmul.f32 0.0625, %v819_v45  ;;  %12523 = vmatprep.subr.bf16.mxu0 %v14109_v24  ;;  %12851 = vmatprep.subr.bf16.mxu1 %v14111_v27  ;;  %v16989_v24 = vld [vmem:[#allocation3 + $0x920] sm:$0xff]  ;;  %v16991_v27 = vld [vmem:[#allocation3 + $0x908] sm:$0xff]  ;;  %v5145_v35 = vsel %vm4721_vm1, %v5144_v12, %v5140_v9  ;;  %v14140_v12 = vcombine.low %v17007_v18, %v17009_v36 }
 0x1d3   :  { %v415_v45 = vld [vmem:[%s20918_s0 + $0xb28] sm:$0xff]  ;;  %v14132_v4 = vcombine.low %v16981_v47, %v16989_v24  ;;  %v6409_v15 = vsel %vm4721_vm1, %v6408_v29, %v6404_v32  ;;  %v176_v32 = vld [vmem:[%s20918_s0 + $0x3b0] sm:$0xff]  ;;  %v458_v13 = vld [vmem:[%s20918_s0 + $0xc80] sm:$0xff] }
 0x1d4   :  { %v2661_v46 = vpack.c.bf16 %v2191_v58, %v2190_v40  ;;  %1637 = vadd.xlane.f32.xlu1 %v1636_v2  ;;  %v1536_v59 = vpop.xlane.xlu1 %1535  ;;  %12524 = vmatpush1.bf16.msra.mxu0 %v14108_v31  ;;  %v21073_v2 = vld [vmem:[#allocation14_spill] sm:$0xff]  ;;  %v1642_v9 = vsel %vm570_vm0, %v415_v45, 0.0 }
 0x1d5   :  { %1634 = vadd.xlane.f32.xlu0 %v1633_v5  ;;  %v2429_v6 = vmul.f32 0.0625, %v1536_v59  ;;  %12852 = vmatpush1.bf16.msra.mxu1 %v14110_v30  ;;  %v1533_v25 = vpop.xlane.xlu0 %1532  ;;  %v871_v5 = vsel %vm570_vm0, %v158_v34, 0.0  ;;  %v17028_v59 = vld [vmem:[#allocation3 + $0x980] sm:$0xff]  ;;  %v17046_v34 = vld [vmem:[#allocation3 + $0x9a8] sm:$0xff] }
 0x1d6   :  { %v4280_v22 = vunpack.c.l.b16 %v2661_v46  ;;  %v4281_v53 = vunpack.c.h.b16 %v2661_v46  ;;  %12525 = vmatprep.subr.bf16.mxu0 %v14117_v8  ;;  %12853 = vmatprep.subr.bf16.mxu1 %v14119_v28  ;;  %v2428_v7 = vmul.f32 0.0625, %v1533_v25  ;;  %v14133_v8 = vcombine.high %v16981_v47, %v16989_v24  ;;  %v17044_v25 = vld [vmem:[#allocation3 + $0x988] sm:$0xff] }
 0x1d7   :  { %v14135_v28 = vcombine.high %v16991_v27, %v16993_v10  ;;  %v14134_v46 = vcombine.low %v16991_v27, %v16993_v10 }
 0x1d8   :  { %v5149_v60 = vrot.slane %v4280_v22, %v21072_v62  ;;  %v5154_v33 = vrot.slane %v4281_v53, %v21073_v2  ;;  %923 = vadd.xlane.f32.xlu1 %v922_v50  ;;  %v1590_v31 = vpop.xlane.xlu1 %1589  ;;  %12526 = vmatpush1.bf16.msra.mxu0 %v14116_v57  ;;  %v17000_v37 = vpack.c.bf16 %v2429_v6, %v2428_v7  ;;  %v17019_v50 = vld [vmem:[#allocation3 + $0x968] sm:$0xff]  ;;  %v414_v22 = vld [vmem:[%s20918_s0 + $0xb20] sm:$0xff] }
 0x1d9   :  { %920 = vadd.xlane.f32.xlu0 %v919_v14  ;;  %v2447_v58 = vmul.f32 0.0625, %v1590_v31  ;;  %12854 = vmatpush1.bf16.msra.mxu1 %v14118_v48  ;;  %v1587_v40 = vpop.xlane.xlu0 %1586  ;;  %v17030_v14 = vld [vmem:[#allocation3 + $0x9a0] sm:$0xff]  ;;  %v14141_v53 = vcombine.high %v17007_v18, %v17009_v36  ;;  %v14143_v7 = vcombine.high %v17017_v43, %v17019_v50  ;;  %v1639_v16 = vsel %vm570_vm0, %v414_v22, 0.0  ;;  %v17072_v36 = vld [vmem:[#allocation3 + $0x9c8] sm:$0xff] }
 0x1da   :  { %v5150_v30 = vsel %vm4728_vm2, %v5149_v60, %v5145_v35  ;;  %12527 = vmatprep.subr.bf16.mxu0 %v14125_v41  ;;  %12855 = vmatprep.subr.bf16.mxu1 %v14127_v19  ;;  %v2446_v61 = vmul.f32 0.0625, %v1587_v40  ;;  %v4262_v41 = vunpack.c.l.b16 %v16929_v17  ;;  %v4263_v19 = vunpack.c.h.b16 %v16929_v17  ;;  %v177_v60 = vld [vmem:[%s20918_s0 + $0x3b8] sm:$0xff]  ;;  %v17066_v35 = vld [vmem:[#allocation3 + $0x9c0] sm:$0xff] }
 0x1db   :  { %v17022_v23 = vsel %vm20974_vm3, %v5154_v33, %v5150_v30  ;;  %v14149_v10 = vcombine.high %v17028_v59, %v17030_v14  ;;  %v14150_v33 = vcombine.low %v17044_v25, %v17046_v34  ;;  %v14151_v31 = vcombine.high %v17044_v25, %v17046_v34  ;;  %v17070_v18 = vld [vmem:[#allocation3 + $0x9e0] sm:$0xff]  ;;  %v17074_v30 = vld [vmem:[#allocation3 + $0x9e8] sm:$0xff] }
 0x1dc   :  { %1691 = vadd.xlane.f32.xlu1 %v1690_v20  ;;  %v774_v57 = vpop.xlane.xlu1 %773  ;;  %12528 = vmatpush1.bf16.msra.mxu0 %v14124_v0  ;;  %v2789_v6 = vpack.c.bf16 %v2447_v58, %v2446_v61  ;;  %v14142_v20 = vcombine.low %v17017_v43, %v17019_v50  ;;  %v5061_v40 = vrot.slane %v4262_v41, %v21070_v38  ;;  %v4519_v43 = vunpack.c.h.b16 %v17000_v37 }
 0x1dd   :  { %1688 = vadd.xlane.f32.xlu0 %v1687_v51  ;;  %v2175_v48 = vmul.f32 0.0625, %v774_v57  ;;  %12856 = vmatpush1.bf16.msra.mxu1 %v14126_v44  ;;  %v771_v47 = vpop.xlane.xlu0 %770  ;;  %v14148_v51 = vcombine.low %v17028_v59, %v17030_v14 }
 0x1de   :  { %12529 = vmatprep.subr.bf16.mxu0 %v14133_v8  ;;  %12857 = vmatprep.subr.bf16.mxu1 %v14135_v28  ;;  %v4536_v0 = vunpack.c.l.b16 %v2789_v6  ;;  %v4537_v24 = vunpack.c.h.b16 %v2789_v6  ;;  %v2174_v27 = vmul.f32 0.0625, %v771_v47  ;;  %v5065_v8 = vrot.slane %v4263_v19, %v21071_v26 }
 0x1df   :  { %v4518_v28 = vunpack.c.l.b16 %v17000_v37  ;;  %v928_v6 = vsel %vm570_vm0, %v177_v60, 0.0  ;;  %v14157_v37 = vcombine.high %v17066_v35, %v17070_v18 }
 0x1e0   :  { %875 = vadd.xlane.f32.xlu1 %v16985_v3  ;;  %v1542_v17 = vpop.xlane.xlu1 %1541  ;;  %12530 = vmatpush1.bf16.msra.mxu0 %v14132_v4  ;;  %v6413_v58 = vrot.slane %v4536_v0, %v21072_v62  ;;  %v6418_v3 = vrot.slane %v4537_v24, %v21073_v2  ;;  %v2653_v45 = vpack.c.bf16 %v2175_v48, %v2174_v27  ;;  %v925_v24 = vsel %vm570_vm0, %v176_v32, 0.0  ;;  %v432_v27 = vld [vmem:[%s20918_s0 + $0xbb0] sm:$0xff]  ;;  %v17146_v32 = vld [vmem:[#allocation3 + $0xa48] sm:$0xff] }
 0x1e1   :  { %872 = vadd.xlane.f32.xlu0 %v871_v5  ;;  %v2431_v44 = vmul.f32 0.0625, %v1542_v17  ;;  %12858 = vmatpush1.bf16.msra.mxu1 %v14134_v46  ;;  %v1539_v50 = vpop.xlane.xlu0 %1538  ;;  %v14159_v48 = vcombine.high %v17072_v36, %v17074_v30  ;;  %v6325_v47 = vrot.slane %v4518_v28, %v21070_v38 }
 0x1e2   :  { %12531 = vmatprep.subr.bf16.mxu0 %v14141_v53  ;;  %12859 = vmatprep.subr.bf16.mxu1 %v14143_v7  ;;  %v6414_v5 = vsel %vm4728_vm2, %v6413_v58, %v6409_v15  ;;  %v4264_v61 = vunpack.c.l.b16 %v2653_v45  ;;  %v4265_v4 = vunpack.c.h.b16 %v2653_v45  ;;  %v2430_v46 = vmul.f32 0.0625, %v1539_v50  ;;  %v17104_v15 = vld [vmem:[#allocation3 + $0xa00] sm:$0xff]  ;;  %v17111_v45 = vld [vmem:[#allocation3 + $0xa28] sm:$0xff] }
 0x1e3   :  { %v17085_v29 = vsel %vm20974_vm3, %v6418_v3, %v6414_v5  ;;  %v6329_v7 = vrot.slane %v4519_v43, %v21071_v26  ;;  %v17107_v58 = vld [vmem:[#allocation3 + $0xa20] sm:$0xff]  ;;  %v17109_v3 = vld [vmem:[#allocation3 + $0xa08] sm:$0xff] }
 0x1e4   :  { %1643 = vadd.xlane.f32.xlu1 %v1642_v9  ;;  %v828_v57 = vpop.xlane.xlu1 %827  ;;  %12532 = vmatpush1.bf16.msra.mxu0 %v14140_v12  ;;  %v5070_v22 = vrot.slane %v4264_v61, %v21072_v62  ;;  %v5075_v53 = vrot.slane %v4265_v4, %v21073_v2  ;;  %v2781_v41 = vpack.c.bf16 %v2431_v44, %v2430_v46  ;;  %v433_v9 = vld [vmem:[%s20918_s0 + $0xbb8] sm:$0xff]  ;;  %v17144_v46 = vld [vmem:[#allocation3 + $0xa60] sm:$0xff] }
 0x1e5   :  { %1640 = vadd.xlane.f32.xlu0 %v1639_v16  ;;  %v2193_v19 = vmul.f32 0.0625, %v828_v57  ;;  %12860 = vmatpush1.bf16.msra.mxu1 %v14142_v20  ;;  %v5066_v12 = vsel %vm4721_vm1, %v5065_v8, %v5061_v40  ;;  %v825_v0 = vpop.xlane.xlu0 %824  ;;  %v14158_v8 = vcombine.low %v17072_v36, %v17074_v30  ;;  %v161_v61 = vld [vmem:[%s20918_s0 + $0x338] sm:$0xff]  ;;  %v6330_v59 = vsel %vm4721_vm1, %v6329_v7, %v6325_v47  ;;  %v17141_v30 = vld [vmem:[#allocation3 + $0xa40] sm:$0xff]  ;;  %v17148_v57 = vld [vmem:[#allocation3 + $0xa68] sm:$0xff] }
 0x1e6   :  { %12533 = vmatprep.subr.bf16.mxu0 %v14149_v10  ;;  %12861 = vmatprep.subr.bf16.mxu1 %v14151_v31  ;;  %v5071_v17 = vsel %vm4728_vm2, %v5070_v22, %v5066_v12  ;;  %v4520_v20 = vunpack.c.l.b16 %v2781_v41  ;;  %v4521_v16 = vunpack.c.h.b16 %v2781_v41  ;;  %v2192_v60 = vmul.f32 0.0625, %v825_v0  ;;  %v21074_v41 = vld [vmem:[#allocation15_spill] sm:$0xff] }
 0x1e7   :  { %v17114_v44 = vsel %vm20974_vm3, %v5075_v53, %v5071_v17  ;;  %v1696_v10 = vsel %vm570_vm0, %v433_v9, 0.0  ;;  %v14156_v31 = vcombine.low %v17066_v35, %v17070_v18  ;;  %v160_v35 = vld [vmem:[%s20918_s0 + $0x330] sm:$0xff]  ;;  %v14165_v18 = vcombine.high %v17104_v15, %v17107_v58  ;;  %v21075_v9 = vld [vmem:[#allocation16_spill] sm:$0xff]  ;;  %v417_v0 = vld [vmem:[%s20918_s0 + $0xb38] sm:$0xff] }
 0x1e8   :  { %929 = vadd.xlane.f32.xlu1 %v928_v6  ;;  %v1596_v40 = vpop.xlane.xlu1 %1595  ;;  %12534 = vmatpush1.bf16.msra.mxu0 %v14148_v51  ;;  %v6334_v28 = vrot.slane %v4520_v20, %v21072_v62  ;;  %v6339_v43 = vrot.slane %v4521_v16, %v21073_v2  ;;  %v2662_v50 = vpack.c.bf16 %v2193_v19, %v2192_v60  ;;  %v1693_v51 = vsel %vm570_vm0, %v432_v27, 0.0  ;;  %v17171_v16 = vld [vmem:[#allocation3 + $0xa80] sm:$0xff] }
 0x1e9   :  { %926 = vadd.xlane.f32.xlu0 %v925_v24  ;;  %v2449_v5 = vmul.f32 0.0625, %v1596_v40  ;;  %12862 = vmatpush1.bf16.msra.mxu1 %v14150_v33  ;;  %v1593_v14 = vpop.xlane.xlu0 %1592  ;;  %v14167_v36 = vcombine.high %v17109_v3, %v17111_v45  ;;  %v14164_v22 = vcombine.low %v17104_v15, %v17107_v58  ;;  %v14166_v53 = vcombine.low %v17109_v3, %v17111_v45  ;;  %v416_v15 = vld [vmem:[%s20918_s0 + $0xb30] sm:$0xff]  ;;  %v3216_v40 = vld [vmem:[#allocation3 + $0xaa0] sm:$0xff] }
 0x1ea   :  { %12535 = vmatprep.subr.bf16.mxu0 %v14157_v37  ;;  %12863 = vmatprep.subr.bf16.mxu1 %v14159_v48  ;;  %v6335_v25 = vsel %vm4728_vm2, %v6334_v28, %v6330_v59  ;;  %v4282_v34 = vunpack.c.l.b16 %v2662_v50  ;;  %v4283_v33 = vunpack.c.h.b16 %v2662_v50  ;;  %v2448_v4 = vmul.f32 0.0625, %v1593_v14 }
 0x1eb   :  { %v17151_v6 = vsel %vm20974_vm3, %v6339_v43, %v6335_v25  ;;  %v880_v48 = vsel %vm570_vm0, %v161_v61, 0.0  ;;  %v877_v27 = vsel %vm570_vm0, %v160_v35, 0.0  ;;  %v14173_v17 = vcombine.high %v17141_v30, %v17144_v46 }
 0x1ec   :  { %1697 = vadd.xlane.f32.xlu1 %v1696_v10  ;;  %v780_v37 = vpop.xlane.xlu1 %779  ;;  %12536 = vmatpush1.bf16.msra.mxu0 %v14156_v31  ;;  %v5159_v19 = vrot.slane %v4282_v34, %v21074_v41  ;;  %v5164_v12 = vrot.slane %v4283_v33, %v21075_v9  ;;  %v2790_v47 = vpack.c.bf16 %v2449_v5, %v2448_v4  ;;  %v17175_v10 = vld [vmem:[#allocation3 + $0xa88] sm:$0xff]  ;;  %v1648_v43 = vsel %vm570_vm0, %v417_v0, 0.0  ;;  %v3220_v34 = vld [vmem:[#allocation3 + $0xac0] sm:$0xff] }
 0x1ed   :  { %1694 = vadd.xlane.f32.xlu0 %v1693_v51  ;;  %v2177_v7 = vmul.f32 0.0625, %v780_v37  ;;  %12864 = vmatpush1.bf16.msra.mxu1 %v14158_v8  ;;  %v777_v24 = vpop.xlane.xlu0 %776  ;;  %v14175_v20 = vcombine.high %v17146_v32, %v17148_v57  ;;  %v17177_v31 = vld [vmem:[#allocation3 + $0xaa8] sm:$0xff]  ;;  %v14172_v50 = vcombine.low %v17141_v30, %v17144_v46  ;;  %v1645_v35 = vsel %vm570_vm0, %v416_v15, 0.0 }
 0x1ee   :  { %12537 = vmatprep.subr.bf16.mxu0 %v14165_v18  ;;  %12865 = vmatprep.subr.bf16.mxu1 %v14167_v36  ;;  %v5160_v60 = vsel %vm20973_vm4, %v5159_v19, %v17022_v23  ;;  %v4538_v58 = vunpack.c.l.b16 %v2790_v47  ;;  %v4539_v3 = vunpack.c.h.b16 %v2790_v47  ;;  %v2176_v45 = vmul.f32 0.0625, %v777_v24  ;;  %v179_v18 = vld [vmem:[%s20918_s0 + $0x3c8] sm:$0xff]  ;;  %v178_v36 = vld [vmem:[%s20918_s0 + $0x3c0] sm:$0xff] }
 0x1ef   :  { %v17180_v8 = vsel %vm21076_vm7, %v5164_v12, %v5160_v60  ;;  %v14174_v23 = vcombine.low %v17146_v32, %v17148_v57  ;;  %v14181_v30 = vcombine.high %v17171_v16, %v3216_v40  ;;  %v14183_v25 = vcombine.high %v17175_v10, %v17177_v31  ;;  %v3224_v57 = vld [vmem:[#allocation3 + $0xae0] sm:$0xff]  ;;  %v3221_v37 = vld [vmem:[#allocation3 + $0xac8] sm:$0xff]  ;;  %vm21078_vm7 = vmmov %vm21077_vm5 }
 0x1f0   :  { %881 = vadd.xlane.f32.xlu1 %v880_v48  ;;  %v1548_v28 = vpop.xlane.xlu1 %1547  ;;  %12538 = vmatpush1.bf16.msra.mxu0 %v14164_v22  ;;  %v6423_v5 = vrot.slane %v4538_v58, %v21074_v41  ;;  %v6428_v61 = vrot.slane %v4539_v3, %v21075_v9  ;;  %v2654_v59 = vpack.c.bf16 %v2177_v7, %v2176_v45  ;;  %v3225_v48 = vld [vmem:[#allocation3 + $0xae8] sm:$0xff]  ;;  %v934_v0 = vsel %vm570_vm0, %v179_v18, 0.0  ;;  %v3228_v60 = vld [vmem:[#allocation3 + $0xb00] sm:$0xff] }
 0x1f1   :  { %878 = vadd.xlane.f32.xlu0 %v877_v27  ;;  %v2433_v14 = vmul.f32 0.0625, %v1548_v28  ;;  %12866 = vmatpush1.bf16.msra.mxu1 %v14166_v53  ;;  %v1545_v51 = vpop.xlane.xlu0 %1544  ;;  %v14180_v19 = vcombine.low %v17171_v16, %v3216_v40  ;;  %v14182_v12 = vcombine.low %v17175_v10, %v17177_v31  ;;  %v931_v27 = vsel %vm570_vm0, %v178_v36, 0.0  ;;  %v435_v15 = vld [vmem:[%s20918_s0 + $0xbc8] sm:$0xff]  ;;  %v3232_v40 = vld [vmem:[#allocation3 + $0xb20] sm:$0xff] }
 0x1f2   :  { %12539 = vmatprep.subr.bf16.mxu0 %v14173_v17  ;;  %12867 = vmatprep.subr.bf16.mxu1 %v14175_v20  ;;  %v6424_v33 = vsel %vm20973_vm4, %v6423_v5, %v17085_v29  ;;  %v4266_v4 = vunpack.c.l.b16 %v2654_v59  ;;  %v4267_v46 = vunpack.c.h.b16 %v2654_v59  ;;  %v2432_v32 = vmul.f32 0.0625, %v1545_v51  ;;  %v434_v17 = vld [vmem:[%s20918_s0 + $0xbc0] sm:$0xff]  ;;  %v3229_v10 = vld [vmem:[#allocation3 + $0xb08] sm:$0xff] }
 0x1f3   :  { %v17202_v22 = vsel %vm21077_vm5, %v6428_v61, %v6424_v33  ;;  %v14189_v20 = vcombine.high %v3220_v34, %v3224_v57  ;;  %v14191_v16 = vcombine.high %v3221_v37, %v3225_v48  ;;  %v3233_v31 = vld [vmem:[#allocation3 + $0xb28] sm:$0xff]  ;;  %v14190_v61 = vcombine.low %v3221_v37, %v3225_v48 }
 0x1f4   :  { %1649 = vadd.xlane.f32.xlu1 %v1648_v43  ;;  %v17204_v53 = vpop.xlane.xlu1 %833  ;;  %12540 = vmatpush1.bf16.msra.mxu0 %v14172_v50  ;;  %v5080_v29 = vrot.slane %v4266_v4, %v21074_v41  ;;  %v5085_v47 = vrot.slane %v4267_v46, %v21075_v9  ;;  %v2782_v7 = vpack.c.bf16 %v2433_v14, %v2432_v32  ;;  %v1699_v14 = vsel %vm570_vm0, %v434_v17, 0.0  ;;  %v163_v51 = vld [vmem:[%s20918_s0 + $0x348] sm:$0xff] }
 0x1f5   :  { %1646 = vadd.xlane.f32.xlu0 %v1645_v35  ;;  %12868 = vmatpush1.bf16.msra.mxu1 %v14174_v23  ;;  %v17212_v24 = vpop.xlane.xlu0 %830  ;;  %v14188_v50 = vcombine.low %v3220_v34, %v3224_v57  ;;  %v162_v35 = vld [vmem:[%s20918_s0 + $0x340] sm:$0xff]  ;;  %v14197_v18 = vcombine.high %v3228_v60, %v3232_v40  ;;  %v14199_v36 = vcombine.high %v3229_v10, %v3233_v31  ;;  %v3237_v33 = vld [vmem:[#allocation3 + $0xb48] sm:$0xff]  ;;  %v886_v37 = vsel %vm570_vm0, %v163_v51, 0.0 }
 0x1f6   :  { %12541 = vmatprep.subr.bf16.mxu0 %v14181_v30  ;;  %12869 = vmatprep.subr.bf16.mxu1 %v14183_v25  ;;  %v5081_v58 = vsel %vm20973_vm4, %v5080_v29, %v17114_v44  ;;  %v4522_v3 = vunpack.c.l.b16 %v2782_v7  ;;  %v4523_v45 = vunpack.c.h.b16 %v2782_v7  ;;  %v1702_v44 = vsel %vm570_vm0, %v435_v15, 0.0  ;;  %v3236_v30 = vld [vmem:[#allocation3 + $0xb40] sm:$0xff]  ;;  %v3241_v4 = vld [vmem:[#allocation3 + $0xb68] sm:$0xff] }
 0x1f7   :  { %v17224_v28 = vsel %vm21078_vm7, %v5085_v47, %v5081_v58  ;;  %v3240_v34 = vld [vmem:[#allocation3 + $0xb60] sm:$0xff]  ;;  %v14196_v57 = vcombine.low %v3228_v60, %v3232_v40  ;;  %v14198_v48 = vcombine.low %v3229_v10, %v3233_v31  ;;  %v14207_v7 = vcombine.high %v3237_v33, %v3241_v4  ;;  %v3245_v15 = vld [vmem:[#allocation3 + $0xb88] sm:$0xff]  ;;  %v181_v40 = vld [vmem:[%s20918_s0 + $0x3d8] sm:$0xff] }
 0x1f8   :  { %935 = vadd.xlane.f32.xlu1 %v934_v0  ;;  %v17226_v43 = vpop.xlane.xlu1 %1601  ;;  %12542 = vmatpush1.bf16.msra.mxu0 %v14180_v19  ;;  %v6344_v23 = vrot.slane %v4522_v3, %v21074_v41  ;;  %v6349_v5 = vrot.slane %v4523_v45, %v21075_v9  ;;  %v418_v29 = vld [vmem:[%s20918_s0 + $0xb40] sm:$0xff]  ;;  %v14205_v47 = vcombine.high %v3236_v30, %v3240_v34  ;;  %v3249_v17 = vld [vmem:[#allocation3 + $0xba8] sm:$0xff]  ;;  %v180_v10 = vld [vmem:[%s20918_s0 + $0x3d0] sm:$0xff]  ;;  %vm21084_vm7 = vcmask 523712  }
 0x1f9   :  { %932 = vadd.xlane.f32.xlu0 %v931_v27  ;;  %12870 = vmatpush1.bf16.msra.mxu1 %v14182_v12  ;;  %v17231_v59 = vpop.xlane.xlu0 %1598  ;;  %v419_v12 = vld [vmem:[%s20918_s0 + $0xb48] sm:$0xff]  ;;  %v3244_v0 = vld [vmem:[#allocation3 + $0xb80] sm:$0xff]  ;;  %v14206_v58 = vcombine.low %v3237_v33, %v3241_v4  ;;  %v1651_v45 = vsel %vm570_vm0, %v418_v29, 0.0  ;;  %v436_v4 = vld [vmem:[%s20918_s0 + $0xbd0] sm:$0xff]  ;;  %vm21087_vm3 = vcmask 589312  }
 0x1fa   :  { %12543 = vmatprep.subr.bf16.mxu0 %v14189_v20  ;;  %12871 = vmatprep.subr.bf16.mxu1 %v14191_v16  ;;  %v6345_v25 = vsel %vm20973_vm4, %v6344_v23, %v17151_v6  ;;  %v883_v6 = vsel %vm570_vm0, %v162_v35, 0.0  ;;  %v3248_v27 = vld [vmem:[#allocation3 + $0xba0] sm:$0xff]  ;;  %v14204_v16 = vcombine.low %v3236_v30, %v3240_v34  ;;  %v1654_v60 = vsel %vm570_vm0, %v419_v12, 0.0 }
 0x1fb   :  { %v17243_v46 = vsel %vm21077_vm5, %v6349_v5, %v6345_v25  ;;  %v14213_v31 = vcombine.high %v3244_v0, %v3248_v27  ;;  %v3252_v23 = vld [vmem:[#allocation3 + $0xbc0] sm:$0xff]  ;;  %v14212_v51 = vcombine.low %v3244_v0, %v3248_v27  ;;  %v940_v35 = vsel %vm570_vm0, %v181_v40, 0.0  ;;  %v437_v25 = vld [vmem:[%s20918_s0 + $0xbd8] sm:$0xff]  ;;  %v17309_v40 = vld [vmem:[#allocation3 + $0xc08] sm:$0xff] }
 0x1fc   :  { %1703 = vadd.xlane.f32.xlu1 %v1702_v44  ;;  %v17245_v32 = vpop.xlane.xlu1 %785  ;;  %12544 = vmatpush1.bf16.msra.mxu0 %v14188_v50  ;;  %v14215_v50 = vcombine.high %v3245_v15, %v3249_v17  ;;  %v3256_v5 = vld [vmem:[#allocation3 + $0xbe0] sm:$0xff]  ;;  %v3253_v44 = vld [vmem:[#allocation3 + $0xbc8] sm:$0xff]  ;;  %v937_v30 = vsel %vm570_vm0, %v180_v10, 0.0  ;;  %v1705_v29 = vsel %vm570_vm0, %v436_v4, 0.0  ;;  %21081 = vst [vmem:[#allocation17_spill] sm:$0xff] %v17309_v40  ;;  %vm21085_vm5 = vmmov %vm21084_vm7 }
 0x1fd   :  { %1700 = vadd.xlane.f32.xlu0 %v1699_v14  ;;  %12872 = vmatpush1.bf16.msra.mxu1 %v14190_v61  ;;  %v17248_v19 = vpop.xlane.xlu0 %782  ;;  %v3257_v61 = vld [vmem:[#allocation3 + $0xbe8] sm:$0xff]  ;;  %v14221_v34 = vcombine.high %v3252_v23, %v3256_v5  ;;  %vm21086_vm4 = vmmov %vm21085_vm5 }
 0x1fe   :  { %12545 = vmatprep.subr.bf16.mxu0 %v14197_v18  ;;  %12873 = vmatprep.subr.bf16.mxu1 %v14199_v36  ;;  %v14214_v18 = vcombine.low %v3245_v15, %v3249_v17  ;;  %v14223_v33 = vcombine.high %v3253_v44, %v3257_v61  ;;  %v439_v4 = vld [vmem:[%s20918_s0 + $0xbe8] sm:$0xff] }
 0x200   :  { %887 = vadd.xlane.f32.xlu1 %v886_v37  ;;  %v17257_v20 = vpop.xlane.xlu1 %1553  ;;  %12546 = vmatpush1.bf16.msra.mxu0 %v14196_v57  ;;  %v14220_v37 = vcombine.low %v3252_v23, %v3256_v5 }
 0x201   :  { %884 = vadd.xlane.f32.xlu0 %v883_v6  ;;  %12874 = vmatpush1.bf16.msra.mxu1 %v14198_v48  ;;  %v17260_v3 = vpop.xlane.xlu0 %1550  ;;  %v1708_v48 = vsel %vm570_vm0, %v437_v25, 0.0  ;;  %v14222_v6 = vcombine.low %v3253_v44, %v3257_v61  ;;  %v183_v61 = vld [vmem:[%s20918_s0 + $0x3e8] sm:$0xff]  ;;  %v2194_v25 = vmul.f32 0.0625, %v17212_v24  ;;  %v438_v24 = vld [vmem:[%s20918_s0 + $0xbe0] sm:$0xff] }
 0x202   :  { %12547 = vmatprep.subr.bf16.mxu0 %v14205_v47  ;;  %12875 = vmatprep.subr.bf16.mxu1 %v14207_v7  ;;  %v165_v47 = vld [vmem:[%s20918_s0 + $0x358] sm:$0xff]  ;;  %v164_v7 = vld [vmem:[%s20918_s0 + $0x350] sm:$0xff] }
 0x203   :  { %v892_v27 = vsel %vm570_vm0, %v165_v47, 0.0  ;;  %v889_v17 = vsel %vm570_vm0, %v164_v7, 0.0  ;;  %v2179_v47 = vmul.f32 0.0625, %v17245_v32  ;;  %v184_v32 = vld [vmem:[%s20918_s0 + $0x3f0] sm:$0xff] }
 0x204   :  { %1655 = vadd.xlane.f32.xlu1 %v1654_v60  ;;  %v17269_v14 = vpop.xlane.xlu1 %839  ;;  %12548 = vmatpush1.bf16.msra.mxu0 %v14204_v16  ;;  %v421_v16 = vld [vmem:[%s20918_s0 + $0xb58] sm:$0xff]  ;;  %v420_v60 = vld [vmem:[%s20918_s0 + $0xb50] sm:$0xff] }
 0x205   :  { %1652 = vadd.xlane.f32.xlu0 %v1651_v45  ;;  %12876 = vmatpush1.bf16.msra.mxu1 %v14206_v58  ;;  %v17272_v36 = vpop.xlane.xlu0 %836  ;;  %v17305_v58 = vld [vmem:[#allocation3 + $0xc00] sm:$0xff]  ;;  %v1660_v23 = vsel %vm570_vm0, %v421_v16, 0.0  ;;  %v1657_v44 = vsel %vm570_vm0, %v420_v60, 0.0  ;;  %v185_v16 = vld [vmem:[%s20918_s0 + $0x3f8] sm:$0xff] }
 0x206   :  { %12549 = vmatprep.subr.bf16.mxu0 %v14213_v31  ;;  %12877 = vmatprep.subr.bf16.mxu1 %v14215_v50  ;;  %21079 = vst [vmem:[#allocation26_spill] sm:$0xff] %v17305_v58  ;;  %v17307_v45 = vld [vmem:[#allocation3 + $0xc20] sm:$0xff]  ;;  %v17315_v50 = vld [vmem:[#allocation3 + $0xc28] sm:$0xff] }
 0x207   :  { %21080 = vst [vmem:[#allocation18_spill] sm:$0xff] %v17307_v45  ;;  %v14229_v31 = vcombine.high %v17305_v58, %v17307_v45  ;;  %21082 = vst [vmem:[#allocation20_spill] sm:$0xff] %v17315_v50 }
 0x208   :  { %941 = vadd.xlane.f32.xlu1 %v940_v35  ;;  %v17281_v57 = vpop.xlane.xlu1 %1607  ;;  %12550 = vmatpush1.bf16.msra.mxu0 %v14212_v51  ;;  %v203_v35 = vld [vmem:[%s20918_s0 + $0x488] sm:$0xff] }
 0x209   :  { %938 = vadd.xlane.f32.xlu0 %v937_v30  ;;  %12878 = vmatpush1.bf16.msra.mxu1 %v14214_v18  ;;  %v17284_v12 = vpop.xlane.xlu0 %1604  ;;  %v14231_v18 = vcombine.high %v17309_v40, %v17315_v50  ;;  %v2195_v30 = vmul.f32 0.0625, %v17204_v53  ;;  %v946_v53 = vsel %vm570_vm0, %v183_v61, 0.0  ;;  %v459_v51 = vld [vmem:[%s20918_s0 + $0xc88] sm:$0xff] }
 0x20a   :  { %12551 = vmatprep.subr.bf16.mxu0 %v14221_v34  ;;  %12879 = vmatprep.subr.bf16.mxu1 %v14223_v33  ;;  %v182_v34 = vld [vmem:[%s20918_s0 + $0x3e0] sm:$0xff] }
 0x20b   :  { %v943_v7 = vsel %vm570_vm0, %v182_v34, 0.0  ;;  %v17366_v60 = vpack.c.bf16 %v2195_v30, %v2194_v25  ;;  %v440_v30 = vld [vmem:[%s20918_s0 + $0xbf0] sm:$0xff] }
 0x20c   :  { %1709 = vadd.xlane.f32.xlu1 %v1708_v48  ;;  %v17293_v0 = vpop.xlane.xlu1 %791  ;;  %12552 = vmatpush1.bf16.msra.mxu0 %v14220_v37  ;;  %v2451_v37 = vmul.f32 0.0625, %v17226_v43  ;;  %v2450_v48 = vmul.f32 0.0625, %v17231_v59  ;;  %v2178_v43 = vmul.f32 0.0625, %v17248_v19  ;;  %v17436_v9 = vsel %vm570_vm0, %v440_v30, 0.0 }
 0x20d   :  { %1706 = vadd.xlane.f32.xlu0 %v1705_v29  ;;  %12880 = vmatpush1.bf16.msra.mxu1 %v14222_v6  ;;  %v17296_v15 = vpop.xlane.xlu0 %788  ;;  %v167_v6 = vld [vmem:[%s20918_s0 + $0x368] sm:$0xff]  ;;  %v166_v29 = vld [vmem:[%s20918_s0 + $0x360] sm:$0xff]  ;;  %v2181_v38 = vmul.f32 0.0625, %v17293_v0 }
 0x20e   :  { %12562 = vmatprep.subr.bf16.mxu0 %v14229_v31  ;;  %12890 = vmatprep.subr.bf16.mxu1 %v14231_v18  ;;  %v1714_v31 = vsel %vm570_vm0, %v439_v4, 0.0  ;;  %v895_v61 = vsel %vm570_vm0, %v166_v29, 0.0  ;;  %v441_v18 = vld [vmem:[%s20918_s0 + $0xbf8] sm:$0xff]  ;;  %v17383_v25 = vpack.c.bf16 %v2451_v37, %v2450_v48  ;;  %v17403_v48 = vpack.c.bf16 %v2179_v47, %v2178_v43  ;;  %v202_v47 = vld [vmem:[%s20918_s0 + $0x480] sm:$0xff] }
 0x20f   :  { %v425_v37 = vld [vmem:[%s20918_s0 + $0xb78] sm:$0xff]  ;;  %v2435_v29 = vmul.f32 0.0625, %v17257_v20  ;;  %v4284_v20 = vunpack.c.l.b16 %v17366_v60  ;;  %v2196_v43 = vmul.f32 0.0625, %v17272_v36  ;;  %v17455_v30 = vsel %vm570_vm0, %v202_v47, 0.0 }
 0x210   :  { %893 = vadd.xlane.f32.xlu1 %v892_v27  ;;  %v17311_v10 = vpop.xlane.xlu1 %1559  ;;  %v423_v27 = vld [vmem:[%s20918_s0 + $0xb68] sm:$0xff]  ;;  %v4540_v41 = vunpack.c.l.b16 %v17383_v25  ;;  %v4285_v47 = vunpack.c.h.b16 %v17366_v60  ;;  %v2180_v50 = vmul.f32 0.0625, %v17296_v15  ;;  %v205_v60 = vld [vmem:[%s20918_s0 + $0x498] sm:$0xff] }
 0x211   :  { %890 = vadd.xlane.f32.xlu0 %v889_v17  ;;  %v17318_v5 = vpop.xlane.xlu0 %1556  ;;  %v422_v17 = vld [vmem:[%s20918_s0 + $0xb60] sm:$0xff]  ;;  %v17386_v34 = vsel %vm570_vm0, %v423_v27, 0.0 }
 0x212   :  { %v17389_v4 = vsel %vm570_vm0, %v422_v17, 0.0  ;;  %v17410_v17 = vsel %vm570_vm0, %v184_v32, 0.0  ;;  %v17425_v32 = vsel %vm570_vm0, %v441_v18, 0.0  ;;  %v17445_v18 = vsel %vm570_vm0, %v425_v37, 0.0 }
 0x213   :  { %v17463_v37 = vsel %vm570_vm0, %v459_v51, 0.0  ;;  %v2453_v51 = vmul.f32 0.0625, %v17281_v57  ;;  %v4269_v57 = vunpack.c.h.b16 %v17403_v48 }
 0x214   :  { %1661 = vadd.xlane.f32.xlu1 %v1660_v23  ;;  %v17335_v33 = vpop.xlane.xlu1 %845  ;;  %v1711_v23 = vsel %vm570_vm0, %v438_v24, 0.0  ;;  %v169_v24 = vld [vmem:[%s20918_s0 + $0x378] sm:$0xff] }
 0x215   :  { %1658 = vadd.xlane.f32.xlu0 %v1657_v44  ;;  %v17354_v59 = vpop.xlane.xlu0 %842  ;;  %v898_v44 = vsel %vm570_vm0, %v167_v6, 0.0  ;;  %v168_v6 = vld [vmem:[%s20918_s0 + $0x370] sm:$0xff] }
 0x216   :  { %v17442_v36 = vsel %vm570_vm0, %v168_v6, 0.0 }
 0x218   :  { %947 = vadd.xlane.f32.xlu1 %v946_v53  ;;  %v17371_v19 = vpop.xlane.xlu1 %1613  ;;  %v17392_v53 = vsel %vm570_vm0, %v185_v16, 0.0  ;;  %v424_v16 = vld [vmem:[%s20918_s0 + $0xb70] sm:$0xff] }
 0x219   :  { %944 = vadd.xlane.f32.xlu0 %v943_v7  ;;  %v2434_v7 = vmul.f32 0.0625, %v17260_v3  ;;  %v17407_v27 = vpop.xlane.xlu0 %1610  ;;  %v2197_v3 = vmul.f32 0.0625, %v17269_v14  ;;  %v17439_v14 = vsel %vm570_vm0, %v169_v24, 0.0  ;;  %v17449_v2 = vsel %vm570_vm0, %v424_v16, 0.0  ;;  %v186_v16 = vld [vmem:[%s20918_s0 + $0x400] sm:$0xff] }
 0x21a   :  { %v4268_v24 = vunpack.c.l.b16 %v17403_v48  ;;  %v17497_v0 = vsel %vm570_vm0, %v186_v16, 0.0 }
 0x21b   :  { %v17458_v62 = vpack.c.bf16 %v2435_v29, %v2434_v7  ;;  %v5169_v29 = vrot.slane %v4284_v20, %v15755_v42  ;;  %v4541_v7 = vunpack.c.h.b16 %v17383_v25  ;;  %v17477_v26 = vpack.c.bf16 %v2197_v3, %v2196_v43  ;;  %v204_v25 = vld [vmem:[%s20918_s0 + $0x490] sm:$0xff]  ;;  %21083 = vst [vmem:[#allocation19_spill] sm:$0xff] %v17497_v0 }
 0x21c   :  { %1715 = vadd.xlane.f32.xlu1 %v1714_v31  ;;  %v17433_v39 = vpop.xlane.xlu1 %797  ;;  %v17452_v31 = vsel %vm570_vm0, %v203_v35, 0.0  ;;  %v187_v35 = vld [vmem:[%s20918_s0 + $0x408] sm:$0xff]  ;;  %v6433_v20 = vrot.slane %v4540_v41, %v15755_v42  ;;  %v5090_v15 = vrot.slane %v4268_v24, %v15755_v42  ;;  %v2437_v3 = vmul.f32 0.0625, %v17311_v10 }
 0x21d   :  { %1712 = vadd.xlane.f32.xlu0 %v1711_v23  ;;  %v17460_v6 = vpop.xlane.xlu0 %794  ;;  %v17466_v23 = vsel %vm570_vm0, %v458_v13, 0.0  ;;  %v2452_v13 = vmul.f32 0.0625, %v17284_v12  ;;  %v17494_v12 = vsel %vm570_vm0, %v187_v35, 0.0  ;;  %v2436_v43 = vmul.f32 0.0625, %v17318_v5 }
 0x21e   :  { %v5174_v41 = vrot.slane %v4285_v47, %v15766_v52  ;;  %v4286_v48 = vunpack.c.l.b16 %v17477_v26  ;;  %v17509_v35 = vsel %vm570_vm0, %v204_v25, 0.0  ;;  %v5170_v24 = vsel %vm21023_vm6, %v5169_v29, %v17180_v8  ;;  %v443_v8 = vld [vmem:[%s20918_s0 + $0xc08] sm:$0xff] }
 0x21f   :  { %v6438_v16 = vrot.slane %v4541_v7, %v15766_v52  ;;  %v2792_v58 = vpack.c.bf16 %v2453_v51, %v2452_v13  ;;  %v2656_v10 = vpack.c.bf16 %v2181_v38, %v2180_v50  ;;  %v6434_v47 = vsel %vm21023_vm6, %v6433_v20, %v17202_v22  ;;  %v442_v38 = vld [vmem:[%s20918_s0 + $0xc00] sm:$0xff] }
 0x220   :  { %899 = vadd.xlane.f32.xlu1 %v898_v44  ;;  %v17483_v40 = vpop.xlane.xlu1 %1565  ;;  %v4524_v44 = vunpack.c.l.b16 %v17458_v62  ;;  %v5095_v0 = vrot.slane %v4269_v57, %v15766_v52  ;;  %v2198_v25 = vmul.f32 0.0625, %v17354_v59  ;;  %v5091_v50 = vsel %vm21023_vm6, %v5090_v15, %v17224_v28 }
 0x221   :  { %896 = vadd.xlane.f32.xlu0 %v895_v61  ;;  %v1563_v45 = vpop.xlane.xlu0 %1562  ;;  %v17506_v61 = vsel %vm570_vm0, %v205_v60, 0.0  ;;  %v2199_v60 = vmul.f32 0.0625, %v17335_v33  ;;  %v4525_v22 = vunpack.c.h.b16 %v17458_v62  ;;  %v2784_v33 = vpack.c.bf16 %v2437_v3, %v2436_v43 }
 0x222   :  { %v4287_v59 = vunpack.c.h.b16 %v17477_v26  ;;  %v2455_v7 = vmul.f32 0.0625, %v17371_v19  ;;  %v2454_v51 = vmul.f32 0.0625, %v17407_v27  ;;  %v4542_v13 = vunpack.c.l.b16 %v2792_v58 }
 0x223   :  { %v4270_v20 = vunpack.c.l.b16 %v2656_v10  ;;  %v17537_v28 = vsel %vm570_vm0, %v443_v8, 0.0  ;;  %v17540_v62 = vsel %vm570_vm0, %v442_v38, 0.0  ;;  %v5175_v15 = vsel %vm21084_vm7, %v5174_v41, %v5170_v24  ;;  %vm21089_vm7 = vmmov %vm21085_vm5 }
 0x224   :  { %1667 = vadd.xlane.f32.xlu1 %v17386_v34  ;;  %v852_v5 = vpop.xlane.xlu1 %851  ;;  %v6354_v34 = vrot.slane %v4524_v44, %v15755_v42  ;;  %v6439_v26 = vsel %vm21085_vm5, %v6438_v16, %v6434_v47  ;;  %v5096_v44 = vsel %vm21086_vm4, %v5095_v0, %v5091_v50  ;;  %v2665_v19 = vpack.c.bf16 %v2199_v60, %v2198_v25  ;;  %vm21088_vm4 = vmmov %vm21087_vm3 }
 0x225   :  { %1664 = vadd.xlane.f32.xlu0 %v17389_v4  ;;  %v849_v29 = vpop.xlane.xlu0 %848  ;;  %v5179_v4 = vrot.slane %v4286_v48, %v15769_v55  ;;  %v4543_v3 = vunpack.c.h.b16 %v2792_v58  ;;  %v4526_v43 = vunpack.c.l.b16 %v2784_v33  ;;  %v5184_v38 = vrot.slane %v4287_v59, %v15772_v56  ;;  %vm21090_vm5 = vmmov %vm21087_vm3 }
 0x226   :  { %v6355_v27 = vsel %vm21023_vm6, %v6354_v34, %v17243_v46  ;;  %v4271_v41 = vunpack.c.h.b16 %v2656_v10  ;;  %v2793_v24 = vpack.c.bf16 %v2455_v7, %v2454_v51  ;;  %v6443_v16 = vrot.slane %v4542_v13, %v15769_v55 }
 0x227   :  { %v5180_v8 = vsel %vm21087_vm3, %v5179_v4, %v5175_v15  ;;  %v5100_v0 = vrot.slane %v4270_v20, %v15769_v55  ;;  %v2182_v47 = vmul.f32 0.0625, %v17460_v6  ;;  %v4527_v58 = vunpack.c.h.b16 %v2784_v33 }
 0x228   :  { %953 = vadd.xlane.f32.xlu1 %v17392_v53  ;;  %v1620_v57 = vpop.xlane.xlu1 %1619  ;;  %v6359_v53 = vrot.slane %v4525_v22, %v15766_v52  ;;  %v4288_v60 = vunpack.c.l.b16 %v2665_v19  ;;  %v2201_v25 = vmul.f32 0.0625, %v852_v5  ;;  %v2200_v50 = vmul.f32 0.0625, %v849_v29 }
 0x229   :  { %950 = vadd.xlane.f32.xlu0 %v17410_v17  ;;  %v1617_v48 = vpop.xlane.xlu0 %1616  ;;  %v2183_v17 = vmul.f32 0.0625, %v17433_v39  ;;  %v6448_v10 = vrot.slane %v4543_v3, %v15772_v56  ;;  %v6364_v22 = vrot.slane %v4526_v43, %v15769_v55  ;;  %v2439_v34 = vmul.f32 0.0625, %v17483_v40 }
 0x22a   :  { %v2438_v59 = vmul.f32 0.0625, %v1563_v45  ;;  %v5105_v39 = vrot.slane %v4271_v41, %v15772_v56  ;;  %v4544_v6 = vunpack.c.l.b16 %v2793_v24  ;;  %v2457_v7 = vmul.f32 0.0625, %v1620_v57 }
 0x22b   :  { %v6444_v33 = vsel %vm21087_vm3, %v6443_v16, %v6439_v26  ;;  %v5101_v5 = vsel %vm21088_vm4, %v5100_v0, %v5096_v44  ;;  %v4289_v29 = vunpack.c.h.b16 %v2665_v19  ;;  %v2657_v51 = vpack.c.bf16 %v2183_v17, %v2182_v47 }
 0x22c   :  { %1721 = vadd.xlane.f32.xlu1 %v17425_v32  ;;  %v804_v46 = vpop.xlane.xlu1 %803  ;;  %v2456_v32 = vmul.f32 0.0625, %v1617_v48  ;;  %v6360_v13 = vsel %vm21089_vm7, %v6359_v53, %v6355_v27  ;;  %v6369_v40 = vrot.slane %v4527_v58, %v15772_v56  ;;  %v5189_v45 = vrot.slane %v4288_v60, %v15795_v11 }
 0x22d   :  { %1718 = vadd.xlane.f32.xlu0 %v17436_v9  ;;  %v801_v4 = vpop.xlane.xlu0 %800  ;;  %v2666_v20 = vpack.c.bf16 %v2201_v25, %v2200_v50  ;;  %v5185_v57 = vsel %vm4777_vm9, %v5184_v38, %v5180_v8  ;;  %v6365_v15 = vsel %vm21090_vm5, %v6364_v22, %v6360_v13  ;;  %v4545_v26 = vunpack.c.h.b16 %v2793_v24 }
 0x22e   :  { %v2785_v44 = vpack.c.bf16 %v2439_v34, %v2438_v59  ;;  %v6449_v3 = vsel %vm4777_vm9, %v6448_v10, %v6444_v33  ;;  %v6453_v27 = vrot.slane %v4544_v6, %v15795_v11  ;;  %v2794_v53 = vpack.c.bf16 %v2457_v7, %v2456_v32 }
 0x22f   :  { %v5194_v43 = vrot.slane %v4289_v29, %v15798_v21  ;;  %v4272_v48 = vunpack.c.l.b16 %v2657_v51  ;;  %v2185_v41 = vmul.f32 0.0625, %v804_v46  ;;  %v2184_v16 = vmul.f32 0.0625, %v801_v4 }
 0x230   :  { %905 = vadd.xlane.f32.xlu1 %v17439_v14  ;;  %v1572_v9 = vpop.xlane.xlu1 %1571  ;;  %v5106_v14 = vsel %vm4777_vm9, %v5105_v39, %v5101_v5  ;;  %v6370_v8 = vsel %vm4777_vm9, %v6369_v40, %v6365_v15  ;;  %v5190_v38 = vsel %vm4784_vm10, %v5189_v45, %v5185_v57  ;;  %v4290_v24 = vunpack.c.l.b16 %v2666_v20 }
 0x231   :  { %902 = vadd.xlane.f32.xlu0 %v17442_v36  ;;  %v1569_v19 = vpop.xlane.xlu0 %1568  ;;  %v6458_v17 = vrot.slane %v4545_v26, %v15798_v21  ;;  %v4528_v47 = vunpack.c.l.b16 %v2785_v44  ;;  %v2441_v58 = vmul.f32 0.0625, %v1572_v9  ;;  %v6454_v46 = vsel %vm4784_vm10, %v6453_v27, %v6449_v3 }
 0x232   :  { %v2440_v60 = vmul.f32 0.0625, %v1569_v19  ;;  %v4273_v50 = vunpack.c.h.b16 %v2657_v51  ;;  %v4546_v10 = vunpack.c.l.b16 %v2794_v53  ;;  %v5195_v22 = vsel %vm4791_vm11, %v5194_v43, %v5190_v38 }
 0x233   :  { %v5110_v34 = vrot.slane %v4272_v48, %v15795_v11  ;;  %v4291_v59 = vunpack.c.h.b16 %v2666_v20  ;;  %v2658_v4 = vpack.c.bf16 %v2185_v41, %v2184_v16  ;;  %v4529_v39 = vunpack.c.h.b16 %v2785_v44 }
 0x234   :  { %1673 = vadd.xlane.f32.xlu1 %v17445_v18  ;;  %v858_v36 = vpop.xlane.xlu1 %857  ;;  %v5199_v6 = vrot.slane %v4290_v24, %v15850_v1  ;;  %v6459_v33 = vsel %vm4791_vm11, %v6458_v17, %v6454_v46  ;;  %v6374_v5 = vrot.slane %v4528_v47, %v15795_v11  ;;  %v4547_v29 = vunpack.c.h.b16 %v2794_v53 }
 0x235   :  { %1670 = vadd.xlane.f32.xlu0 %v17449_v2  ;;  %v2203_v0 = vmul.f32 0.0625, %v858_v36  ;;  %v855_v25 = vpop.xlane.xlu0 %854  ;;  %v2786_v51 = vpack.c.bf16 %v2441_v58, %v2440_v60  ;;  %v5115_v13 = vrot.slane %v4273_v50, %v15798_v21  ;;  %v6463_v40 = vrot.slane %v4546_v10, %v15850_v1 }
 0x236   :  { %v2202_v18 = vmul.f32 0.0625, %v855_v25  ;;  %v5111_v20 = vsel %vm4784_vm10, %v5110_v34, %v5106_v14  ;;  %v5204_v57 = vrot.slane %v4291_v59, %v15866_v54  ;;  %v4274_v15 = vunpack.c.l.b16 %v2658_v4  ;;  %v21091_v25 = vld [vmem:[#allocation19_spill] sm:$0xff] }
 0x237   :  { %v6379_v44 = vrot.slane %v4529_v39, %v15798_v21  ;;  %v5200_v19 = vsel %vm4798_vm12, %v5199_v6, %v5195_v22  ;;  %v6375_v53 = vsel %vm4784_vm10, %v6374_v5, %v6370_v8  ;;  %v6468_v43 = vrot.slane %v4547_v29, %v15866_v54 }
 0x238   :  { %1007 = vadd.xlane.f32.xlu1 %v17452_v31  ;;  %v1626_v2 = vpop.xlane.xlu1 %1625  ;;  %v2667_v7 = vpack.c.bf16 %v2203_v0, %v2202_v18  ;;  %v4530_v14 = vunpack.c.l.b16 %v2786_v51  ;;  %v6464_v16 = vsel %vm4798_vm12, %v6463_v40, %v6459_v33  ;;  %v5205_v24 = vsel %vm4805_vm13, %v5204_v57, %v5200_v19 }
 0x239   :  { %1004 = vadd.xlane.f32.xlu0 %v17455_v30  ;;  %v2459_v32 = vmul.f32 0.0625, %v1626_v2  ;;  %v1623_v9 = vpop.xlane.xlu0 %1622  ;;  %v4275_v0 = vunpack.c.h.b16 %v2658_v4  ;;  %v5120_v17 = vrot.slane %v4274_v15, %v15850_v1  ;;  %v6469_v50 = vsel %vm4805_vm13, %v6468_v43, %v6464_v16 }
 0x23a   :  { %v4292_v31 = vunpack.c.l.b16 %v2667_v7  ;;  %v2458_v45 = vmul.f32 0.0625, %v1623_v9  ;;  %v4293_v30 = vunpack.c.h.b16 %v2667_v7  ;;  %v4531_v10 = vunpack.c.h.b16 %v2786_v51 }
 0x23b   :  { %v6384_v18 = vrot.slane %v4530_v14, %v15850_v1  ;;  %v5116_v59 = vsel %vm4791_vm11, %v5115_v13, %v5111_v20  ;;  %v6380_v39 = vsel %vm4791_vm11, %v6379_v44, %v6375_v53  ;;  %v5125_v6 = vrot.slane %v4275_v0, %v15866_v54  ;;  %v461_v13 = vld [vmem:[%s20918_s0 + $0xc98] sm:$0xff] }
 0x23c   :  { %1775 = vadd.xlane.f32.xlu1 %v17463_v37  ;;  %v810_v26 = vpop.xlane.xlu1 %809  ;;  %v2795_v3 = vpack.c.bf16 %v2459_v32, %v2458_v45  ;;  %v5209_v48 = vrot.slane %v4292_v31, %v15911_v63  ;;  %v5121_v5 = vsel %vm4798_vm12, %v5120_v17, %v5116_v59  ;;  %v6389_v31 = vrot.slane %v4531_v10, %v15866_v54  ;;  %v3272_v10 = vld [vmem:[#allocation3 + $0xc60] sm:$0xff] }
 0x23d   :  { %1772 = vadd.xlane.f32.xlu0 %v17466_v23  ;;  %v2187_v27 = vmul.f32 0.0625, %v810_v26  ;;  %v807_v41 = vpop.xlane.xlu0 %806  ;;  %v5214_v23 = vrot.slane %v4293_v30, %v15914_v49  ;;  %v6385_v40 = vsel %vm4798_vm12, %v6384_v18, %v6380_v39  ;;  %v5126_v26 = vsel %vm4805_vm13, %v5125_v6, %v5121_v5  ;;  %v17662_v18 = vld [vmem:[#allocation3 + $0xc48] sm:$0xff]  ;;  %v444_v39 = vld [vmem:[%s20918_s0 + $0xc10] sm:$0xff] }
 0x23e   :  { %v4548_v37 = vunpack.c.l.b16 %v2795_v3  ;;  %v4549_v36 = vunpack.c.h.b16 %v2795_v3  ;;  %v2186_v38 = vmul.f32 0.0625, %v807_v41  ;;  %v5210_v34 = vsel %vm4812_vm14, %v5209_v48, %v5205_v24  ;;  %v207_v6 = vld [vmem:[%s20918_s0 + $0x4a8] sm:$0xff] }
 0x23f   :  { %v5215_v9 = vsel %vm4819_vm15, %v5214_v23, %v5210_v34  ;;  %v1780_v3 = vsel %vm570_vm0, %v461_v13, 0.0  ;;  %vm21104_vm3 = vcmask 261312  }
 0x240   :  { %959 = vadd.xlane.f32.xlu1 %v17494_v12  ;;  %v1578_v8 = vpop.xlane.xlu1 %1577  ;;  %v6473_v47 = vrot.slane %v4548_v37, %v15911_v63  ;;  %v6478_v58 = vrot.slane %v4549_v36, %v15914_v49  ;;  %v2659_v60 = vpack.c.bf16 %v2187_v27, %v2186_v38  ;;  %v460_v27 = vld [vmem:[%s20918_s0 + $0xc90] sm:$0xff]  ;;  %v189_v37 = vld [vmem:[%s20918_s0 + $0x418] sm:$0xff]  ;;  %vm21105_vm4 = vmmov %vm21104_vm3 }
 0x241   :  { %956 = vadd.xlane.f32.xlu0 %v21091_v25  ;;  %v2443_v46 = vmul.f32 0.0625, %v1578_v8  ;;  %v1575_v22 = vpop.xlane.xlu0 %1574  ;;  %v1777_v38 = vsel %vm570_vm0, %v460_v27, 0.0  ;;  %v17659_v25 = vld [vmem:[#allocation3 + $0xc40] sm:$0xff]  ;;  %vm21106_vm7 = vmmov %vm21104_vm3 }
 0x242   :  { %v4276_v12 = vunpack.c.l.b16 %v2659_v60  ;;  %v2442_v4 = vmul.f32 0.0625, %v1575_v22  ;;  %v6474_v2 = vsel %vm4812_vm14, %v6473_v47, %v6469_v50  ;;  %v4277_v7 = vunpack.c.h.b16 %v2659_v60  ;;  %v445_v60 = vld [vmem:[%s20918_s0 + $0xc18] sm:$0xff]  ;;  %v17664_v22 = vld [vmem:[#allocation3 + $0xc68] sm:$0xff]  ;;  %v17705_v27 = vld [vmem:[#allocation3 + $0xcc0] sm:$0xff] }
 0x243   :  { %v6479_v33 = vsel %vm4819_vm15, %v6478_v58, %v6474_v2  ;;  %v964_v47 = vsel %vm570_vm0, %v189_v37, 0.0  ;;  %v188_v58 = vld [vmem:[%s20918_s0 + $0x410] sm:$0xff]  ;;  %v1732_v2 = vsel %vm570_vm0, %v445_v60, 0.0  ;;  %v14237_v5 = vcombine.high %v17659_v25, %v3272_v10  ;;  %v21101_v60 = vld [vmem:[#allocation12_spill] sm:$0xff]  ;;  %vm21107_vm5 = vmmov %vm21104_vm3 }
 0x244   :  { %1013 = vadd.xlane.f32.xlu1 %v17506_v61  ;;  %v912_v32 = vpop.xlane.xlu1 %911  ;;  %v2787_v29 = vpack.c.bf16 %v2443_v46, %v2442_v4  ;;  %v5130_v61 = vrot.slane %v4276_v12, %v15911_v63  ;;  %v7276_v20 = vsel %vm7270_vm8, %v6479_v33, %v5215_v9  ;;  %v5135_v44 = vrot.slane %v4277_v7, %v15914_v49  ;;  %v206_v33 = vld [vmem:[%s20918_s0 + $0x4a0] sm:$0xff] }
 0x245   :  { %1010 = vadd.xlane.f32.xlu0 %v17509_v35  ;;  %v2221_v51 = vmul.f32 0.0625, %v912_v32  ;;  %v909_v45 = vpop.xlane.xlu0 %908  ;;  %v17625_v35 = vpack.c.b16 %v7276_v20, %v7276_v20  ;;  %v961_v12 = vsel %vm570_vm0, %v188_v58, 0.0  ;;  %v17686_v9 = vld [vmem:[#allocation3 + $0xca0] sm:$0xff]  ;;  %v17697_v20 = vld [vmem:[#allocation3 + $0xca8] sm:$0xff] }
 0x246   :  { %v4532_v57 = vunpack.c.l.b16 %v2787_v29  ;;  %v4533_v15 = vunpack.c.h.b16 %v2787_v29  ;;  %v2220_v30 = vmul.f32 0.0625, %v909_v45  ;;  %v5131_v16 = vsel %vm4812_vm14, %v5130_v61, %v5126_v26  ;;  %v463_v61 = vld [vmem:[%s20918_s0 + $0xca8] sm:$0xff]  ;;  %v21094_v26 = vld [vmem:[#allocation26_spill] sm:$0xff] }
 0x247   :  { %21092 = vst [vmem:[#allocation19_spill] sm:$0xff] %v17625_v35  ;;  %12553 = vmatprep.mubr.bf16.mxu0 %v17625_v35  ;;  %12881 = vmatprep.mubr.bf16.mxu1 %v17625_v35  ;;  %v14239_v29 = vcombine.high %v17662_v18, %v17664_v22  ;;  %v17695_v45 = vld [vmem:[#allocation3 + $0xc88] sm:$0xff] }
 0x248   :  { %1727 = vadd.xlane.f32.xlu1 %v17537_v28  ;;  %v1680_v19 = vpop.xlane.xlu1 %1679  ;;  %v6394_v53 = vrot.slane %v4532_v57, %v15911_v63  ;;  %v6399_v43 = vrot.slane %v4533_v15, %v15914_v49  ;;  %v17636_v14 = vpack.c.bf16 %v2221_v51, %v2220_v30  ;;  %v6390_v28 = vsel %vm4805_vm13, %v6389_v31, %v6385_v40  ;;  %v17684_v51 = vld [vmem:[#allocation3 + $0xc80] sm:$0xff] }
 0x249   :  { %v2477_v48 = vmul.f32 0.0625, %v1680_v19  ;;  %1724 = vadd.xlane.f32.xlu0 %v17540_v62  ;;  %v1677_v41 = vpop.xlane.xlu0 %1676  ;;  %v5136_v62 = vsel %vm4819_vm15, %v5135_v44, %v5131_v16  ;;  %v1729_v15 = vsel %vm570_vm0, %v444_v39, 0.0  ;;  %v1018_v30 = vsel %vm570_vm0, %v207_v6, 0.0  ;;  %v21095_v44 = vld [vmem:[#allocation18_spill] sm:$0xff]  ;;  %v17739_v39 = vld [vmem:[#allocation3 + $0xd20] sm:$0xff] }
 0x24a   :  { %v2476_v36 = vmul.f32 0.0625, %v1677_v41  ;;  %v6395_v24 = vsel %vm4812_vm14, %v6394_v53, %v6390_v28  ;;  %v4310_v13 = vunpack.c.l.b16 %v17636_v14  ;;  %v4311_v40 = vunpack.c.h.b16 %v17636_v14  ;;  %v17707_v53 = vld [vmem:[#allocation3 + $0xce0] sm:$0xff]  ;;  %v21097_v14 = vld [vmem:[#allocation17_spill] sm:$0xff] }
 0x24b   :  { %v6400_v17 = vsel %vm4819_vm15, %v6399_v43, %v6395_v24  ;;  %v21096_v19 = vcombine.low %v21094_v26, %v21095_v44  ;;  %v1015_v43 = vsel %vm570_vm0, %v206_v33, 0.0  ;;  %v14238_v41 = vcombine.low %v17662_v18, %v17664_v22 }
 0x24c   :  { %1781 = vadd.xlane.f32.xlu1 %v1780_v3  ;;  %v864_v0 = vpop.xlane.xlu1 %863  ;;  %v17649_v23 = vpack.c.bf16 %v2477_v48, %v2476_v36  ;;  %v7275_v50 = vsel %vm7270_vm8, %v6400_v17, %v5136_v62  ;;  %v14236_v3 = vcombine.low %v17659_v25, %v3272_v10  ;;  %v21098_v48 = vld [vmem:[#allocation20_spill] sm:$0xff]  ;;  %v14244_v16 = vcombine.low %v17684_v51, %v17686_v9  ;;  %v17726_v62 = vld [vmem:[#allocation3 + $0xce8] sm:$0xff] }
 0x24d   :  { %v2205_v8 = vmul.f32 0.0625, %v864_v0  ;;  %1778 = vadd.xlane.f32.xlu0 %v1777_v38  ;;  %v861_v46 = vpop.xlane.xlu0 %860  ;;  %v17666_v59 = vpack.c.b16 %v7275_v50, %v7275_v50  ;;  %v21099_v28 = vcombine.low %v21097_v14, %v21098_v48  ;;  %v14245_v37 = vcombine.high %v17684_v51, %v17686_v9  ;;  %v462_v10 = vld [vmem:[%s20918_s0 + $0xca0] sm:$0xff]  ;;  %v17749_v51 = vld [vmem:[#allocation3 + $0xd28] sm:$0xff] }
 0x24e   :  { %v2204_v34 = vmul.f32 0.0625, %v861_v46  ;;  %v1786_v24 = vsel %vm570_vm0, %v463_v61, 0.0  ;;  %v14246_v0 = vcombine.low %v17695_v45, %v17697_v20  ;;  %v14247_v17 = vcombine.high %v17695_v45, %v17697_v20  ;;  %v21102_v9 = vld [vmem:[#allocation13_spill] sm:$0xff] }
 0x24f   :  { %21093 = vst [vmem:[#allocation27_spill] sm:$0xff] %v17666_v59  ;;  %12554 = vmatmul.mubr.bf16.vlgmr.msra.gmra.mrb[0].mxu0 %v17666_v59  ;;  %12882 = vmatmul.mubr.bf16.vlgmr.msra.gmra.mrb[0].mxu1 %v17666_v59  ;;  %v5302_v25 = vrot.slane %v4311_v40, %v21101_v60  ;;  %v14253_v18 = vcombine.high %v17705_v27, %v17707_v53  ;;  %v4566_v6 = vunpack.c.l.b16 %v17649_v23  ;;  %v21103_v40 = vld [vmem:[#allocation14_spill] sm:$0xff] }
 0x250   :  { %965 = vadd.xlane.f32.xlu1 %v964_v47  ;;  %v918_v4 = vpop.xlane.xlu1 %917  ;;  %v17676_v7 = vpack.c.bf16 %v2205_v8, %v2204_v34  ;;  %12563 = vmatpush1.bf16.msra.mxu0 %v21096_v19  ;;  %v17724_v8 = vld [vmem:[#allocation3 + $0xcc8] sm:$0xff]  ;;  %v21100_v47 = vld [vmem:[#allocation11_spill] sm:$0xff]  ;;  %v17764_v19 = vld [vmem:[#allocation3 + $0xd40] sm:$0xff] }
 0x251   :  { %v2223_v32 = vmul.f32 0.0625, %v918_v4  ;;  %v915_v31 = vpop.xlane.xlu0 %914  ;;  %962 = vadd.xlane.f32.xlu0 %v961_v12  ;;  %12891 = vmatpush1.bf16.msra.mxu1 %v21099_v28  ;;  %v5298_v58 = vrot.slane %v4310_v13, %v21100_v47  ;;  %v14252_v4 = vcombine.low %v17705_v27, %v17707_v53  ;;  %v14254_v33 = vcombine.low %v17724_v8, %v17726_v62  ;;  %v17773_v28 = vld [vmem:[#allocation3 + $0xd48] sm:$0xff] }
 0x252   :  { %v2222_v57 = vmul.f32 0.0625, %v915_v31  ;;  %12564 = vmatprep.subr.bf16.mxu0 %v14237_v5  ;;  %12892 = vmatprep.subr.bf16.mxu1 %v14239_v29  ;;  %v14255_v5 = vcombine.high %v17724_v8, %v17726_v62  ;;  %v17747_v29 = vld [vmem:[#allocation3 + $0xd08] sm:$0xff] }
 0x253   :  { %v5303_v20 = vsel %vm4721_vm1, %v5302_v25, %v5298_v58  ;;  %v14262_v14 = vcombine.low %v17747_v29, %v17749_v51  ;;  %v14263_v48 = vcombine.high %v17747_v29, %v17749_v51  ;;  %v190_v25 = vld [vmem:[%s20918_s0 + $0x420] sm:$0xff]  ;;  %v17851_v51 = vld [vmem:[#allocation3 + $0xdc8] sm:$0xff] }
 0x254   :  { %1733 = vadd.xlane.f32.xlu1 %v1732_v2  ;;  %v2677_v36 = vpack.c.bf16 %v2223_v32, %v2222_v57  ;;  %12565 = vmatpush1.bf16.msra.mxu0 %v14236_v3  ;;  %v17737_v2 = vld [vmem:[#allocation3 + $0xd00] sm:$0xff]  ;;  %v4567_v32 = vunpack.c.h.b16 %v17649_v23  ;;  %v1783_v23 = vsel %vm570_vm0, %v462_v10, 0.0 }
 0x255   :  { %v1632_v38 = vpop.xlane.xlu1 %1631  ;;  %v1629_v50 = vpop.xlane.xlu0 %1628  ;;  %1730 = vadd.xlane.f32.xlu0 %v1729_v15  ;;  %12893 = vmatpush1.bf16.msra.mxu1 %v14238_v41  ;;  %v14260_v26 = vcombine.low %v17737_v2, %v17739_v39  ;;  %v14261_v44 = vcombine.high %v17737_v2, %v17739_v39  ;;  %v17766_v3 = vld [vmem:[#allocation3 + $0xd60] sm:$0xff]  ;;  %v17775_v41 = vld [vmem:[#allocation3 + $0xd68] sm:$0xff] }
 0x256   :  { %v2461_v46 = vmul.f32 0.0625, %v1632_v38  ;;  %v4312_v22 = vunpack.c.l.b16 %v2677_v36  ;;  %v4313_v34 = vunpack.c.h.b16 %v2677_v36  ;;  %v2460_v12 = vmul.f32 0.0625, %v1629_v50  ;;  %12566 = vmatprep.subr.bf16.mxu0 %v14245_v37  ;;  %12894 = vmatprep.subr.bf16.mxu1 %v14247_v17  ;;  %v17785_v17 = vld [vmem:[#allocation3 + $0xda0] sm:$0xff] }
 0x257   :  { %v6562_v37 = vrot.slane %v4566_v6, %v21100_v47  ;;  %v6566_v36 = vrot.slane %v4567_v32, %v21101_v60  ;;  %v4294_v38 = vunpack.c.l.b16 %v17676_v7  ;;  %v17844_v39 = vld [vmem:[#allocation3 + $0xdc0] sm:$0xff] }
 0x258   :  { %1019 = vadd.xlane.f32.xlu1 %v1018_v30  ;;  %v5307_v13 = vrot.slane %v4312_v22, %v21102_v9  ;;  %v5312_v31 = vrot.slane %v4313_v34, %v21103_v40  ;;  %v17753_v61 = vpack.c.bf16 %v2461_v46, %v2460_v12  ;;  %v191_v30 = vld [vmem:[%s20918_s0 + $0x428] sm:$0xff]  ;;  %12567 = vmatpush1.bf16.msra.mxu0 %v14244_v16  ;;  %v17783_v16 = vld [vmem:[#allocation3 + $0xd80] sm:$0xff] }
 0x259   :  { %v1686_v45 = vpop.xlane.xlu1 %1685  ;;  %v1683_v15 = vpop.xlane.xlu0 %1682  ;;  %1016 = vadd.xlane.f32.xlu0 %v1015_v43  ;;  %12895 = vmatpush1.bf16.msra.mxu1 %v14246_v0  ;;  %v970_v58 = vsel %vm570_vm0, %v191_v30, 0.0  ;;  %v14268_v46 = vcombine.low %v17764_v19, %v17766_v3  ;;  %v4295_v0 = vunpack.c.h.b16 %v17676_v7  ;;  %v447_v22 = vld [vmem:[%s20918_s0 + $0xc28] sm:$0xff]  ;;  %v14270_v34 = vcombine.low %v17773_v28, %v17775_v41  ;;  %v446_v30 = vld [vmem:[%s20918_s0 + $0xc20] sm:$0xff] }
 0x25a   :  { %v2479_v57 = vmul.f32 0.0625, %v1686_v45  ;;  %v5308_v27 = vsel %vm4728_vm2, %v5307_v13, %v5303_v20  ;;  %v2478_v53 = vmul.f32 0.0625, %v1683_v15  ;;  %12568 = vmatprep.subr.bf16.mxu0 %v14253_v18  ;;  %12896 = vmatprep.subr.bf16.mxu1 %v14255_v5  ;;  %v14271_v18 = vcombine.high %v17773_v28, %v17775_v41  ;;  %v17849_v29 = vld [vmem:[#allocation3 + $0xde0] sm:$0xff]  ;;  %v17889_v41 = vld [vmem:[#allocation3 + $0xe08] sm:$0xff] }
 0x25b   :  { %v17781_v43 = vsel %vm21104_vm3, %v5312_v31, %v5308_v27  ;;  %v14277_v7 = vcombine.high %v17783_v16, %v17785_v17  ;;  %v6567_v5 = vsel %vm4721_vm1, %v6566_v36, %v6562_v37  ;;  %v5219_v13 = vrot.slane %v4294_v38, %v21100_v47  ;;  %v17816_v27 = vld [vmem:[#allocation3 + $0xd88] sm:$0xff]  ;;  %v17887_v28 = vld [vmem:[#allocation3 + $0xe20] sm:$0xff] }
 0x25c   :  { %1787 = vadd.xlane.f32.xlu1 %v1786_v24  ;;  %v2805_v8 = vpack.c.bf16 %v2479_v57, %v2478_v53  ;;  %v14269_v24 = vcombine.high %v17764_v19, %v17766_v3  ;;  %12569 = vmatpush1.bf16.msra.mxu0 %v14252_v4  ;;  %v967_v31 = vsel %vm570_vm0, %v190_v25, 0.0  ;;  %v14276_v45 = vcombine.low %v17783_v16, %v17785_v17  ;;  %v17879_v3 = vld [vmem:[#allocation3 + $0xe00] sm:$0xff]  ;;  %v21108_v16 = vld [vmem:[#allocation15_spill] sm:$0xff] }
 0x25d   :  { %v870_v62 = vpop.xlane.xlu1 %869  ;;  %1784 = vadd.xlane.f32.xlu0 %v1783_v23  ;;  %12897 = vmatpush1.bf16.msra.mxu1 %v14254_v33  ;;  %v1738_v15 = vsel %vm570_vm0, %v447_v22, 0.0  ;;  %v17818_v33 = vld [vmem:[#allocation3 + $0xda8] sm:$0xff]  ;;  %v5223_v53 = vrot.slane %v4295_v0, %v21101_v60  ;;  %v4550_v37 = vunpack.c.l.b16 %v17753_v61  ;;  %v4551_v36 = vunpack.c.h.b16 %v17753_v61 }
 0x25e   :  { %v2207_v50 = vmul.f32 0.0625, %v870_v62  ;;  %v867_v10 = vpop.xlane.xlu0 %866  ;;  %v4568_v12 = vunpack.c.l.b16 %v2805_v8  ;;  %v4569_v6 = vunpack.c.h.b16 %v2805_v8  ;;  %12570 = vmatprep.subr.bf16.mxu0 %v14261_v44  ;;  %12898 = vmatprep.subr.bf16.mxu1 %v14263_v48  ;;  %v209_v62 = vld [vmem:[%s20918_s0 + $0x4b8] sm:$0xff]  ;;  %v1735_v61 = vsel %vm570_vm0, %v446_v30, 0.0 }
 0x25f   :  { %v2206_v32 = vmul.f32 0.0625, %v867_v10  ;;  %v14278_v10 = vcombine.low %v17816_v27, %v17818_v33  ;;  %v14279_v2 = vcombine.high %v17816_v27, %v17818_v33  ;;  %v464_v33 = vld [vmem:[%s20918_s0 + $0xcb0] sm:$0xff]  ;;  %vm21110_vm3 = vcmask 326912  }
 0x260   :  { %971 = vadd.xlane.f32.xlu1 %v970_v58  ;;  %v6571_v20 = vrot.slane %v4568_v12, %v21102_v9  ;;  %v6576_v23 = vrot.slane %v4569_v6, %v21103_v40  ;;  %12571 = vmatpush1.bf16.msra.mxu0 %v14260_v26 }
 0x261   :  { %v2669_v57 = vpack.c.bf16 %v2207_v50, %v2206_v32  ;;  %v1638_v4 = vpop.xlane.xlu1 %1637  ;;  %968 = vadd.xlane.f32.xlu0 %v967_v31  ;;  %v208_v50 = vld [vmem:[%s20918_s0 + $0x4b0] sm:$0xff]  ;;  %12899 = vmatpush1.bf16.msra.mxu1 %v14262_v14  ;;  %v1024_v32 = vsel %vm570_vm0, %v209_v62, 0.0  ;;  %v17853_v14 = vld [vmem:[#allocation3 + $0xde8] sm:$0xff]  ;;  %v6483_v31 = vrot.slane %v4550_v37, %v21100_v47 }
 0x262   :  { %v2463_v38 = vmul.f32 0.0625, %v1638_v4  ;;  %v1635_v8 = vpop.xlane.xlu0 %1634  ;;  %v6572_v58 = vsel %vm4728_vm2, %v6571_v20, %v6567_v5  ;;  %12572 = vmatprep.subr.bf16.mxu0 %v14269_v24  ;;  %12900 = vmatprep.subr.bf16.mxu1 %v14271_v18  ;;  %v5224_v5 = vsel %vm4721_vm1, %v5223_v53, %v5219_v13  ;;  %v6487_v20 = vrot.slane %v4551_v36, %v21101_v60  ;;  %v465_v4 = vld [vmem:[%s20918_s0 + $0xcb8] sm:$0xff] }
 0x263   :  { %v4296_v44 = vunpack.c.l.b16 %v2669_v57  ;;  %v4297_v48 = vunpack.c.h.b16 %v2669_v57  ;;  %v2462_v25 = vmul.f32 0.0625, %v1635_v8  ;;  %v17831_v0 = vsel %vm21105_vm4, %v6576_v23, %v6572_v58 }
 0x264   :  { %1739 = vadd.xlane.f32.xlu1 %v1738_v15  ;;  %12573 = vmatpush1.bf16.msra.mxu0 %v14268_v46  ;;  %v1021_v27 = vsel %vm570_vm0, %v208_v50, 0.0  ;;  %v14285_v53 = vcombine.high %v17844_v39, %v17849_v29  ;;  %v14287_v19 = vcombine.high %v17851_v51, %v17853_v14  ;;  %v1792_v8 = vsel %vm570_vm0, %v465_v4, 0.0 }
 0x265   :  { %v5228_v26 = vrot.slane %v4296_v44, %v21102_v9  ;;  %v5233_v22 = vrot.slane %v4297_v48, %v21103_v40  ;;  %v2797_v12 = vpack.c.bf16 %v2463_v38, %v2462_v25  ;;  %v924_v6 = vpop.xlane.xlu1 %923  ;;  %1736 = vadd.xlane.f32.xlu0 %v1735_v61  ;;  %12901 = vmatpush1.bf16.msra.mxu1 %v14270_v34  ;;  %v17891_v34 = vld [vmem:[#allocation3 + $0xe28] sm:$0xff]  ;;  %v193_v48 = vld [vmem:[%s20918_s0 + $0x438] sm:$0xff]  ;;  %vm21111_vm4 = vcmask 392512  }
 0x266   :  { %v2225_v23 = vmul.f32 0.0625, %v924_v6  ;;  %v921_v57 = vpop.xlane.xlu0 %920  ;;  %12574 = vmatprep.subr.bf16.mxu0 %v14277_v7  ;;  %12902 = vmatprep.subr.bf16.mxu1 %v14279_v2  ;;  %v6488_v62 = vsel %vm4721_vm1, %v6487_v20, %v6483_v31  ;;  %v14284_v25 = vcombine.low %v17844_v39, %v17849_v29  ;;  %v14286_v7 = vcombine.low %v17851_v51, %v17853_v14  ;;  %v192_v39 = vld [vmem:[%s20918_s0 + $0x430] sm:$0xff]  ;;  %v17916_v29 = vld [vmem:[#allocation3 + $0xe40] sm:$0xff] }
 0x267   :  { %v5229_v24 = vsel %vm4728_vm2, %v5228_v26, %v5224_v5  ;;  %v4552_v18 = vunpack.c.l.b16 %v2797_v12  ;;  %v4553_v15 = vunpack.c.h.b16 %v2797_v12  ;;  %v2224_v30 = vmul.f32 0.0625, %v921_v57  ;;  %v17921_v20 = vld [vmem:[#allocation3 + $0xe60] sm:$0xff] }
 0x268   :  { %v17866_v13 = vsel %vm21106_vm7, %v5233_v22, %v5229_v24  ;;  %1025 = vadd.xlane.f32.xlu1 %v1024_v32  ;;  %12575 = vmatpush1.bf16.msra.mxu0 %v14276_v45  ;;  %v1789_v12 = vsel %vm570_vm0, %v464_v33, 0.0  ;;  %v14293_v6 = vcombine.high %v17879_v3, %v17887_v28  ;;  %v14295_v32 = vcombine.high %v17889_v41, %v17891_v34  ;;  %v21109_v45 = vld [vmem:[#allocation16_spill] sm:$0xff]  ;;  %v449_v24 = vld [vmem:[%s20918_s0 + $0xc38] sm:$0xff]  ;;  %vm21112_vm7 = vmmov %vm21110_vm3 }
 0x269   :  { %v6492_v46 = vrot.slane %v4552_v18, %v21102_v9  ;;  %v6497_v37 = vrot.slane %v4553_v15, %v21103_v40  ;;  %v2678_v36 = vpack.c.bf16 %v2225_v23, %v2224_v30  ;;  %v1692_v38 = vpop.xlane.xlu1 %1691  ;;  %1022 = vadd.xlane.f32.xlu0 %v1021_v27  ;;  %12903 = vmatpush1.bf16.msra.mxu1 %v14278_v10  ;;  %v976_v31 = vsel %vm570_vm0, %v193_v48, 0.0  ;;  %v17923_v10 = vld [vmem:[#allocation3 + $0xe48] sm:$0xff] }
 0x26a   :  { %v2481_v58 = vmul.f32 0.0625, %v1692_v38  ;;  %v1689_v44 = vpop.xlane.xlu0 %1688  ;;  %12576 = vmatprep.subr.bf16.mxu0 %v14285_v53  ;;  %12904 = vmatprep.subr.bf16.mxu1 %v14287_v19  ;;  %v17925_v23 = vld [vmem:[#allocation3 + $0xe68] sm:$0xff]  ;;  %v14292_v18 = vcombine.low %v17879_v3, %v17887_v28  ;;  %v14294_v15 = vcombine.low %v17889_v41, %v17891_v34  ;;  %v448_v3 = vld [vmem:[%s20918_s0 + $0xc30] sm:$0xff]  ;;  %v1744_v34 = vsel %vm570_vm0, %v449_v24, 0.0 }
 0x26b   :  { %v6493_v61 = vsel %vm4728_vm2, %v6492_v46, %v6488_v62  ;;  %v4314_v50 = vunpack.c.l.b16 %v2678_v36  ;;  %v4315_v2 = vunpack.c.h.b16 %v2678_v36  ;;  %v2480_v26 = vmul.f32 0.0625, %v1689_v44  ;;  %v17947_v36 = vld [vmem:[#allocation3 + $0xe80] sm:$0xff]  ;;  %v17954_v44 = vld [vmem:[#allocation3 + $0xea8] sm:$0xff] }
 0x26c   :  { %v17906_v22 = vsel %vm21107_vm5, %v6497_v37, %v6493_v61  ;;  %1793 = vadd.xlane.f32.xlu1 %v1792_v8  ;;  %12577 = vmatpush1.bf16.msra.mxu0 %v14284_v25  ;;  %v973_v46 = vsel %vm570_vm0, %v192_v39, 0.0  ;;  %v14301_v37 = vcombine.high %v17916_v29, %v17921_v20  ;;  %v3344_v62 = vld [vmem:[#allocation3 + $0xea0] sm:$0xff]  ;;  %v14300_v61 = vcombine.low %v17916_v29, %v17921_v20  ;;  %vm21113_vm5 = vmmov %vm21111_vm4  ;;  %v3349_v24 = vld [vmem:[#allocation3 + $0xec8] sm:$0xff] }
 0x26d   :  { %v5317_v17 = vrot.slane %v4314_v50, %v21108_v16  ;;  %v5322_v51 = vrot.slane %v4315_v2, %v21109_v45  ;;  %v2806_v14 = vpack.c.bf16 %v2481_v58, %v2480_v26  ;;  %v876_v5 = vpop.xlane.xlu1 %875  ;;  %1790 = vadd.xlane.f32.xlu0 %v1789_v12  ;;  %12905 = vmatpush1.bf16.msra.mxu1 %v14286_v7  ;;  %v17952_v58 = vld [vmem:[#allocation3 + $0xe88] sm:$0xff]  ;;  %v210_v20 = vld [vmem:[%s20918_s0 + $0x4c0] sm:$0xff] }
 0x26e   :  { %v2209_v57 = vmul.f32 0.0625, %v876_v5  ;;  %v873_v4 = vpop.xlane.xlu0 %872  ;;  %12578 = vmatprep.subr.bf16.mxu0 %v14293_v6  ;;  %12906 = vmatprep.subr.bf16.mxu1 %v14295_v32  ;;  %v211_v7 = vld [vmem:[%s20918_s0 + $0x4c8] sm:$0xff]  ;;  %v14302_v50 = vcombine.low %v17923_v10, %v17925_v23  ;;  %v1741_v32 = vsel %vm570_vm0, %v448_v3, 0.0  ;;  %v14309_v29 = vcombine.high %v17947_v36, %v3344_v62 }
 0x26f   :  { %v5318_v30 = vsel %vm21110_vm3, %v5317_v17, %v17781_v43  ;;  %v4570_v27 = vunpack.c.l.b16 %v2806_v14  ;;  %v4571_v33 = vunpack.c.h.b16 %v2806_v14  ;;  %v2208_v53 = vmul.f32 0.0625, %v873_v4  ;;  %v467_v4 = vld [vmem:[%s20918_s0 + $0xcc8] sm:$0xff] }
 0x270   :  { %v17937_v19 = vsel %vm21111_vm4, %v5322_v51, %v5318_v30  ;;  %977 = vadd.xlane.f32.xlu1 %v976_v31  ;;  %v14303_v43 = vcombine.high %v17923_v10, %v17925_v23  ;;  %12579 = vmatpush1.bf16.msra.mxu0 %v14292_v18  ;;  %v14311_v17 = vcombine.high %v17952_v58, %v17954_v44  ;;  %v1030_v31 = vsel %vm570_vm0, %v211_v7, 0.0  ;;  %v3348_v10 = vld [vmem:[#allocation3 + $0xec0] sm:$0xff]  ;;  %v3353_v18 = vld [vmem:[#allocation3 + $0xee8] sm:$0xff] }
 0x271   :  { %v6581_v38 = vrot.slane %v4570_v27, %v21108_v16  ;;  %v6586_v8 = vrot.slane %v4571_v33, %v21109_v45  ;;  %v2670_v28 = vpack.c.bf16 %v2209_v57, %v2208_v53  ;;  %v1644_v41 = vpop.xlane.xlu1 %1643  ;;  %974 = vadd.xlane.f32.xlu0 %v973_v46  ;;  %12907 = vmatpush1.bf16.msra.mxu1 %v14294_v15  ;;  %v3352_v23 = vld [vmem:[#allocation3 + $0xee0] sm:$0xff]  ;;  %v1027_v46 = vsel %vm570_vm0, %v210_v20, 0.0 }
 0x272   :  { %v2465_v48 = vmul.f32 0.0625, %v1644_v41  ;;  %v1641_v25 = vpop.xlane.xlu0 %1640  ;;  %12580 = vmatprep.subr.bf16.mxu0 %v14301_v37  ;;  %12908 = vmatprep.subr.bf16.mxu1 %v14303_v43  ;;  %v14308_v33 = vcombine.low %v17947_v36, %v3344_v62  ;;  %v14310_v3 = vcombine.low %v17952_v58, %v17954_v44  ;;  %v14317_v37 = vcombine.high %v3348_v10, %v3352_v23  ;;  %v466_v36 = vld [vmem:[%s20918_s0 + $0xcc0] sm:$0xff]  ;;  %v3357_v44 = vld [vmem:[#allocation3 + $0xf08] sm:$0xff] }
 0x273   :  { %v6582_v2 = vsel %vm21112_vm7, %v6581_v38, %v17831_v0  ;;  %v4298_v26 = vunpack.c.l.b16 %v2670_v28  ;;  %v4299_v12 = vunpack.c.h.b16 %v2670_v28  ;;  %v2464_v39 = vmul.f32 0.0625, %v1641_v25  ;;  %v195_v28 = vld [vmem:[%s20918_s0 + $0x448] sm:$0xff]  ;;  %v3360_v58 = vld [vmem:[#allocation3 + $0xf20] sm:$0xff]  ;;  %vm21114_vm7 = vmmov %vm21110_vm3 }
 0x274   :  { %v17966_v6 = vsel %vm21113_vm5, %v6586_v8, %v6582_v2  ;;  %1745 = vadd.xlane.f32.xlu1 %v1744_v34  ;;  %12581 = vmatpush1.bf16.msra.mxu0 %v14300_v61  ;;  %v1798_v8 = vsel %vm570_vm0, %v467_v4, 0.0  ;;  %v14319_v41 = vcombine.high %v3349_v24, %v3353_v18  ;;  %v3356_v34 = vld [vmem:[#allocation3 + $0xf00] sm:$0xff]  ;;  %v14316_v7 = vcombine.low %v3348_v10, %v3352_v23  ;;  %vm21115_vm5 = vmmov %vm21111_vm4 }
 0x275   :  { %v5238_v51 = vrot.slane %v4298_v26, %v21108_v16  ;;  %v5243_v0 = vrot.slane %v4299_v12, %v21109_v45  ;;  %v2798_v14 = vpack.c.bf16 %v2465_v48, %v2464_v39  ;;  %v17974_v5 = vpop.xlane.xlu1 %929  ;;  %1742 = vadd.xlane.f32.xlu0 %v1741_v32  ;;  %12909 = vmatpush1.bf16.msra.mxu1 %v14302_v50  ;;  %v3361_v48 = vld [vmem:[#allocation3 + $0xf28] sm:$0xff]  ;;  %v1795_v50 = vsel %vm570_vm0, %v466_v36, 0.0  ;;  %v194_v39 = vld [vmem:[%s20918_s0 + $0x440] sm:$0xff] }
 0x276   :  { %v17980_v57 = vpop.xlane.xlu0 %926  ;;  %12582 = vmatprep.subr.bf16.mxu0 %v14309_v29  ;;  %12910 = vmatprep.subr.bf16.mxu1 %v14311_v17  ;;  %v14318_v2 = vcombine.low %v3349_v24, %v3353_v18  ;;  %v982_v12 = vsel %vm570_vm0, %v195_v28, 0.0  ;;  %v14325_v32 = vcombine.high %v3356_v34, %v3360_v58  ;;  %v14327_v29 = vcombine.high %v3357_v44, %v3361_v48  ;;  %v3364_v17 = vld [vmem:[#allocation3 + $0xf40] sm:$0xff] }
 0x277   :  { %v5239_v15 = vsel %vm21110_vm3, %v5238_v51, %v17866_v13  ;;  %v4554_v30 = vunpack.c.l.b16 %v2798_v14  ;;  %v4555_v27 = vunpack.c.h.b16 %v2798_v14  ;;  %v3365_v14 = vld [vmem:[#allocation3 + $0xf48] sm:$0xff]  ;;  %v14324_v20 = vcombine.low %v3356_v34, %v3360_v58  ;;  %v450_v18 = vld [vmem:[%s20918_s0 + $0xc40] sm:$0xff]  ;;  %v212_v34 = vld [vmem:[%s20918_s0 + $0x4d0] sm:$0xff] }
 0x278   :  { %v17989_v53 = vsel %vm21111_vm4, %v5243_v0, %v5239_v15  ;;  %1031 = vadd.xlane.f32.xlu1 %v1030_v31  ;;  %12583 = vmatpush1.bf16.msra.mxu0 %v14308_v33  ;;  %v3368_v0 = vld [vmem:[#allocation3 + $0xf60] sm:$0xff]  ;;  %v3369_v31 = vld [vmem:[#allocation3 + $0xf68] sm:$0xff]  ;;  %v979_v10 = vsel %vm570_vm0, %v194_v39, 0.0  ;;  %v14326_v23 = vcombine.low %v3357_v44, %v3361_v48  ;;  %v213_v15 = vld [vmem:[%s20918_s0 + $0x4d8] sm:$0xff]  ;;  %vm21122_vm3 = vcmask 523712  }
 0x279   :  { %v6502_v43 = vrot.slane %v4554_v30, %v21108_v16  ;;  %v6507_v13 = vrot.slane %v4555_v27, %v21109_v45  ;;  %v17996_v38 = vpop.xlane.xlu1 %1697  ;;  %1028 = vadd.xlane.f32.xlu0 %v1027_v46  ;;  %12911 = vmatpush1.bf16.msra.mxu1 %v14310_v3  ;;  %v14333_v30 = vcombine.high %v3364_v17, %v3368_v0  ;;  %v3372_v33 = vld [vmem:[#allocation3 + $0xf80] sm:$0xff]  ;;  %v469_v58 = vld [vmem:[%s20918_s0 + $0xcd8] sm:$0xff]  ;;  %vm21123_vm4 = vmmov %vm21122_vm3 }
 0x27a   :  { %v18005_v62 = vpop.xlane.xlu0 %1694  ;;  %12584 = vmatprep.subr.bf16.mxu0 %v14317_v37  ;;  %12912 = vmatprep.subr.bf16.mxu1 %v14319_v41  ;;  %v14335_v27 = vcombine.high %v3365_v14, %v3369_v31  ;;  %v3376_v3 = vld [vmem:[#allocation3 + $0xfa0] sm:$0xff]  ;;  %v3373_v37 = vld [vmem:[#allocation3 + $0xf88] sm:$0xff]  ;;  %v14334_v36 = vcombine.low %v3365_v14, %v3369_v31  ;;  %v1036_v41 = vsel %vm570_vm0, %v213_v15, 0.0  ;;  %v237_v45 = vld [vmem:[%s20918_s0 + $0x598] sm:$0xff] }
 0x27b   :  { %v6503_v25 = vsel %vm21114_vm7, %v6502_v43, %v17906_v22  ;;  %v451_v22 = vld [vmem:[%s20918_s0 + $0xc48] sm:$0xff]  ;;  %v14341_v44 = vcombine.high %v3372_v33, %v3376_v3  ;;  %v14340_v39 = vcombine.low %v3372_v33, %v3376_v3  ;;  %v453_v3 = vld [vmem:[%s20918_s0 + $0xc58] sm:$0xff]  ;;  %vm21124_vm7 = vmmov %vm21122_vm3 }
 0x27c   :  { %v18010_v61 = vsel %vm21115_vm5, %v6507_v13, %v6503_v25  ;;  %1799 = vadd.xlane.f32.xlu1 %v1798_v8  ;;  %12585 = vmatpush1.bf16.msra.mxu0 %v14316_v7  ;;  %v1750_v24 = vsel %vm570_vm0, %v451_v22, 0.0  ;;  %v3377_v43 = vld [vmem:[#allocation3 + $0xfa8] sm:$0xff]  ;;  %v14332_v13 = vcombine.low %v3364_v17, %v3368_v0  ;;  %v1747_v8 = vsel %vm570_vm0, %v450_v18, 0.0  ;;  %v3380_v25 = vld [vmem:[#allocation3 + $0xfc0] sm:$0xff]  ;;  %v468_v0 = vld [vmem:[%s20918_s0 + $0xcd0] sm:$0xff] }
 0x27d   :  { %v18013_v26 = vpop.xlane.xlu1 %881  ;;  %1796 = vadd.xlane.f32.xlu0 %v1795_v50  ;;  %12913 = vmatpush1.bf16.msra.mxu1 %v14318_v2  ;;  %v14343_v48 = vcombine.high %v3373_v37, %v3377_v43  ;;  %v3384_v50 = vld [vmem:[#allocation3 + $0xfe0] sm:$0xff]  ;;  %v3381_v2 = vld [vmem:[#allocation3 + $0xfc8] sm:$0xff]  ;;  %v1033_v22 = vsel %vm570_vm0, %v212_v34, 0.0  ;;  %v1804_v17 = vsel %vm570_vm0, %v469_v58, 0.0  ;;  %v1756_v58 = vsel %vm570_vm0, %v453_v3, 0.0  ;;  %v217_v3 = vld [vmem:[%s20918_s0 + $0x4f8] sm:$0xff] }
 0x27e   :  { %v18022_v51 = vpop.xlane.xlu0 %878  ;;  %12586 = vmatprep.subr.bf16.mxu0 %v14325_v32  ;;  %12914 = vmatprep.subr.bf16.mxu1 %v14327_v29  ;;  %v14342_v32 = vcombine.low %v3373_v37, %v3377_v43  ;;  %v14349_v14 = vcombine.high %v3380_v25, %v3384_v50  ;;  %v18072_v37 = vld [vmem:[#allocation3 + $0x1000] sm:$0xff]  ;;  %vm21125_vm5 = vcmask 589312  }
 0x27f   :  { %21116 = vst [vmem:[#allocation26_spill] sm:$0xff] %v18072_v37  ;;  %v18074_v43 = vld [vmem:[#allocation3 + $0x1020] sm:$0xff] }
 0x280   :  { %983 = vadd.xlane.f32.xlu1 %v982_v12  ;;  %12587 = vmatpush1.bf16.msra.mxu0 %v14324_v20  ;;  %v3385_v12 = vld [vmem:[#allocation3 + $0xfe8] sm:$0xff]  ;;  %21117 = vst [vmem:[#allocation18_spill] sm:$0xff] %v18074_v43 }
 0x281   :  { %v18025_v4 = vpop.xlane.xlu1 %1649  ;;  %980 = vadd.xlane.f32.xlu0 %v979_v10  ;;  %12915 = vmatpush1.bf16.msra.mxu1 %v14326_v23  ;;  %v14351_v31 = vcombine.high %v3381_v2, %v3385_v12  ;;  %v197_v10 = vld [vmem:[%s20918_s0 + $0x458] sm:$0xff]  ;;  %v14348_v23 = vcombine.low %v3380_v25, %v3384_v50  ;;  %v14350_v18 = vcombine.low %v3381_v2, %v3385_v12  ;;  %v215_v25 = vld [vmem:[%s20918_s0 + $0x4e8] sm:$0xff]  ;;  %v214_v2 = vld [vmem:[%s20918_s0 + $0x4e0] sm:$0xff] }
 0x282   :  { %v18034_v46 = vpop.xlane.xlu0 %1646  ;;  %12588 = vmatprep.subr.bf16.mxu0 %v14333_v30  ;;  %12916 = vmatprep.subr.bf16.mxu1 %v14335_v27  ;;  %v988_v30 = vsel %vm570_vm0, %v197_v10, 0.0  ;;  %v196_v27 = vld [vmem:[%s20918_s0 + $0x450] sm:$0xff]  ;;  %v198_v10 = vld [vmem:[%s20918_s0 + $0x460] sm:$0xff] }
 0x284   :  { %1751 = vadd.xlane.f32.xlu1 %v1750_v24  ;;  %12589 = vmatpush1.bf16.msra.mxu0 %v14332_v13  ;;  %v1801_v24 = vsel %vm570_vm0, %v468_v0, 0.0  ;;  %v18076_v13 = vld [vmem:[#allocation3 + $0x1008] sm:$0xff]  ;;  %v2226_v0 = vmul.f32 0.0625, %v17980_v57  ;;  %v2482_v57 = vmul.f32 0.0625, %v18005_v62 }
 0x285   :  { %v18037_v28 = vpop.xlane.xlu1 %935  ;;  %1748 = vadd.xlane.f32.xlu0 %v1747_v8  ;;  %12917 = vmatpush1.bf16.msra.mxu1 %v14334_v36  ;;  %21118 = vst [vmem:[#allocation17_spill] sm:$0xff] %v18076_v13  ;;  %v985_v8 = vsel %vm570_vm0, %v196_v27, 0.0  ;;  %v14357_v36 = vcombine.high %v18072_v37, %v18074_v43 }
 0x286   :  { %v18046_v7 = vpop.xlane.xlu0 %932  ;;  %12590 = vmatprep.subr.bf16.mxu0 %v14341_v44  ;;  %12918 = vmatprep.subr.bf16.mxu1 %v14343_v48  ;;  %v452_v44 = vld [vmem:[%s20918_s0 + $0xc50] sm:$0xff] }
 0x287   :  { %v1753_v12 = vsel %vm570_vm0, %v452_v44, 0.0  ;;  %v2228_v35 = vmul.f32 0.0625, %v18046_v7 }
 0x288   :  { %1037 = vadd.xlane.f32.xlu1 %v1036_v41  ;;  %12591 = vmatpush1.bf16.msra.mxu0 %v14340_v39  ;;  %v18081_v41 = vld [vmem:[#allocation3 + $0x1028] sm:$0xff] }
 0x289   :  { %v18049_v29 = vpop.xlane.xlu1 %1703  ;;  %1034 = vadd.xlane.f32.xlu0 %v1033_v22  ;;  %12919 = vmatpush1.bf16.msra.mxu1 %v14342_v32  ;;  %21119 = vst [vmem:[#allocation20_spill] sm:$0xff] %v18081_v41  ;;  %v14359_v50 = vcombine.high %v18076_v13, %v18081_v41  ;;  %v471_v39 = vld [vmem:[%s20918_s0 + $0xce8] sm:$0xff]  ;;  %v470_v22 = vld [vmem:[%s20918_s0 + $0xce0] sm:$0xff]  ;;  %v18251_v41 = vsel %vm570_vm0, %v237_v45, 0.0  ;;  %v236_v45 = vld [vmem:[%s20918_s0 + $0x590] sm:$0xff] }
 0x28a   :  { %v18055_v20 = vpop.xlane.xlu0 %1700  ;;  %12592 = vmatprep.subr.bf16.mxu0 %v14349_v14  ;;  %12920 = vmatprep.subr.bf16.mxu1 %v14351_v31  ;;  %v199_v32 = vld [vmem:[%s20918_s0 + $0x468] sm:$0xff]  ;;  %v1042_v31 = vsel %vm570_vm0, %v215_v25, 0.0  ;;  %v1807_v62 = vsel %vm570_vm0, %v470_v22, 0.0  ;;  %v472_v25 = vld [vmem:[%s20918_s0 + $0xcf0] sm:$0xff]  ;;  %21121 = vst [vmem:[#allocation29_spill] sm:$0xff] %v18251_v41  ;;  %v2485_v37 = vmul.f32 0.0625, %v18049_v29 }
 0x28c   :  { %1805 = vadd.xlane.f32.xlu1 %v1804_v17  ;;  %12593 = vmatpush1.bf16.msra.mxu0 %v14348_v23  ;;  %v2227_v17 = vmul.f32 0.0625, %v17974_v5  ;;  %v455_v23 = vld [vmem:[%s20918_s0 + $0xc68] sm:$0xff]  ;;  %v2483_v5 = vmul.f32 0.0625, %v17996_v38  ;;  %v1810_v38 = vsel %vm570_vm0, %v471_v39, 0.0 }
 0x28d   :  { %v18061_v15 = vpop.xlane.xlu1 %887  ;;  %1802 = vadd.xlane.f32.xlu0 %v1801_v24  ;;  %12921 = vmatpush1.bf16.msra.mxu1 %v14350_v18  ;;  %v454_v24 = vld [vmem:[%s20918_s0 + $0xc60] sm:$0xff]  ;;  %v2211_v18 = vmul.f32 0.0625, %v18013_v26  ;;  %v473_v26 = vld [vmem:[%s20918_s0 + $0xcf8] sm:$0xff]  ;;  %v18146_v44 = vsel %vm570_vm0, %v455_v23, 0.0 }
 0x28e   :  { %v18067_v33 = vpop.xlane.xlu0 %884  ;;  %12603 = vmatprep.subr.bf16.mxu0 %v14357_v36  ;;  %12931 = vmatprep.subr.bf16.mxu1 %v14359_v50  ;;  %v1039_v36 = vsel %vm570_vm0, %v214_v2, 0.0  ;;  %v201_v50 = vld [vmem:[%s20918_s0 + $0x478] sm:$0xff]  ;;  %v200_v2 = vld [vmem:[%s20918_s0 + $0x470] sm:$0xff]  ;;  %v18162_v22 = vsel %vm570_vm0, %v454_v24, 0.0  ;;  %v18173_v23 = vpack.c.bf16 %v2483_v5, %v2482_v57  ;;  %v234_v5 = vld [vmem:[%s20918_s0 + $0x580] sm:$0xff]  ;;  %v18191_v57 = vsel %vm570_vm0, %v473_v26, 0.0 }
 0x28f   :  { %v2229_v26 = vmul.f32 0.0625, %v18037_v28 }
 0x290   :  { %989 = vadd.xlane.f32.xlu1 %v988_v30  ;;  %v2210_v30 = vmul.f32 0.0625, %v18022_v51  ;;  %v994_v51 = vsel %vm570_vm0, %v199_v32, 0.0  ;;  %v18165_v32 = vsel %vm570_vm0, %v217_v3, 0.0  ;;  %v456_v3 = vld [vmem:[%s20918_s0 + $0xc70] sm:$0xff]  ;;  %v4572_v40 = vunpack.c.l.b16 %v18173_v23 }
 0x291   :  { %v18083_v34 = vpop.xlane.xlu1 %1655  ;;  %986 = vadd.xlane.f32.xlu0 %v985_v8  ;;  %v216_v8 = vld [vmem:[%s20918_s0 + $0x4f0] sm:$0xff]  ;;  %v18226_v7 = vsel %vm570_vm0, %v456_v3, 0.0 }
 0x292   :  { %v18089_v48 = vpop.xlane.xlu0 %1652  ;;  %v18175_v59 = vpack.c.bf16 %v2211_v18, %v2210_v30  ;;  %v18200_v18 = vsel %vm570_vm0, %v200_v2, 0.0  ;;  %v491_v30 = vld [vmem:[%s20918_s0 + $0xd88] sm:$0xff]  ;;  %v218_v2 = vld [vmem:[%s20918_s0 + $0x500] sm:$0xff]  ;;  %v6591_v29 = vrot.slane %v4572_v40, %v15755_v42 }
 0x293   :  { %v18239_v13 = vsel %vm570_vm0, %v491_v30, 0.0  ;;  %v2484_v30 = vmul.f32 0.0625, %v18055_v20 }
 0x294   :  { %1757 = vadd.xlane.f32.xlu1 %v1756_v58  ;;  %v18143_v58 = vsel %vm570_vm0, %v198_v10, 0.0  ;;  %v457_v10 = vld [vmem:[%s20918_s0 + $0xc78] sm:$0xff]  ;;  %v4300_v9 = vunpack.c.l.b16 %v18175_v59  ;;  %v4301_v20 = vunpack.c.h.b16 %v18175_v59  ;;  %v18281_v59 = vsel %vm570_vm0, %v236_v45, 0.0 }
 0x295   :  { %v18111_v14 = vpop.xlane.xlu1 %941  ;;  %1754 = vadd.xlane.f32.xlu0 %v1753_v12  ;;  %v18157_v12 = vpack.c.bf16 %v2227_v17, %v2226_v0  ;;  %v2467_v17 = vmul.f32 0.0625, %v18025_v4  ;;  %v2466_v0 = vmul.f32 0.0625, %v18034_v46  ;;  %v18194_v4 = vsel %vm570_vm0, %v472_v25, 0.0 }
 0x296   :  { %v18127_v27 = vpop.xlane.xlu0 %938  ;;  %v18197_v46 = vsel %vm570_vm0, %v201_v50, 0.0  ;;  %v18211_v25 = vsel %vm570_vm0, %v457_v10, 0.0  ;;  %v219_v50 = vld [vmem:[%s20918_s0 + $0x508] sm:$0xff]  ;;  %v18232_v10 = vsel %vm570_vm0, %v234_v5, 0.0  ;;  %v18248_v5 = vsel %vm570_vm0, %v218_v2, 0.0 }
 0x297   :  { %v4316_v28 = vunpack.c.l.b16 %v18157_v12  ;;  %v18236_v60 = vpack.c.bf16 %v2467_v17, %v2466_v0  ;;  %21120 = vst [vmem:[#allocation28_spill] sm:$0xff] %v18248_v5  ;;  %v4317_v17 = vunpack.c.h.b16 %v18157_v12  ;;  %v2680_v0 = vpack.c.bf16 %v2229_v26, %v2228_v35  ;;  %v475_v35 = vld [vmem:[%s20918_s0 + $0xd08] sm:$0xff] }
 0x298   :  { %1043 = vadd.xlane.f32.xlu1 %v1042_v31  ;;  %v18168_v31 = vsel %vm570_vm0, %v216_v8, 0.0  ;;  %v235_v8 = vld [vmem:[%s20918_s0 + $0x588] sm:$0xff]  ;;  %v2212_v2 = vmul.f32 0.0625, %v18067_v33  ;;  %v2469_v33 = vmul.f32 0.0625, %v18083_v34  ;;  %v2231_v26 = vmul.f32 0.0625, %v18111_v14 }
 0x299   :  { %v18159_v39 = vpop.xlane.xlu1 %1709  ;;  %1040 = vadd.xlane.f32.xlu0 %v1039_v36  ;;  %v490_v36 = vld [vmem:[%s20918_s0 + $0xd80] sm:$0xff]  ;;  %v4318_v41 = vunpack.c.l.b16 %v2680_v0  ;;  %v2808_v40 = vpack.c.bf16 %v2485_v37, %v2484_v30  ;;  %v6592_v37 = vsel %vm21023_vm6, %v6591_v29, %v17966_v6 }
 0x29a   :  { %v18179_v24 = vpop.xlane.xlu0 %1706  ;;  %v18242_v3 = vsel %vm570_vm0, %v490_v36, 0.0  ;;  %v4573_v36 = vunpack.c.h.b16 %v18173_v23  ;;  %v2468_v23 = vmul.f32 0.0625, %v18089_v48  ;;  %v5332_v48 = vrot.slane %v4317_v17, %v15766_v52 }
 0x29b   :  { %v2487_v6 = vmul.f32 0.0625, %v18159_v39 }
 0x29c   :  { %1811 = vadd.xlane.f32.xlu1 %v1810_v38  ;;  %v18229_v38 = vsel %vm570_vm0, %v235_v8, 0.0  ;;  %v18245_v8 = vsel %vm570_vm0, %v219_v50, 0.0  ;;  %v2213_v50 = vmul.f32 0.0625, %v18061_v15  ;;  %v4556_v15 = vunpack.c.l.b16 %v18236_v60 }
 0x29d   :  { %v18223_v16 = vpop.xlane.xlu1 %893  ;;  %1808 = vadd.xlane.f32.xlu0 %v1807_v62  ;;  %v5327_v62 = vrot.slane %v4316_v28, %v15755_v42  ;;  %v2230_v28 = vmul.f32 0.0625, %v18127_v27  ;;  %v6596_v14 = vrot.slane %v4573_v36, %v15766_v52  ;;  %v5337_v36 = vrot.slane %v4318_v41, %v15769_v55 }
 0x29e   :  { %v891_v47 = vpop.xlane.xlu0 %890  ;;  %v2672_v27 = vpack.c.bf16 %v2213_v50, %v2212_v2  ;;  %v6512_v30 = vrot.slane %v4556_v15, %v15755_v42  ;;  %v4574_v50 = vunpack.c.l.b16 %v2808_v40  ;;  %v2486_v2 = vmul.f32 0.0625, %v18179_v24 }
 0x29f   :  { %v5328_v34 = vsel %vm21023_vm6, %v5327_v62, %v17937_v19  ;;  %v4319_v19 = vunpack.c.h.b16 %v2680_v0  ;;  %v2800_v62 = vpack.c.bf16 %v2469_v33, %v2468_v23  ;;  %v2681_v17 = vpack.c.bf16 %v2231_v26, %v2230_v28 }
 0x2a0   :  { %995 = vadd.xlane.f32.xlu1 %v994_v51  ;;  %v5248_v51 = vrot.slane %v4300_v9, %v15755_v42  ;;  %v18284_v9 = vsel %vm570_vm0, %v475_v35, 0.0  ;;  %v4302_v29 = vunpack.c.l.b16 %v2672_v27  ;;  %v6513_v41 = vsel %vm21023_vm6, %v6512_v30, %v18010_v61 }
 0x2a1   :  { %v18260_v43 = vpop.xlane.xlu1 %1661  ;;  %992 = vadd.xlane.f32.xlu0 %v18143_v58  ;;  %v5253_v58 = vrot.slane %v4301_v20, %v15766_v52  ;;  %v2215_v20 = vmul.f32 0.0625, %v18223_v16  ;;  %v5342_v24 = vrot.slane %v4319_v19, %v15772_v56  ;;  %v4558_v33 = vunpack.c.l.b16 %v2800_v62 }
 0x2a2   :  { %v18272_v12 = vpop.xlane.xlu0 %1658  ;;  %v5249_v35 = vsel %vm21023_vm6, %v5248_v51, %v17989_v53  ;;  %v2214_v53 = vmul.f32 0.0625, %v891_v47  ;;  %v6597_v51 = vsel %vm21123_vm4, %v6596_v14, %v6592_v37  ;;  %v4320_v23 = vunpack.c.l.b16 %v2681_v17  ;;  %vm21126_vm4 = vmmov %vm21125_vm5 }
 0x2a3   :  { %v6601_v16 = vrot.slane %v4574_v50, %v15769_v55  ;;  %v4303_v26 = vunpack.c.h.b16 %v2672_v27  ;;  %v2809_v28 = vpack.c.bf16 %v2487_v6, %v2486_v2  ;;  %v5258_v61 = vrot.slane %v4302_v29, %v15769_v55 }
 0x2a4   :  { %1763 = vadd.xlane.f32.xlu1 %v18146_v44  ;;  %v4557_v44 = vunpack.c.h.b16 %v18236_v60  ;;  %v5333_v60 = vsel %vm21122_vm3, %v5332_v48, %v5328_v34  ;;  %v2673_v34 = vpack.c.bf16 %v2215_v20, %v2214_v53  ;;  %v6522_v27 = vrot.slane %v4558_v33, %v15769_v55 }
 0x2a5   :  { %v948_v5 = vpop.xlane.xlu1 %947  ;;  %1760 = vadd.xlane.f32.xlu0 %v18162_v22  ;;  %v5254_v22 = vsel %vm21124_vm7, %v5253_v58, %v5249_v35  ;;  %v5338_v47 = vsel %vm21125_vm5, %v5337_v36, %v5333_v60  ;;  %v4559_v58 = vunpack.c.h.b16 %v2800_v62  ;;  %v5347_v36 = vrot.slane %v4320_v23, %v15795_v11  ;;  %vm21127_vm7 = vmmov %vm21126_vm4 }
 0x2a6   :  { %v945_v45 = vpop.xlane.xlu0 %944  ;;  %v6517_v39 = vrot.slane %v4557_v44, %v15766_v52  ;;  %v2233_v48 = vmul.f32 0.0625, %v948_v5  ;;  %v6602_v5 = vsel %vm21126_vm4, %v6601_v16, %v6597_v51  ;;  %v4576_v62 = vunpack.c.l.b16 %v2809_v28  ;;  %vm21128_vm5 = vmmov %vm21126_vm4 }
 0x2a7   :  { %v2232_v14 = vmul.f32 0.0625, %v945_v45  ;;  %v5263_v45 = vrot.slane %v4303_v26, %v15772_v56  ;;  %v2471_v50 = vmul.f32 0.0625, %v18260_v43  ;;  %v2470_v6 = vmul.f32 0.0625, %v18272_v12 }
 0x2a8   :  { %1049 = vadd.xlane.f32.xlu1 %v18165_v32  ;;  %v4575_v32 = vunpack.c.h.b16 %v2808_v40  ;;  %v4321_v40 = vunpack.c.h.b16 %v2681_v17  ;;  %v4304_v17 = vunpack.c.l.b16 %v2673_v34  ;;  %v5259_v29 = vsel %vm21127_vm7, %v5258_v61, %v5254_v22 }
 0x2a9   :  { %v1716_v0 = vpop.xlane.xlu1 %1715  ;;  %1046 = vadd.xlane.f32.xlu0 %v18168_v31  ;;  %v6518_v31 = vsel %vm21122_vm3, %v6517_v39, %v6513_v41  ;;  %v2682_v2 = vpack.c.bf16 %v2233_v48, %v2232_v14  ;;  %v4577_v39 = vunpack.c.h.b16 %v2809_v28  ;;  %v6611_v43 = vrot.slane %v4576_v62, %v15795_v11 }
 0x2aa   :  { %v1713_v15 = vpop.xlane.xlu0 %1712  ;;  %v2489_v44 = vmul.f32 0.0625, %v1716_v0  ;;  %v6606_v19 = vrot.slane %v4575_v32, %v15772_v56  ;;  %v5352_v20 = vrot.slane %v4321_v40, %v15798_v21  ;;  %v6523_v41 = vsel %vm21128_vm5, %v6522_v27, %v6518_v31 }
 0x2ab   :  { %v2488_v30 = vmul.f32 0.0625, %v1713_v15  ;;  %v4305_v12 = vunpack.c.h.b16 %v2673_v34  ;;  %v5268_v32 = vrot.slane %v4304_v17, %v15795_v11  ;;  %v2801_v33 = vpack.c.bf16 %v2471_v50, %v2470_v6 }
 0x2ac   :  { %1817 = vadd.xlane.f32.xlu1 %v18191_v57  ;;  %v5343_v57 = vsel %vm4777_vm9, %v5342_v24, %v5338_v47  ;;  %v6607_v51 = vsel %vm4777_vm9, %v6606_v19, %v6602_v5  ;;  %v5264_v24 = vsel %vm4777_vm9, %v5263_v45, %v5259_v29  ;;  %v4322_v23 = vunpack.c.l.b16 %v2682_v2 }
 0x2ad   :  { %v900_v37 = vpop.xlane.xlu1 %899  ;;  %1814 = vadd.xlane.f32.xlu0 %v18194_v4  ;;  %v6527_v4 = vrot.slane %v4559_v58, %v15772_v56  ;;  %v2810_v53 = vpack.c.bf16 %v2489_v44, %v2488_v30  ;;  %v6616_v34 = vrot.slane %v4577_v39, %v15798_v21  ;;  %v5273_v58 = vrot.slane %v4305_v12, %v15798_v21 }
 0x2ae   :  { %v897_v35 = vpop.xlane.xlu0 %896  ;;  %v2217_v15 = vmul.f32 0.0625, %v900_v37  ;;  %v6612_v37 = vsel %vm4784_vm10, %v6611_v43, %v6607_v51  ;;  %v4323_v40 = vunpack.c.h.b16 %v2682_v2  ;;  %v5269_v30 = vsel %vm4784_vm10, %v5268_v32, %v5264_v24 }
 0x2af   :  { %v2216_v22 = vmul.f32 0.0625, %v897_v35  ;;  %v6528_v16 = vsel %vm4777_vm9, %v6527_v4, %v6523_v41  ;;  %v4578_v28 = vunpack.c.l.b16 %v2810_v53  ;;  %v4560_v35 = vunpack.c.l.b16 %v2801_v33 }
 0x2b0   :  { %1001 = vadd.xlane.f32.xlu1 %v18197_v46  ;;  %v5348_v46 = vsel %vm4784_vm10, %v5347_v36, %v5343_v57  ;;  %v5357_v31 = vrot.slane %v4322_v23, %v15850_v1  ;;  %v4561_v36 = vunpack.c.h.b16 %v2801_v33  ;;  %v4579_v57 = vunpack.c.h.b16 %v2810_v53 }
 0x2b1   :  { %v1668_v60 = vpop.xlane.xlu1 %1667  ;;  %998 = vadd.xlane.f32.xlu0 %v18200_v18  ;;  %v5353_v26 = vsel %vm4791_vm11, %v5352_v20, %v5348_v46  ;;  %v2674_v44 = vpack.c.bf16 %v2217_v15, %v2216_v22  ;;  %v6617_v62 = vsel %vm4791_vm11, %v6616_v34, %v6612_v37  ;;  %v5274_v6 = vsel %vm4791_vm11, %v5273_v58, %v5269_v30 }
 0x2b2   :  { %v1665_v0 = vpop.xlane.xlu0 %1664  ;;  %v2473_v48 = vmul.f32 0.0625, %v1668_v60  ;;  %v5362_v2 = vrot.slane %v4323_v40, %v15866_v54  ;;  %v6532_v4 = vrot.slane %v4560_v35, %v15795_v11  ;;  %v5358_v20 = vsel %vm4798_vm12, %v5357_v31, %v5353_v26  ;;  %v21129_v40 = vld [vmem:[#allocation28_spill] sm:$0xff]  ;;  %v21130_v31 = vld [vmem:[#allocation29_spill] sm:$0xff] }
 0x2b3   :  { %v2472_v14 = vmul.f32 0.0625, %v1665_v0  ;;  %v4306_v60 = vunpack.c.l.b16 %v2674_v44  ;;  %v6537_v41 = vrot.slane %v4561_v36, %v15798_v21  ;;  %v6626_v46 = vrot.slane %v4579_v57, %v15866_v54 }
 0x2b4   :  { %1769 = vadd.xlane.f32.xlu1 %v18211_v25  ;;  %v5363_v24 = vsel %vm4805_vm13, %v5362_v2, %v5358_v20  ;;  %v4307_v32 = vunpack.c.h.b16 %v2674_v44  ;;  %v493_v20 = vld [vmem:[%s20918_s0 + $0xd98] sm:$0xff]  ;;  %vm21141_vm3 = vcmask 261312  }
 0x2b5   :  { %v954_v47 = vpop.xlane.xlu1 %953  ;;  %1766 = vadd.xlane.f32.xlu0 %v18226_v7  ;;  %v6621_v7 = vrot.slane %v4578_v28, %v15850_v1  ;;  %v2802_v17 = vpack.c.bf16 %v2473_v48, %v2472_v14  ;;  %v5278_v33 = vrot.slane %v4306_v60, %v15850_v1  ;;  %vm21142_vm4 = vmmov %vm21141_vm3 }
 0x2b6   :  { %v2235_v18 = vmul.f32 0.0625, %v954_v47  ;;  %v951_v61 = vpop.xlane.xlu0 %950  ;;  %v5283_v30 = vrot.slane %v4307_v32, %v15866_v54  ;;  %vm21143_vm7 = vmmov %vm21141_vm3 }
 0x2b7   :  { %v2234_v25 = vmul.f32 0.0625, %v951_v61  ;;  %v4562_v12 = vunpack.c.l.b16 %v2802_v17  ;;  %v4563_v48 = vunpack.c.h.b16 %v2802_v17  ;;  %vm21144_vm5 = vmmov %vm21141_vm3 }
 0x2b8   :  { %1103 = vadd.xlane.f32.xlu1 %v18229_v38 }
 0x2b9   :  { %v2683_v19 = vpack.c.bf16 %v2235_v18, %v2234_v25  ;;  %v1722_v27 = vpop.xlane.xlu1 %1721  ;;  %1100 = vadd.xlane.f32.xlu0 %v18232_v10  ;;  %v6622_v10 = vsel %vm4798_vm12, %v6621_v7, %v6617_v62  ;;  %v6542_v37 = vrot.slane %v4562_v12, %v15850_v1  ;;  %v6547_v17 = vrot.slane %v4563_v48, %v15866_v54 }
 0x2ba   :  { %v2491_v5 = vmul.f32 0.0625, %v1722_v27  ;;  %v1719_v45 = vpop.xlane.xlu0 %1718  ;;  %v6627_v34 = vsel %vm4805_vm13, %v6626_v46, %v6622_v10  ;;  %v5279_v27 = vsel %vm4798_vm12, %v5278_v33, %v5274_v6  ;;  %v3396_v33 = vld [vmem:[#allocation3 + $0x1040] sm:$0xff] }
 0x2bb   :  { %v4324_v50 = vunpack.c.l.b16 %v2683_v19  ;;  %v2490_v38 = vmul.f32 0.0625, %v1719_v45  ;;  %v4325_v29 = vunpack.c.h.b16 %v2683_v19  ;;  %v474_v45 = vld [vmem:[%s20918_s0 + $0xd00] sm:$0xff] }
 0x2bc   :  { %1871 = vadd.xlane.f32.xlu1 %v18239_v13 }
 0x2bd   :  { %v5367_v53 = vrot.slane %v4324_v50, %v15911_v63  ;;  %v2811_v0 = vpack.c.bf16 %v2491_v5, %v2490_v38  ;;  %v906_v51 = vpop.xlane.xlu1 %905  ;;  %1868 = vadd.xlane.f32.xlu0 %v18242_v3  ;;  %v5372_v23 = vrot.slane %v4325_v29, %v15914_v49  ;;  %v6533_v3 = vsel %vm4784_vm10, %v6532_v4, %v6528_v16 }
 0x2be   :  { %v2219_v39 = vmul.f32 0.0625, %v906_v51  ;;  %v903_v43 = vpop.xlane.xlu0 %902  ;;  %v6538_v62 = vsel %vm4791_vm11, %v6537_v41, %v6533_v3  ;;  %v1819_v51 = vsel %vm570_vm0, %v474_v45, 0.0 }
 0x2bf   :  { %v4580_v15 = vunpack.c.l.b16 %v2811_v0  ;;  %v4581_v22 = vunpack.c.h.b16 %v2811_v0  ;;  %v2218_v13 = vmul.f32 0.0625, %v903_v43  ;;  %v5368_v61 = vsel %vm4812_vm14, %v5367_v53, %v5363_v24  ;;  %v221_v24 = vld [vmem:[%s20918_s0 + $0x518] sm:$0xff] }
 0x2c0   :  { %1055 = vadd.xlane.f32.xlu1 %v18245_v8  ;;  %v5373_v16 = vsel %vm4819_vm15, %v5372_v23, %v5368_v61  ;;  %v6543_v6 = vsel %vm4798_vm12, %v6542_v37, %v6538_v62  ;;  %v5284_v53 = vsel %vm4805_vm13, %v5283_v30, %v5279_v27  ;;  %v3400_v23 = vld [vmem:[#allocation3 + $0x1060] sm:$0xff]  ;;  %v3401_v61 = vld [vmem:[#allocation3 + $0x1068] sm:$0xff]  ;;  %v21132_v37 = vld [vmem:[#allocation18_spill] sm:$0xff] }
 0x2c1   :  { %v6631_v47 = vrot.slane %v4580_v15, %v15911_v63  ;;  %v6636_v26 = vrot.slane %v4581_v22, %v15914_v49  ;;  %v2675_v28 = vpack.c.bf16 %v2219_v39, %v2218_v13  ;;  %v1674_v18 = vpop.xlane.xlu1 %1673  ;;  %1052 = vadd.xlane.f32.xlu0 %v21129_v40  ;;  %v492_v39 = vld [vmem:[%s20918_s0 + $0xd90] sm:$0xff]  ;;  %v6548_v12 = vsel %vm4805_vm13, %v6547_v17, %v6543_v6  ;;  %v18439_v62 = vld [vmem:[#allocation3 + $0x1088] sm:$0xff] }
 0x2c2   :  { %v2475_v14 = vmul.f32 0.0625, %v1674_v18  ;;  %v1671_v25 = vpop.xlane.xlu0 %1670  ;;  %v1876_v13 = vsel %vm570_vm0, %v493_v20, 0.0  ;;  %v18413_v18 = vld [vmem:[#allocation3 + $0x1048] sm:$0xff]  ;;  %v14365_v27 = vcombine.high %v3396_v33, %v3400_v23 }
 0x2c3   :  { %v4308_v58 = vunpack.c.l.b16 %v2675_v28  ;;  %v2474_v8 = vmul.f32 0.0625, %v1671_v25  ;;  %v6632_v44 = vsel %vm4812_vm14, %v6631_v47, %v6627_v34  ;;  %v4309_v35 = vunpack.c.h.b16 %v2675_v28  ;;  %v220_v25 = vld [vmem:[%s20918_s0 + $0x510] sm:$0xff]  ;;  %v18441_v17 = vld [vmem:[#allocation3 + $0x10a8] sm:$0xff] }
 0x2c4   :  { %1109 = vadd.xlane.f32.xlu1 %v21130_v31  ;;  %v6637_v19 = vsel %vm4819_vm15, %v6636_v26, %v6632_v44  ;;  %v1873_v47 = vsel %vm570_vm0, %v492_v39, 0.0  ;;  %v21135_v31 = vld [vmem:[#allocation20_spill] sm:$0xff]  ;;  %v1057_v45 = vsel %vm570_vm0, %v220_v25, 0.0  ;;  %v14375_v39 = vcombine.high %v18439_v62, %v18441_v17 }
 0x2c5   :  { %v5288_v36 = vrot.slane %v4308_v58, %v15911_v63  ;;  %v2803_v57 = vpack.c.bf16 %v2475_v14, %v2474_v8  ;;  %v1008_v7 = vpop.xlane.xlu1 %1007  ;;  %v7278_v5 = vsel %vm7270_vm8, %v6637_v19, %v5373_v16  ;;  %1106 = vadd.xlane.f32.xlu0 %v18281_v59  ;;  %v5293_v0 = vrot.slane %v4309_v35, %v15914_v49  ;;  %v21133_v58 = vld [vmem:[#allocation26_spill] sm:$0xff]  ;;  %v477_v35 = vld [vmem:[%s20918_s0 + $0xd18] sm:$0xff]  ;;  %v21136_v16 = vld [vmem:[#allocation17_spill] sm:$0xff] }
 0x2c6   :  { %v2253_v50 = vmul.f32 0.0625, %v1008_v7  ;;  %v1005_v38 = vpop.xlane.xlu0 %1004  ;;  %v18383_v2 = vpack.c.b16 %v7278_v5, %v7278_v5  ;;  %v1060_v14 = vsel %vm570_vm0, %v221_v24, 0.0  ;;  %v14356_v40 = vcombine.low %v21133_v58, %v21132_v37  ;;  %v18432_v7 = vld [vmem:[#allocation3 + $0x1080] sm:$0xff] }
 0x2c7   :  { %v4564_v60 = vunpack.c.l.b16 %v2803_v57  ;;  %v4565_v29 = vunpack.c.h.b16 %v2803_v57  ;;  %v2252_v4 = vmul.f32 0.0625, %v1005_v38  ;;  %v5289_v43 = vsel %vm4812_vm14, %v5288_v36, %v5284_v53  ;;  %v18434_v5 = vld [vmem:[#allocation3 + $0x10a0] sm:$0xff] }
 0x2c8   :  { %21131 = vst [vmem:[#allocation28_spill] sm:$0xff] %v18383_v2  ;;  %12594 = vmatprep.mubr.bf16.mxu0 %v18383_v2  ;;  %12922 = vmatprep.mubr.bf16.mxu1 %v18383_v2  ;;  %v5294_v26 = vsel %vm4819_vm15, %v5293_v0, %v5289_v43  ;;  %v14358_v19 = vcombine.low %v21136_v16, %v21135_v31  ;;  %v1828_v6 = vsel %vm570_vm0, %v477_v35, 0.0  ;;  %v18459_v43 = vld [vmem:[#allocation3 + $0x10c0] sm:$0xff] }
 0x2c9   :  { %v6552_v41 = vrot.slane %v4564_v60, %v15911_v63  ;;  %v6557_v10 = vrot.slane %v4565_v29, %v15914_v49  ;;  %v18397_v59 = vpack.c.bf16 %v2253_v50, %v2252_v4  ;;  %1823 = vadd.xlane.f32.xlu1 %v18284_v9  ;;  %v1776_v46 = vpop.xlane.xlu1 %1775  ;;  %1820 = vadd.xlane.f32.xlu0 %v1819_v51  ;;  %v476_v60 = vld [vmem:[%s20918_s0 + $0xd10] sm:$0xff] }
 0x2ca   :  { %v2509_v15 = vmul.f32 0.0625, %v1776_v46  ;;  %v1773_v22 = vpop.xlane.xlu0 %1772  ;;  %v14367_v57 = vcombine.high %v18413_v18, %v3401_v61  ;;  %v14364_v29 = vcombine.low %v3396_v33, %v3400_v23  ;;  %v14366_v4 = vcombine.low %v18413_v18, %v3401_v61  ;;  %v495_v33 = vld [vmem:[%s20918_s0 + $0xda8] sm:$0xff]  ;;  %v21138_v18 = vld [vmem:[#allocation12_spill] sm:$0xff] }
 0x2cb   :  { %v2508_v32 = vmul.f32 0.0625, %v1773_v22  ;;  %v6553_v9 = vsel %vm4812_vm14, %v6552_v41, %v6548_v12  ;;  %v4342_v20 = vunpack.c.l.b16 %v18397_v59  ;;  %v4343_v53 = vunpack.c.h.b16 %v18397_v59  ;;  %v239_v41 = vld [vmem:[%s20918_s0 + $0x5a8] sm:$0xff]  ;;  %v18461_v59 = vld [vmem:[#allocation3 + $0x10e0] sm:$0xff] }
 0x2cc   :  { %v6558_v28 = vsel %vm4819_vm15, %v6557_v10, %v6553_v9  ;;  %v14373_v10 = vcombine.high %v18432_v7, %v18434_v5  ;;  %v1825_v12 = vsel %vm570_vm0, %v476_v60, 0.0  ;;  %v18466_v22 = vld [vmem:[#allocation3 + $0x10e8] sm:$0xff]  ;;  %v238_v9 = vld [vmem:[%s20918_s0 + $0x5a0] sm:$0xff]  ;;  %v14372_v23 = vcombine.low %v18432_v7, %v18434_v5  ;;  %v21140_v5 = vld [vmem:[#allocation14_spill] sm:$0xff] }
 0x2cd   :  { %v18415_v3 = vpack.c.bf16 %v2509_v15, %v2508_v32  ;;  %1877 = vadd.xlane.f32.xlu1 %v1876_v13  ;;  %v960_v34 = vpop.xlane.xlu1 %959  ;;  %v7277_v48 = vsel %vm7270_vm8, %v6558_v28, %v5294_v26  ;;  %1874 = vadd.xlane.f32.xlu0 %v1873_v47  ;;  %v18464_v15 = vld [vmem:[#allocation3 + $0x10c8] sm:$0xff]  ;;  %v1114_v32 = vsel %vm570_vm0, %v239_v41, 0.0  ;;  %v14374_v47 = vcombine.low %v18439_v62, %v18441_v17  ;;  %v21137_v26 = vld [vmem:[#allocation11_spill] sm:$0xff]  ;;  %v18521_v41 = vld [vmem:[#allocation3 + $0x1160] sm:$0xff] }
 0x2ce   :  { %v2237_v8 = vmul.f32 0.0625, %v960_v34  ;;  %v957_v44 = vpop.xlane.xlu0 %956  ;;  %v18424_v30 = vpack.c.b16 %v7277_v48, %v7277_v48  ;;  %v5456_v28 = vrot.slane %v4342_v20, %v21137_v26  ;;  %v5460_v61 = vrot.slane %v4343_v53, %v21138_v18  ;;  %v494_v48 = vld [vmem:[%s20918_s0 + $0xda0] sm:$0xff]  ;;  %v479_v53 = vld [vmem:[%s20918_s0 + $0xd28] sm:$0xff] }
 0x2cf   :  { %v2236_v36 = vmul.f32 0.0625, %v957_v44  ;;  %v18490_v44 = vld [vmem:[#allocation3 + $0x1120] sm:$0xff]  ;;  %v1111_v31 = vsel %vm570_vm0, %v238_v9, 0.0  ;;  %v1882_v16 = vsel %vm570_vm0, %v495_v33, 0.0  ;;  %v1879_v17 = vsel %vm570_vm0, %v494_v48, 0.0 }
 0x2d0   :  { %21134 = vst [vmem:[#allocation29_spill] sm:$0xff] %v18424_v30  ;;  %12595 = vmatmul.mubr.bf16.vlgmr.msra.gmra.mrb[0].mxu0 %v18424_v30  ;;  %12923 = vmatmul.mubr.bf16.vlgmr.msra.gmra.mrb[0].mxu1 %v18424_v30  ;;  %v14382_v60 = vcombine.low %v18464_v15, %v18466_v22  ;;  %v1834_v33 = vsel %vm570_vm0, %v479_v53, 0.0  ;;  %v240_v53 = vld [vmem:[%s20918_s0 + $0x5b0] sm:$0xff] }
 0x2d1   :  { %v18443_v50 = vpack.c.bf16 %v2237_v8, %v2236_v36  ;;  %1061 = vadd.xlane.f32.xlu1 %v1060_v14  ;;  %v1014_v38 = vpop.xlane.xlu1 %1013  ;;  %12604 = vmatpush1.bf16.msra.mxu0 %v14356_v40  ;;  %v14381_v14 = vcombine.high %v18459_v43, %v18461_v59  ;;  %v14383_v40 = vcombine.high %v18464_v15, %v18466_v22  ;;  %v18488_v8 = vld [vmem:[#allocation3 + $0x1100] sm:$0xff]  ;;  %v18498_v36 = vld [vmem:[#allocation3 + $0x1128] sm:$0xff] }
 0x2d2   :  { %v2255_v0 = vmul.f32 0.0625, %v1014_v38  ;;  %v1011_v51 = vpop.xlane.xlu0 %1010  ;;  %12932 = vmatpush1.bf16.msra.mxu1 %v14358_v19  ;;  %12605 = vmatprep.subr.bf16.mxu0 %v14365_v27  ;;  %v14380_v19 = vcombine.low %v18459_v43, %v18461_v59  ;;  %v18496_v27 = vld [vmem:[#allocation3 + $0x1108] sm:$0xff]  ;;  %v478_v59 = vld [vmem:[%s20918_s0 + $0xd20] sm:$0xff] }
 0x2d3   :  { %1058 = vadd.xlane.f32.xlu0 %v1057_v45  ;;  %v2254_v46 = vmul.f32 0.0625, %v1011_v51  ;;  %12933 = vmatprep.subr.bf16.mxu1 %v14367_v57  ;;  %v21139_v57 = vld [vmem:[#allocation13_spill] sm:$0xff]  ;;  %v18519_v51 = vld [vmem:[#allocation3 + $0x1140] sm:$0xff]  ;;  %v18550_v48 = vsel %vm570_vm0, %v478_v59, 0.0 }
 0x2d4   :  { %v223_v38 = vld [vmem:[%s20918_s0 + $0x528] sm:$0xff] }
 0x2d5   :  { %v2693_v13 = vpack.c.bf16 %v2255_v0, %v2254_v46  ;;  %1829 = vadd.xlane.f32.xlu1 %v1828_v6  ;;  %v1728_v24 = vpop.xlane.xlu1 %1727  ;;  %12606 = vmatpush1.bf16.msra.mxu0 %v14364_v29  ;;  %v222_v6 = vld [vmem:[%s20918_s0 + $0x520] sm:$0xff]  ;;  %v5461_v29 = vsel %vm4721_vm1, %v5460_v61, %v5456_v28  ;;  %v14389_v0 = vcombine.high %v18488_v8, %v18490_v44  ;;  %v4599_v46 = vunpack.c.h.b16 %v18415_v3  ;;  %v18531_v15 = vld [vmem:[#allocation3 + $0x1148] sm:$0xff] }
 0x2d6   :  { %v2493_v34 = vmul.f32 0.0625, %v1728_v24  ;;  %12934 = vmatpush1.bf16.msra.mxu1 %v14366_v4  ;;  %12607 = vmatprep.subr.bf16.mxu0 %v14373_v10  ;;  %v1725_v58 = vpop.xlane.xlu0 %1724  ;;  %v4598_v10 = vunpack.c.l.b16 %v18415_v3  ;;  %v18533_v22 = vld [vmem:[#allocation3 + $0x1168] sm:$0xff]  ;;  %v1066_v24 = vsel %vm570_vm0, %v223_v38, 0.0  ;;  %v14397_v28 = vcombine.high %v18519_v51, %v18521_v41  ;;  %v18547_v61 = vld [vmem:[#allocation3 + $0x1180] sm:$0xff] }
 0x2d7   :  { %v4344_v25 = vunpack.c.l.b16 %v2693_v13  ;;  %v4345_v37 = vunpack.c.h.b16 %v2693_v13  ;;  %1826 = vadd.xlane.f32.xlu0 %v1825_v12  ;;  %12935 = vmatprep.subr.bf16.mxu1 %v14375_v39  ;;  %v2492_v35 = vmul.f32 0.0625, %v1725_v58  ;;  %v14391_v12 = vcombine.high %v18496_v27, %v18498_v36  ;;  %v18558_v58 = vld [vmem:[#allocation3 + $0x1188] sm:$0xff] }
 0x2d8   :  { %v18591_v59 = vld [vmem:[#allocation3 + $0x11c8] sm:$0xff] }
 0x2d9   :  { %v5465_v7 = vrot.slane %v4344_v25, %v21139_v57  ;;  %v5470_v45 = vrot.slane %v4345_v37, %v21140_v5  ;;  %1115 = vadd.xlane.f32.xlu1 %v1114_v32  ;;  %v1782_v62 = vpop.xlane.xlu1 %1781  ;;  %12608 = vmatpush1.bf16.msra.mxu0 %v14372_v23  ;;  %v18512_v4 = vpack.c.bf16 %v2493_v34, %v2492_v35  ;;  %v1063_v32 = vsel %vm570_vm0, %v222_v6, 0.0  ;;  %v18556_v37 = vld [vmem:[#allocation3 + $0x11a0] sm:$0xff] }
 0x2da   :  { %v2511_v20 = vmul.f32 0.0625, %v1782_v62  ;;  %12936 = vmatpush1.bf16.msra.mxu1 %v14374_v47  ;;  %12609 = vmatprep.subr.bf16.mxu0 %v14381_v14  ;;  %v1779_v43 = vpop.xlane.xlu0 %1778  ;;  %v14388_v23 = vcombine.low %v18488_v8, %v18490_v44  ;;  %v14390_v47 = vcombine.low %v18496_v27, %v18498_v36  ;;  %v14396_v14 = vcombine.low %v18519_v51, %v18521_v41  ;;  %v18585_v51 = vld [vmem:[#allocation3 + $0x11c0] sm:$0xff] }
 0x2db   :  { %v5466_v39 = vsel %vm4728_vm2, %v5465_v7, %v5461_v29  ;;  %1112 = vadd.xlane.f32.xlu0 %v1111_v31  ;;  %12937 = vmatprep.subr.bf16.mxu1 %v14383_v40  ;;  %v2510_v3 = vmul.f32 0.0625, %v1779_v43  ;;  %v14399_v25 = vcombine.high %v18531_v15, %v18533_v22  ;;  %v18560_v40 = vld [vmem:[#allocation3 + $0x11a8] sm:$0xff]  ;;  %v6720_v8 = vrot.slane %v4598_v10, %v21137_v26  ;;  %v18589_v43 = vld [vmem:[#allocation3 + $0x11e0] sm:$0xff] }
 0x2dc   :  { %v18536_v13 = vsel %vm21141_vm3, %v5470_v45, %v5466_v39  ;;  %v6724_v44 = vrot.slane %v4599_v46, %v21138_v18  ;;  %v4326_v35 = vunpack.c.l.b16 %v18443_v50  ;;  %v14398_v45 = vcombine.low %v18531_v15, %v18533_v22 }
 0x2dd   :  { %1883 = vadd.xlane.f32.xlu1 %v1882_v16  ;;  %v966_v9 = vpop.xlane.xlu1 %965  ;;  %12610 = vmatpush1.bf16.msra.mxu0 %v14380_v19  ;;  %v2821_v34 = vpack.c.bf16 %v2511_v20, %v2510_v3  ;;  %v241_v16 = vld [vmem:[%s20918_s0 + $0x5b8] sm:$0xff]  ;;  %v4327_v19 = vunpack.c.h.b16 %v18443_v50  ;;  %v14405_v6 = vcombine.high %v18547_v61, %v18556_v37  ;;  %v4582_v22 = vunpack.c.l.b16 %v18512_v4 }
 0x2de   :  { %12938 = vmatpush1.bf16.msra.mxu1 %v14382_v60  ;;  %12611 = vmatprep.subr.bf16.mxu0 %v14389_v0  ;;  %v2239_v31 = vmul.f32 0.0625, %v966_v9  ;;  %v963_v7 = vpop.xlane.xlu0 %962  ;;  %v14406_v60 = vcombine.low %v18558_v58, %v18560_v40  ;;  %v1120_v20 = vsel %vm570_vm0, %v241_v16, 0.0  ;;  %v14407_v0 = vcombine.high %v18558_v58, %v18560_v40  ;;  %v18621_v16 = vld [vmem:[#allocation3 + $0x1228] sm:$0xff] }
 0x2df   :  { %1880 = vadd.xlane.f32.xlu0 %v1879_v17  ;;  %12939 = vmatprep.subr.bf16.mxu1 %v14391_v12  ;;  %v4600_v27 = vunpack.c.l.b16 %v2821_v34  ;;  %v4601_v36 = vunpack.c.h.b16 %v2821_v34  ;;  %v2238_v62 = vmul.f32 0.0625, %v963_v7  ;;  %v14404_v17 = vcombine.low %v18547_v61, %v18556_v37  ;;  %v18593_v12 = vld [vmem:[#allocation3 + $0x11e8] sm:$0xff] }
 0x2e0   :  { %v6725_v41 = vsel %vm4721_vm1, %v6724_v44, %v6720_v8  ;;  %v5377_v10 = vrot.slane %v4326_v35, %v21137_v26  ;;  %v5381_v15 = vrot.slane %v4327_v19, %v21138_v18  ;;  %v4583_v3 = vunpack.c.h.b16 %v18512_v4  ;;  %v18617_v35 = vld [vmem:[#allocation3 + $0x1220] sm:$0xff] }
 0x2e1   :  { %1067 = vadd.xlane.f32.xlu1 %v1066_v24  ;;  %v1734_v38 = vpop.xlane.xlu1 %1733  ;;  %12612 = vmatpush1.bf16.msra.mxu0 %v14388_v23  ;;  %v6729_v50 = vrot.slane %v4600_v27, %v21139_v57  ;;  %v6734_v29 = vrot.slane %v4601_v36, %v21140_v5  ;;  %v2685_v46 = vpack.c.bf16 %v2239_v31, %v2238_v62  ;;  %v1117_v34 = vsel %vm570_vm0, %v240_v53, 0.0  ;;  %v18619_v31 = vld [vmem:[#allocation3 + $0x1208] sm:$0xff] }
 0x2e2   :  { %12940 = vmatpush1.bf16.msra.mxu1 %v14390_v47  ;;  %12613 = vmatprep.subr.bf16.mxu0 %v14397_v28  ;;  %v2495_v39 = vmul.f32 0.0625, %v1734_v38  ;;  %v1731_v9 = vpop.xlane.xlu0 %1730  ;;  %v14412_v4 = vcombine.low %v18585_v51, %v18589_v43  ;;  %v14413_v37 = vcombine.high %v18585_v51, %v18589_v43  ;;  %v14415_v58 = vcombine.high %v18591_v59, %v18593_v12  ;;  %v225_v51 = vld [vmem:[%s20918_s0 + $0x538] sm:$0xff] }
 0x2e3   :  { %1064 = vadd.xlane.f32.xlu0 %v1063_v32  ;;  %12941 = vmatprep.subr.bf16.mxu1 %v14399_v25  ;;  %v6730_v24 = vsel %vm4728_vm2, %v6729_v50, %v6725_v41  ;;  %v4328_v32 = vunpack.c.l.b16 %v2685_v46  ;;  %v4329_v47 = vunpack.c.h.b16 %v2685_v46  ;;  %v2494_v28 = vmul.f32 0.0625, %v1731_v9  ;;  %v497_v25 = vld [vmem:[%s20918_s0 + $0xdb8] sm:$0xff] }
 0x2e4   :  { %v18600_v23 = vsel %vm21142_vm4, %v6734_v29, %v6730_v24  ;;  %v5382_v19 = vsel %vm4721_vm1, %v5381_v15, %v5377_v10  ;;  %v6641_v27 = vrot.slane %v4582_v22, %v21137_v26  ;;  %v6645_v36 = vrot.slane %v4583_v3, %v21138_v18  ;;  %v496_v29 = vld [vmem:[%s20918_s0 + $0xdb0] sm:$0xff]  ;;  %v18643_v10 = vld [vmem:[#allocation3 + $0x1240] sm:$0xff] }
 0x2e5   :  { %1835 = vadd.xlane.f32.xlu1 %v1834_v33  ;;  %v1020_v61 = vpop.xlane.xlu1 %1019  ;;  %12614 = vmatpush1.bf16.msra.mxu0 %v14396_v14  ;;  %v18612_v33 = vld [vmem:[#allocation3 + $0x1200] sm:$0xff]  ;;  %v5386_v14 = vrot.slane %v4328_v32, %v21139_v57  ;;  %v5391_v40 = vrot.slane %v4329_v47, %v21140_v5  ;;  %v2813_v8 = vpack.c.bf16 %v2495_v39, %v2494_v28  ;;  %v1885_v3 = vsel %vm570_vm0, %v496_v29, 0.0 }
 0x2e6   :  { %12942 = vmatpush1.bf16.msra.mxu1 %v14398_v45  ;;  %12615 = vmatprep.subr.bf16.mxu0 %v14405_v6  ;;  %v2257_v44 = vmul.f32 0.0625, %v1020_v61  ;;  %v1017_v7 = vpop.xlane.xlu0 %1016  ;;  %v14414_v45 = vcombine.low %v18591_v59, %v18593_v12  ;;  %v14423_v41 = vcombine.high %v18619_v31, %v18621_v16  ;;  %v18647_v59 = vld [vmem:[#allocation3 + $0x1260] sm:$0xff]  ;;  %v18651_v12 = vld [vmem:[#allocation3 + $0x1268] sm:$0xff]  ;;  %v6646_v15 = vsel %vm4721_vm1, %v6645_v36, %v6641_v27 }
 0x2e7   :  { %1832 = vadd.xlane.f32.xlu0 %v18550_v48  ;;  %12943 = vmatprep.subr.bf16.mxu1 %v14407_v0  ;;  %v5387_v48 = vsel %vm4728_vm2, %v5386_v14, %v5382_v19  ;;  %v4584_v62 = vunpack.c.l.b16 %v2813_v8  ;;  %v4585_v38 = vunpack.c.h.b16 %v2813_v8  ;;  %v2256_v6 = vmul.f32 0.0625, %v1017_v7  ;;  %v18674_v8 = vld [vmem:[#allocation3 + $0x1280] sm:$0xff]  ;;  %v18680_v36 = vld [vmem:[#allocation3 + $0x1288] sm:$0xff] }
 0x2e8   :  { %v18633_v53 = vsel %vm21143_vm7, %v5391_v40, %v5387_v48  ;;  %v1888_v0 = vsel %vm570_vm0, %v497_v25, 0.0  ;;  %v14420_v24 = vcombine.low %v18612_v33, %v18617_v35  ;;  %v14422_v9 = vcombine.low %v18619_v31, %v18621_v16  ;;  %v224_v25 = vld [vmem:[%s20918_s0 + $0x530] sm:$0xff]  ;;  %v18678_v27 = vld [vmem:[#allocation3 + $0x12a0] sm:$0xff]  ;;  %v18682_v7 = vld [vmem:[#allocation3 + $0x12a8] sm:$0xff] }
 0x2e9   :  { %1121 = vadd.xlane.f32.xlu1 %v1120_v20  ;;  %v1788_v50 = vpop.xlane.xlu1 %1787  ;;  %12616 = vmatpush1.bf16.msra.mxu0 %v14404_v17  ;;  %v14421_v20 = vcombine.high %v18612_v33, %v18617_v35  ;;  %v6650_v17 = vrot.slane %v4584_v62, %v21139_v57  ;;  %v6655_v46 = vrot.slane %v4585_v38, %v21140_v5  ;;  %v481_v33 = vld [vmem:[%s20918_s0 + $0xd38] sm:$0xff]  ;;  %v21146_v35 = vld [vmem:[#allocation16_spill] sm:$0xff]  ;;  %v1069_v48 = vsel %vm570_vm0, %v224_v25, 0.0 }
 0x2ea   :  { %12944 = vmatpush1.bf16.msra.mxu1 %v14406_v60  ;;  %12617 = vmatprep.subr.bf16.mxu0 %v14413_v37  ;;  %v2694_v39 = vpack.c.bf16 %v2257_v44, %v2256_v6  ;;  %v2513_v43 = vmul.f32 0.0625, %v1788_v50  ;;  %v18649_v60 = vld [vmem:[#allocation3 + $0x1248] sm:$0xff]  ;;  %v1785_v22 = vpop.xlane.xlu0 %1784  ;;  %v14429_v14 = vcombine.high %v18643_v10, %v18647_v59  ;;  %v14428_v62 = vcombine.low %v18643_v10, %v18647_v59 }
 0x2eb   :  { %1118 = vadd.xlane.f32.xlu0 %v1117_v34  ;;  %12945 = vmatprep.subr.bf16.mxu1 %v14415_v58  ;;  %v6651_v32 = vsel %vm4728_vm2, %v6650_v17, %v6646_v15  ;;  %v2512_v61 = vmul.f32 0.0625, %v1785_v22  ;;  %v1072_v58 = vsel %vm570_vm0, %v225_v51, 0.0  ;;  %v14431_v40 = vcombine.high %v18649_v60, %v18651_v12  ;;  %v243_v17 = vld [vmem:[%s20918_s0 + $0x5c8] sm:$0xff]  ;;  %v18709_v15 = vld [vmem:[#allocation3 + $0x12e0] sm:$0xff] }
 0x2ec   :  { %v4346_v47 = vunpack.c.l.b16 %v2694_v39  ;;  %v4347_v28 = vunpack.c.h.b16 %v2694_v39  ;;  %v18664_v37 = vsel %vm21144_vm5, %v6655_v46, %v6651_v32  ;;  %v14430_v38 = vcombine.low %v18649_v60, %v18651_v12  ;;  %v18705_v39 = vld [vmem:[#allocation3 + $0x12c0] sm:$0xff]  ;;  %v18711_v22 = vld [vmem:[#allocation3 + $0x12c8] sm:$0xff] }
 0x2ed   :  { %1889 = vadd.xlane.f32.xlu1 %v1888_v0  ;;  %v972_v34 = vpop.xlane.xlu1 %971  ;;  %12618 = vmatpush1.bf16.msra.mxu0 %v14412_v4  ;;  %v21145_v4 = vld [vmem:[#allocation15_spill] sm:$0xff]  ;;  %v2822_v16 = vpack.c.bf16 %v2513_v43, %v2512_v61  ;;  %vm21147_vm3 = vcmask 326912   ;;  %vm21148_vm4 = vcmask 392512   ;;  %v1840_v10 = vsel %vm570_vm0, %v481_v33, 0.0  ;;  %v242_v33 = vld [vmem:[%s20918_s0 + $0x5c0] sm:$0xff] }
 0x2ee   :  { %12946 = vmatpush1.bf16.msra.mxu1 %v14414_v45  ;;  %12619 = vmatprep.subr.bf16.mxu0 %v14421_v20  ;;  %v5475_v44 = vrot.slane %v4346_v47, %v21145_v4  ;;  %v5480_v31 = vrot.slane %v4347_v28, %v21146_v35  ;;  %v2241_v19 = vmul.f32 0.0625, %v972_v34  ;;  %v969_v45 = vpop.xlane.xlu0 %968  ;;  %v480_v20 = vld [vmem:[%s20918_s0 + $0xd30] sm:$0xff]  ;;  %v14439_v46 = vcombine.high %v18680_v36, %v18682_v7  ;;  %vm21149_vm7 = vmmov %vm21147_vm3 }
 0x2ef   :  { %1886 = vadd.xlane.f32.xlu0 %v1885_v3  ;;  %12947 = vmatprep.subr.bf16.mxu1 %v14423_v41  ;;  %v4602_v50 = vunpack.c.l.b16 %v2822_v16  ;;  %v4603_v29 = vunpack.c.h.b16 %v2822_v16  ;;  %v2240_v0 = vmul.f32 0.0625, %v969_v45  ;;  %v18713_v3 = vld [vmem:[#allocation3 + $0x12e8] sm:$0xff]  ;;  %v14436_v32 = vcombine.low %v18674_v8, %v18678_v27  ;;  %vm21150_vm5 = vmmov %vm21148_vm4 }
 0x2f0   :  { %v5476_v6 = vsel %vm21147_vm3, %v5475_v44, %v18536_v13  ;;  %v14437_v13 = vcombine.high %v18674_v8, %v18678_v27  ;;  %v14438_v47 = vcombine.low %v18680_v36, %v18682_v7  ;;  %v14447_v8 = vcombine.high %v18711_v22, %v18713_v3  ;;  %v3484_v27 = vld [vmem:[#allocation3 + $0x1300] sm:$0xff] }
 0x2f1   :  { %1073 = vadd.xlane.f32.xlu1 %v1072_v58  ;;  %v1740_v51 = vpop.xlane.xlu1 %1739  ;;  %12620 = vmatpush1.bf16.msra.mxu0 %v14420_v24  ;;  %v18695_v41 = vsel %vm21148_vm4, %v5480_v31, %v5476_v6  ;;  %v6739_v43 = vrot.slane %v4602_v50, %v21145_v4  ;;  %v6744_v59 = vrot.slane %v4603_v29, %v21146_v35  ;;  %v3488_v36 = vld [vmem:[#allocation3 + $0x1320] sm:$0xff]  ;;  %v1123_v45 = vsel %vm570_vm0, %v242_v33, 0.0 }
 0x2f2   :  { %12948 = vmatpush1.bf16.msra.mxu1 %v14422_v9  ;;  %12621 = vmatprep.subr.bf16.mxu0 %v14429_v14  ;;  %v2686_v60 = vpack.c.bf16 %v2241_v19, %v2240_v0  ;;  %v2497_v12 = vmul.f32 0.0625, %v1740_v51  ;;  %v1737_v24 = vpop.xlane.xlu0 %1736  ;;  %v1837_v9 = vsel %vm570_vm0, %v480_v20, 0.0  ;;  %v499_v19 = vld [vmem:[%s20918_s0 + $0xdc8] sm:$0xff]  ;;  %v498_v0 = vld [vmem:[%s20918_s0 + $0xdc0] sm:$0xff]  ;;  %v14444_v51 = vcombine.low %v18705_v39, %v18709_v15 }
 0x2f3   :  { %1070 = vadd.xlane.f32.xlu0 %v1069_v48  ;;  %12949 = vmatprep.subr.bf16.mxu1 %v14431_v40  ;;  %v6740_v28 = vsel %vm21149_vm7, %v6739_v43, %v18600_v23  ;;  %v2496_v25 = vmul.f32 0.0625, %v1737_v24  ;;  %v1126_v40 = vsel %vm570_vm0, %v243_v17, 0.0  ;;  %v14445_v23 = vcombine.high %v18705_v39, %v18709_v15  ;;  %v3485_v48 = vld [vmem:[#allocation3 + $0x1308] sm:$0xff]  ;;  %vm21151_vm7 = vmmov %vm21147_vm3 }
 0x2f4   :  { %v4330_v61 = vunpack.c.l.b16 %v2686_v60  ;;  %v4331_v34 = vunpack.c.h.b16 %v2686_v60  ;;  %v18728_v14 = vsel %vm21150_vm5, %v6744_v59, %v6740_v28  ;;  %v14453_v17 = vcombine.high %v3484_v27, %v3488_v36  ;;  %v227_v39 = vld [vmem:[%s20918_s0 + $0x548] sm:$0xff]  ;;  %v3492_v59 = vld [vmem:[#allocation3 + $0x1340] sm:$0xff]  ;;  %vm21152_vm5 = vmmov %vm21148_vm4 }
 0x2f5   :  { %1841 = vadd.xlane.f32.xlu1 %v1840_v10  ;;  %v18722_v58 = vpop.xlane.xlu1 %1025  ;;  %12622 = vmatpush1.bf16.msra.mxu0 %v14428_v62  ;;  %v2814_v16 = vpack.c.bf16 %v2497_v12, %v2496_v25  ;;  %v3489_v62 = vld [vmem:[#allocation3 + $0x1328] sm:$0xff]  ;;  %v1894_v10 = vsel %vm570_vm0, %v499_v19, 0.0  ;;  %v3496_v60 = vld [vmem:[#allocation3 + $0x1360] sm:$0xff]  ;;  %v1891_v15 = vsel %vm570_vm0, %v498_v0, 0.0 }
 0x2f6   :  { %12950 = vmatpush1.bf16.msra.mxu1 %v14430_v38  ;;  %12623 = vmatprep.subr.bf16.mxu0 %v14437_v13  ;;  %v5396_v44 = vrot.slane %v4330_v61, %v21145_v4  ;;  %v5401_v31 = vrot.slane %v4331_v34, %v21146_v35  ;;  %v18740_v7 = vpop.xlane.xlu0 %1022  ;;  %v14455_v43 = vcombine.high %v3485_v48, %v3489_v62  ;;  %v3493_v24 = vld [vmem:[#allocation3 + $0x1348] sm:$0xff]  ;;  %v1078_v61 = vsel %vm570_vm0, %v227_v39, 0.0  ;;  %v3512_v0 = vld [vmem:[#allocation3 + $0x13e0] sm:$0xff] }
 0x2f7   :  { %1838 = vadd.xlane.f32.xlu0 %v1837_v9  ;;  %12951 = vmatprep.subr.bf16.mxu1 %v14439_v46  ;;  %v4586_v6 = vunpack.c.l.b16 %v2814_v16  ;;  %v4587_v50 = vunpack.c.h.b16 %v2814_v16  ;;  %v14454_v34 = vcombine.low %v3485_v48, %v3489_v62  ;;  %v14461_v25 = vcombine.high %v3492_v59, %v3496_v60  ;;  %v3505_v16 = vld [vmem:[#allocation3 + $0x13a8] sm:$0xff] }
 0x2f8   :  { %v5397_v38 = vsel %vm21147_vm3, %v5396_v44, %v18633_v53  ;;  %v14446_v53 = vcombine.low %v18711_v22, %v18713_v3  ;;  %v3497_v22 = vld [vmem:[#allocation3 + $0x1368] sm:$0xff]  ;;  %vm21158_vm3 = vcmask 523712  }
 0x2f9   :  { %1127 = vadd.xlane.f32.xlu1 %v1126_v40  ;;  %v18745_v29 = vpop.xlane.xlu1 %1793  ;;  %12624 = vmatpush1.bf16.msra.mxu0 %v14436_v32  ;;  %v18753_v20 = vsel %vm21148_vm4, %v5401_v31, %v5397_v38  ;;  %v6660_v13 = vrot.slane %v4586_v6, %v21145_v4  ;;  %v6665_v46 = vrot.slane %v4587_v50, %v21146_v35  ;;  %v226_v32 = vld [vmem:[%s20918_s0 + $0x540] sm:$0xff]  ;;  %v3501_v31 = vld [vmem:[#allocation3 + $0x1388] sm:$0xff]  ;;  %v245_v38 = vld [vmem:[%s20918_s0 + $0x5d8] sm:$0xff] }
 0x2fa   :  { %12952 = vmatpush1.bf16.msra.mxu1 %v14438_v47  ;;  %12625 = vmatprep.subr.bf16.mxu0 %v14445_v23  ;;  %v18763_v12 = vpop.xlane.xlu0 %1790  ;;  %v14452_v47 = vcombine.low %v3484_v27, %v3488_v36  ;;  %v14463_v33 = vcombine.high %v3493_v24, %v3497_v22  ;;  %v3500_v40 = vld [vmem:[#allocation3 + $0x1380] sm:$0xff]  ;;  %v1075_v44 = vsel %vm570_vm0, %v226_v32, 0.0  ;;  %v14460_v36 = vcombine.low %v3492_v59, %v3496_v60  ;;  %vm21159_vm4 = vmmov %vm21158_vm3 }
 0x2fb   :  { %1124 = vadd.xlane.f32.xlu0 %v1123_v45  ;;  %12953 = vmatprep.subr.bf16.mxu1 %v14447_v8  ;;  %v6661_v3 = vsel %vm21151_vm7, %v6660_v13, %v18664_v37  ;;  %v483_v37 = vld [vmem:[%s20918_s0 + $0xd48] sm:$0xff]  ;;  %v3504_v23 = vld [vmem:[#allocation3 + $0x13a0] sm:$0xff]  ;;  %v14462_v48 = vcombine.low %v3493_v24, %v3497_v22  ;;  %v14471_v6 = vcombine.high %v3501_v31, %v3505_v16  ;;  %vm21160_vm7 = vmmov %vm21158_vm3 }
 0x2fc   :  { %v18774_v28 = vsel %vm21152_vm5, %v6665_v46, %v6661_v3  ;;  %v482_v27 = vld [vmem:[%s20918_s0 + $0xd40] sm:$0xff]  ;;  %v1846_v45 = vsel %vm570_vm0, %v483_v37, 0.0  ;;  %v14469_v62 = vcombine.high %v3500_v40, %v3504_v23  ;;  %v244_v46 = vld [vmem:[%s20918_s0 + $0x5d0] sm:$0xff]  ;;  %v14468_v39 = vcombine.low %v3500_v40, %v3504_v23  ;;  %v229_v37 = vld [vmem:[%s20918_s0 + $0x558] sm:$0xff] }
 0x2fd   :  { %1895 = vadd.xlane.f32.xlu1 %v1894_v10  ;;  %v18768_v9 = vpop.xlane.xlu1 %977  ;;  %12626 = vmatpush1.bf16.msra.mxu0 %v14444_v51  ;;  %v3508_v50 = vld [vmem:[#allocation3 + $0x13c0] sm:$0xff]  ;;  %v1843_v10 = vsel %vm570_vm0, %v482_v27, 0.0  ;;  %v14470_v59 = vcombine.low %v3501_v31, %v3505_v16  ;;  %v1129_v3 = vsel %vm570_vm0, %v244_v46, 0.0  ;;  %v1084_v31 = vsel %vm570_vm0, %v229_v37, 0.0  ;;  %v485_v16 = vld [vmem:[%s20918_s0 + $0xd58] sm:$0xff]  ;;  %vm21161_vm5 = vmmov %vm21158_vm3 }
 0x2fe   :  { %12954 = vmatpush1.bf16.msra.mxu1 %v14446_v53  ;;  %12627 = vmatprep.subr.bf16.mxu0 %v14453_v17  ;;  %v18780_v8 = vpop.xlane.xlu0 %974  ;;  %v3509_v53 = vld [vmem:[#allocation3 + $0x13c8] sm:$0xff]  ;;  %v14477_v60 = vcombine.high %v3508_v50, %v3512_v0  ;;  %v18828_v27 = vld [vmem:[#allocation3 + $0x1400] sm:$0xff]  ;;  %v2258_v46 = vmul.f32 0.0625, %v18740_v7  ;;  %v2515_v37 = vmul.f32 0.0625, %v18745_v29 }
 0x2ff   :  { %1892 = vadd.xlane.f32.xlu0 %v1891_v15  ;;  %12955 = vmatprep.subr.bf16.mxu1 %v14455_v43  ;;  %v3513_v17 = vld [vmem:[#allocation3 + $0x13e8] sm:$0xff]  ;;  %v1132_v43 = vsel %vm570_vm0, %v245_v38, 0.0  ;;  %v501_v15 = vld [vmem:[%s20918_s0 + $0xdd8] sm:$0xff]  ;;  %21153 = vst [vmem:[#allocation18_spill] sm:$0xff] %v18828_v27 }
 0x300   :  { %v14479_v24 = vcombine.high %v3509_v53, %v3513_v17  ;;  %v18837_v38 = vld [vmem:[#allocation3 + $0x1408] sm:$0xff] }
 0x301   :  { %1079 = vadd.xlane.f32.xlu1 %v1078_v61  ;;  %v18783_v19 = vpop.xlane.xlu1 %1745  ;;  %12628 = vmatpush1.bf16.msra.mxu0 %v14452_v47  ;;  %v500_v47 = vld [vmem:[%s20918_s0 + $0xdd0] sm:$0xff]  ;;  %v14476_v61 = vcombine.low %v3508_v50, %v3512_v0  ;;  %21155 = vst [vmem:[#allocation20_spill] sm:$0xff] %v18837_v38 }
 0x302   :  { %12956 = vmatpush1.bf16.msra.mxu1 %v14454_v34  ;;  %12629 = vmatprep.subr.bf16.mxu0 %v14461_v25  ;;  %v18792_v51 = vpop.xlane.xlu0 %1742  ;;  %v1900_v34 = vsel %vm570_vm0, %v501_v15, 0.0  ;;  %v14478_v25 = vcombine.low %v3509_v53, %v3513_v17  ;;  %v1897_v40 = vsel %vm570_vm0, %v500_v47, 0.0  ;;  %v484_v0 = vld [vmem:[%s20918_s0 + $0xd50] sm:$0xff]  ;;  %v2259_v17 = vmul.f32 0.0625, %v18722_v58  ;;  %v246_v15 = vld [vmem:[%s20918_s0 + $0x5e0] sm:$0xff]  ;;  %v267_v53 = vld [vmem:[%s20918_s0 + $0x688] sm:$0xff] }
 0x303   :  { %1076 = vadd.xlane.f32.xlu0 %v1075_v44  ;;  %12957 = vmatprep.subr.bf16.mxu1 %v14463_v33  ;;  %v228_v44 = vld [vmem:[%s20918_s0 + $0x550] sm:$0xff] }
 0x304   :  { %v18871_v47 = vpack.c.bf16 %v2259_v17, %v2258_v46  ;;  %v2499_v17 = vmul.f32 0.0625, %v18783_v19  ;;  %v2498_v46 = vmul.f32 0.0625, %v18792_v51 }
 0x305   :  { %1847 = vadd.xlane.f32.xlu1 %v1846_v45  ;;  %v18795_v13 = vpop.xlane.xlu1 %1031  ;;  %12630 = vmatpush1.bf16.msra.mxu0 %v14460_v36  ;;  %v18830_v36 = vld [vmem:[#allocation3 + $0x1420] sm:$0xff] }
 0x306   :  { %12958 = vmatpush1.bf16.msra.mxu1 %v14462_v48  ;;  %12631 = vmatprep.subr.bf16.mxu0 %v14469_v62  ;;  %v18804_v22 = vpop.xlane.xlu0 %1028  ;;  %21154 = vst [vmem:[#allocation26_spill] sm:$0xff] %v18830_v36  ;;  %v1081_v48 = vsel %vm570_vm0, %v228_v44, 0.0  ;;  %v14485_v62 = vcombine.high %v18828_v27, %v18830_v36  ;;  %v2243_v44 = vmul.f32 0.0625, %v18768_v9  ;;  %v249_v9 = vld [vmem:[%s20918_s0 + $0x5f8] sm:$0xff] }
 0x307   :  { %1844 = vadd.xlane.f32.xlu0 %v1843_v10  ;;  %12959 = vmatprep.subr.bf16.mxu1 %v14471_v6  ;;  %v18839_v6 = vld [vmem:[#allocation3 + $0x1428] sm:$0xff]  ;;  %v1852_v10 = vsel %vm570_vm0, %v485_v16, 0.0  ;;  %v2260_v5 = vmul.f32 0.0625, %v18804_v22 }
 0x308   :  { %21156 = vst [vmem:[#allocation17_spill] sm:$0xff] %v18839_v6 }
 0x309   :  { %1133 = vadd.xlane.f32.xlu1 %v1132_v43  ;;  %v18807_v32 = vpop.xlane.xlu1 %1799  ;;  %12632 = vmatpush1.bf16.msra.mxu0 %v14468_v39  ;;  %v247_v39 = vld [vmem:[%s20918_s0 + $0x5e8] sm:$0xff]  ;;  %v14487_v43 = vcombine.high %v18837_v38, %v18839_v6 }
 0x30a   :  { %12960 = vmatpush1.bf16.msra.mxu1 %v14470_v59  ;;  %12633 = vmatprep.subr.bf16.mxu0 %v14477_v60  ;;  %v18816_v33 = vpop.xlane.xlu0 %1796  ;;  %v1849_v60 = vsel %vm570_vm0, %v484_v0, 0.0  ;;  %v1138_v7 = vsel %vm570_vm0, %v247_v39, 0.0 }
 0x30b   :  { %1130 = vadd.xlane.f32.xlu0 %v1129_v3  ;;  %12961 = vmatprep.subr.bf16.mxu1 %v14479_v24  ;;  %v503_v24 = vld [vmem:[%s20918_s0 + $0xde8] sm:$0xff]  ;;  %v502_v3 = vld [vmem:[%s20918_s0 + $0xde0] sm:$0xff] }
 0x30c   :  { %v1906_v29 = vsel %vm570_vm0, %v503_v24, 0.0 }
 0x30d   :  { %1901 = vadd.xlane.f32.xlu1 %v1900_v34  ;;  %v18819_v23 = vpop.xlane.xlu1 %983  ;;  %12634 = vmatpush1.bf16.msra.mxu0 %v14476_v61  ;;  %v1135_v61 = vsel %vm570_vm0, %v246_v15, 0.0  ;;  %v231_v34 = vld [vmem:[%s20918_s0 + $0x568] sm:$0xff]  ;;  %v232_v15 = vld [vmem:[%s20918_s0 + $0x570] sm:$0xff] }
 0x30e   :  { %12962 = vmatpush1.bf16.msra.mxu1 %v14478_v25  ;;  %v18832_v45 = vpop.xlane.xlu0 %980  ;;  %12644 = vmatprep.subr.bf16.mxu0 %v14485_v62  ;;  %v230_v25 = vld [vmem:[%s20918_s0 + $0x560] sm:$0xff]  ;;  %v1090_v39 = vsel %vm570_vm0, %v231_v34, 0.0  ;;  %v488_v34 = vld [vmem:[%s20918_s0 + $0xd70] sm:$0xff]  ;;  %v2245_v57 = vmul.f32 0.0625, %v18819_v23 }
 0x30f   :  { %1898 = vadd.xlane.f32.xlu0 %v1897_v40  ;;  %12972 = vmatprep.subr.bf16.mxu1 %v14487_v43  ;;  %v2514_v40 = vmul.f32 0.0625, %v18763_v12  ;;  %v486_v62 = vld [vmem:[%s20918_s0 + $0xd60] sm:$0xff]  ;;  %v1903_v12 = vsel %vm570_vm0, %v502_v3, 0.0  ;;  %v504_v43 = vld [vmem:[%s20918_s0 + $0xdf0] sm:$0xff]  ;;  %v1087_v19 = vsel %vm570_vm0, %v230_v25, 0.0  ;;  %v489_v3 = vld [vmem:[%s20918_s0 + $0xd78] sm:$0xff] }
 0x310   :  { %v18921_v24 = vsel %vm570_vm0, %v486_v62, 0.0  ;;  %v18939_v62 = vsel %vm570_vm0, %v249_v9, 0.0  ;;  %v18950_v4 = vsel %vm570_vm0, %v504_v43, 0.0  ;;  %v18965_v9 = vsel %vm570_vm0, %v489_v3, 0.0 }
 0x311   :  { %1085 = vadd.xlane.f32.xlu1 %v1084_v31  ;;  %v18841_v50 = vpop.xlane.xlu1 %1751  ;;  %v2242_v31 = vmul.f32 0.0625, %v18780_v8  ;;  %v248_v8 = vld [vmem:[%s20918_s0 + $0x5f0] sm:$0xff]  ;;  %v4349_v43 = vunpack.c.h.b16 %v18871_v47  ;;  %v2517_v3 = vmul.f32 0.0625, %v18807_v32  ;;  %v2244_v18 = vmul.f32 0.0625, %v18832_v45 }
 0x312   :  { %v18856_v59 = vpop.xlane.xlu0 %1748  ;;  %v18942_v30 = vsel %vm570_vm0, %v248_v8, 0.0  ;;  %v18968_v8 = vsel %vm570_vm0, %v488_v34, 0.0  ;;  %v2516_v34 = vmul.f32 0.0625, %v18816_v33 }
 0x313   :  { %1082 = vadd.xlane.f32.xlu0 %v1081_v48  ;;  %v487_v48 = vld [vmem:[%s20918_s0 + $0xd68] sm:$0xff]  ;;  %v18934_v25 = vpack.c.bf16 %v2243_v44, %v2242_v31  ;;  %v266_v44 = vld [vmem:[%s20918_s0 + $0x680] sm:$0xff]  ;;  %v5490_v33 = vrot.slane %v4349_v43, %v15766_v52  ;;  %v2500_v38 = vmul.f32 0.0625, %v18856_v59 }
 0x314   :  { %v1858_v51 = vsel %vm570_vm0, %v487_v48, 0.0  ;;  %v523_v31 = vld [vmem:[%s20918_s0 + $0xe88] sm:$0xff]  ;;  %v18989_v22 = vsel %vm570_vm0, %v266_v44, 0.0 }
 0x315   :  { %1853 = vadd.xlane.f32.xlu1 %v1852_v10  ;;  %v18862_v58 = vpop.xlane.xlu1 %1037  ;;  %v505_v10 = vld [vmem:[%s20918_s0 + $0xdf8] sm:$0xff]  ;;  %v4333_v43 = vunpack.c.h.b16 %v18934_v25 }
 0x316   :  { %v18884_v16 = vpop.xlane.xlu0 %1034  ;;  %v18947_v35 = vsel %vm570_vm0, %v505_v10, 0.0  ;;  %v18971_v10 = vsel %vm570_vm0, %v267_v53, 0.0  ;;  %v250_v53 = vld [vmem:[%s20918_s0 + $0x600] sm:$0xff] }
 0x317   :  { %1850 = vadd.xlane.f32.xlu0 %v1849_v60  ;;  %v233_v60 = vld [vmem:[%s20918_s0 + $0x578] sm:$0xff] }
 0x319   :  { %1139 = vadd.xlane.f32.xlu1 %v1138_v7  ;;  %v18892_v0 = vpop.xlane.xlu1 %1805  ;;  %v4348_v7 = vunpack.c.l.b16 %v18871_v47 }
 0x31a   :  { %v18936_v48 = vpop.xlane.xlu0 %1802 }
 0x31b   :  { %1136 = vadd.xlane.f32.xlu0 %v1135_v61  ;;  %v18932_v61 = vpack.c.bf16 %v2515_v37, %v2514_v40  ;;  %v18953_v37 = vsel %vm570_vm0, %v233_v60, 0.0  ;;  %v18956_v40 = vsel %vm570_vm0, %v232_v15, 0.0  ;;  %v5485_v60 = vrot.slane %v4348_v7, %v15755_v42 }
 0x31c   :  { %v2261_v15 = vmul.f32 0.0625, %v18795_v13  ;;  %v4332_v7 = vunpack.c.l.b16 %v18934_v25 }
 0x31d   :  { %1907 = vadd.xlane.f32.xlu1 %v1906_v29  ;;  %v18944_v2 = vpop.xlane.xlu1 %989  ;;  %v2815_v29 = vpack.c.bf16 %v2499_v17, %v2498_v46  ;;  %v522_v17 = vld [vmem:[%s20918_s0 + $0xe80] sm:$0xff]  ;;  %v251_v46 = vld [vmem:[%s20918_s0 + $0x608] sm:$0xff]  ;;  %v4604_v47 = vunpack.c.l.b16 %v18932_v61  ;;  %v5486_v32 = vsel %vm21023_vm6, %v5485_v60, %v18695_v41  ;;  %v4605_v23 = vunpack.c.h.b16 %v18932_v61 }
 0x31e   :  { %v987_v13 = vpop.xlane.xlu0 %986  ;;  %v19001_v27 = vsel %vm570_vm0, %v522_v17, 0.0  ;;  %v19004_v44 = vsel %vm570_vm0, %v251_v46, 0.0  ;;  %v2696_v45 = vpack.c.bf16 %v2261_v15, %v2260_v5  ;;  %v268_v17 = vld [vmem:[%s20918_s0 + $0x690] sm:$0xff]  ;;  %v507_v46 = vld [vmem:[%s20918_s0 + $0xe08] sm:$0xff]  ;;  %v5406_v61 = vrot.slane %v4332_v7, %v15755_v42 }
 0x31f   :  { %1904 = vadd.xlane.f32.xlu0 %v1903_v12  ;;  %v18992_v12 = vsel %vm570_vm0, %v523_v31, 0.0  ;;  %v4588_v36 = vunpack.c.l.b16 %v2815_v29  ;;  %v19007_v31 = vsel %vm570_vm0, %v250_v53, 0.0  ;;  %v6749_v41 = vrot.slane %v4604_v47, %v15755_v42 }
 0x320   :  { %21157 = vst [vmem:[#allocation30_spill] sm:$0xff] %v19007_v31  ;;  %v4589_v5 = vunpack.c.h.b16 %v2815_v29  ;;  %v2824_v60 = vpack.c.bf16 %v2517_v3, %v2516_v34  ;;  %v2688_v15 = vpack.c.bf16 %v2245_v57, %v2244_v18  ;;  %v2501_v53 = vmul.f32 0.0625, %v18841_v50 }
 0x321   :  { %1091 = vadd.xlane.f32.xlu1 %v1090_v39  ;;  %v18998_v26 = vpop.xlane.xlu1 %1757  ;;  %v269_v39 = vld [vmem:[%s20918_s0 + $0x698] sm:$0xff]  ;;  %v6670_v31 = vrot.slane %v4588_v36, %v15755_v42  ;;  %v19034_v25 = vsel %vm570_vm0, %v268_v17, 0.0  ;;  %v19037_v29 = vsel %vm570_vm0, %v507_v46, 0.0  ;;  %v5491_v47 = vsel %vm21158_vm3, %v5490_v33, %v5486_v32 }
 0x322   :  { %v19031_v49 = vsel %vm570_vm0, %v269_v39, 0.0  ;;  %v4350_v18 = vunpack.c.l.b16 %v2696_v45  ;;  %v2263_v57 = vmul.f32 0.0625, %v18862_v58  ;;  %v2262_v50 = vmul.f32 0.0625, %v18884_v16 }
 0x323   :  { %1088 = vadd.xlane.f32.xlu0 %v1087_v19  ;;  %v19025_v19 = vpop.xlane.xlu0 %1754  ;;  %v6750_v36 = vsel %vm21023_vm6, %v6749_v41, %v18728_v14  ;;  %v6754_v59 = vrot.slane %v4605_v23, %v15766_v52  ;;  %v5411_v7 = vrot.slane %v4333_v43, %v15766_v52  ;;  %v6675_v34 = vrot.slane %v4589_v5, %v15766_v52 }
 0x324   :  { %v4606_v32 = vunpack.c.l.b16 %v2824_v60  ;;  %v4334_v33 = vunpack.c.l.b16 %v2688_v15  ;;  %v2816_v58 = vpack.c.bf16 %v2501_v53, %v2500_v38  ;;  %v4351_v14 = vunpack.c.h.b16 %v2696_v45 }
 0x325   :  { %1859 = vadd.xlane.f32.xlu1 %v1858_v51  ;;  %v1044_v6 = vpop.xlane.xlu1 %1043  ;;  %v5407_v51 = vsel %vm21023_vm6, %v5406_v61, %v18753_v20  ;;  %v2519_v23 = vmul.f32 0.0625, %v18892_v0  ;;  %v2518_v39 = vmul.f32 0.0625, %v18936_v48  ;;  %v5495_v20 = vrot.slane %v4350_v18, %v15769_v55 }
 0x326   :  { %v2697_v17 = vpack.c.bf16 %v2263_v57, %v2262_v50  ;;  %v2247_v46 = vmul.f32 0.0625, %v18944_v2  ;;  %v2246_v41 = vmul.f32 0.0625, %v987_v13  ;;  %v6755_v38 = vsel %vm21159_vm4, %v6754_v59, %v6750_v36 }
 0x327   :  { %1856 = vadd.xlane.f32.xlu0 %v18921_v24  ;;  %v1041_v3 = vpop.xlane.xlu0 %1040  ;;  %v6671_v24 = vsel %vm21023_vm6, %v6670_v31, %v18774_v28  ;;  %v2265_v43 = vmul.f32 0.0625, %v1044_v6  ;;  %v6759_v28 = vrot.slane %v4606_v32, %v15769_v55  ;;  %v4335_v31 = vunpack.c.h.b16 %v2688_v15 }
 0x328   :  { %v2264_v61 = vmul.f32 0.0625, %v1041_v3  ;;  %v5416_v0 = vrot.slane %v4334_v33, %v15769_v55  ;;  %v4590_v48 = vunpack.c.l.b16 %v2816_v58  ;;  %v5412_v2 = vsel %vm21160_vm7, %v5411_v7, %v5407_v51 }
 0x329   :  { %1145 = vadd.xlane.f32.xlu1 %v18939_v62  ;;  %v1812_v16 = vpop.xlane.xlu1 %1811  ;;  %v4607_v62 = vunpack.c.h.b16 %v2824_v60  ;;  %v6676_v13 = vsel %vm21161_vm5, %v6675_v34, %v6671_v24  ;;  %v2825_v53 = vpack.c.bf16 %v2519_v23, %v2518_v39  ;;  %vm21162_vm3 = vcmask 589312  }
 0x32a   :  { %v5496_v6 = vsel %vm21162_vm3, %v5495_v20, %v5491_v47  ;;  %v4591_v60 = vunpack.c.h.b16 %v2816_v58  ;;  %v4352_v18 = vunpack.c.l.b16 %v2697_v17  ;;  %v2689_v57 = vpack.c.bf16 %v2247_v46, %v2246_v41  ;;  %vm21163_vm4 = vmmov %vm21162_vm3 }
 0x32b   :  { %1142 = vadd.xlane.f32.xlu0 %v18942_v30  ;;  %v1809_v5 = vpop.xlane.xlu0 %1808  ;;  %v5500_v30 = vrot.slane %v4351_v14, %v15772_v56  ;;  %v6764_v15 = vrot.slane %v4607_v62, %v15772_v56  ;;  %v2698_v50 = vpack.c.bf16 %v2265_v43, %v2264_v61  ;;  %v2521_v36 = vmul.f32 0.0625, %v1812_v16  ;;  %vm21164_vm7 = vmmov %vm21162_vm3 }
 0x32c   :  { %v6760_v51 = vsel %vm21163_vm4, %v6759_v28, %v6755_v38  ;;  %v5417_v7 = vsel %vm21164_vm7, %v5416_v0, %v5412_v2  ;;  %v5421_v3 = vrot.slane %v4335_v31, %v15772_v56  ;;  %v6680_v34 = vrot.slane %v4590_v48, %v15769_v55  ;;  %vm21165_vm5 = vmmov %vm21162_vm3 }
 0x32d   :  { %1913 = vadd.xlane.f32.xlu1 %v18947_v35  ;;  %v996_v45 = vpop.xlane.xlu1 %995  ;;  %v2520_v35 = vmul.f32 0.0625, %v1809_v5  ;;  %v4353_v32 = vunpack.c.h.b16 %v2697_v17  ;;  %v4608_v33 = vunpack.c.l.b16 %v2825_v53  ;;  %v2502_v58 = vmul.f32 0.0625, %v19025_v19 }
 0x32e   :  { %v5501_v16 = vsel %vm4777_vm9, %v5500_v30, %v5496_v6  ;;  %v6685_v24 = vrot.slane %v4591_v60, %v15772_v56  ;;  %v5505_v14 = vrot.slane %v4352_v18, %v15795_v11  ;;  %v4336_v23 = vunpack.c.l.b16 %v2689_v57 }
 0x32f   :  { %1910 = vadd.xlane.f32.xlu0 %v18950_v4  ;;  %v993_v59 = vpop.xlane.xlu0 %992  ;;  %v2503_v4 = vmul.f32 0.0625, %v18998_v26  ;;  %v4354_v39 = vunpack.c.l.b16 %v2698_v50  ;;  %v2826_v20 = vpack.c.bf16 %v2521_v36, %v2520_v35  ;;  %v2249_v46 = vmul.f32 0.0625, %v996_v45 }
 0x330   :  { %v6765_v17 = vsel %vm4777_vm9, %v6764_v15, %v6760_v51  ;;  %v5422_v26 = vsel %vm4777_vm9, %v5421_v3, %v5417_v7  ;;  %v6681_v19 = vsel %vm21165_vm5, %v6680_v34, %v6676_v13  ;;  %v4609_v38 = vunpack.c.h.b16 %v2825_v53 }
 0x331   :  { %1097 = vadd.xlane.f32.xlu1 %v18953_v37  ;;  %v1764_v47 = vpop.xlane.xlu1 %1763  ;;  %v2248_v37 = vmul.f32 0.0625, %v993_v59  ;;  %v5510_v43 = vrot.slane %v4353_v32, %v15798_v21  ;;  %v6769_v61 = vrot.slane %v4608_v33, %v15795_v11  ;;  %v2817_v5 = vpack.c.bf16 %v2503_v4, %v2502_v58 }
 0x332   :  { %v5506_v28 = vsel %vm4784_vm10, %v5505_v14, %v5501_v16  ;;  %v5426_v31 = vrot.slane %v4336_v23, %v15795_v11  ;;  %v4355_v0 = vunpack.c.h.b16 %v2698_v50  ;;  %v6686_v45 = vsel %vm4777_vm9, %v6685_v24, %v6681_v19 }
 0x333   :  { %1094 = vadd.xlane.f32.xlu0 %v18956_v40  ;;  %v1761_v41 = vpop.xlane.xlu0 %1760  ;;  %v4337_v40 = vunpack.c.h.b16 %v2689_v57  ;;  %v5515_v2 = vrot.slane %v4354_v39, %v15850_v1  ;;  %v2690_v13 = vpack.c.bf16 %v2249_v46, %v2248_v37  ;;  %v6774_v53 = vrot.slane %v4609_v38, %v15798_v21 }
 0x334   :  { %v2505_v6 = vmul.f32 0.0625, %v1764_v47  ;;  %v2504_v60 = vmul.f32 0.0625, %v1761_v41  ;;  %v5511_v15 = vsel %vm4791_vm11, %v5510_v43, %v5506_v28  ;;  %v4592_v36 = vunpack.c.l.b16 %v2817_v5 }
 0x335   :  { %1865 = vadd.xlane.f32.xlu1 %v18965_v9  ;;  %v1050_v62 = vpop.xlane.xlu1 %1049  ;;  %v4610_v9 = vunpack.c.l.b16 %v2826_v20  ;;  %v5431_v50 = vrot.slane %v4337_v40, %v15798_v21  ;;  %v5427_v35 = vsel %vm4784_vm10, %v5426_v31, %v5422_v26  ;;  %v5520_v59 = vrot.slane %v4355_v0, %v15866_v54  ;;  %v21166_v31 = vld [vmem:[#allocation21_spill] sm:$0xff] }
 0x336   :  { %v2267_v48 = vmul.f32 0.0625, %v1050_v62  ;;  %v5516_v3 = vsel %vm4798_vm12, %v5515_v2, %v5511_v15  ;;  %v4611_v34 = vunpack.c.h.b16 %v2826_v20  ;;  %v4338_v47 = vunpack.c.l.b16 %v2690_v13 }
 0x337   :  { %1862 = vadd.xlane.f32.xlu0 %v18968_v8  ;;  %v1047_v30 = vpop.xlane.xlu0 %1046  ;;  %v6770_v8 = vsel %vm4784_vm10, %v6769_v61, %v6765_v17  ;;  %v2818_v4 = vpack.c.bf16 %v2505_v6, %v2504_v60  ;;  %v5432_v14 = vsel %vm4791_vm11, %v5431_v50, %v5427_v35  ;;  %v4593_v23 = vunpack.c.h.b16 %v2817_v5 }
 0x338   :  { %v2266_v18 = vmul.f32 0.0625, %v1047_v30  ;;  %v6775_v33 = vsel %vm4791_vm11, %v6774_v53, %v6770_v8  ;;  %v5521_v20 = vsel %vm4805_vm13, %v5520_v59, %v5516_v3  ;;  %v6784_v26 = vrot.slane %v4611_v34, %v15866_v54  ;;  %v21167_v30 = vld [vmem:[#allocation30_spill] sm:$0xff] }
 0x339   :  { %1199 = vadd.xlane.f32.xlu1 %v18971_v10  ;;  %v1818_v57 = vpop.xlane.xlu1 %1817  ;;  %v6779_v10 = vrot.slane %v4610_v9, %v15850_v1  ;;  %v5436_v19 = vrot.slane %v4338_v47, %v15850_v1  ;;  %v4594_v62 = vunpack.c.l.b16 %v2818_v4  ;;  %vm21179_vm3 = vcmask 261312  }
 0x33a   :  { %v2699_v51 = vpack.c.bf16 %v2267_v48, %v2266_v18  ;;  %v2523_v7 = vmul.f32 0.0625, %v1818_v57  ;;  %v4595_v18 = vunpack.c.h.b16 %v2818_v4  ;;  %vm21180_vm4 = vmmov %vm21179_vm3 }
 0x33b   :  { %1196 = vadd.xlane.f32.xlu0 %v18989_v22  ;;  %v1815_v32 = vpop.xlane.xlu0 %1814  ;;  %v6690_v22 = vrot.slane %v4592_v36, %v15795_v11  ;;  %v6780_v17 = vsel %vm4798_vm12, %v6779_v10, %v6775_v33  ;;  %v5437_v6 = vsel %vm4798_vm12, %v5436_v19, %v5432_v14  ;;  %v6700_v15 = vrot.slane %v4594_v62, %v15850_v1  ;;  %v253_v19 = vld [vmem:[%s20918_s0 + $0x618] sm:$0xff]  ;;  %vm21181_vm7 = vmmov %vm21179_vm3 }
 0x33c   :  { %v4356_v58 = vunpack.c.l.b16 %v2699_v51  ;;  %v2522_v16 = vmul.f32 0.0625, %v1815_v32  ;;  %v4357_v39 = vunpack.c.h.b16 %v2699_v51  ;;  %vm21182_vm5 = vmmov %vm21179_vm3 }
 0x33d   :  { %1967 = vadd.xlane.f32.xlu1 %v18992_v12  ;;  %v1002_v24 = vpop.xlane.xlu1 %1001  ;;  %v4339_v12 = vunpack.c.h.b16 %v2690_v13  ;;  %v6691_v28 = vsel %vm4784_vm10, %v6690_v22, %v6686_v45  ;;  %v6785_v45 = vsel %vm4805_vm13, %v6784_v26, %v6780_v17 }
 0x33e   :  { %v5525_v46 = vrot.slane %v4356_v58, %v15911_v63  ;;  %v2827_v37 = vpack.c.bf16 %v2523_v7, %v2522_v16  ;;  %v2251_v41 = vmul.f32 0.0625, %v1002_v24  ;;  %v5530_v0 = vrot.slane %v4357_v39, %v21166_v31 }
 0x33f   :  { %1964 = vadd.xlane.f32.xlu0 %v19001_v27  ;;  %v999_v38 = vpop.xlane.xlu0 %998  ;;  %v6695_v27 = vrot.slane %v4593_v23, %v15798_v21  ;;  %v5441_v60 = vrot.slane %v4339_v12, %v15866_v54  ;;  %v6705_v58 = vrot.slane %v4595_v18, %v15866_v54 }
 0x340   :  { %v4612_v43 = vunpack.c.l.b16 %v2827_v37  ;;  %v4613_v61 = vunpack.c.h.b16 %v2827_v37  ;;  %v2250_v40 = vmul.f32 0.0625, %v999_v38  ;;  %v5526_v48 = vsel %vm4812_vm14, %v5525_v46, %v5521_v20  ;;  %v524_v20 = vld [vmem:[%s20918_s0 + $0xe90] sm:$0xff] }
 0x341   :  { %1151 = vadd.xlane.f32.xlu1 %v19004_v44  ;;  %v1770_v5 = vpop.xlane.xlu1 %1769  ;;  %v506_v44 = vld [vmem:[%s20918_s0 + $0xe00] sm:$0xff]  ;;  %v5531_v51 = vsel %vm4819_vm15, %v5530_v0, %v5526_v48  ;;  %v6696_v33 = vsel %vm4791_vm11, %v6695_v27, %v6691_v28  ;;  %v5442_v4 = vsel %vm4805_vm13, %v5441_v60, %v5437_v6  ;;  %v252_v28 = vld [vmem:[%s20918_s0 + $0x610] sm:$0xff]  ;;  %v509_v6 = vld [vmem:[%s20918_s0 + $0xe18] sm:$0xff] }
 0x342   :  { %v6789_v2 = vrot.slane %v4612_v43, %v15911_v63  ;;  %v6794_v9 = vrot.slane %v4613_v61, %v21166_v31  ;;  %v2691_v13 = vpack.c.bf16 %v2251_v41, %v2250_v40  ;;  %v2507_v53 = vmul.f32 0.0625, %v1770_v5  ;;  %v19164_v27 = vld [vmem:[#allocation3 + $0x1440] sm:$0xff] }
 0x343   :  { %1148 = vadd.xlane.f32.xlu0 %v21167_v30  ;;  %v1767_v57 = vpop.xlane.xlu0 %1766  ;;  %v1915_v3 = vsel %vm570_vm0, %v506_v44, 0.0  ;;  %v6701_v14 = vsel %vm4798_vm12, %v6700_v15, %v6696_v33  ;;  %v1969_v43 = vsel %vm570_vm0, %v524_v20, 0.0  ;;  %v19166_v0 = vld [vmem:[#allocation3 + $0x1460] sm:$0xff]  ;;  %v19173_v30 = vld [vmem:[#allocation3 + $0x1468] sm:$0xff]  ;;  %v508_v15 = vld [vmem:[%s20918_s0 + $0xe10] sm:$0xff] }
 0x344   :  { %v4340_v8 = vunpack.c.l.b16 %v2691_v13  ;;  %v2506_v50 = vmul.f32 0.0625, %v1767_v57  ;;  %v6790_v35 = vsel %vm4812_vm14, %v6789_v2, %v6785_v45  ;;  %v4341_v59 = vunpack.c.h.b16 %v2691_v13  ;;  %v19171_v13 = vld [vmem:[#allocation3 + $0x1448] sm:$0xff] }
 0x345   :  { %1205 = vadd.xlane.f32.xlu1 %v19031_v49  ;;  %v1104_v36 = vpop.xlane.xlu1 %1103  ;;  %v6795_v7 = vsel %vm4819_vm15, %v6794_v9, %v6790_v35  ;;  %v525_v49 = vld [vmem:[%s20918_s0 + $0xe98] sm:$0xff]  ;;  %v6706_v38 = vsel %vm4805_vm13, %v6705_v58, %v6701_v14  ;;  %v1156_v9 = vsel %vm570_vm0, %v253_v19, 0.0  ;;  %v1153_v57 = vsel %vm570_vm0, %v252_v28, 0.0  ;;  %v19208_v33 = vld [vmem:[#allocation3 + $0x14a8] sm:$0xff] }
 0x346   :  { %v5446_v34 = vrot.slane %v4340_v8, %v15911_v63  ;;  %v2819_v10 = vpack.c.bf16 %v2507_v53, %v2506_v50  ;;  %v2285_v47 = vmul.f32 0.0625, %v1104_v36  ;;  %v7280_v32 = vsel %vm7270_vm8, %v6795_v7, %v5531_v51  ;;  %v21170_v8 = vld [vmem:[#allocation17_spill] sm:$0xff]  ;;  %v21171_v50 = vld [vmem:[#allocation20_spill] sm:$0xff] }
 0x347   :  { %1202 = vadd.xlane.f32.xlu0 %v19034_v25  ;;  %v1101_v16 = vpop.xlane.xlu0 %1100  ;;  %v19139_v24 = vpack.c.b16 %v7280_v32, %v7280_v32  ;;  %v5451_v46 = vrot.slane %v4341_v59, %v21166_v31  ;;  %v1972_v37 = vsel %vm570_vm0, %v525_v49, 0.0  ;;  %v14486_v36 = vcombine.low %v21171_v50, %v21170_v8  ;;  %v271_v7 = vld [vmem:[%s20918_s0 + $0x6a8] sm:$0xff]  ;;  %v270_v32 = vld [vmem:[%s20918_s0 + $0x6a0] sm:$0xff] }
 0x348   :  { %v4596_v23 = vunpack.c.l.b16 %v2819_v10  ;;  %v4597_v25 = vunpack.c.h.b16 %v2819_v10  ;;  %v2284_v22 = vmul.f32 0.0625, %v1101_v16  ;;  %v5447_v41 = vsel %vm4812_vm14, %v5446_v34, %v5442_v4  ;;  %v19196_v34 = vld [vmem:[#allocation3 + $0x1480] sm:$0xff]  ;;  %v19206_v49 = vld [vmem:[#allocation3 + $0x1488] sm:$0xff] }
 0x349   :  { %21168 = vst [vmem:[#allocation21_spill] sm:$0xff] %v19139_v24  ;;  %1919 = vadd.xlane.f32.xlu1 %v19037_v29  ;;  %v1872_v39 = vpop.xlane.xlu1 %1871  ;;  %12635 = vmatprep.mubr.bf16.mxu0 %v19139_v24  ;;  %v5452_v48 = vsel %vm4819_vm15, %v5451_v46, %v5447_v41  ;;  %v14493_v35 = vcombine.high %v19164_v27, %v19166_v0  ;;  %v19198_v10 = vld [vmem:[#allocation3 + $0x14a0] sm:$0xff]  ;;  %v1921_v16 = vsel %vm570_vm0, %v508_v15, 0.0  ;;  %v527_v14 = vld [vmem:[%s20918_s0 + $0xea8] sm:$0xff] }
 0x34a   :  { %12963 = vmatprep.mubr.bf16.mxu1 %v19139_v24  ;;  %v6710_v17 = vrot.slane %v4596_v23, %v15911_v63  ;;  %v6715_v26 = vrot.slane %v4597_v25, %v21166_v31  ;;  %v19153_v29 = vpack.c.bf16 %v2285_v47, %v2284_v22  ;;  %v2541_v12 = vmul.f32 0.0625, %v1872_v39  ;;  %v526_v23 = vld [vmem:[%s20918_s0 + $0xea0] sm:$0xff]  ;;  %v255_v25 = vld [vmem:[%s20918_s0 + $0x628] sm:$0xff]  ;;  %v21172_v22 = vld [vmem:[#allocation18_spill] sm:$0xff] }
 0x34b   :  { %1916 = vadd.xlane.f32.xlu0 %v1915_v3  ;;  %v1869_v62 = vpop.xlane.xlu0 %1868  ;;  %v14495_v3 = vcombine.high %v19171_v13, %v19173_v30  ;;  %v1924_v47 = vsel %vm570_vm0, %v509_v6, 0.0  ;;  %v21173_v39 = vld [vmem:[#allocation26_spill] sm:$0xff]  ;;  %v14492_v46 = vcombine.low %v19164_v27, %v19166_v0  ;;  %v1978_v28 = vsel %vm570_vm0, %v527_v14, 0.0  ;;  %v21175_v6 = vld [vmem:[#allocation11_spill] sm:$0xff]  ;;  %v19288_v14 = vld [vmem:[#allocation3 + $0x1508] sm:$0xff] }
 0x34c   :  { %v2540_v61 = vmul.f32 0.0625, %v1869_v62  ;;  %v6711_v5 = vsel %vm4812_vm14, %v6710_v17, %v6706_v38  ;;  %v21174_v20 = vcombine.low %v21172_v22, %v21173_v39  ;;  %v4375_v41 = vunpack.c.h.b16 %v19153_v29  ;;  %v254_v62 = vld [vmem:[%s20918_s0 + $0x620] sm:$0xff]  ;;  %v21178_v39 = vld [vmem:[#allocation14_spill] sm:$0xff] }
 0x34d   :  { %1973 = vadd.xlane.f32.xlu1 %v1972_v37  ;;  %v1056_v40 = vpop.xlane.xlu1 %1055  ;;  %v6716_v2 = vsel %vm4819_vm15, %v6715_v26, %v6711_v5  ;;  %v4374_v37 = vunpack.c.l.b16 %v19153_v29  ;;  %v14494_v26 = vcombine.low %v19171_v13, %v19173_v30  ;;  %v1210_v38 = vsel %vm570_vm0, %v271_v7, 0.0  ;;  %v511_v30 = vld [vmem:[%s20918_s0 + $0xe28] sm:$0xff]  ;;  %v510_v7 = vld [vmem:[%s20918_s0 + $0xe20] sm:$0xff] }
 0x34e   :  { %v19175_v53 = vpack.c.bf16 %v2541_v12, %v2540_v61  ;;  %v2269_v44 = vmul.f32 0.0625, %v1056_v40  ;;  %v7279_v45 = vsel %vm7270_vm8, %v6716_v2, %v5452_v48  ;;  %v14501_v12 = vcombine.high %v19196_v34, %v19198_v10  ;;  %v19241_v61 = vld [vmem:[#allocation3 + $0x14e0] sm:$0xff]  ;;  %v19251_v48 = vld [vmem:[#allocation3 + $0x14c8] sm:$0xff] }
 0x34f   :  { %1970 = vadd.xlane.f32.xlu0 %v1969_v43  ;;  %v1053_v60 = vpop.xlane.xlu0 %1052  ;;  %v19181_v18 = vpack.c.b16 %v7279_v45, %v7279_v45  ;;  %v14503_v29 = vcombine.high %v19206_v49, %v19208_v33  ;;  %v19239_v43 = vld [vmem:[#allocation3 + $0x14c0] sm:$0xff]  ;;  %v1207_v5 = vsel %vm570_vm0, %v270_v32, 0.0  ;;  %v19246_v27 = vsel %vm570_vm0, %v526_v23, 0.0  ;;  %v19253_v2 = vld [vmem:[#allocation3 + $0x14e8] sm:$0xff] }
 0x350   :  { %v2268_v59 = vmul.f32 0.0625, %v1053_v60  ;;  %v19249_v0 = vsel %vm570_vm0, %v255_v25, 0.0  ;;  %v14502_v45 = vcombine.low %v19206_v49, %v19208_v33  ;;  %v5614_v60 = vrot.slane %v4374_v37, %v21175_v6  ;;  %v19290_v23 = vld [vmem:[#allocation3 + $0x1528] sm:$0xff] }
 0x351   :  { %21169 = vst [vmem:[#allocation30_spill] sm:$0xff] %v19181_v18  ;;  %1157 = vadd.xlane.f32.xlu1 %v1156_v9  ;;  %v1110_v51 = vpop.xlane.xlu1 %1109  ;;  %12636 = vmatmul.mubr.bf16.vlgmr.msra.gmra.mrb[0].mxu0 %v19181_v18  ;;  %v19265_v50 = vsel %vm570_vm0, %v254_v62, 0.0  ;;  %v4631_v32 = vunpack.c.h.b16 %v19175_v53  ;;  %v19281_v33 = vsel %vm570_vm0, %v511_v30, 0.0  ;;  %v21177_v25 = vld [vmem:[#allocation13_spill] sm:$0xff]  ;;  %v19325_v30 = vld [vmem:[#allocation3 + $0x1580] sm:$0xff] }
 0x352   :  { %12964 = vmatmul.mubr.bf16.vlgmr.msra.gmra.mrb[0].mxu1 %v19181_v18  ;;  %v19210_v4 = vpack.c.bf16 %v2269_v44, %v2268_v59  ;;  %v2287_v58 = vmul.f32 0.0625, %v1110_v51  ;;  %12645 = vmatpush1.bf16.msra.mxu0 %v21174_v20  ;;  %v14500_v44 = vcombine.low %v19196_v34, %v19198_v10  ;;  %v19274_v34 = vld [vmem:[#allocation3 + $0x1500] sm:$0xff] }
 0x353   :  { %1154 = vadd.xlane.f32.xlu0 %v1153_v57  ;;  %v1107_v17 = vpop.xlane.xlu0 %1106  ;;  %12973 = vmatpush1.bf16.msra.mxu1 %v14486_v36  ;;  %v21176_v57 = vld [vmem:[#allocation12_spill] sm:$0xff]  ;;  %v14509_v36 = vcombine.high %v19239_v43, %v19241_v61 }
 0x354   :  { %12646 = vmatprep.subr.bf16.mxu0 %v14493_v35  ;;  %v2286_v19 = vmul.f32 0.0625, %v1107_v17  ;;  %12974 = vmatprep.subr.bf16.mxu1 %v14495_v3  ;;  %v5618_v15 = vrot.slane %v4375_v41, %v21176_v57  ;;  %v14511_v3 = vcombine.high %v19251_v48, %v19253_v2  ;;  %v19276_v10 = vld [vmem:[#allocation3 + $0x1520] sm:$0xff]  ;;  %v19298_v17 = vsel %vm570_vm0, %v510_v7, 0.0 }
 0x355   :  { %1925 = vadd.xlane.f32.xlu1 %v1924_v47  ;;  %v4630_v47 = vunpack.c.l.b16 %v19175_v53  ;;  %v554_v18 = vld [vmem:[%s20918_s0 + $0xf80] sm:$0xff] }
 0x356   :  { %v1824_v40 = vpop.xlane.xlu1 %1823  ;;  %v2709_v9 = vpack.c.bf16 %v2287_v58, %v2286_v19  ;;  %12647 = vmatpush1.bf16.msra.mxu0 %v14492_v46  ;;  %v273_v58 = vld [vmem:[%s20918_s0 + $0x6b8] sm:$0xff]  ;;  %v5619_v37 = vsel %vm4721_vm1, %v5618_v15, %v5614_v60  ;;  %v19304_v19 = vld [vmem:[#allocation3 + $0x1540] sm:$0xff]  ;;  %v14518_v60 = vcombine.low %v19288_v14, %v19290_v23 }
 0x357   :  { %1922 = vadd.xlane.f32.xlu0 %v1921_v16  ;;  %v2525_v13 = vmul.f32 0.0625, %v1824_v40  ;;  %v1821_v8 = vpop.xlane.xlu0 %1820  ;;  %12975 = vmatpush1.bf16.msra.mxu1 %v14494_v26  ;;  %v14508_v16 = vcombine.low %v19239_v43, %v19241_v61  ;;  %v14510_v26 = vcombine.low %v19251_v48, %v19253_v2  ;;  %v19310_v43 = vsel %vm570_vm0, %v273_v58, 0.0  ;;  %v19314_v40 = vld [vmem:[#allocation3 + $0x1548] sm:$0xff] }
 0x358   :  { %12648 = vmatprep.subr.bf16.mxu0 %v14501_v12  ;;  %v4376_v35 = vunpack.c.l.b16 %v2709_v9  ;;  %v4377_v59 = vunpack.c.h.b16 %v2709_v9  ;;  %v2524_v51 = vmul.f32 0.0625, %v1821_v8  ;;  %12976 = vmatprep.subr.bf16.mxu1 %v14503_v29  ;;  %v14517_v12 = vcombine.high %v19274_v34, %v19276_v10  ;;  %v19332_v8 = vld [vmem:[#allocation3 + $0x15a0] sm:$0xff] }
 0x359   :  { %1211 = vadd.xlane.f32.xlu1 %v1210_v38  ;;  %v19306_v38 = vld [vmem:[#allocation3 + $0x1560] sm:$0xff]  ;;  %v14519_v61 = vcombine.high %v19288_v14, %v19290_v23  ;;  %v6878_v48 = vrot.slane %v4630_v47, %v21175_v6  ;;  %v6882_v2 = vrot.slane %v4631_v32, %v21176_v57  ;;  %v14532_v58 = vcombine.low %v19325_v30, %v19332_v8 }
 0x35a   :  { %v1878_v49 = vpop.xlane.xlu1 %1877  ;;  %v5623_v22 = vrot.slane %v4376_v35, %v21177_v25  ;;  %v5628_v20 = vrot.slane %v4377_v59, %v21178_v39  ;;  %v19294_v53 = vpack.c.bf16 %v2525_v13, %v2524_v51  ;;  %12649 = vmatpush1.bf16.msra.mxu0 %v14500_v44  ;;  %v14525_v15 = vcombine.high %v19304_v19, %v19306_v38  ;;  %v19336_v35 = vld [vmem:[#allocation3 + $0x15a8] sm:$0xff]  ;;  %v19354_v23 = vld [vmem:[#allocation3 + $0x15c0] sm:$0xff] }
 0x35b   :  { %1208 = vadd.xlane.f32.xlu0 %v1207_v5  ;;  %v2543_v46 = vmul.f32 0.0625, %v1878_v49  ;;  %v1875_v41 = vpop.xlane.xlu0 %1874  ;;  %12977 = vmatpush1.bf16.msra.mxu1 %v14502_v45  ;;  %v19316_v5 = vld [vmem:[#allocation3 + $0x1568] sm:$0xff]  ;;  %v4358_v59 = vunpack.c.l.b16 %v19210_v4  ;;  %v4359_v51 = vunpack.c.h.b16 %v19210_v4  ;;  %v6883_v4 = vsel %vm4721_vm1, %v6882_v2, %v6878_v48  ;;  %v272_v48 = vld [vmem:[%s20918_s0 + $0x6b0] sm:$0xff] }
 0x35c   :  { %12650 = vmatprep.subr.bf16.mxu0 %v14509_v36  ;;  %v5624_v62 = vsel %vm4728_vm2, %v5623_v22, %v5619_v37  ;;  %v2542_v29 = vmul.f32 0.0625, %v1875_v41  ;;  %12978 = vmatprep.subr.bf16.mxu1 %v14511_v3  ;;  %v19334_v36 = vld [vmem:[#allocation3 + $0x1588] sm:$0xff]  ;;  %v14526_v3 = vcombine.low %v19314_v40, %v19316_v5  ;;  %v14527_v32 = vcombine.high %v19314_v40, %v19316_v5  ;;  %v19359_v37 = vld [vmem:[#allocation3 + $0x15e0] sm:$0xff] }
 0x35d   :  { %1979 = vadd.xlane.f32.xlu1 %v1978_v28  ;;  %v19321_v9 = vsel %vm21179_vm3, %v5628_v20, %v5624_v62  ;;  %v14516_v28 = vcombine.low %v19274_v34, %v19276_v10  ;;  %v14535_v14 = vcombine.high %v19334_v36, %v19336_v35  ;;  %v19361_v41 = vld [vmem:[#allocation3 + $0x15c8] sm:$0xff]  ;;  %v4615_v62 = vunpack.c.h.b16 %v19294_v53 }
 0x35e   :  { %v1062_v13 = vpop.xlane.xlu1 %1061  ;;  %v2837_v44 = vpack.c.bf16 %v2543_v46, %v2542_v29  ;;  %12651 = vmatpush1.bf16.msra.mxu0 %v14508_v16  ;;  %v14533_v16 = vcombine.high %v19325_v30, %v19332_v8  ;;  %vm21185_vm3 = vcmask 326912  }
 0x35f   :  { %1976 = vadd.xlane.f32.xlu0 %v19246_v27  ;;  %v2271_v45 = vmul.f32 0.0625, %v1062_v13  ;;  %12979 = vmatpush1.bf16.msra.mxu1 %v14510_v26  ;;  %v14524_v27 = vcombine.low %v19304_v19, %v19306_v38  ;;  %v19363_v26 = vld [vmem:[#allocation3 + $0x15e8] sm:$0xff]  ;;  %v5539_v19 = vrot.slane %v4359_v51, %v21176_v57  ;;  %v4614_v38 = vunpack.c.l.b16 %v19294_v53 }
 0x360   :  { %v1059_v7 = vpop.xlane.xlu0 %1058  ;;  %12652 = vmatprep.subr.bf16.mxu0 %v14517_v12  ;;  %v4632_v34 = vunpack.c.l.b16 %v2837_v44  ;;  %v4633_v10 = vunpack.c.h.b16 %v2837_v44  ;;  %12980 = vmatprep.subr.bf16.mxu1 %v14519_v61  ;;  %v5535_v12 = vrot.slane %v4358_v59, %v21175_v6  ;;  %v14534_v53 = vcombine.low %v19334_v36, %v19336_v35  ;;  %v529_v59 = vld [vmem:[%s20918_s0 + $0xeb8] sm:$0xff] }
 0x361   :  { %v2270_v47 = vmul.f32 0.0625, %v1059_v7  ;;  %1163 = vadd.xlane.f32.xlu1 %v19249_v0  ;;  %v14543_v44 = vcombine.high %v19361_v41, %v19363_v26  ;;  %v6799_v35 = vrot.slane %v4614_v38, %v21175_v6  ;;  %v6803_v51 = vrot.slane %v4615_v62, %v21176_v57  ;;  %v257_v62 = vld [vmem:[%s20918_s0 + $0x638] sm:$0xff] }
 0x362   :  { %v1830_v49 = vpop.xlane.xlu1 %1829  ;;  %v6887_v0 = vrot.slane %v4632_v34, %v21177_v25  ;;  %v6892_v22 = vrot.slane %v4633_v10, %v21178_v39  ;;  %12653 = vmatpush1.bf16.msra.mxu0 %v14516_v28  ;;  %v14541_v28 = vcombine.high %v19354_v23, %v19359_v37  ;;  %v5540_v36 = vsel %vm4721_vm1, %v5539_v19, %v5535_v12  ;;  %v528_v10 = vld [vmem:[%s20918_s0 + $0xeb0] sm:$0xff] }
 0x363   :  { %v2701_v20 = vpack.c.bf16 %v2271_v45, %v2270_v47  ;;  %1160 = vadd.xlane.f32.xlu0 %v19265_v50  ;;  %v2527_v46 = vmul.f32 0.0625, %v1830_v49  ;;  %12981 = vmatpush1.bf16.msra.mxu1 %v14518_v60  ;;  %v1213_v34 = vsel %vm570_vm0, %v272_v48, 0.0  ;;  %v19400_v49 = vld [vmem:[#allocation3 + $0x1620] sm:$0xff]  ;;  %v14542_v12 = vcombine.low %v19361_v41, %v19363_v26  ;;  %v256_v26 = vld [vmem:[%s20918_s0 + $0x630] sm:$0xff]  ;;  %v19436_v48 = vld [vmem:[#allocation3 + $0x1648] sm:$0xff] }
 0x364   :  { %v1827_v29 = vpop.xlane.xlu0 %1826  ;;  %12654 = vmatprep.subr.bf16.mxu0 %v14525_v15  ;;  %v6888_v50 = vsel %vm4728_vm2, %v6887_v0, %v6883_v4  ;;  %12982 = vmatprep.subr.bf16.mxu1 %v14527_v32  ;;  %v19402_v0 = vld [vmem:[#allocation3 + $0x1608] sm:$0xff]  ;;  %v1981_v41 = vsel %vm570_vm0, %v528_v10, 0.0  ;;  %v512_v10 = vld [vmem:[%s20918_s0 + $0xe30] sm:$0xff] }
 0x365   :  { %v4360_v61 = vunpack.c.l.b16 %v2701_v20  ;;  %v4361_v40 = vunpack.c.h.b16 %v2701_v20  ;;  %v2526_v5 = vmul.f32 0.0625, %v1827_v29  ;;  %1931 = vadd.xlane.f32.xlu1 %v19281_v33  ;;  %v19375_v2 = vsel %vm21180_vm4, %v6892_v22, %v6888_v50  ;;  %v19404_v22 = vld [vmem:[#allocation3 + $0x1628] sm:$0xff] }
 0x366   :  { %v1116_v13 = vpop.xlane.xlu1 %1115  ;;  %12655 = vmatpush1.bf16.msra.mxu0 %v14524_v27  ;;  %v14551_v50 = vcombine.high %v19402_v0, %v19404_v22  ;;  %vm21186_vm4 = vcmask 392512  }
 0x367   :  { %v5544_v33 = vrot.slane %v4360_v61, %v21177_v25  ;;  %v5549_v45 = vrot.slane %v4361_v40, %v21178_v39  ;;  %v2829_v60 = vpack.c.bf16 %v2527_v46, %v2526_v5  ;;  %1928 = vadd.xlane.f32.xlu0 %v19298_v17  ;;  %v2289_v15 = vmul.f32 0.0625, %v1116_v13  ;;  %12983 = vmatpush1.bf16.msra.mxu1 %v14526_v3  ;;  %v19396_v17 = vld [vmem:[#allocation3 + $0x1600] sm:$0xff]  ;;  %v19438_v13 = vld [vmem:[#allocation3 + $0x1668] sm:$0xff] }
 0x368   :  { %v1113_v7 = vpop.xlane.xlu0 %1112  ;;  %12656 = vmatprep.subr.bf16.mxu0 %v14533_v16  ;;  %12984 = vmatprep.subr.bf16.mxu1 %v14535_v14  ;;  %v1984_v16 = vsel %vm570_vm0, %v529_v59, 0.0  ;;  %v14540_v46 = vcombine.low %v19354_v23, %v19359_v37  ;;  %v6804_v23 = vsel %vm4721_vm1, %v6803_v51, %v6799_v35  ;;  %v14549_v29 = vcombine.high %v19396_v17, %v19400_v49  ;;  %v19431_v61 = vld [vmem:[#allocation3 + $0x1640] sm:$0xff]  ;;  %v513_v51 = vld [vmem:[%s20918_s0 + $0xe38] sm:$0xff] }
 0x369   :  { %v5545_v47 = vsel %vm4728_vm2, %v5544_v33, %v5540_v36  ;;  %v4616_v27 = vunpack.c.l.b16 %v2829_v60  ;;  %v4617_v32 = vunpack.c.h.b16 %v2829_v60  ;;  %v2288_v4 = vmul.f32 0.0625, %v1113_v7  ;;  %1217 = vadd.xlane.f32.xlu1 %v19310_v43  ;;  %v19434_v5 = vld [vmem:[#allocation3 + $0x1660] sm:$0xff]  ;;  %v21183_v60 = vld [vmem:[#allocation15_spill] sm:$0xff] }
 0x36a   :  { %v19407_v20 = vsel %vm21181_vm7, %v5549_v45, %v5545_v47  ;;  %v1884_v3 = vpop.xlane.xlu1 %1883  ;;  %12657 = vmatpush1.bf16.msra.mxu0 %v14532_v58  ;;  %v1168_v33 = vsel %vm570_vm0, %v257_v62, 0.0  ;;  %v14548_v45 = vcombine.low %v19396_v17, %v19400_v49  ;;  %v21184_v59 = vld [vmem:[#allocation16_spill] sm:$0xff]  ;;  %v14550_v17 = vcombine.low %v19402_v0, %v19404_v22  ;;  %v19469_v0 = vld [vmem:[#allocation3 + $0x16a8] sm:$0xff]  ;;  %vm21187_vm7 = vmmov %vm21185_vm3 }
 0x36b   :  { %v6808_v43 = vrot.slane %v4616_v27, %v21177_v25  ;;  %v6813_v14 = vrot.slane %v4617_v32, %v21178_v39  ;;  %v2710_v19 = vpack.c.bf16 %v2289_v15, %v2288_v4  ;;  %1214 = vadd.xlane.f32.xlu0 %v1213_v34  ;;  %v2545_v38 = vmul.f32 0.0625, %v1884_v3  ;;  %12985 = vmatpush1.bf16.msra.mxu1 %v14534_v53  ;;  %v19461_v32 = vld [vmem:[#allocation3 + $0x1680] sm:$0xff] }
 0x36c   :  { %v1881_v37 = vpop.xlane.xlu0 %1880  ;;  %12658 = vmatprep.subr.bf16.mxu0 %v14541_v28  ;;  %12986 = vmatprep.subr.bf16.mxu1 %v14543_v44  ;;  %v1165_v34 = vsel %vm570_vm0, %v256_v26, 0.0  ;;  %v14557_v47 = vcombine.high %v19431_v61, %v19434_v5  ;;  %v14559_v27 = vcombine.high %v19436_v48, %v19438_v13  ;;  %v1933_v26 = vsel %vm570_vm0, %v512_v10, 0.0 }
 0x36d   :  { %v6809_v30 = vsel %vm4728_vm2, %v6808_v43, %v6804_v23  ;;  %v4378_v8 = vunpack.c.l.b16 %v2710_v19  ;;  %v4379_v58 = vunpack.c.h.b16 %v2710_v19  ;;  %v2544_v40 = vmul.f32 0.0625, %v1881_v37  ;;  %1985 = vadd.xlane.f32.xlu1 %v1984_v16  ;;  %v275_v37 = vld [vmem:[%s20918_s0 + $0x6c8] sm:$0xff] }
 0x36e   :  { %v19441_v53 = vsel %vm21182_vm5, %v6813_v14, %v6809_v30  ;;  %v1068_v28 = vpop.xlane.xlu1 %1067  ;;  %12659 = vmatpush1.bf16.msra.mxu0 %v14540_v46  ;;  %v19465_v46 = vld [vmem:[#allocation3 + $0x16a0] sm:$0xff]  ;;  %v1936_v14 = vsel %vm570_vm0, %v513_v51, 0.0  ;;  %vm21188_vm5 = vmmov %vm21186_vm4 }
 0x36f   :  { %v5633_v15 = vrot.slane %v4378_v8, %v21183_v60  ;;  %v5638_v36 = vrot.slane %v4379_v58, %v21184_v59  ;;  %v2838_v44 = vpack.c.bf16 %v2545_v38, %v2544_v40  ;;  %1982 = vadd.xlane.f32.xlu0 %v1981_v41  ;;  %v2273_v35 = vmul.f32 0.0625, %v1068_v28  ;;  %12987 = vmatpush1.bf16.msra.mxu1 %v14542_v12  ;;  %v19467_v12 = vld [vmem:[#allocation3 + $0x1688] sm:$0xff]  ;;  %v3604_v28 = vld [vmem:[#allocation3 + $0x16c0] sm:$0xff] }
 0x370   :  { %v1065_v7 = vpop.xlane.xlu0 %1064  ;;  %12660 = vmatprep.subr.bf16.mxu0 %v14549_v29  ;;  %12988 = vmatprep.subr.bf16.mxu1 %v14551_v50  ;;  %v14558_v29 = vcombine.low %v19436_v48, %v19438_v13  ;;  %v14565_v50 = vcombine.high %v19461_v32, %v19465_v46  ;;  %v3608_v48 = vld [vmem:[#allocation3 + $0x16e0] sm:$0xff] }
 0x371   :  { %v5634_v4 = vsel %vm21185_vm3, %v5633_v15, %v19321_v9  ;;  %v4634_v49 = vunpack.c.l.b16 %v2838_v44  ;;  %v4635_v3 = vunpack.c.h.b16 %v2838_v44  ;;  %v2272_v16 = vmul.f32 0.0625, %v1065_v7  ;;  %1169 = vadd.xlane.f32.xlu1 %v1168_v33  ;;  %v3605_v15 = vld [vmem:[#allocation3 + $0x16c8] sm:$0xff] }
 0x372   :  { %v19472_v22 = vsel %vm21186_vm4, %v5638_v36, %v5634_v4  ;;  %v1836_v43 = vpop.xlane.xlu1 %1835  ;;  %v14556_v9 = vcombine.low %v19431_v61, %v19434_v5  ;;  %12661 = vmatpush1.bf16.msra.mxu0 %v14548_v45  ;;  %v14567_v61 = vcombine.high %v19467_v12, %v19469_v0  ;;  %v274_v5 = vld [vmem:[%s20918_s0 + $0x6c0] sm:$0xff]  ;;  %v1222_v45 = vsel %vm570_vm0, %v275_v37, 0.0  ;;  %v3609_v36 = vld [vmem:[#allocation3 + $0x16e8] sm:$0xff] }
 0x373   :  { %v6897_v19 = vrot.slane %v4634_v49, %v21183_v60  ;;  %v6902_v38 = vrot.slane %v4635_v3, %v21184_v59  ;;  %v2702_v62 = vpack.c.bf16 %v2273_v35, %v2272_v16  ;;  %1166 = vadd.xlane.f32.xlu0 %v1165_v34  ;;  %v2529_v23 = vmul.f32 0.0625, %v1836_v43  ;;  %12989 = vmatpush1.bf16.msra.mxu1 %v14550_v17  ;;  %v531_v7 = vld [vmem:[%s20918_s0 + $0xec8] sm:$0xff]  ;;  %v530_v49 = vld [vmem:[%s20918_s0 + $0xec0] sm:$0xff] }
 0x374   :  { %v1833_v41 = vpop.xlane.xlu0 %1832  ;;  %12662 = vmatprep.subr.bf16.mxu0 %v14557_v47  ;;  %12990 = vmatprep.subr.bf16.mxu1 %v14559_v27  ;;  %v1219_v10 = vsel %vm570_vm0, %v274_v5, 0.0  ;;  %v14566_v17 = vcombine.low %v19467_v12, %v19469_v0  ;;  %v14573_v47 = vcombine.high %v3604_v28, %v3608_v48  ;;  %v14575_v3 = vcombine.high %v3605_v15, %v3609_v36  ;;  %v3612_v16 = vld [vmem:[#allocation3 + $0x1700] sm:$0xff]  ;;  %v3613_v0 = vld [vmem:[#allocation3 + $0x1708] sm:$0xff] }
 0x375   :  { %v6898_v30 = vsel %vm21187_vm7, %v6897_v19, %v19375_v2  ;;  %v4362_v8 = vunpack.c.l.b16 %v2702_v62  ;;  %v4363_v58 = vunpack.c.h.b16 %v2702_v62  ;;  %v2528_v40 = vmul.f32 0.0625, %v1833_v41  ;;  %1937 = vadd.xlane.f32.xlu1 %v1936_v14  ;;  %vm21189_vm7 = vmmov %vm21185_vm3 }
 0x376   :  { %v19495_v13 = vsel %vm21188_vm5, %v6902_v38, %v6898_v30  ;;  %v19497_v33 = vpop.xlane.xlu1 %1121  ;;  %v14564_v2 = vcombine.low %v19461_v32, %v19465_v46  ;;  %12663 = vmatpush1.bf16.msra.mxu0 %v14556_v9  ;;  %v3616_v46 = vld [vmem:[#allocation3 + $0x1720] sm:$0xff]  ;;  %v1990_v12 = vsel %vm570_vm0, %v531_v7, 0.0  ;;  %v259_v38 = vld [vmem:[%s20918_s0 + $0x648] sm:$0xff]  ;;  %v14572_v62 = vcombine.low %v3604_v28, %v3608_v48  ;;  %vm21190_vm5 = vmmov %vm21186_vm4 }
 0x377   :  { %v5554_v44 = vrot.slane %v4362_v8, %v21183_v60  ;;  %v5559_v35 = vrot.slane %v4363_v58, %v21184_v59  ;;  %v2830_v51 = vpack.c.bf16 %v2529_v23, %v2528_v40  ;;  %1934 = vadd.xlane.f32.xlu0 %v1933_v26  ;;  %12991 = vmatpush1.bf16.msra.mxu1 %v14558_v29  ;;  %v1987_v37 = vsel %vm570_vm0, %v530_v49, 0.0  ;;  %v3620_v30 = vld [vmem:[#allocation3 + $0x1740] sm:$0xff]  ;;  %v3621_v28 = vld [vmem:[#allocation3 + $0x1748] sm:$0xff] }
 0x378   :  { %v19507_v34 = vpop.xlane.xlu0 %1118  ;;  %12664 = vmatprep.subr.bf16.mxu0 %v14565_v50  ;;  %12992 = vmatprep.subr.bf16.mxu1 %v14567_v61  ;;  %v14574_v41 = vcombine.low %v3605_v15, %v3609_v36  ;;  %v14581_v26 = vcombine.high %v3612_v16, %v3616_v46  ;;  %v258_v50 = vld [vmem:[%s20918_s0 + $0x640] sm:$0xff]  ;;  %v1174_v5 = vsel %vm570_vm0, %v259_v38, 0.0  ;;  %v3625_v48 = vld [vmem:[#allocation3 + $0x1768] sm:$0xff] }
 0x379   :  { %v5555_v27 = vsel %vm21185_vm3, %v5554_v44, %v19407_v20  ;;  %v4618_v32 = vunpack.c.l.b16 %v2830_v51  ;;  %v4619_v4 = vunpack.c.h.b16 %v2830_v51  ;;  %1223 = vadd.xlane.f32.xlu1 %v1222_v45  ;;  %v3617_v20 = vld [vmem:[#allocation3 + $0x1728] sm:$0xff]  ;;  %v3624_v8 = vld [vmem:[#allocation3 + $0x1760] sm:$0xff]  ;;  %v14580_v45 = vcombine.low %v3612_v16, %v3616_v46 }
 0x37a   :  { %v19518_v43 = vsel %vm21186_vm4, %v5559_v35, %v5555_v27  ;;  %v19520_v14 = vpop.xlane.xlu1 %1889  ;;  %12665 = vmatpush1.bf16.msra.mxu0 %v14564_v2  ;;  %v14583_v61 = vcombine.high %v3613_v0, %v3617_v20  ;;  %v1171_v15 = vsel %vm570_vm0, %v258_v50, 0.0  ;;  %v14582_v36 = vcombine.low %v3613_v0, %v3617_v20  ;;  %v514_v35 = vld [vmem:[%s20918_s0 + $0xe40] sm:$0xff]  ;;  %v3629_v27 = vld [vmem:[#allocation3 + $0x1788] sm:$0xff]  ;;  %v276_v0 = vld [vmem:[%s20918_s0 + $0x6d0] sm:$0xff] }
 0x37b   :  { %v6818_v9 = vrot.slane %v4618_v32, %v21183_v60  ;;  %v6823_v19 = vrot.slane %v4619_v4, %v21184_v59  ;;  %1220 = vadd.xlane.f32.xlu0 %v1219_v10  ;;  %12993 = vmatpush1.bf16.msra.mxu1 %v14566_v17  ;;  %v14589_v44 = vcombine.high %v3620_v30, %v3624_v8  ;;  %v3628_v7 = vld [vmem:[#allocation3 + $0x1780] sm:$0xff]  ;;  %v3633_v32 = vld [vmem:[#allocation3 + $0x17a8] sm:$0xff]  ;;  %v277_v4 = vld [vmem:[%s20918_s0 + $0x6d8] sm:$0xff]  ;;  %v1939_v16 = vsel %vm570_vm0, %v514_v35, 0.0 }
 0x37c   :  { %v19528_v23 = vpop.xlane.xlu0 %1886  ;;  %12666 = vmatprep.subr.bf16.mxu0 %v14573_v47  ;;  %12994 = vmatprep.subr.bf16.mxu1 %v14575_v3  ;;  %v14591_v51 = vcombine.high %v3621_v28, %v3625_v48  ;;  %v3632_v10 = vld [vmem:[#allocation3 + $0x17a0] sm:$0xff]  ;;  %v14588_v49 = vcombine.low %v3620_v30, %v3624_v8  ;;  %v14590_v46 = vcombine.low %v3621_v28, %v3625_v48  ;;  %vm21196_vm3 = vcmask 523712  }
 0x37d   :  { %v6819_v29 = vsel %vm21189_vm7, %v6818_v9, %v19441_v53  ;;  %1991 = vadd.xlane.f32.xlu1 %v1990_v12  ;;  %v515_v53 = vld [vmem:[%s20918_s0 + $0xe48] sm:$0xff]  ;;  %v14597_v12 = vcombine.high %v3628_v7, %v3632_v10  ;;  %v14599_v20 = vcombine.high %v3629_v27, %v3633_v32  ;;  %v3636_v9 = vld [vmem:[#allocation3 + $0x17c0] sm:$0xff]  ;;  %v14598_v30 = vcombine.low %v3629_v27, %v3633_v32  ;;  %vm21197_vm4 = vmmov %vm21196_vm3 }
 0x37e   :  { %v19537_v58 = vsel %vm21190_vm5, %v6823_v19, %v6819_v29  ;;  %v19539_v40 = vpop.xlane.xlu1 %1073  ;;  %12667 = vmatpush1.bf16.msra.mxu0 %v14572_v62  ;;  %v1942_v47 = vsel %vm570_vm0, %v515_v53, 0.0  ;;  %v3640_v19 = vld [vmem:[#allocation3 + $0x17e0] sm:$0xff]  ;;  %v1228_v62 = vsel %vm570_vm0, %v277_v4, 0.0  ;;  %v14596_v29 = vcombine.low %v3628_v7, %v3632_v10  ;;  %v516_v4 = vld [vmem:[%s20918_s0 + $0xe50] sm:$0xff]  ;;  %vm21198_vm7 = vmmov %vm21196_vm3 }
 0x37f   :  { %1988 = vadd.xlane.f32.xlu0 %v1987_v37  ;;  %12995 = vmatpush1.bf16.msra.mxu1 %v14574_v41  ;;  %v3637_v37 = vld [vmem:[#allocation3 + $0x17c8] sm:$0xff]  ;;  %v14605_v8 = vcombine.high %v3636_v9, %v3640_v19  ;;  %vm21199_vm5 = vcmask 589312  }
 0x380   :  { %v19545_v2 = vpop.xlane.xlu0 %1070  ;;  %12668 = vmatprep.subr.bf16.mxu0 %v14581_v26  ;;  %12996 = vmatprep.subr.bf16.mxu1 %v14583_v61  ;;  %v3641_v41 = vld [vmem:[#allocation3 + $0x17e8] sm:$0xff]  ;;  %v533_v26 = vld [vmem:[%s20918_s0 + $0xed8] sm:$0xff]  ;;  %v1225_v61 = vsel %vm570_vm0, %v276_v0, 0.0 }
 0x381   :  { %1175 = vadd.xlane.f32.xlu1 %v1174_v5  ;;  %v532_v5 = vld [vmem:[%s20918_s0 + $0xed0] sm:$0xff]  ;;  %v14607_v28 = vcombine.high %v3637_v37, %v3641_v41  ;;  %v1996_v53 = vsel %vm570_vm0, %v533_v26, 0.0  ;;  %v14606_v35 = vcombine.low %v3637_v37, %v3641_v41  ;;  %v1945_v37 = vsel %vm570_vm0, %v516_v4, 0.0  ;;  %v299_v26 = vld [vmem:[%s20918_s0 + $0x788] sm:$0xff] }
 0x382   :  { %v19551_v17 = vpop.xlane.xlu1 %1841  ;;  %12669 = vmatpush1.bf16.msra.mxu0 %v14580_v45  ;;  %v261_v45 = vld [vmem:[%s20918_s0 + $0x658] sm:$0xff]  ;;  %v555_v41 = vld [vmem:[%s20918_s0 + $0xf88] sm:$0xff]  ;;  %v19744_v39 = vsel %vm570_vm0, %v299_v26, 0.0 }
 0x383   :  { %1172 = vadd.xlane.f32.xlu0 %v1171_v15  ;;  %12997 = vmatpush1.bf16.msra.mxu1 %v14582_v36  ;;  %v14604_v15 = vcombine.low %v3636_v9, %v3640_v19  ;;  %v1180_v10 = vsel %vm570_vm0, %v261_v45, 0.0  ;;  %v19610_v9 = vld [vmem:[#allocation3 + $0x1828] sm:$0xff]  ;;  %v2547_v45 = vmul.f32 0.0625, %v19520_v14 }
 0x384   :  { %v19557_v3 = vpop.xlane.xlu0 %1838  ;;  %12670 = vmatprep.subr.bf16.mxu0 %v14589_v44  ;;  %12998 = vmatprep.subr.bf16.mxu1 %v14591_v51  ;;  %v1993_v44 = vsel %vm570_vm0, %v532_v5, 0.0  ;;  %v260_v51 = vld [vmem:[%s20918_s0 + $0x650] sm:$0xff]  ;;  %21194 = vst [vmem:[#allocation26_spill] sm:$0xff] %v19610_v9  ;;  %v279_v19 = vld [vmem:[%s20918_s0 + $0x6e8] sm:$0xff] }
 0x385   :  { %1943 = vadd.xlane.f32.xlu1 %v1942_v47  ;;  %v517_v47 = vld [vmem:[%s20918_s0 + $0xe58] sm:$0xff]  ;;  %v1177_v32 = vsel %vm570_vm0, %v260_v51, 0.0  ;;  %v2274_v51 = vmul.f32 0.0625, %v19545_v2  ;;  %v283_v26 = vld [vmem:[%s20918_s0 + $0x708] sm:$0xff] }
 0x386   :  { %v19563_v38 = vpop.xlane.xlu1 %1127  ;;  %12671 = vmatpush1.bf16.msra.mxu0 %v14588_v49  ;;  %v19599_v49 = vld [vmem:[#allocation3 + $0x1800] sm:$0xff]  ;;  %v1948_v0 = vsel %vm570_vm0, %v517_v47, 0.0 }
 0x387   :  { %1940 = vadd.xlane.f32.xlu0 %v1939_v16  ;;  %12999 = vmatpush1.bf16.msra.mxu1 %v14590_v46  ;;  %21191 = vst [vmem:[#allocation17_spill] sm:$0xff] %v19599_v49  ;;  %v19601_v16 = vld [vmem:[#allocation3 + $0x1820] sm:$0xff]  ;;  %v19603_v46 = vld [vmem:[#allocation3 + $0x1808] sm:$0xff] }
 0x388   :  { %v19569_v50 = vpop.xlane.xlu0 %1124  ;;  %12672 = vmatprep.subr.bf16.mxu0 %v14597_v12  ;;  %13000 = vmatprep.subr.bf16.mxu1 %v14599_v20  ;;  %21192 = vst [vmem:[#allocation20_spill] sm:$0xff] %v19601_v16  ;;  %21193 = vst [vmem:[#allocation18_spill] sm:$0xff] %v19603_v46  ;;  %v14613_v20 = vcombine.high %v19599_v49, %v19601_v16  ;;  %v518_v47 = vld [vmem:[%s20918_s0 + $0xe60] sm:$0xff] }
 0x389   :  { %1229 = vadd.xlane.f32.xlu1 %v1228_v62 }
 0x38a   :  { %v19575_v48 = vpop.xlane.xlu1 %1895  ;;  %12673 = vmatpush1.bf16.msra.mxu0 %v14596_v29  ;;  %v14615_v29 = vcombine.high %v19603_v46, %v19610_v9 }
 0x38b   :  { %1226 = vadd.xlane.f32.xlu0 %v1225_v61  ;;  %13001 = vmatpush1.bf16.msra.mxu1 %v14598_v30  ;;  %v2291_v61 = vmul.f32 0.0625, %v19497_v33  ;;  %v2290_v30 = vmul.f32 0.0625, %v19507_v34  ;;  %v2546_v33 = vmul.f32 0.0625, %v19528_v23  ;;  %v534_v34 = vld [vmem:[%s20918_s0 + $0xee0] sm:$0xff] }
 0x38c   :  { %v19581_v36 = vpop.xlane.xlu0 %1892  ;;  %12674 = vmatprep.subr.bf16.mxu0 %v14605_v8  ;;  %13002 = vmatprep.subr.bf16.mxu1 %v14607_v28  ;;  %v278_v8 = vld [vmem:[%s20918_s0 + $0x6e0] sm:$0xff]  ;;  %v1234_v28 = vsel %vm570_vm0, %v279_v19, 0.0 }
 0x38d   :  { %1997 = vadd.xlane.f32.xlu1 %v1996_v53  ;;  %v535_v53 = vld [vmem:[%s20918_s0 + $0xee8] sm:$0xff]  ;;  %v1231_v23 = vsel %vm570_vm0, %v278_v8, 0.0  ;;  %v19660_v4 = vpack.c.bf16 %v2291_v61, %v2290_v30  ;;  %v536_v61 = vld [vmem:[%s20918_s0 + $0xef0] sm:$0xff]  ;;  %v19677_v30 = vpack.c.bf16 %v2547_v45, %v2546_v33  ;;  %v521_v45 = vld [vmem:[%s20918_s0 + $0xe78] sm:$0xff] }
 0x38e   :  { %v19587_v7 = vpop.xlane.xlu1 %1079  ;;  %12675 = vmatpush1.bf16.msra.mxu0 %v14604_v15  ;;  %v263_v15 = vld [vmem:[%s20918_s0 + $0x668] sm:$0xff]  ;;  %v19728_v59 = vsel %vm570_vm0, %v536_v61, 0.0 }
 0x38f   :  { %1994 = vadd.xlane.f32.xlu0 %v1993_v44  ;;  %13003 = vmatpush1.bf16.msra.mxu1 %v14606_v35  ;;  %v262_v44 = vld [vmem:[%s20918_s0 + $0x660] sm:$0xff]  ;;  %v2275_v35 = vmul.f32 0.0625, %v19539_v40  ;;  %v280_v40 = vld [vmem:[%s20918_s0 + $0x6f0] sm:$0xff]  ;;  %v1186_v19 = vsel %vm570_vm0, %v263_v15, 0.0  ;;  %v2277_v6 = vmul.f32 0.0625, %v19587_v7 }
 0x390   :  { %v19593_v27 = vpop.xlane.xlu0 %1076  ;;  %12685 = vmatprep.subr.bf16.mxu0 %v14613_v20  ;;  %13013 = vmatprep.subr.bf16.mxu1 %v14615_v29  ;;  %v1999_v20 = vsel %vm570_vm0, %v534_v34, 0.0  ;;  %v537_v29 = vld [vmem:[%s20918_s0 + $0xef8] sm:$0xff]  ;;  %v264_v15 = vld [vmem:[%s20918_s0 + $0x670] sm:$0xff] }
 0x391   :  { %1181 = vadd.xlane.f32.xlu1 %v1180_v10  ;;  %v519_v10 = vld [vmem:[%s20918_s0 + $0xe68] sm:$0xff]  ;;  %v265_v34 = vld [vmem:[%s20918_s0 + $0x678] sm:$0xff]  ;;  %v19695_v33 = vpack.c.bf16 %v2275_v35, %v2274_v51  ;;  %v298_v35 = vld [vmem:[%s20918_s0 + $0x780] sm:$0xff]  ;;  %v2292_v51 = vmul.f32 0.0625, %v19569_v50  ;;  %v19734_v50 = vsel %vm570_vm0, %v264_v15, 0.0  ;;  %v2276_v9 = vmul.f32 0.0625, %v19593_v27 }
 0x392   :  { %v19605_v12 = vpop.xlane.xlu1 %1847  ;;  %v1954_v8 = vsel %vm570_vm0, %v519_v10, 0.0  ;;  %v19747_v61 = vsel %vm570_vm0, %v298_v35, 0.0  ;;  %v4381_v35 = vunpack.c.h.b16 %v19660_v4 }
 0x393   :  { %1178 = vadd.xlane.f32.xlu0 %v1177_v32  ;;  %v281_v32 = vld [vmem:[%s20918_s0 + $0x6f8] sm:$0xff]  ;;  %v2704_v49 = vpack.c.bf16 %v2277_v6, %v2276_v9  ;;  %v538_v6 = vld [vmem:[%s20918_s0 + $0xf00] sm:$0xff] }
 0x394   :  { %v19615_v62 = vpop.xlane.xlu0 %1844 }
 0x395   :  { %1949 = vadd.xlane.f32.xlu1 %v1948_v0  ;;  %v2002_v0 = vsel %vm570_vm0, %v535_v53, 0.0  ;;  %v19684_v53 = vsel %vm570_vm0, %v281_v32, 0.0  ;;  %v520_v32 = vld [vmem:[%s20918_s0 + $0xe70] sm:$0xff] }
 0x396   :  { %v19629_v5 = vpop.xlane.xlu1 %1133  ;;  %v19741_v60 = vsel %vm570_vm0, %v520_v32, 0.0  ;;  %v282_v32 = vld [vmem:[%s20918_s0 + $0x700] sm:$0xff] }
 0x397   :  { %1946 = vadd.xlane.f32.xlu0 %v1945_v37  ;;  %v1183_v37 = vsel %vm570_vm0, %v262_v44, 0.0  ;;  %v2531_v44 = vmul.f32 0.0625, %v19551_v17  ;;  %v4380_v17 = vunpack.c.l.b16 %v19660_v4  ;;  %v301_v4 = vld [vmem:[%s20918_s0 + $0x798] sm:$0xff]  ;;  %v19789_v7 = vsel %vm570_vm0, %v282_v32, 0.0 }
 0x398   :  { %v19648_v14 = vpop.xlane.xlu0 %1130  ;;  %21195 = vst [vmem:[#allocation31_spill] sm:$0xff] %v19789_v7 }
 0x399   :  { %1235 = vadd.xlane.f32.xlu1 %v1234_v28  ;;  %v19681_v28 = vsel %vm570_vm0, %v518_v47, 0.0  ;;  %v19702_v47 = vsel %vm570_vm0, %v280_v40, 0.0  ;;  %v19717_v40 = vsel %vm570_vm0, %v537_v29, 0.0  ;;  %v4636_v29 = vunpack.c.l.b16 %v19677_v30 }
 0x39a   :  { %v19665_v2 = vpop.xlane.xlu1 %1901 }
 0x39b   :  { %1232 = vadd.xlane.f32.xlu0 %v1231_v23  ;;  %v2530_v23 = vmul.f32 0.0625, %v19557_v3  ;;  %v2293_v3 = vmul.f32 0.0625, %v19563_v38  ;;  %v19731_v38 = vsel %vm570_vm0, %v265_v34, 0.0  ;;  %v4364_v34 = vunpack.c.l.b16 %v19695_v33 }
 0x39c   :  { %v19699_v10 = vpop.xlane.xlu0 %1898 }
 0x39d   :  { %2003 = vadd.xlane.f32.xlu1 %v2002_v0  ;;  %v19737_v0 = vsel %vm570_vm0, %v521_v45, 0.0  ;;  %v19750_v25 = vpack.c.bf16 %v2531_v44, %v2530_v23  ;;  %v19755_v45 = vsel %vm570_vm0, %v555_v41, 0.0  ;;  %v5643_v44 = vrot.slane %v4380_v17, %v15755_v42 }
 0x39e   :  { %v19725_v24 = vpop.xlane.xlu1 %1085  ;;  %v4637_v23 = vunpack.c.h.b16 %v19677_v30  ;;  %v19769_v57 = vpack.c.bf16 %v2293_v3, %v2292_v51  ;;  %v2548_v41 = vmul.f32 0.0625, %v19581_v36  ;;  %v300_v30 = vld [vmem:[%s20918_s0 + $0x790] sm:$0xff]  ;;  %v19786_v36 = vsel %vm570_vm0, %v283_v26, 0.0 }
 0x39f   :  { %2000 = vadd.xlane.f32.xlu0 %v1999_v20  ;;  %v19758_v20 = vsel %vm570_vm0, %v554_v18, 0.0  ;;  %v2549_v18 = vmul.f32 0.0625, %v19575_v48  ;;  %v4365_v48 = vunpack.c.h.b16 %v19695_v33  ;;  %v5564_v27 = vrot.slane %v4364_v34, %v15755_v42 }
 0x3a0   :  { %v19752_v15 = vpop.xlane.xlu0 %1082  ;;  %v4620_v17 = vunpack.c.l.b16 %v19750_v25  ;;  %v2533_v3 = vmul.f32 0.0625, %v19605_v12  ;;  %v2532_v51 = vmul.f32 0.0625, %v19615_v62  ;;  %v4382_v33 = vunpack.c.l.b16 %v19769_v57 }
 0x3a1   :  { %1187 = vadd.xlane.f32.xlu1 %v1186_v19  ;;  %v6907_v19 = vrot.slane %v4636_v29, %v15755_v42  ;;  %v5648_v29 = vrot.slane %v4381_v35, %v15766_v52  ;;  %v19801_v26 = vsel %vm570_vm0, %v300_v30, 0.0  ;;  %v5644_v34 = vsel %vm21023_vm6, %v5643_v44, %v19472_v22  ;;  %v539_v22 = vld [vmem:[%s20918_s0 + $0xf08] sm:$0xff] }
 0x3a2   :  { %v19775_v46 = vpop.xlane.xlu1 %1853  ;;  %v6912_v32 = vrot.slane %v4637_v23, %v15766_v52  ;;  %v2840_v12 = vpack.c.bf16 %v2549_v18, %v2548_v41  ;;  %v5569_v7 = vrot.slane %v4365_v48, %v15766_v52  ;;  %v5565_v9 = vsel %vm21023_vm6, %v5564_v27, %v19518_v43 }
 0x3a3   :  { %1184 = vadd.xlane.f32.xlu0 %v1183_v37  ;;  %v19798_v37 = vsel %vm570_vm0, %v301_v4, 0.0  ;;  %v6908_v35 = vsel %vm21023_vm6, %v6907_v19, %v19495_v13  ;;  %v2294_v4 = vmul.f32 0.0625, %v19648_v14  ;;  %v4621_v13 = vunpack.c.h.b16 %v19750_v25 }
 0x3a4   :  { %v1851_v16 = vpop.xlane.xlu0 %1850  ;;  %v6828_v44 = vrot.slane %v4620_v17, %v15755_v42  ;;  %v4383_v14 = vunpack.c.h.b16 %v19769_v57  ;;  %v2551_v18 = vmul.f32 0.0625, %v19665_v2  ;;  %v2550_v41 = vmul.f32 0.0625, %v19699_v10 }
 0x3a5   :  { %1955 = vadd.xlane.f32.xlu1 %v1954_v8  ;;  %v2295_v8 = vmul.f32 0.0625, %v19629_v5  ;;  %v2832_v5 = vpack.c.bf16 %v2533_v3, %v2532_v51  ;;  %v4638_v30 = vunpack.c.l.b16 %v2840_v12  ;;  %v4366_v19 = vunpack.c.l.b16 %v2704_v49 }
 0x3a6   :  { %v1140_v62 = vpop.xlane.xlu1 %1139  ;;  %v19828_v43 = vsel %vm570_vm0, %v539_v22, 0.0  ;;  %v19831_v25 = vsel %vm570_vm0, %v538_v6, 0.0  ;;  %v5649_v27 = vsel %vm21196_vm3, %v5648_v29, %v5644_v34  ;;  %v6913_v57 = vsel %vm21197_vm4, %v6912_v32, %v6908_v35  ;;  %vm21200_vm3 = vmmov %vm21199_vm5 }
 0x3a7   :  { %1952 = vadd.xlane.f32.xlu0 %v19681_v28  ;;  %v5653_v28 = vrot.slane %v4382_v33, %v15769_v55  ;;  %v5570_v17 = vsel %vm21198_vm7, %v5569_v7, %v5565_v9  ;;  %v2713_v2 = vpack.c.bf16 %v2295_v8, %v2294_v4  ;;  %v6833_v10 = vrot.slane %v4621_v13, %v15766_v52  ;;  %vm21201_vm4 = vmmov %vm21200_vm3 }
 0x3a8   :  { %v1137_v23 = vpop.xlane.xlu0 %1136  ;;  %v4639_v3 = vunpack.c.h.b16 %v2840_v12  ;;  %v4622_v51 = vunpack.c.l.b16 %v2832_v5  ;;  %v5658_v6 = vrot.slane %v4383_v14, %v15772_v56  ;;  %v4367_v29 = vunpack.c.h.b16 %v2704_v49 }
 0x3a9   :  { %1241 = vadd.xlane.f32.xlu1 %v19684_v53  ;;  %v6829_v53 = vsel %vm21023_vm6, %v6828_v44, %v19537_v58  ;;  %v5654_v22 = vsel %vm21199_vm5, %v5653_v28, %v5649_v27  ;;  %v2841_v34 = vpack.c.bf16 %v2551_v18, %v2550_v41  ;;  %v6917_v7 = vrot.slane %v4638_v30, %v15769_v55  ;;  %vm21202_vm5 = vmmov %vm21200_vm3 }
 0x3aa   :  { %v1908_v48 = vpop.xlane.xlu1 %1907  ;;  %v2279_v32 = vmul.f32 0.0625, %v19725_v24  ;;  %v2278_v58 = vmul.f32 0.0625, %v19752_v15  ;;  %v4623_v12 = vunpack.c.h.b16 %v2832_v5  ;;  %v4384_v8 = vunpack.c.l.b16 %v2713_v2 }
 0x3ab   :  { %1238 = vadd.xlane.f32.xlu0 %v19702_v47  ;;  %v5574_v47 = vrot.slane %v4366_v19, %v15769_v55  ;;  %v2297_v4 = vmul.f32 0.0625, %v1140_v62  ;;  %v2296_v9 = vmul.f32 0.0625, %v1137_v23  ;;  %v6922_v49 = vrot.slane %v4639_v3, %v15772_v56 }
 0x3ac   :  { %v1905_v33 = vpop.xlane.xlu0 %1904  ;;  %v6838_v13 = vrot.slane %v4622_v51, %v15769_v55  ;;  %v2534_v44 = vmul.f32 0.0625, %v1851_v16  ;;  %v5579_v28 = vrot.slane %v4367_v29, %v15772_v56  ;;  %v4640_v24 = vunpack.c.l.b16 %v2841_v34 }
 0x3ad   :  { %2009 = vadd.xlane.f32.xlu1 %v19717_v40  ;;  %v2535_v40 = vmul.f32 0.0625, %v19775_v46  ;;  %v2553_v18 = vmul.f32 0.0625, %v1908_v48  ;;  %v2552_v15 = vmul.f32 0.0625, %v1905_v33  ;;  %v6918_v62 = vsel %vm21200_vm3, %v6917_v7, %v6913_v57 }
 0x3ae   :  { %v1092_v35 = vpop.xlane.xlu1 %1091  ;;  %v5575_v5 = vsel %vm21201_vm4, %v5574_v47, %v5570_v17  ;;  %v2705_v23 = vpack.c.bf16 %v2279_v32, %v2278_v58  ;;  %v6834_v30 = vsel %vm21198_vm7, %v6833_v10, %v6829_v53  ;;  %v6843_v46 = vrot.slane %v4623_v12, %v15772_v56 }
 0x3af   :  { %2006 = vadd.xlane.f32.xlu0 %v19728_v59  ;;  %v4385_v59 = vunpack.c.h.b16 %v2713_v2  ;;  %v5663_v16 = vrot.slane %v4384_v8, %v15795_v11  ;;  %v2714_v19 = vpack.c.bf16 %v2297_v4, %v2296_v9  ;;  %v5659_v48 = vsel %vm4777_vm9, %v5658_v6, %v5654_v22 }
 0x3b0   :  { %v1089_v14 = vpop.xlane.xlu0 %1088  ;;  %v4641_v27 = vunpack.c.h.b16 %v2841_v34  ;;  %v2833_v57 = vpack.c.bf16 %v2535_v40, %v2534_v44  ;;  %v6923_v17 = vsel %vm4777_vm9, %v6922_v49, %v6918_v62  ;;  %v5580_v2 = vsel %vm4777_vm9, %v5579_v28, %v5575_v5 }
 0x3b1   :  { %1193 = vadd.xlane.f32.xlu1 %v19731_v38  ;;  %v6839_v38 = vsel %vm21202_vm5, %v6838_v13, %v6834_v30  ;;  %v6927_v53 = vrot.slane %v4640_v24, %v15795_v11  ;;  %v2842_v10 = vpack.c.bf16 %v2553_v18, %v2552_v15  ;;  %v5668_v51 = vrot.slane %v4385_v59, %v15798_v21 }
 0x3b2   :  { %v1860_v41 = vpop.xlane.xlu1 %1859  ;;  %v4368_v33 = vunpack.c.l.b16 %v2705_v23  ;;  %v2280_v29 = vmul.f32 0.0625, %v1089_v14  ;;  %v6844_v6 = vsel %vm4777_vm9, %v6843_v46, %v6839_v38  ;;  %v5664_v34 = vsel %vm4784_vm10, %v5663_v16, %v5659_v48 }
 0x3b3   :  { %1190 = vadd.xlane.f32.xlu0 %v19734_v50  ;;  %v2281_v50 = vmul.f32 0.0625, %v1092_v35  ;;  %v4386_v7 = vunpack.c.l.b16 %v2714_v19  ;;  %v6932_v32 = vrot.slane %v4641_v27, %v15798_v21  ;;  %v4624_v58 = vunpack.c.l.b16 %v2833_v57 }
 0x3b4   :  { %v1857_v3 = vpop.xlane.xlu0 %1856  ;;  %v2537_v12 = vmul.f32 0.0625, %v1860_v41  ;;  %v6928_v4 = vsel %vm4784_vm10, %v6927_v53, %v6923_v17  ;;  %v4369_v9 = vunpack.c.h.b16 %v2705_v23  ;;  %v4642_v35 = vunpack.c.l.b16 %v2842_v10 }
 0x3b5   :  { %1961 = vadd.xlane.f32.xlu1 %v19737_v0  ;;  %v2536_v8 = vmul.f32 0.0625, %v1857_v3  ;;  %v5669_v13 = vsel %vm4791_vm11, %v5668_v51, %v5664_v34  ;;  %v5584_v40 = vrot.slane %v4368_v33, %v15795_v11  ;;  %v4387_v44 = vunpack.c.h.b16 %v2714_v19 }
 0x3b6   :  { %v1146_v22 = vpop.xlane.xlu1 %1145  ;;  %v4625_v28 = vunpack.c.h.b16 %v2833_v57  ;;  %v5673_v24 = vrot.slane %v4386_v7, %v15850_v1  ;;  %v6933_v62 = vsel %vm4791_vm11, %v6932_v32, %v6928_v4  ;;  %v6848_v5 = vrot.slane %v4624_v58, %v15795_v11 }
 0x3b7   :  { %1958 = vadd.xlane.f32.xlu0 %v19741_v60  ;;  %v2299_v47 = vmul.f32 0.0625, %v1146_v22  ;;  %v2706_v60 = vpack.c.bf16 %v2281_v50, %v2280_v29  ;;  %v4643_v59 = vunpack.c.h.b16 %v2842_v10  ;;  %v5589_v41 = vrot.slane %v4369_v9, %v15798_v21 }
 0x3b8   :  { %v1143_v0 = vpop.xlane.xlu0 %1142  ;;  %v6937_v30 = vrot.slane %v4642_v35, %v15850_v1  ;;  %v5585_v19 = vsel %vm4784_vm10, %v5584_v40, %v5580_v2  ;;  %v6853_v57 = vrot.slane %v4625_v28, %v15798_v21  ;;  %v5674_v3 = vsel %vm4798_vm12, %v5673_v24, %v5669_v13 }
 0x3b9   :  { %v2298_v49 = vmul.f32 0.0625, %v1143_v0  ;;  %1295 = vadd.xlane.f32.xlu1 %v19744_v39  ;;  %v2834_v39 = vpack.c.bf16 %v2537_v12, %v2536_v8  ;;  %v4370_v48 = vunpack.c.l.b16 %v2706_v60  ;;  %v6849_v10 = vsel %vm4784_vm10, %v6848_v5, %v6844_v6  ;;  %v21203_v0 = vld [vmem:[#allocation31_spill] sm:$0xff] }
 0x3ba   :  { %v1914_v14 = vpop.xlane.xlu1 %1913  ;;  %v6942_v51 = vrot.slane %v4643_v59, %v15866_v54  ;;  %v6938_v50 = vsel %vm4798_vm12, %v6937_v30, %v6933_v62  ;;  %v5590_v40 = vsel %vm4791_vm11, %v5589_v41, %v5585_v19  ;;  %v6854_v28 = vsel %vm4791_vm11, %v6853_v57, %v6849_v10 }
 0x3bb   :  { %v2715_v18 = vpack.c.bf16 %v2299_v47, %v2298_v49  ;;  %1292 = vadd.xlane.f32.xlu0 %v19747_v61  ;;  %v2555_v15 = vmul.f32 0.0625, %v1914_v14  ;;  %v5678_v61 = vrot.slane %v4387_v44, %v15866_v54  ;;  %v4371_v47 = vunpack.c.h.b16 %v2706_v60 }
 0x3bc   :  { %v1911_v23 = vpop.xlane.xlu0 %1910  ;;  %v6943_v9 = vsel %vm4805_vm13, %v6942_v51, %v6938_v50  ;;  %v4627_v35 = vunpack.c.h.b16 %v2834_v39  ;;  %vm21216_vm3 = vcmask 261312  }
 0x3bd   :  { %v4388_v46 = vunpack.c.l.b16 %v2715_v18  ;;  %v2554_v16 = vmul.f32 0.0625, %v1911_v23  ;;  %2063 = vadd.xlane.f32.xlu1 %v19755_v45  ;;  %v4389_v38 = vunpack.c.h.b16 %v2715_v18  ;;  %v4626_v45 = vunpack.c.l.b16 %v2834_v39  ;;  %vm21217_vm4 = vmmov %vm21216_vm3 }
 0x3be   :  { %v1098_v27 = vpop.xlane.xlu1 %1097  ;;  %v5679_v7 = vsel %vm4805_vm13, %v5678_v61, %v5674_v3  ;;  %v5599_v24 = vrot.slane %v4371_v47, %v15866_v54  ;;  %v6863_v30 = vrot.slane %v4627_v35, %v15866_v54  ;;  %v19953_v35 = vld [vmem:[#allocation3 + $0x1860] sm:$0xff]  ;;  %vm21218_vm7 = vmmov %vm21216_vm3 }
 0x3bf   :  { %v2843_v17 = vpack.c.bf16 %v2555_v15, %v2554_v16  ;;  %2060 = vadd.xlane.f32.xlu0 %v19758_v20  ;;  %v2283_v53 = vmul.f32 0.0625, %v1098_v27  ;;  %v5683_v2 = vrot.slane %v4388_v46, %v15911_v63  ;;  %v5594_v20 = vrot.slane %v4370_v48, %v15850_v1  ;;  %vm21219_vm5 = vmmov %vm21216_vm3 }
 0x3c0   :  { %v1095_v33 = vpop.xlane.xlu0 %1094  ;;  %v5688_v6 = vrot.slane %v4389_v38, %v21166_v31 }
 0x3c1   :  { %v4644_v29 = vunpack.c.l.b16 %v2843_v17  ;;  %v4645_v22 = vunpack.c.h.b16 %v2843_v17  ;;  %v2282_v34 = vmul.f32 0.0625, %v1095_v33  ;;  %1247 = vadd.xlane.f32.xlu1 %v19786_v36  ;;  %v6858_v36 = vrot.slane %v4626_v45, %v15850_v1 }
 0x3c2   :  { %v1866_v32 = vpop.xlane.xlu1 %1865  ;;  %v5684_v13 = vsel %vm4812_vm14, %v5683_v2, %v5679_v7  ;;  %v5595_v5 = vsel %vm4798_vm12, %v5594_v20, %v5590_v40  ;;  %v285_v2 = vld [vmem:[%s20918_s0 + $0x718] sm:$0xff]  ;;  %v540_v40 = vld [vmem:[%s20918_s0 + $0xf10] sm:$0xff] }
 0x3c3   :  { %v6947_v58 = vrot.slane %v4644_v29, %v15911_v63  ;;  %v6952_v12 = vrot.slane %v4645_v22, %v21166_v31  ;;  %v2707_v8 = vpack.c.bf16 %v2283_v53, %v2282_v34  ;;  %1244 = vadd.xlane.f32.xlu0 %v21203_v0  ;;  %v2539_v4 = vmul.f32 0.0625, %v1866_v32  ;;  %v556_v53 = vld [vmem:[%s20918_s0 + $0xf90] sm:$0xff]  ;;  %v19950_v0 = vld [vmem:[#allocation3 + $0x1840] sm:$0xff] }
 0x3c4   :  { %v1863_v49 = vpop.xlane.xlu0 %1862  ;;  %v5689_v23 = vsel %vm4819_vm15, %v5688_v6, %v5684_v13  ;;  %v6859_v41 = vsel %vm4798_vm12, %v6858_v36, %v6854_v28  ;;  %v5600_v27 = vsel %vm4805_vm13, %v5599_v24, %v5595_v5  ;;  %v2065_v34 = vsel %vm570_vm0, %v556_v53, 0.0  ;;  %v19955_v36 = vld [vmem:[#allocation3 + $0x1848] sm:$0xff]  ;;  %v286_v53 = vld [vmem:[%s20918_s0 + $0x720] sm:$0xff] }
 0x3c5   :  { %v4372_v44 = vunpack.c.l.b16 %v2707_v8  ;;  %v2538_v60 = vmul.f32 0.0625, %v1863_v49  ;;  %1301 = vadd.xlane.f32.xlu1 %v19798_v37  ;;  %v6948_v14 = vsel %vm4812_vm14, %v6947_v58, %v6943_v9  ;;  %v4373_v18 = vunpack.c.h.b16 %v2707_v8  ;;  %v557_v37 = vld [vmem:[%s20918_s0 + $0xf98] sm:$0xff]  ;;  %v19957_v49 = vld [vmem:[#allocation3 + $0x1868] sm:$0xff] }
 0x3c6   :  { %v1200_v15 = vpop.xlane.xlu1 %1199  ;;  %v6953_v62 = vsel %vm4819_vm15, %v6952_v12, %v6948_v14  ;;  %v2068_v17 = vsel %vm570_vm0, %v557_v37, 0.0  ;;  %v6864_v33 = vsel %vm4805_vm13, %v6863_v30, %v6859_v41  ;;  %v1252_v6 = vsel %vm570_vm0, %v285_v2, 0.0  ;;  %v541_v8 = vld [vmem:[%s20918_s0 + $0xf18] sm:$0xff]  ;;  %v303_v24 = vld [vmem:[%s20918_s0 + $0x7a8] sm:$0xff]  ;;  %v19987_v41 = vld [vmem:[#allocation3 + $0x1880] sm:$0xff] }
 0x3c7   :  { %v2835_v59 = vpack.c.bf16 %v2539_v4, %v2538_v60  ;;  %1298 = vadd.xlane.f32.xlu0 %v19801_v26  ;;  %v2317_v39 = vmul.f32 0.0625, %v1200_v15  ;;  %v5604_v46 = vrot.slane %v4372_v44, %v15911_v63  ;;  %v7282_v19 = vsel %vm7270_vm8, %v6953_v62, %v5689_v23  ;;  %v559_v15 = vld [vmem:[%s20918_s0 + $0xfa8] sm:$0xff]  ;;  %v21207_v2 = vld [vmem:[#allocation20_spill] sm:$0xff] }
 0x3c8   :  { %v1197_v16 = vpop.xlane.xlu0 %1196  ;;  %v19916_v26 = vpack.c.b16 %v7282_v19, %v7282_v19  ;;  %v5609_v57 = vrot.slane %v4373_v18, %v21166_v31  ;;  %v2020_v28 = vsel %vm570_vm0, %v541_v8, 0.0  ;;  %v302_v18 = vld [vmem:[%s20918_s0 + $0x7a0] sm:$0xff]  ;;  %v14621_v23 = vcombine.high %v19950_v0, %v19953_v35  ;;  %v20030_v8 = vld [vmem:[#allocation3 + $0x18c8] sm:$0xff] }
 0x3c9   :  { %v4628_v61 = vunpack.c.l.b16 %v2835_v59  ;;  %v4629_v48 = vunpack.c.h.b16 %v2835_v59  ;;  %v2316_v38 = vmul.f32 0.0625, %v1197_v16  ;;  %2015 = vadd.xlane.f32.xlu1 %v19828_v43  ;;  %v5605_v29 = vsel %vm4812_vm14, %v5604_v46, %v5600_v27  ;;  %v558_v59 = vld [vmem:[%s20918_s0 + $0xfa0] sm:$0xff] }
 0x3ca   :  { %21204 = vst [vmem:[#allocation31_spill] sm:$0xff] %v19916_v26  ;;  %v1968_v3 = vpop.xlane.xlu1 %1967  ;;  %12676 = vmatprep.mubr.bf16.mxu0 %v19916_v26  ;;  %13004 = vmatprep.mubr.bf16.mxu1 %v19916_v26  ;;  %v5610_v12 = vsel %vm4819_vm15, %v5609_v57, %v5605_v29  ;;  %v14623_v37 = vcombine.high %v19955_v36, %v19957_v49  ;;  %v2017_v19 = vsel %vm570_vm0, %v540_v40, 0.0  ;;  %v1306_v57 = vsel %vm570_vm0, %v303_v24, 0.0  ;;  %v21210_v29 = vld [vmem:[#allocation26_spill] sm:$0xff]  ;;  %v543_v24 = vld [vmem:[%s20918_s0 + $0xf28] sm:$0xff] }
 0x3cb   :  { %v6868_v10 = vrot.slane %v4628_v61, %v15911_v63  ;;  %v6873_v51 = vrot.slane %v4629_v48, %v21166_v31  ;;  %v19927_v45 = vpack.c.bf16 %v2317_v39, %v2316_v38  ;;  %v2573_v43 = vmul.f32 0.0625, %v1968_v3  ;;  %2012 = vadd.xlane.f32.xlu0 %v19831_v25  ;;  %v284_v25 = vld [vmem:[%s20918_s0 + $0x710] sm:$0xff]  ;;  %v287_v39 = vld [vmem:[%s20918_s0 + $0x728] sm:$0xff]  ;;  %v19994_v61 = vld [vmem:[#allocation3 + $0x18a0] sm:$0xff] }
 0x3cc   :  { %v1965_v50 = vpop.xlane.xlu0 %1964  ;;  %v1249_v60 = vsel %vm570_vm0, %v284_v25, 0.0  ;;  %v19996_v48 = vld [vmem:[#allocation3 + $0x1888] sm:$0xff]  ;;  %v1303_v3 = vsel %vm570_vm0, %v302_v18, 0.0  ;;  %v20028_v25 = vld [vmem:[#allocation3 + $0x18e0] sm:$0xff]  ;;  %v14628_v40 = vcombine.low %v19987_v41, %v19994_v61 }
 0x3cd   :  { %v2572_v22 = vmul.f32 0.0625, %v1965_v50  ;;  %2069 = vadd.xlane.f32.xlu1 %v2068_v17  ;;  %v6869_v7 = vsel %vm4812_vm14, %v6868_v10, %v6864_v33  ;;  %v4406_v30 = vunpack.c.l.b16 %v19927_v45  ;;  %v4407_v46 = vunpack.c.h.b16 %v19927_v45  ;;  %v19998_v38 = vld [vmem:[#allocation3 + $0x18a8] sm:$0xff]  ;;  %v21209_v50 = vld [vmem:[#allocation18_spill] sm:$0xff] }
 0x3ce   :  { %v1152_v47 = vpop.xlane.xlu1 %1151  ;;  %v6874_v20 = vsel %vm4819_vm15, %v6873_v51, %v6869_v7  ;;  %v2074_v17 = vsel %vm570_vm0, %v559_v15, 0.0  ;;  %v20007_v51 = vsel %vm570_vm0, %v558_v59, 0.0  ;;  %v20010_v45 = vsel %vm570_vm0, %v287_v39, 0.0 }
 0x3cf   :  { %v19941_v32 = vpack.c.bf16 %v2573_v43, %v2572_v22  ;;  %v2301_v58 = vmul.f32 0.0625, %v1152_v47  ;;  %2066 = vadd.xlane.f32.xlu0 %v2065_v34  ;;  %v7281_v9 = vsel %vm7270_vm8, %v6874_v20, %v5610_v12  ;;  %v21206_v43 = vld [vmem:[#allocation17_spill] sm:$0xff]  ;;  %v21211_v22 = vcombine.low %v21209_v50, %v21210_v29  ;;  %v20022_v47 = vld [vmem:[#allocation3 + $0x18c0] sm:$0xff] }
 0x3d0   :  { %v1149_v4 = vpop.xlane.xlu0 %1148  ;;  %v19962_v44 = vpack.c.b16 %v7281_v9, %v7281_v9  ;;  %v21208_v33 = vcombine.low %v21206_v43, %v21207_v2  ;;  %v14620_v34 = vcombine.low %v19950_v0, %v19953_v35  ;;  %v14622_v7 = vcombine.low %v19955_v36, %v19957_v49  ;;  %v20032_v0 = vld [vmem:[#allocation3 + $0x18e8] sm:$0xff]  ;;  %v21213_v35 = vld [vmem:[#allocation12_spill] sm:$0xff] }
 0x3d1   :  { %v2300_v13 = vmul.f32 0.0625, %v1149_v4  ;;  %1253 = vadd.xlane.f32.xlu1 %v1252_v6  ;;  %v14631_v12 = vcombine.high %v19996_v48, %v19998_v38  ;;  %v21212_v4 = vld [vmem:[#allocation11_spill] sm:$0xff]  ;;  %v5776_v36 = vrot.slane %v4407_v46, %v21213_v35  ;;  %v14630_v18 = vcombine.low %v19996_v48, %v19998_v38  ;;  %v542_v48 = vld [vmem:[%s20918_s0 + $0xf20] sm:$0xff]  ;;  %v20071_v43 = vld [vmem:[#allocation3 + $0x1908] sm:$0xff] }
 0x3d2   :  { %21205 = vst [vmem:[#allocation32_spill] sm:$0xff] %v19962_v44  ;;  %v1206_v14 = vpop.xlane.xlu1 %1205  ;;  %12677 = vmatmul.mubr.bf16.vlgmr.msra.gmra.mrb[0].mxu0 %v19962_v44  ;;  %13005 = vmatmul.mubr.bf16.vlgmr.msra.gmra.mrb[0].mxu1 %v19962_v44  ;;  %v5772_v9 = vrot.slane %v4406_v30, %v21212_v4  ;;  %v4662_v15 = vunpack.c.l.b16 %v19941_v32  ;;  %v14637_v39 = vcombine.high %v20022_v47, %v20028_v25  ;;  %v21214_v30 = vld [vmem:[#allocation13_spill] sm:$0xff] }
 0x3d3   :  { %v19975_v62 = vpack.c.bf16 %v2301_v58, %v2300_v13  ;;  %v2319_v5 = vmul.f32 0.0625, %v1206_v14  ;;  %1250 = vadd.xlane.f32.xlu0 %v1249_v60  ;;  %12686 = vmatpush1.bf16.msra.mxu0 %v21208_v33  ;;  %v14629_v58 = vcombine.high %v19987_v41, %v19994_v61  ;;  %v20037_v13 = vsel %vm570_vm0, %v286_v53, 0.0  ;;  %v20054_v41 = vld [vmem:[#allocation3 + $0x1920] sm:$0xff]  ;;  %v20073_v2 = vld [vmem:[#allocation3 + $0x1928] sm:$0xff] }
 0x3d4   :  { %v1203_v16 = vpop.xlane.xlu0 %1202  ;;  %13014 = vmatpush1.bf16.msra.mxu1 %v21211_v22  ;;  %12687 = vmatprep.subr.bf16.mxu0 %v14621_v23  ;;  %v14639_v23 = vcombine.high %v20030_v8, %v20032_v0  ;;  %v5777_v38 = vsel %vm4721_vm1, %v5776_v36, %v5772_v9  ;;  %v14636_v53 = vcombine.low %v20022_v47, %v20028_v25 }
 0x3d5   :  { %v2318_v27 = vmul.f32 0.0625, %v1203_v16  ;;  %2021 = vadd.xlane.f32.xlu1 %v2020_v28  ;;  %13015 = vmatprep.subr.bf16.mxu1 %v14623_v37  ;;  %v20052_v37 = vld [vmem:[#allocation3 + $0x1900] sm:$0xff]  ;;  %v21215_v16 = vld [vmem:[#allocation14_spill] sm:$0xff]  ;;  %v7036_v47 = vrot.slane %v4662_v15, %v21212_v4  ;;  %v14646_v9 = vcombine.low %v20071_v43, %v20073_v2  ;;  %v14647_v36 = vcombine.high %v20071_v43, %v20073_v2 }
 0x3d6   :  { %v1920_v10 = vpop.xlane.xlu1 %1919  ;;  %v14644_v29 = vcombine.low %v20052_v37, %v20054_v41  ;;  %v14645_v22 = vcombine.high %v20052_v37, %v20054_v41  ;;  %v20159_v37 = vld [vmem:[#allocation3 + $0x19c8] sm:$0xff] }
 0x3d7   :  { %v2725_v20 = vpack.c.bf16 %v2319_v5, %v2318_v27  ;;  %v2557_v6 = vmul.f32 0.0625, %v1920_v10  ;;  %2018 = vadd.xlane.f32.xlu0 %v2017_v19  ;;  %v4663_v5 = vunpack.c.h.b16 %v19941_v32  ;;  %12688 = vmatpush1.bf16.msra.mxu0 %v14620_v34  ;;  %v14638_v10 = vcombine.low %v20030_v8, %v20032_v0  ;;  %v20080_v34 = vld [vmem:[#allocation3 + $0x1940] sm:$0xff]  ;;  %v305_v0 = vld [vmem:[%s20918_s0 + $0x7b8] sm:$0xff]  ;;  %v20161_v41 = vld [vmem:[#allocation3 + $0x19e8] sm:$0xff] }
 0x3d8   :  { %v1917_v49 = vpop.xlane.xlu0 %1916  ;;  %13016 = vmatpush1.bf16.msra.mxu1 %v14622_v7  ;;  %12689 = vmatprep.subr.bf16.mxu0 %v14629_v58  ;;  %v20082_v7 = vld [vmem:[#allocation3 + $0x1960] sm:$0xff]  ;;  %v20092_v58 = vld [vmem:[#allocation3 + $0x1948] sm:$0xff] }
 0x3d9   :  { %v4408_v60 = vunpack.c.l.b16 %v2725_v20  ;;  %v4409_v14 = vunpack.c.h.b16 %v2725_v20  ;;  %v2556_v28 = vmul.f32 0.0625, %v1917_v49  ;;  %1307 = vadd.xlane.f32.xlu1 %v1306_v57  ;;  %13017 = vmatprep.subr.bf16.mxu1 %v14631_v12  ;;  %v20065_v57 = vsel %vm570_vm0, %v543_v24, 0.0  ;;  %v20094_v12 = vld [vmem:[#allocation3 + $0x1968] sm:$0xff]  ;;  %v20103_v49 = vld [vmem:[#allocation3 + $0x1980] sm:$0xff] }
 0x3da   :  { %v1974_v59 = vpop.xlane.xlu1 %1973  ;;  %v7040_v20 = vrot.slane %v4663_v5, %v21213_v35  ;;  %v14652_v24 = vcombine.low %v20080_v34, %v20082_v7 }
 0x3db   :  { %v5781_v46 = vrot.slane %v4408_v60, %v21214_v30  ;;  %v5786_v19 = vrot.slane %v4409_v14, %v21215_v16  ;;  %v20058_v61 = vpack.c.bf16 %v2557_v6, %v2556_v28  ;;  %v2575_v32 = vmul.f32 0.0625, %v1974_v59  ;;  %1304 = vadd.xlane.f32.xlu0 %v1303_v3  ;;  %12690 = vmatpush1.bf16.msra.mxu0 %v14628_v40  ;;  %v20105_v40 = vld [vmem:[#allocation3 + $0x19a0] sm:$0xff] }
 0x3dc   :  { %v1971_v27 = vpop.xlane.xlu0 %1970  ;;  %13018 = vmatpush1.bf16.msra.mxu1 %v14630_v18  ;;  %12691 = vmatprep.subr.bf16.mxu0 %v14637_v39  ;;  %v4390_v60 = vunpack.c.l.b16 %v19975_v62  ;;  %v4391_v14 = vunpack.c.h.b16 %v19975_v62  ;;  %v14653_v18 = vcombine.high %v20080_v34, %v20082_v7  ;;  %v14654_v39 = vcombine.low %v20092_v58, %v20094_v12  ;;  %v20194_v34 = vld [vmem:[#allocation3 + $0x1a20] sm:$0xff]  ;;  %v20196_v7 = vld [vmem:[#allocation3 + $0x1a08] sm:$0xff] }
 0x3dd   :  { %v5782_v33 = vsel %vm4728_vm2, %v5781_v46, %v5777_v38  ;;  %v2574_v50 = vmul.f32 0.0625, %v1971_v27  ;;  %2075 = vadd.xlane.f32.xlu1 %v2074_v17  ;;  %v20090_v17 = vsel %vm570_vm0, %v542_v48, 0.0  ;;  %13019 = vmatprep.subr.bf16.mxu1 %v14639_v23  ;;  %v7041_v23 = vsel %vm4721_vm1, %v7040_v20, %v7036_v47  ;;  %v304_v27 = vld [vmem:[%s20918_s0 + $0x7b0] sm:$0xff] }
 0x3de   :  { %v20087_v6 = vsel %vm21216_vm3, %v5786_v19, %v5782_v33  ;;  %v1158_v3 = vpop.xlane.xlu1 %1157  ;;  %v1312_v46 = vsel %vm570_vm0, %v305_v0, 0.0  ;;  %v14655_v19 = vcombine.high %v20092_v58, %v20094_v12  ;;  %v5693_v43 = vrot.slane %v4390_v60, %v21212_v4  ;;  %v20153_v0 = vld [vmem:[#allocation3 + $0x19c0] sm:$0xff] }
 0x3df   :  { %v2853_v25 = vpack.c.bf16 %v2575_v32, %v2574_v50  ;;  %v2303_v8 = vmul.f32 0.0625, %v1158_v3  ;;  %2072 = vadd.xlane.f32.xlu0 %v20007_v51  ;;  %12692 = vmatpush1.bf16.msra.mxu0 %v14636_v53  ;;  %v14661_v32 = vcombine.high %v20103_v49, %v20105_v40  ;;  %v20128_v53 = vld [vmem:[#allocation3 + $0x1988] sm:$0xff]  ;;  %v5697_v2 = vrot.slane %v4391_v14, %v21213_v35 }
 0x3e0   :  { %v1155_v28 = vpop.xlane.xlu0 %1154  ;;  %13020 = vmatpush1.bf16.msra.mxu1 %v14638_v10  ;;  %12693 = vmatprep.subr.bf16.mxu0 %v14645_v22  ;;  %v20130_v10 = vld [vmem:[#allocation3 + $0x19a8] sm:$0xff]  ;;  %v4646_v33 = vunpack.c.l.b16 %v20058_v61  ;;  %v4647_v50 = vunpack.c.h.b16 %v20058_v61  ;;  %v561_v61 = vld [vmem:[%s20918_s0 + $0xfb8] sm:$0xff]  ;;  %vm21222_vm3 = vcmask 326912  }
 0x3e1   :  { %v4664_v15 = vunpack.c.l.b16 %v2853_v25  ;;  %v4665_v5 = vunpack.c.h.b16 %v2853_v25  ;;  %v2302_v59 = vmul.f32 0.0625, %v1155_v28  ;;  %1259 = vadd.xlane.f32.xlu1 %v20010_v45  ;;  %13021 = vmatprep.subr.bf16.mxu1 %v14647_v36 }
 0x3e2   :  { %v1926_v62 = vpop.xlane.xlu1 %1925 }
 0x3e3   :  { %v7045_v51 = vrot.slane %v4664_v15, %v21214_v30  ;;  %v7050_v45 = vrot.slane %v4665_v5, %v21215_v16  ;;  %v2717_v48 = vpack.c.bf16 %v2303_v8, %v2302_v59  ;;  %v2559_v38 = vmul.f32 0.0625, %v1926_v62  ;;  %1256 = vadd.xlane.f32.xlu0 %v20037_v13  ;;  %12694 = vmatpush1.bf16.msra.mxu0 %v14644_v29  ;;  %v20157_v15 = vld [vmem:[#allocation3 + $0x19e0] sm:$0xff] }
 0x3e4   :  { %v1923_v47 = vpop.xlane.xlu0 %1922  ;;  %v1309_v8 = vsel %vm570_vm0, %v304_v27, 0.0  ;;  %13022 = vmatpush1.bf16.msra.mxu1 %v14646_v9  ;;  %v14660_v13 = vcombine.low %v20103_v49, %v20105_v40  ;;  %12695 = vmatprep.subr.bf16.mxu0 %v14653_v18  ;;  %v5698_v29 = vsel %vm4721_vm1, %v5697_v2, %v5693_v43  ;;  %v6957_v9 = vrot.slane %v4646_v33, %v21212_v4 }
 0x3e5   :  { %v7046_v20 = vsel %vm4728_vm2, %v7045_v51, %v7041_v23  ;;  %v4392_v3 = vunpack.c.l.b16 %v2717_v48  ;;  %v4393_v58 = vunpack.c.h.b16 %v2717_v48  ;;  %v2558_v22 = vmul.f32 0.0625, %v1923_v47  ;;  %2027 = vadd.xlane.f32.xlu1 %v20065_v57  ;;  %13023 = vmatprep.subr.bf16.mxu1 %v14655_v19 }
 0x3e6   :  { %v20140_v12 = vsel %vm21217_vm4, %v7050_v45, %v7046_v20  ;;  %v1212_v25 = vpop.xlane.xlu1 %1211  ;;  %v14663_v57 = vcombine.high %v20128_v53, %v20130_v10  ;;  %v6961_v5 = vrot.slane %v4647_v50, %v21213_v35  ;;  %v14662_v23 = vcombine.low %v20128_v53, %v20130_v10  ;;  %v560_v45 = vld [vmem:[%s20918_s0 + $0xfb0] sm:$0xff]  ;;  %v289_v53 = vld [vmem:[%s20918_s0 + $0x738] sm:$0xff]  ;;  %v20187_v10 = vld [vmem:[#allocation3 + $0x1a00] sm:$0xff] }
 0x3e7   :  { %v5702_v36 = vrot.slane %v4392_v3, %v21214_v30  ;;  %v5707_v60 = vrot.slane %v4393_v58, %v21215_v16  ;;  %v2845_v14 = vpack.c.bf16 %v2559_v38, %v2558_v22  ;;  %v2321_v28 = vmul.f32 0.0625, %v1212_v25  ;;  %2024 = vadd.xlane.f32.xlu0 %v20090_v17  ;;  %12696 = vmatpush1.bf16.msra.mxu0 %v14652_v24  ;;  %v20198_v24 = vld [vmem:[#allocation3 + $0x1a28] sm:$0xff]  ;;  %v288_v25 = vld [vmem:[%s20918_s0 + $0x730] sm:$0xff] }
 0x3e8   :  { %v1209_v59 = vpop.xlane.xlu0 %1208  ;;  %v2080_v27 = vsel %vm570_vm0, %v561_v61, 0.0  ;;  %13024 = vmatpush1.bf16.msra.mxu1 %v14654_v39  ;;  %v14669_v17 = vcombine.high %v20153_v0, %v20157_v15  ;;  %12697 = vmatprep.subr.bf16.mxu0 %v14661_v32  ;;  %v6962_v39 = vsel %vm4721_vm1, %v6961_v5, %v6957_v9  ;;  %v2077_v20 = vsel %vm570_vm0, %v560_v45, 0.0  ;;  %v20225_v5 = vld [vmem:[#allocation3 + $0x1a60] sm:$0xff] }
 0x3e9   :  { %v5703_v62 = vsel %vm4728_vm2, %v5702_v36, %v5698_v29  ;;  %v4648_v18 = vunpack.c.l.b16 %v2845_v14  ;;  %v4649_v19 = vunpack.c.h.b16 %v2845_v14  ;;  %v2320_v51 = vmul.f32 0.0625, %v1209_v59  ;;  %1313 = vadd.xlane.f32.xlu1 %v1312_v46  ;;  %13025 = vmatprep.subr.bf16.mxu1 %v14663_v57  ;;  %v545_v36 = vld [vmem:[%s20918_s0 + $0xf38] sm:$0xff]  ;;  %v20221_v14 = vld [vmem:[#allocation3 + $0x1a40] sm:$0xff]  ;;  %v20229_v59 = vld [vmem:[#allocation3 + $0x1a68] sm:$0xff] }
 0x3ea   :  { %v20174_v48 = vsel %vm21218_vm7, %v5707_v60, %v5703_v62  ;;  %v1980_v38 = vpop.xlane.xlu1 %1979  ;;  %v14671_v46 = vcombine.high %v20159_v37, %v20161_v41  ;;  %v14668_v3 = vcombine.low %v20153_v0, %v20157_v15  ;;  %v14670_v58 = vcombine.low %v20159_v37, %v20161_v41  ;;  %v21221_v37 = vld [vmem:[#allocation16_spill] sm:$0xff]  ;;  %vm21224_vm7 = vmmov %vm21222_vm3 }
 0x3eb   :  { %v6966_v43 = vrot.slane %v4648_v18, %v21214_v30  ;;  %v6971_v2 = vrot.slane %v4649_v19, %v21215_v16  ;;  %v2726_v33 = vpack.c.bf16 %v2321_v28, %v2320_v51  ;;  %v2577_v50 = vmul.f32 0.0625, %v1980_v38  ;;  %1310 = vadd.xlane.f32.xlu0 %v1309_v8  ;;  %12698 = vmatpush1.bf16.msra.mxu0 %v14660_v13  ;;  %v21220_v28 = vld [vmem:[#allocation15_spill] sm:$0xff]  ;;  %v20227_v13 = vld [vmem:[#allocation3 + $0x1a48] sm:$0xff] }
 0x3ec   :  { %v1977_v47 = vpop.xlane.xlu0 %1976  ;;  %v1264_v0 = vsel %vm570_vm0, %v289_v53, 0.0  ;;  %13026 = vmatpush1.bf16.msra.mxu1 %v14662_v23  ;;  %v14677_v8 = vcombine.high %v20187_v10, %v20194_v34  ;;  %v14679_v60 = vcombine.high %v20196_v7, %v20198_v24  ;;  %12699 = vmatprep.subr.bf16.mxu0 %v14669_v17  ;;  %v1261_v62 = vsel %vm570_vm0, %v288_v25, 0.0  ;;  %v544_v53 = vld [vmem:[%s20918_s0 + $0xf30] sm:$0xff] }
 0x3ed   :  { %v6967_v49 = vsel %vm4728_vm2, %v6966_v43, %v6962_v39  ;;  %v4410_v40 = vunpack.c.l.b16 %v2726_v33  ;;  %v4411_v32 = vunpack.c.h.b16 %v2726_v33  ;;  %v2576_v22 = vmul.f32 0.0625, %v1977_v47  ;;  %2081 = vadd.xlane.f32.xlu1 %v2080_v27  ;;  %13027 = vmatprep.subr.bf16.mxu1 %v14671_v46  ;;  %v307_v43 = vld [vmem:[%s20918_s0 + $0x7c8] sm:$0xff]  ;;  %v20252_v33 = vld [vmem:[#allocation3 + $0x1a80] sm:$0xff] }
 0x3ee   :  { %v20211_v61 = vsel %vm21219_vm5, %v6971_v2, %v6967_v49  ;;  %v1164_v57 = vpop.xlane.xlu1 %1163  ;;  %v14676_v18 = vcombine.low %v20187_v10, %v20194_v34  ;;  %v14678_v19 = vcombine.low %v20196_v7, %v20198_v24  ;;  %vm21223_vm4 = vcmask 392512   ;;  %v20256_v39 = vld [vmem:[#allocation3 + $0x1aa0] sm:$0xff]  ;;  %v20258_v47 = vld [vmem:[#allocation3 + $0x1a88] sm:$0xff] }
 0x3ef   :  { %v5791_v15 = vrot.slane %v4410_v40, %v21220_v28  ;;  %v5796_v41 = vrot.slane %v4411_v32, %v21221_v37  ;;  %v2854_v29 = vpack.c.bf16 %v2577_v50, %v2576_v22  ;;  %v2305_v9 = vmul.f32 0.0625, %v1164_v57  ;;  %2078 = vadd.xlane.f32.xlu0 %v2077_v20  ;;  %12700 = vmatpush1.bf16.msra.mxu0 %v14668_v3  ;;  %v20260_v20 = vld [vmem:[#allocation3 + $0x1aa8] sm:$0xff]  ;;  %vm21225_vm5 = vmmov %vm21223_vm4 }
 0x3f0   :  { %v1161_v23 = vpop.xlane.xlu0 %1160  ;;  %v2032_v10 = vsel %vm570_vm0, %v545_v36, 0.0  ;;  %13028 = vmatpush1.bf16.msra.mxu1 %v14670_v58  ;;  %v14687_v2 = vcombine.high %v20227_v13, %v20229_v59  ;;  %12701 = vmatprep.subr.bf16.mxu0 %v14677_v8  ;;  %v2029_v58 = vsel %vm570_vm0, %v544_v53, 0.0  ;;  %v14684_v49 = vcombine.low %v20221_v14, %v20225_v5 }
 0x3f1   :  { %v5792_v51 = vsel %vm21222_vm3, %v5791_v15, %v20087_v6  ;;  %v4666_v45 = vunpack.c.l.b16 %v2854_v29  ;;  %v4667_v38 = vunpack.c.h.b16 %v2854_v29  ;;  %v2304_v27 = vmul.f32 0.0625, %v1161_v23  ;;  %1265 = vadd.xlane.f32.xlu1 %v1264_v0  ;;  %13029 = vmatprep.subr.bf16.mxu1 %v14679_v60  ;;  %v306_v0 = vld [vmem:[%s20918_s0 + $0x7c0] sm:$0xff] }
 0x3f2   :  { %v20242_v17 = vsel %vm21223_vm4, %v5796_v41, %v5792_v51  ;;  %v1932_v46 = vpop.xlane.xlu1 %1931  ;;  %v14685_v6 = vcombine.high %v20221_v14, %v20225_v5  ;;  %v14686_v40 = vcombine.low %v20227_v13, %v20229_v59  ;;  %v1318_v60 = vsel %vm570_vm0, %v307_v43, 0.0  ;;  %v3732_v5 = vld [vmem:[#allocation3 + $0x1ac0] sm:$0xff] }
 0x3f3   :  { %v7055_v50 = vrot.slane %v4666_v45, %v21220_v28  ;;  %v7060_v34 = vrot.slane %v4667_v38, %v21221_v37  ;;  %v2718_v7 = vpack.c.bf16 %v2305_v9, %v2304_v27  ;;  %v2561_v24 = vmul.f32 0.0625, %v1932_v46  ;;  %1262 = vadd.xlane.f32.xlu0 %v1261_v62  ;;  %12702 = vmatpush1.bf16.msra.mxu0 %v14676_v18  ;;  %v563_v9 = vld [vmem:[%s20918_s0 + $0xfc8] sm:$0xff]  ;;  %v3736_v13 = vld [vmem:[#allocation3 + $0x1ae0] sm:$0xff] }
 0x3f4   :  { %v1929_v3 = vpop.xlane.xlu0 %1928  ;;  %13030 = vmatpush1.bf16.msra.mxu1 %v14678_v19  ;;  %v14695_v14 = vcombine.high %v20258_v47, %v20260_v20  ;;  %12703 = vmatprep.subr.bf16.mxu0 %v14685_v6  ;;  %v1315_v23 = vsel %vm570_vm0, %v306_v0, 0.0  ;;  %v3733_v62 = vld [vmem:[#allocation3 + $0x1ac8] sm:$0xff]  ;;  %v14692_v38 = vcombine.low %v20252_v33, %v20256_v39  ;;  %v2086_v46 = vsel %vm570_vm0, %v563_v9, 0.0 }
 0x3f5   :  { %v7056_v32 = vsel %vm21224_vm7, %v7055_v50, %v20140_v12  ;;  %v4394_v22 = vunpack.c.l.b16 %v2718_v7  ;;  %v4395_v25 = vunpack.c.h.b16 %v2718_v7  ;;  %v2560_v57 = vmul.f32 0.0625, %v1929_v3  ;;  %2033 = vadd.xlane.f32.xlu1 %v2032_v10  ;;  %13031 = vmatprep.subr.bf16.mxu1 %v14687_v2  ;;  %v3737_v18 = vld [vmem:[#allocation3 + $0x1ae8] sm:$0xff]  ;;  %v562_v10 = vld [vmem:[%s20918_s0 + $0xfc0] sm:$0xff]  ;;  %vm21226_vm7 = vmmov %vm21222_vm3 }
 0x3f6   :  { %v20273_v36 = vsel %vm21225_vm5, %v7060_v34, %v7056_v32  ;;  %v20275_v8 = vpop.xlane.xlu1 %1217  ;;  %v14693_v12 = vcombine.high %v20252_v33, %v20256_v39  ;;  %v14701_v43 = vcombine.high %v3732_v5, %v3736_v13  ;;  %v291_v33 = vld [vmem:[%s20918_s0 + $0x748] sm:$0xff]  ;;  %v14703_v50 = vcombine.high %v3733_v62, %v3737_v18  ;;  %v3740_v34 = vld [vmem:[#allocation3 + $0x1b00] sm:$0xff]  ;;  %vm21227_vm5 = vmmov %vm21223_vm4 }
 0x3f7   :  { %v5712_v15 = vrot.slane %v4394_v22, %v21220_v28  ;;  %v5717_v41 = vrot.slane %v4395_v25, %v21221_v37  ;;  %v2846_v29 = vpack.c.bf16 %v2561_v24, %v2560_v57  ;;  %2030 = vadd.xlane.f32.xlu0 %v2029_v58  ;;  %12704 = vmatpush1.bf16.msra.mxu0 %v14684_v49  ;;  %v3744_v24 = vld [vmem:[#allocation3 + $0x1b20] sm:$0xff]  ;;  %v3741_v39 = vld [vmem:[#allocation3 + $0x1b08] sm:$0xff] }
 0x3f8   :  { %v20287_v59 = vpop.xlane.xlu0 %1214  ;;  %13032 = vmatpush1.bf16.msra.mxu1 %v14686_v40  ;;  %12705 = vmatprep.subr.bf16.mxu0 %v14693_v12  ;;  %v3745_v3 = vld [vmem:[#allocation3 + $0x1b28] sm:$0xff]  ;;  %v1270_v40 = vsel %vm570_vm0, %v291_v33, 0.0  ;;  %v14700_v32 = vcombine.low %v3732_v5, %v3736_v13  ;;  %v14702_v22 = vcombine.low %v3733_v62, %v3737_v18  ;;  %v290_v25 = vld [vmem:[%s20918_s0 + $0x740] sm:$0xff]  ;;  %v14709_v57 = vcombine.high %v3740_v34, %v3744_v24  ;;  %v309_v18 = vld [vmem:[%s20918_s0 + $0x7d8] sm:$0xff] }
 0x3f9   :  { %v5713_v19 = vsel %vm21222_vm3, %v5712_v15, %v20174_v48  ;;  %v4650_v51 = vunpack.c.l.b16 %v2846_v29  ;;  %v4651_v45 = vunpack.c.h.b16 %v2846_v29  ;;  %1319 = vadd.xlane.f32.xlu1 %v1318_v60  ;;  %v14694_v48 = vcombine.low %v20258_v47, %v20260_v20  ;;  %13033 = vmatprep.subr.bf16.mxu1 %v14695_v14  ;;  %v3748_v60 = vld [vmem:[#allocation3 + $0x1b40] sm:$0xff]  ;;  %v3749_v15 = vld [vmem:[#allocation3 + $0x1b48] sm:$0xff] }
 0x3fa   :  { %v20295_v27 = vsel %vm21223_vm4, %v5717_v41, %v5713_v19  ;;  %v20297_v53 = vpop.xlane.xlu1 %1985  ;;  %v2083_v20 = vsel %vm570_vm0, %v562_v10, 0.0  ;;  %v14711_v0 = vcombine.high %v3741_v39, %v3745_v3  ;;  %v3752_v14 = vld [vmem:[#allocation3 + $0x1b60] sm:$0xff]  ;;  %v3753_v41 = vld [vmem:[#allocation3 + $0x1b68] sm:$0xff]  ;;  %v1267_v29 = vsel %vm570_vm0, %v290_v25, 0.0 }
 0x3fb   :  { %v6976_v6 = vrot.slane %v4650_v51, %v21220_v28  ;;  %v6981_v2 = vrot.slane %v4651_v45, %v21221_v37  ;;  %1316 = vadd.xlane.f32.xlu0 %v1315_v23  ;;  %12706 = vmatpush1.bf16.msra.mxu0 %v14692_v38  ;;  %v14708_v13 = vcombine.low %v3740_v34, %v3744_v24  ;;  %v546_v62 = vld [vmem:[%s20918_s0 + $0xf40] sm:$0xff]  ;;  %v3757_v10 = vld [vmem:[#allocation3 + $0x1b88] sm:$0xff]  ;;  %v308_v34 = vld [vmem:[%s20918_s0 + $0x7d0] sm:$0xff]  ;;  %vm21228_vm3 = vcmask 523712  }
 0x3fc   :  { %v20310_v7 = vpop.xlane.xlu0 %1982  ;;  %13034 = vmatpush1.bf16.msra.mxu1 %v14694_v48  ;;  %12707 = vmatprep.subr.bf16.mxu0 %v14701_v43  ;;  %v14710_v23 = vcombine.low %v3741_v39, %v3745_v3  ;;  %v14717_v19 = vcombine.high %v3748_v60, %v3752_v14  ;;  %v14719_v51 = vcombine.high %v3749_v15, %v3753_v41  ;;  %v3756_v45 = vld [vmem:[#allocation3 + $0x1b80] sm:$0xff]  ;;  %v3761_v48 = vld [vmem:[#allocation3 + $0x1ba8] sm:$0xff]  ;;  %v2035_v43 = vsel %vm570_vm0, %v546_v62, 0.0  ;;  %v565_v24 = vld [vmem:[%s20918_s0 + $0xfd8] sm:$0xff] }
 0x3fd   :  { %v6977_v47 = vsel %vm21226_vm7, %v6976_v6, %v20211_v61  ;;  %2087 = vadd.xlane.f32.xlu1 %v2086_v46  ;;  %v547_v61 = vld [vmem:[%s20918_s0 + $0xf48] sm:$0xff]  ;;  %13035 = vmatprep.subr.bf16.mxu1 %v14703_v50  ;;  %v3760_v46 = vld [vmem:[#allocation3 + $0x1ba0] sm:$0xff]  ;;  %v14716_v33 = vcombine.low %v3748_v60, %v3752_v14  ;;  %v14718_v50 = vcombine.low %v3749_v15, %v3753_v41  ;;  %v1321_v25 = vsel %vm570_vm0, %v308_v34, 0.0  ;;  %v564_v14 = vld [vmem:[%s20918_s0 + $0xfd0] sm:$0xff] }
 0x3fe   :  { %v20316_v58 = vsel %vm21227_vm5, %v6981_v2, %v6977_v47  ;;  %v20318_v49 = vpop.xlane.xlu1 %1169  ;;  %v2038_v5 = vsel %vm570_vm0, %v547_v61, 0.0  ;;  %v1324_v2 = vsel %vm570_vm0, %v309_v18, 0.0  ;;  %v14725_v39 = vcombine.high %v3756_v45, %v3760_v46  ;;  %v3764_v47 = vld [vmem:[#allocation3 + $0x1bc0] sm:$0xff]  ;;  %v293_v15 = vld [vmem:[%s20918_s0 + $0x758] sm:$0xff]  ;;  %vm21229_vm4 = vmmov %vm21228_vm3 }
 0x3ff   :  { %2084 = vadd.xlane.f32.xlu0 %v2083_v20  ;;  %12708 = vmatpush1.bf16.msra.mxu0 %v14700_v32  ;;  %v14727_v3 = vcombine.high %v3757_v10, %v3761_v48  ;;  %v3765_v32 = vld [vmem:[#allocation3 + $0x1bc8] sm:$0xff]  ;;  %v14726_v60 = vcombine.low %v3757_v10, %v3761_v48  ;;  %v1276_v62 = vsel %vm570_vm0, %v293_v15, 0.0  ;;  %v20377_v10 = vld [vmem:[#allocation3 + $0x1c00] sm:$0xff]  ;;  %vm21230_vm7 = vmmov %vm21228_vm3  ;;  %vm21231_vm5 = vcmask 589312  }
 0x400   :  { %v20327_v12 = vpop.xlane.xlu0 %1166  ;;  %13036 = vmatpush1.bf16.msra.mxu1 %v14702_v22  ;;  %12709 = vmatprep.subr.bf16.mxu0 %v14709_v57  ;;  %v3769_v22 = vld [vmem:[#allocation3 + $0x1be8] sm:$0xff]  ;;  %v2092_v57 = vsel %vm570_vm0, %v565_v24, 0.0  ;;  %v20379_v48 = vld [vmem:[#allocation3 + $0x1c20] sm:$0xff] }
 0x401   :  { %1271 = vadd.xlane.f32.xlu1 %v1270_v40  ;;  %13037 = vmatprep.subr.bf16.mxu1 %v14711_v0  ;;  %v3768_v40 = vld [vmem:[#allocation3 + $0x1be0] sm:$0xff]  ;;  %v14724_v0 = vcombine.low %v3756_v45, %v3760_v46  ;;  %v549_v45 = vld [vmem:[%s20918_s0 + $0xf58] sm:$0xff]  ;;  %v567_v15 = vld [vmem:[%s20918_s0 + $0xfe8] sm:$0xff] }
 0x402   :  { %v20330_v9 = vpop.xlane.xlu1 %1937  ;;  %v14733_v41 = vcombine.high %v3764_v47, %v3768_v40  ;;  %v14732_v18 = vcombine.low %v3764_v47, %v3768_v40  ;;  %v2044_v34 = vsel %vm570_vm0, %v549_v45, 0.0  ;;  %v311_v47 = vld [vmem:[%s20918_s0 + $0x7e8] sm:$0xff]  ;;  %v2323_v40 = vmul.f32 0.0625, %v20275_v8 }
 0x403   :  { %1268 = vadd.xlane.f32.xlu0 %v1267_v29  ;;  %12710 = vmatpush1.bf16.msra.mxu0 %v14708_v13  ;;  %v14735_v29 = vcombine.high %v3765_v32, %v3769_v22  ;;  %v2089_v13 = vsel %vm570_vm0, %v564_v14, 0.0  ;;  %v2579_v14 = vmul.f32 0.0625, %v20297_v53  ;;  %v2578_v8 = vmul.f32 0.0625, %v20310_v7 }
 0x404   :  { %v20339_v38 = vpop.xlane.xlu0 %1934  ;;  %13038 = vmatpush1.bf16.msra.mxu1 %v14710_v23  ;;  %12711 = vmatprep.subr.bf16.mxu0 %v14717_v19  ;;  %v14734_v19 = vcombine.low %v3765_v32, %v3769_v22  ;;  %v2322_v32 = vmul.f32 0.0625, %v20287_v59  ;;  %v310_v59 = vld [vmem:[%s20918_s0 + $0x7e0] sm:$0xff] }
 0x405   :  { %2039 = vadd.xlane.f32.xlu1 %v2038_v5  ;;  %13039 = vmatprep.subr.bf16.mxu1 %v14719_v51  ;;  %v292_v51 = vld [vmem:[%s20918_s0 + $0x750] sm:$0xff]  ;;  %v2562_v53 = vmul.f32 0.0625, %v20339_v38  ;;  %v1327_v7 = vsel %vm570_vm0, %v310_v59, 0.0  ;;  %v2855_v45 = vpack.c.bf16 %v2579_v14, %v2578_v8 }
 0x406   :  { %v20342_v6 = vpop.xlane.xlu1 %1223 }
 0x407   :  { %2036 = vadd.xlane.f32.xlu0 %v2035_v43  ;;  %12712 = vmatpush1.bf16.msra.mxu0 %v14716_v33  ;;  %v20381_v43 = vld [vmem:[#allocation3 + $0x1c08] sm:$0xff]  ;;  %v1273_v33 = vsel %vm570_vm0, %v292_v51, 0.0  ;;  %v2098_v51 = vsel %vm570_vm0, %v567_v15, 0.0 }
 0x408   :  { %v20351_v20 = vpop.xlane.xlu0 %1220  ;;  %13040 = vmatpush1.bf16.msra.mxu1 %v14718_v50  ;;  %12713 = vmatprep.subr.bf16.mxu0 %v14725_v39  ;;  %v14741_v39 = vcombine.high %v20377_v10, %v20379_v48 }
 0x409   :  { %1325 = vadd.xlane.f32.xlu1 %v1324_v2  ;;  %13041 = vmatprep.subr.bf16.mxu1 %v14727_v3  ;;  %v20383_v2 = vld [vmem:[#allocation3 + $0x1c28] sm:$0xff]  ;;  %v548_v3 = vld [vmem:[%s20918_s0 + $0xf50] sm:$0xff]  ;;  %v2324_v38 = vmul.f32 0.0625, %v20351_v20  ;;  %v550_v20 = vld [vmem:[%s20918_s0 + $0xf60] sm:$0xff] }
 0x40a   :  { %v20354_v61 = vpop.xlane.xlu1 %1991 }
 0x40b   :  { %1322 = vadd.xlane.f32.xlu0 %v1321_v25  ;;  %12714 = vmatpush1.bf16.msra.mxu0 %v14724_v0  ;;  %v14743_v25 = vcombine.high %v20381_v43, %v20383_v2 }
 0x40c   :  { %v20363_v5 = vpop.xlane.xlu0 %1988  ;;  %13042 = vmatpush1.bf16.msra.mxu1 %v14726_v60  ;;  %12715 = vmatprep.subr.bf16.mxu0 %v14733_v41  ;;  %v1330_v60 = vsel %vm570_vm0, %v311_v47, 0.0  ;;  %v2727_v41 = vpack.c.bf16 %v2323_v40, %v2322_v32  ;;  %v551_v40 = vld [vmem:[%s20918_s0 + $0xf68] sm:$0xff] }
 0x40d   :  { %2093 = vadd.xlane.f32.xlu1 %v2092_v57  ;;  %13043 = vmatprep.subr.bf16.mxu1 %v14735_v29  ;;  %v2041_v57 = vsel %vm570_vm0, %v548_v3, 0.0 }
 0x40e   :  { %v20366_v23 = vpop.xlane.xlu1 %1175  ;;  %v4413_v14 = vunpack.c.h.b16 %v2727_v41 }
 0x40f   :  { %2090 = vadd.xlane.f32.xlu0 %v2089_v13  ;;  %12716 = vmatpush1.bf16.msra.mxu0 %v14732_v18  ;;  %v2307_v13 = vmul.f32 0.0625, %v20318_v49  ;;  %v2563_v18 = vmul.f32 0.0625, %v20330_v9  ;;  %v295_v49 = vld [vmem:[%s20918_s0 + $0x768] sm:$0xff]  ;;  %v2325_v9 = vmul.f32 0.0625, %v20342_v6 }
 0x410   :  { %v20375_v46 = vpop.xlane.xlu0 %1172  ;;  %13044 = vmatpush1.bf16.msra.mxu1 %v14734_v19  ;;  %12726 = vmatprep.subr.bf16.mxu0 %v14741_v39  ;;  %v294_v39 = vld [vmem:[%s20918_s0 + $0x760] sm:$0xff]  ;;  %v1282_v6 = vsel %vm570_vm0, %v295_v49, 0.0  ;;  %v2581_v49 = vmul.f32 0.0625, %v20354_v61  ;;  %v5806_v61 = vrot.slane %v4413_v14, %v15766_v52 }
 0x411   :  { %1277 = vadd.xlane.f32.xlu1 %v1276_v62  ;;  %13054 = vmatprep.subr.bf16.mxu1 %v14743_v25  ;;  %v2306_v62 = vmul.f32 0.0625, %v20327_v12  ;;  %v4412_v12 = vunpack.c.l.b16 %v2727_v41  ;;  %v20438_v47 = vpack.c.bf16 %v2563_v18, %v2562_v53  ;;  %v2728_v59 = vpack.c.bf16 %v2325_v9, %v2324_v38  ;;  %v312_v18 = vld [vmem:[%s20918_s0 + $0x7f0] sm:$0xff]  ;;  %v569_v53 = vld [vmem:[%s20918_s0 + $0xff8] sm:$0xff] }
 0x412   :  { %v20386_v50 = vpop.xlane.xlu1 %1943  ;;  %v4669_v41 = vunpack.c.h.b16 %v2855_v45  ;;  %v2309_v9 = vmul.f32 0.0625, %v20366_v23  ;;  %v2308_v38 = vmul.f32 0.0625, %v20375_v46  ;;  %v1333_v24 = vsel %vm570_vm0, %v312_v18, 0.0 }
 0x413   :  { %1274 = vadd.xlane.f32.xlu0 %v1273_v33  ;;  %v566_v33 = vld [vmem:[%s20918_s0 + $0xfe0] sm:$0xff]  ;;  %v2719_v3 = vpack.c.bf16 %v2307_v13, %v2306_v62  ;;  %v5801_v8 = vrot.slane %v4412_v12, %v15755_v42  ;;  %v2050_v13 = vsel %vm570_vm0, %v551_v40, 0.0  ;;  %v313_v62 = vld [vmem:[%s20918_s0 + $0x7f8] sm:$0xff]  ;;  %v2580_v12 = vmul.f32 0.0625, %v20363_v5 }
 0x414   :  { %v20401_v22 = vpop.xlane.xlu0 %1940  ;;  %v2095_v32 = vsel %vm570_vm0, %v566_v33, 0.0  ;;  %v2047_v33 = vsel %vm570_vm0, %v550_v20, 0.0  ;;  %v4414_v20 = vunpack.c.l.b16 %v2728_v59  ;;  %v4653_v44 = vunpack.c.h.b16 %v20438_v47 }
 0x415   :  { %2045 = vadd.xlane.f32.xlu1 %v2044_v34  ;;  %v4397_v5 = vunpack.c.h.b16 %v2719_v3  ;;  %v7070_v18 = vrot.slane %v4669_v41, %v15766_v52  ;;  %v2720_v14 = vpack.c.bf16 %v2309_v9, %v2308_v38 }
 0x416   :  { %v20406_v0 = vpop.xlane.xlu1 %1229  ;;  %v5811_v41 = vrot.slane %v4414_v20, %v15769_v55 }
 0x417   :  { %2042 = vadd.xlane.f32.xlu0 %v2041_v57  ;;  %v4668_v57 = vunpack.c.l.b16 %v2855_v45  ;;  %v1336_v45 = vsel %vm570_vm0, %v313_v62, 0.0  ;;  %v2564_v62 = vmul.f32 0.0625, %v20401_v22 }
 0x418   :  { %v20417_v29 = vpop.xlane.xlu0 %1226 }
 0x419   :  { %1331 = vadd.xlane.f32.xlu1 %v1330_v60  ;;  %v1279_v60 = vsel %vm570_vm0, %v294_v39, 0.0  ;;  %v7065_v40 = vrot.slane %v4668_v57, %v15755_v42  ;;  %v2565_v57 = vmul.f32 0.0625, %v20386_v50  ;;  %v2327_v50 = vmul.f32 0.0625, %v20406_v0 }
 0x41a   :  { %v20424_v19 = vpop.xlane.xlu1 %1997  ;;  %v2326_v22 = vmul.f32 0.0625, %v20417_v29  ;;  %v6991_v29 = vrot.slane %v4653_v44, %v15766_v52 }
 0x41b   :  { %1328 = vadd.xlane.f32.xlu0 %v1327_v7  ;;  %v4396_v7 = vunpack.c.l.b16 %v2719_v3 }
 0x41c   :  { %v1995_v34 = vpop.xlane.xlu0 %1994 }
 0x41d   :  { %2099 = vadd.xlane.f32.xlu1 %v2098_v51  ;;  %v4652_v51 = vunpack.c.l.b16 %v20438_v47  ;;  %v5722_v46 = vrot.slane %v4396_v7, %v15755_v42  ;;  %v7066_v47 = vsel %vm21023_vm6, %v7065_v40, %v20273_v36  ;;  %v4415_v7 = vunpack.c.h.b16 %v2728_v59  ;;  %v296_v36 = vld [vmem:[%s20918_s0 + $0x770] sm:$0xff] }
 0x41e   :  { %v20444_v25 = vpop.xlane.xlu1 %1181  ;;  %v2848_v59 = vpack.c.bf16 %v2565_v57, %v2564_v62  ;;  %v1285_v44 = vsel %vm570_vm0, %v296_v36, 0.0 }
 0x41f   :  { %2096 = vadd.xlane.f32.xlu0 %v2095_v32  ;;  %v2104_v32 = vsel %vm570_vm0, %v569_v53, 0.0  ;;  %v568_v53 = vld [vmem:[%s20918_s0 + $0xff0] sm:$0xff]  ;;  %v5723_v0 = vsel %vm21023_vm6, %v5722_v46, %v20295_v27  ;;  %v5816_v26 = vrot.slane %v4415_v7, %v15772_v56  ;;  %v2729_v27 = vpack.c.bf16 %v2327_v50, %v2326_v22  ;;  %v553_v50 = vld [vmem:[%s20918_s0 + $0xf78] sm:$0xff] }
 0x420   :  { %v20452_v15 = vpop.xlane.xlu0 %1178  ;;  %v2101_v9 = vsel %vm570_vm0, %v568_v53, 0.0  ;;  %v4399_v53 = vunpack.c.h.b16 %v2720_v14  ;;  %v2311_v7 = vmul.f32 0.0625, %v20444_v25 }
 0x421   :  { %1283 = vadd.xlane.f32.xlu1 %v1282_v6  ;;  %v5802_v6 = vsel %vm21023_vm6, %v5801_v8, %v20242_v17  ;;  %v6986_v17 = vrot.slane %v4652_v51, %v15755_v42  ;;  %v2856_v8 = vpack.c.bf16 %v2581_v49, %v2580_v12  ;;  %v2583_v51 = vmul.f32 0.0625, %v20424_v19 }
 0x422   :  { %v20470_v39 = vpop.xlane.xlu1 %1949  ;;  %v2582_v49 = vmul.f32 0.0625, %v1995_v34  ;;  %v4398_v34 = vunpack.c.l.b16 %v2720_v14  ;;  %v5807_v20 = vsel %vm21228_vm3, %v5806_v61, %v5802_v6  ;;  %v5737_v25 = vrot.slane %v4399_v53, %v15772_v56 }
 0x423   :  { %1280 = vadd.xlane.f32.xlu0 %v1279_v60  ;;  %v297_v60 = vld [vmem:[%s20918_s0 + $0x778] sm:$0xff]  ;;  %v6987_v38 = vsel %vm21023_vm6, %v6986_v17, %v20316_v58  ;;  %v4670_v19 = vunpack.c.l.b16 %v2856_v8  ;;  %v5812_v46 = vsel %vm21231_vm5, %v5811_v41, %v5807_v20  ;;  %vm21232_vm6 = vmmov %vm21228_vm3  ;;  %v4671_v17 = vunpack.c.h.b16 %v2856_v8 }
 0x424   :  { %v20479_v23 = vpop.xlane.xlu0 %1946  ;;  %v2857_v57 = vpack.c.bf16 %v2583_v51, %v2582_v49  ;;  %v6992_v62 = vsel %vm21232_vm6, %v6991_v29, %v6987_v38  ;;  %v5732_v61 = vrot.slane %v4398_v34, %v15769_v55  ;;  %v5817_v22 = vsel %vm4777_vm9, %v5816_v26, %v5812_v46  ;;  %vm21233_vm6 = vmmov %vm21231_vm5  ;;  %v552_v38 = vld [vmem:[%s20918_s0 + $0xf70] sm:$0xff] }
 0x425   :  { %2051 = vadd.xlane.f32.xlu1 %v2050_v13  ;;  %v5727_v13 = vrot.slane %v4397_v5, %v15766_v52  ;;  %v1288_v5 = vsel %vm570_vm0, %v297_v60, 0.0  ;;  %v4654_v60 = vunpack.c.l.b16 %v2848_v59  ;;  %v7075_v6 = vrot.slane %v4670_v19, %v15769_v55  ;;  %vm21234_vm3 = vmmov %vm21231_vm5 }
 0x426   :  { %v1236_v3 = vpop.xlane.xlu1 %1235  ;;  %v4416_v8 = vunpack.c.l.b16 %v2729_v27  ;;  %v7080_v36 = vrot.slane %v4671_v17, %v15772_v56  ;;  %v2567_v34 = vmul.f32 0.0625, %v20470_v39  ;;  %v4673_v20 = vunpack.c.h.b16 %v2857_v57 }
 0x427   :  { %2048 = vadd.xlane.f32.xlu0 %v2047_v33  ;;  %v7071_v33 = vsel %vm21229_vm4, %v7070_v18, %v7066_v47  ;;  %v2310_v18 = vmul.f32 0.0625, %v20452_v15  ;;  %v2329_v14 = vmul.f32 0.0625, %v1236_v3  ;;  %v6996_v15 = vrot.slane %v4654_v60, %v15769_v55  ;;  %vm21235_vm4 = vmmov %vm21234_vm3 }
 0x428   :  { %v1233_v12 = vpop.xlane.xlu0 %1232  ;;  %v7076_v26 = vsel %vm21233_vm6, %v7075_v6, %v7071_v33  ;;  %v5821_v19 = vrot.slane %v4416_v8, %v15795_v11  ;;  %v2053_v39 = vsel %vm570_vm0, %v552_v38, 0.0 }
 0x429   :  { %1337 = vadd.xlane.f32.xlu1 %v1336_v45  ;;  %v5728_v45 = vsel %vm21230_vm7, %v5727_v13, %v5723_v0  ;;  %v2328_v13 = vmul.f32 0.0625, %v1233_v12  ;;  %v2056_v0 = vsel %vm570_vm0, %v553_v50, 0.0  ;;  %v4417_v12 = vunpack.c.h.b16 %v2729_v27 }
 0x42a   :  { %v2004_v40 = vpop.xlane.xlu1 %2003  ;;  %v5733_v3 = vsel %vm21234_vm3, %v5732_v61, %v5728_v45  ;;  %v2721_v29 = vpack.c.bf16 %v2311_v7, %v2310_v18  ;;  %v7081_v46 = vsel %vm4777_vm9, %v7080_v36, %v7076_v26  ;;  %v6997_v17 = vsel %vm21235_vm4, %v6996_v15, %v6992_v62 }
 0x42b   :  { %1334 = vadd.xlane.f32.xlu0 %v1333_v24  ;;  %v4655_v24 = vunpack.c.h.b16 %v2848_v59  ;;  %v2585_v41 = vmul.f32 0.0625, %v2004_v40  ;;  %v2730_v40 = vpack.c.bf16 %v2329_v14, %v2328_v13  ;;  %v5822_v61 = vsel %vm4784_vm10, %v5821_v19, %v5817_v22 }
 0x42c   :  { %v2001_v58 = vpop.xlane.xlu0 %2000  ;;  %v4400_v53 = vunpack.c.l.b16 %v2721_v29  ;;  %vm21237_vm0 = vcmask 261312  }
 0x42d   :  { %2105 = vadd.xlane.f32.xlu1 %v2104_v32  ;;  %v4672_v32 = vunpack.c.l.b16 %v2857_v57  ;;  %v2584_v51 = vmul.f32 0.0625, %v2001_v58  ;;  %v5738_v58 = vsel %vm4777_vm9, %v5737_v25, %v5733_v3  ;;  %v4418_v18 = vunpack.c.l.b16 %v2730_v40  ;;  %vm21238_vm7 = vmmov %vm21237_vm0 }
 0x42e   :  { %v1188_v47 = vpop.xlane.xlu1 %1187  ;;  %v5742_v22 = vrot.slane %v4400_v53, %v15795_v11  ;;  %vm21239_vm5 = vmmov %vm21237_vm0 }
 0x42f   :  { %2102 = vadd.xlane.f32.xlu0 %v2101_v9  ;;  %v2566_v9 = vmul.f32 0.0625, %v20479_v23  ;;  %v7085_v33 = vrot.slane %v4672_v32, %v15795_v11  ;;  %v2858_v45 = vpack.c.bf16 %v2585_v41, %v2584_v51  ;;  %v5826_v23 = vrot.slane %v4417_v12, %v15798_v21  ;;  %vm21240_vm6 = vmmov %vm21237_vm0 }
 0x430   :  { %v1185_v49 = vpop.xlane.xlu0 %1184  ;;  %v2313_v60 = vmul.f32 0.0625, %v1188_v47 }
 0x431   :  { %1289 = vadd.xlane.f32.xlu1 %v1288_v5  ;;  %v7001_v5 = vrot.slane %v4655_v24, %v15772_v56  ;;  %v2312_v6 = vmul.f32 0.0625, %v1185_v49  ;;  %v2849_v7 = vpack.c.bf16 %v2567_v34, %v2566_v9  ;;  %v7086_v14 = vsel %vm4784_vm10, %v7085_v33, %v7081_v46 }
 0x432   :  { %v1956_v59 = vpop.xlane.xlu1 %1955  ;;  %v4674_v62 = vunpack.c.l.b16 %v2858_v45  ;;  %v4401_v24 = vunpack.c.h.b16 %v2721_v29  ;;  %v5827_v51 = vsel %vm4791_vm11, %v5826_v23, %v5822_v61  ;;  %v4419_v49 = vunpack.c.h.b16 %v2730_v40 }
 0x433   :  { %1286 = vadd.xlane.f32.xlu0 %v1285_v44  ;;  %v7002_v8 = vsel %vm4777_vm9, %v7001_v5, %v6997_v17  ;;  %v7090_v44 = vrot.slane %v4673_v20, %v15798_v21  ;;  %v2569_v32 = vmul.f32 0.0625, %v1956_v59  ;;  %v2722_v36 = vpack.c.bf16 %v2313_v60, %v2312_v6 }
 0x434   :  { %v1953_v27 = vpop.xlane.xlu0 %1952  ;;  %v4656_v15 = vunpack.c.l.b16 %v2849_v7  ;;  %v4657_v38 = vunpack.c.h.b16 %v2849_v7  ;;  %v4675_v29 = vunpack.c.h.b16 %v2858_v45  ;;  %v7095_v59 = vrot.slane %v4674_v62, %v15850_v1 }
 0x435   :  { %2057 = vadd.xlane.f32.xlu1 %v2056_v0  ;;  %v2568_v41 = vmul.f32 0.0625, %v1953_v27  ;;  %v5831_v0 = vrot.slane %v4418_v18, %v15850_v1  ;;  %v7091_v12 = vsel %vm4791_vm11, %v7090_v44, %v7086_v14  ;;  %v5747_v34 = vrot.slane %v4401_v24, %v15798_v21 }
 0x436   :  { %v1242_v57 = vpop.xlane.xlu1 %1241  ;;  %v5743_v40 = vsel %vm4784_vm10, %v5742_v22, %v5738_v58  ;;  %v5836_v33 = vrot.slane %v4419_v49, %v15866_v54  ;;  %v4402_v27 = vunpack.c.l.b16 %v2722_v36  ;;  %v7011_v60 = vrot.slane %v4657_v38, %v15798_v21 }
 0x437   :  { %v2331_v50 = vmul.f32 0.0625, %v1242_v57  ;;  %2054 = vadd.xlane.f32.xlu0 %v2053_v39  ;;  %v2850_v9 = vpack.c.bf16 %v2569_v32, %v2568_v41  ;;  %v7006_v39 = vrot.slane %v4656_v15, %v15795_v11  ;;  %v5832_v23 = vsel %vm4798_vm12, %v5831_v0, %v5827_v51 }
 0x438   :  { %v1239_v13 = vpop.xlane.xlu0 %1238  ;;  %v7096_v6 = vsel %vm4798_vm12, %v7095_v59, %v7091_v12  ;;  %v7100_v57 = vrot.slane %v4675_v29, %v15866_v54  ;;  %v5837_v44 = vsel %vm4805_vm13, %v5836_v33, %v5832_v23  ;;  %v4403_v62 = vunpack.c.h.b16 %v2722_v36 }
 0x439   :  { %v2330_v47 = vmul.f32 0.0625, %v1239_v13  ;;  %v4658_v7 = vunpack.c.l.b16 %v2850_v9  ;;  %v5752_v13 = vrot.slane %v4402_v27, %v15850_v1  ;;  %v7007_v49 = vsel %vm4784_vm10, %v7006_v39, %v7002_v8 }
 0x43a   :  { %v2010_v25 = vpop.xlane.xlu1 %2009  ;;  %v4659_v15 = vunpack.c.h.b16 %v2850_v9  ;;  %v5748_v29 = vsel %vm4791_vm11, %v5747_v34, %v5743_v40  ;;  %v5757_v59 = vrot.slane %v4403_v62, %v15866_v54 }
 0x43b   :  { %v2731_v26 = vpack.c.bf16 %v2331_v50, %v2330_v47  ;;  %v2587_v3 = vmul.f32 0.0625, %v2010_v25  ;;  %v7101_v25 = vsel %vm4805_vm13, %v7100_v57, %v7096_v6  ;;  %v7016_v36 = vrot.slane %v4658_v7, %v15850_v1 }
 0x43c   :  { %v2007_v19 = vpop.xlane.xlu0 %2006 }
 0x43d   :  { %v4420_v5 = vunpack.c.l.b16 %v2731_v26  ;;  %v2586_v20 = vmul.f32 0.0625, %v2007_v19  ;;  %v4421_v46 = vunpack.c.h.b16 %v2731_v26 }
 0x43e   :  { %v1194_v17 = vpop.xlane.xlu1 %1193 }
 0x43f   :  { %v2859_v45 = vpack.c.bf16 %v2587_v3, %v2586_v20  ;;  %v2315_v53 = vmul.f32 0.0625, %v1194_v17  ;;  %v5841_v61 = vrot.slane %v4420_v5, %v15911_v63  ;;  %v5846_v24 = vrot.slane %v4421_v46, %v21166_v31 }
 0x440   :  { %v1191_v58 = vpop.xlane.xlu0 %1190  ;;  %v5753_v20 = vsel %vm4798_vm12, %v5752_v13, %v5748_v29  ;;  %v7012_v46 = vsel %vm4791_vm11, %v7011_v60, %v7007_v49  ;;  %v7021_v17 = vrot.slane %v4659_v15, %v15866_v54  ;;  %v3781_v49 = vld [vmem:[#allocation3 + $0x1c48] sm:$0xff] }
 0x441   :  { %v4676_v18 = vunpack.c.l.b16 %v2859_v45  ;;  %v4677_v50 = vunpack.c.h.b16 %v2859_v45  ;;  %v2314_v14 = vmul.f32 0.0625, %v1191_v58  ;;  %v5842_v0 = vsel %vm4812_vm14, %v5841_v61, %v5837_v44 }
 0x442   :  { %v1962_v32 = vpop.xlane.xlu1 %1961  ;;  %v5847_v27 = vsel %vm4819_vm15, %v5846_v24, %v5842_v0  ;;  %v7017_v40 = vsel %vm4798_vm12, %v7016_v36, %v7012_v46  ;;  %v5758_v57 = vsel %vm4805_vm13, %v5757_v59, %v5753_v20  ;;  %v20597_v36 = vld [vmem:[#allocation3 + $0x10] sm:$0xff]  ;;  %v3788_v46 = vld [vmem:[#allocation3 + $0x1c80] sm:$0xff] }
 0x443   :  { %v7105_v41 = vrot.slane %v4676_v18, %v15911_v63  ;;  %v7110_v47 = vrot.slane %v4677_v50, %v21166_v31  ;;  %v2723_v51 = vpack.c.bf16 %v2315_v53, %v2314_v14  ;;  %v2571_v22 = vmul.f32 0.0625, %v1962_v32 }
 0x444   :  { %v1959_v26 = vpop.xlane.xlu0 %1958  ;;  %v7022_v44 = vsel %vm4805_vm13, %v7021_v17, %v7017_v40  ;;  %v3789_v40 = vld [vmem:[#allocation3 + $0x1c88] sm:$0xff] }
 0x445   :  { %v7106_v3 = vsel %vm4812_vm14, %v7105_v41, %v7101_v25  ;;  %v4404_v12 = vunpack.c.l.b16 %v2723_v51  ;;  %v2570_v38 = vmul.f32 0.0625, %v1959_v26  ;;  %v4405_v19 = vunpack.c.h.b16 %v2723_v51  ;;  %v3780_v41 = vld [vmem:[#allocation3 + $0x1c40] sm:$0xff]  ;;  %v3785_v25 = vld [vmem:[#allocation3 + $0x1c68] sm:$0xff] }
 0x446   :  { %v1296_v5 = vpop.xlane.xlu1 %1295  ;;  %v7111_v8 = vsel %vm4819_vm15, %v7110_v47, %v7106_v3  ;;  %v20599_v3 = vld [vmem:[#allocation3 + $0x30] sm:$0xff] }
 0x447   :  { %v2851_v9 = vpack.c.bf16 %v2571_v22, %v2570_v38  ;;  %v2349_v33 = vmul.f32 0.0625, %v1296_v5  ;;  %v5762_v39 = vrot.slane %v4404_v12, %v15911_v63  ;;  %v7284_v34 = vsel %vm7270_vm8, %v7111_v8, %v5847_v27  ;;  %v3784_v22 = vld [vmem:[#allocation3 + $0x1c60] sm:$0xff]  ;;  %v20601_v12 = vld [vmem:[#allocation3 + $0x18] sm:$0xff] }
 0x448   :  { %v1293_v23 = vpop.xlane.xlu0 %1292  ;;  %v5767_v61 = vrot.slane %v4405_v19, %v21166_v31  ;;  %v20584_v58 = vpack.c.b16 %v7284_v34, %v7284_v34  ;;  %v13848_v59 = vcombine.low %v20597_v36, %v20599_v3  ;;  %v20606_v19 = vld [vmem:[#allocation3 + $0x38] sm:$0xff]  ;;  %v14742_v8 = vcombine.low %v20381_v43, %v20383_v2  ;;  %v3792_v34 = vld [vmem:[#allocation3 + $0x1ca0] sm:$0xff] }
 0x449   :  { %v4660_v45 = vunpack.c.l.b16 %v2851_v9  ;;  %v4661_v53 = vunpack.c.h.b16 %v2851_v9  ;;  %v2348_v6 = vmul.f32 0.0625, %v1293_v23  ;;  %v5763_v62 = vsel %vm4812_vm14, %v5762_v39, %v5758_v57 }
 0x44a   :  { %v2064_v7 = vpop.xlane.xlu1 %2063  ;;  %12717 = vmatprep.mubr.bf16.mxu0 %v20584_v58  ;;  %13045 = vmatprep.mubr.bf16.mxu1 %v20584_v58  ;;  %v5768_v26 = vsel %vm4819_vm15, %v5767_v61, %v5763_v62  ;;  %v14751_v27 = vcombine.high %v3781_v49, %v3785_v25  ;;  %v13850_v17 = vcombine.low %v20601_v12, %v20606_v19  ;;  %v3800_v62 = vld [vmem:[#allocation3 + $0x1ce0] sm:$0xff] }
 0x44b   :  { %v7026_v60 = vrot.slane %v4660_v45, %v15911_v63  ;;  %v7031_v18 = vrot.slane %v4661_v53, %v21166_v31  ;;  %v2740_v50 = vpack.c.bf16 %v2349_v33, %v2348_v6  ;;  %v2605_v14 = vmul.f32 0.0625, %v2064_v7  ;;  %v3793_v45 = vld [vmem:[#allocation3 + $0x1ca8] sm:$0xff] }
 0x44c   :  { %v2061_v13 = vpop.xlane.xlu0 %2060  ;;  %v14749_v33 = vcombine.high %v3780_v41, %v3784_v22  ;;  %v21236_v57 = vcombine.low %v20377_v10, %v20379_v48  ;;  %v14748_v61 = vcombine.low %v3780_v41, %v3784_v22  ;;  %v14750_v7 = vcombine.low %v3781_v49, %v3785_v25 }
 0x44d   :  { %v7027_v24 = vsel %vm4812_vm14, %v7026_v60, %v7022_v44  ;;  %v2604_v32 = vmul.f32 0.0625, %v2061_v13  ;;  %v4438_v53 = vunpack.c.l.b16 %v2740_v50  ;;  %v4439_v6 = vunpack.c.h.b16 %v2740_v50  ;;  %v3796_v44 = vld [vmem:[#allocation3 + $0x1cc0] sm:$0xff]  ;;  %v3797_v13 = vld [vmem:[#allocation3 + $0x1cc8] sm:$0xff] }
 0x44e   :  { %v1248_v47 = vpop.xlane.xlu1 %1247  ;;  %v7032_v51 = vsel %vm4819_vm15, %v7031_v18, %v7027_v24  ;;  %v14757_v18 = vcombine.high %v3788_v46, %v3792_v34  ;;  %v3801_v24 = vld [vmem:[#allocation3 + $0x1ce8] sm:$0xff]  ;;  %v14756_v41 = vcombine.low %v3788_v46, %v3792_v34  ;;  %v14758_v22 = vcombine.low %v3789_v40, %v3793_v45 }
 0x44f   :  { %v20594_v15 = vpack.c.bf16 %v2605_v14, %v2604_v32  ;;  %v2333_v0 = vmul.f32 0.0625, %v1248_v47  ;;  %v7283_v29 = vsel %vm7270_vm8, %v7032_v51, %v5768_v26  ;;  %v14759_v14 = vcombine.high %v3789_v40, %v3793_v45 }
 0x450   :  { %v1245_v38 = vpop.xlane.xlu0 %1244  ;;  %v20610_v20 = vpack.c.b16 %v7283_v29, %v7283_v29  ;;  %v5930_v32 = vrot.slane %v4438_v53, %v21212_v4  ;;  %v5934_v47 = vrot.slane %v4439_v6, %v21213_v35  ;;  %v14765_v26 = vcombine.high %v3796_v44, %v3800_v62  ;;  %v3804_v29 = vld [vmem:[#allocation3 + $0x1d00] sm:$0xff] }
 0x451   :  { %v2332_v5 = vmul.f32 0.0625, %v1245_v38  ;;  %v14767_v38 = vcombine.high %v3797_v13, %v3801_v24  ;;  %v14764_v34 = vcombine.low %v3796_v44, %v3800_v62  ;;  %v4694_v40 = vunpack.c.l.b16 %v20594_v15 }
 0x452   :  { %v1302_v9 = vpop.xlane.xlu1 %1301  ;;  %12718 = vmatmul.mubr.bf16.vlgmr.msra.gmra.mrb[0].mxu0 %v20610_v20  ;;  %13046 = vmatmul.mubr.bf16.vlgmr.msra.gmra.mrb[0].mxu1 %v20610_v20  ;;  %v4695_v45 = vunpack.c.h.b16 %v20594_v15  ;;  %v3813_v15 = vld [vmem:[#allocation3 + $0x1d48] sm:$0xff] }
 0x453   :  { %v20614_v39 = vpack.c.bf16 %v2333_v0, %v2332_v5  ;;  %v2351_v23 = vmul.f32 0.0625, %v1302_v9  ;;  %12727 = vmatpush1.bf16.msra.mxu0 %v21236_v57  ;;  %13055 = vmatpush1.bf16.msra.mxu1 %v14742_v8  ;;  %v3808_v9 = vld [vmem:[#allocation3 + $0x1d20] sm:$0xff] }
 0x454   :  { %v1299_v43 = vpop.xlane.xlu0 %1298  ;;  %12728 = vmatprep.subr.bf16.mxu0 %v14749_v33  ;;  %13056 = vmatprep.subr.bf16.mxu1 %v14751_v27  ;;  %v3805_v33 = vld [vmem:[#allocation3 + $0x1d08] sm:$0xff]  ;;  %v20631_v57 = vld [vmem:[#allocation3 + $0x1d40] sm:$0xff] }
 0x455   :  { %v2350_v2 = vmul.f32 0.0625, %v1299_v43  ;;  %v3809_v27 = vld [vmem:[#allocation3 + $0x1d28] sm:$0xff] }
 0x456   :  { %v2016_v60 = vpop.xlane.xlu1 %2015  ;;  %v14775_v44 = vcombine.high %v3805_v33, %v3809_v27 }
 0x457   :  { %v2741_v50 = vpack.c.bf16 %v2351_v23, %v2350_v2  ;;  %v2589_v51 = vmul.f32 0.0625, %v2016_v60  ;;  %12729 = vmatpush1.bf16.msra.mxu0 %v14748_v61  ;;  %13057 = vmatpush1.bf16.msra.mxu1 %v14750_v7  ;;  %v5935_v23 = vsel %vm4721_vm1, %v5934_v47, %v5930_v32  ;;  %v14766_v2 = vcombine.low %v3797_v13, %v3801_v24  ;;  %v20633_v61 = vld [vmem:[#allocation3 + $0x1d60] sm:$0xff] }
 0x458   :  { %v2013_v0 = vpop.xlane.xlu0 %2012  ;;  %12730 = vmatprep.subr.bf16.mxu0 %v14757_v18  ;;  %13058 = vmatprep.subr.bf16.mxu1 %v14759_v14  ;;  %v14773_v14 = vcombine.high %v3804_v29, %v3808_v9  ;;  %v14772_v32 = vcombine.low %v3804_v29, %v3808_v9  ;;  %v14774_v47 = vcombine.low %v3805_v33, %v3809_v27  ;;  %v20640_v24 = vld [vmem:[#allocation3 + $0x1d80] sm:$0xff] }
 0x459   :  { %v4440_v10 = vunpack.c.l.b16 %v2741_v50  ;;  %v4441_v48 = vunpack.c.h.b16 %v2741_v50  ;;  %v2588_v49 = vmul.f32 0.0625, %v2013_v0  ;;  %v3817_v50 = vld [vmem:[#allocation3 + $0x1d68] sm:$0xff]  ;;  %v14781_v13 = vcombine.high %v20631_v57, %v20633_v61 }
 0x45a   :  { %v2070_v25 = vpop.xlane.xlu1 %2069  ;;  %v14780_v33 = vcombine.low %v20631_v57, %v20633_v61  ;;  %v14782_v27 = vcombine.low %v3813_v15, %v3817_v50  ;;  %v20664_v57 = vld [vmem:[#allocation3 + $0x1de0] sm:$0xff]  ;;  %v20666_v61 = vld [vmem:[#allocation3 + $0x1dc8] sm:$0xff] }
 0x45b   :  { %v5939_v5 = vrot.slane %v4440_v10, %v21214_v30  ;;  %v5944_v8 = vrot.slane %v4441_v48, %v21215_v16  ;;  %v20626_v53 = vpack.c.bf16 %v2589_v51, %v2588_v49  ;;  %v2607_v46 = vmul.f32 0.0625, %v2070_v25  ;;  %12731 = vmatpush1.bf16.msra.mxu0 %v14756_v41  ;;  %13059 = vmatpush1.bf16.msra.mxu1 %v14758_v22  ;;  %v20645_v41 = vld [vmem:[#allocation3 + $0x1da0] sm:$0xff]  ;;  %v20647_v22 = vld [vmem:[#allocation3 + $0x1d88] sm:$0xff] }
 0x45c   :  { %v2067_v43 = vpop.xlane.xlu0 %2066  ;;  %12732 = vmatprep.subr.bf16.mxu0 %v14765_v26  ;;  %13060 = vmatprep.subr.bf16.mxu1 %v14767_v38  ;;  %v7194_v51 = vrot.slane %v4694_v40, %v21212_v4  ;;  %v7198_v10 = vrot.slane %v4695_v45, %v21213_v35  ;;  %v4422_v48 = vunpack.c.l.b16 %v20614_v39  ;;  %v20649_v49 = vld [vmem:[#allocation3 + $0x1da8] sm:$0xff]  ;;  %v4423_v25 = vunpack.c.h.b16 %v20614_v39  ;;  %v20660_v40 = vld [vmem:[#allocation3 + $0x1dc0] sm:$0xff] }
 0x45d   :  { %v5940_v6 = vsel %vm4728_vm2, %v5939_v5, %v5935_v23  ;;  %v2606_v60 = vmul.f32 0.0625, %v2067_v43  ;;  %v14791_v39 = vcombine.high %v20647_v22, %v20649_v49 }
 0x45e   :  { %v20636_v7 = vsel %vm21237_vm0, %v5944_v8, %v5940_v6  ;;  %v1254_v18 = vpop.xlane.xlu1 %1253  ;;  %v14783_v8 = vcombine.high %v3813_v15, %v3817_v50  ;;  %v7199_v45 = vsel %vm4721_vm1, %v7198_v10, %v7194_v51  ;;  %v5851_v6 = vrot.slane %v4422_v48, %v21212_v4 }
 0x45f   :  { %v2869_v62 = vpack.c.bf16 %v2607_v46, %v2606_v60  ;;  %v2335_v0 = vmul.f32 0.0625, %v1254_v18  ;;  %12733 = vmatpush1.bf16.msra.mxu0 %v14764_v34  ;;  %13061 = vmatpush1.bf16.msra.mxu1 %v14766_v2  ;;  %v14789_v34 = vcombine.high %v20640_v24, %v20645_v41  ;;  %v20668_v60 = vld [vmem:[#allocation3 + $0x1de8] sm:$0xff]  ;;  %v5855_v18 = vrot.slane %v4423_v25, %v21213_v35 }
 0x460   :  { %v1251_v29 = vpop.xlane.xlu0 %1250  ;;  %12734 = vmatprep.subr.bf16.mxu0 %v14773_v14  ;;  %13062 = vmatprep.subr.bf16.mxu1 %v14775_v44  ;;  %v4678_v14 = vunpack.c.l.b16 %v20626_v53  ;;  %v4679_v44 = vunpack.c.h.b16 %v20626_v53  ;;  %v14788_v48 = vcombine.low %v20640_v24, %v20645_v41  ;;  %v14797_v53 = vcombine.high %v20660_v40, %v20664_v57 }
 0x461   :  { %v4696_v26 = vunpack.c.l.b16 %v2869_v62  ;;  %v4697_v38 = vunpack.c.h.b16 %v2869_v62  ;;  %v2334_v9 = vmul.f32 0.0625, %v1251_v29  ;;  %v14799_v25 = vcombine.high %v20666_v61, %v20668_v60 }
 0x462   :  { %v2022_v5 = vpop.xlane.xlu1 %2021  ;;  %v7115_v24 = vrot.slane %v4678_v14, %v21212_v4  ;;  %v7119_v41 = vrot.slane %v4679_v44, %v21213_v35  ;;  %v14796_v4 = vcombine.low %v20660_v40, %v20664_v57  ;;  %v14798_v35 = vcombine.low %v20666_v61, %v20668_v60  ;;  %v3844_v40 = vld [vmem:[#allocation3 + $0x1e40] sm:$0xff] }
 0x463   :  { %v7203_v23 = vrot.slane %v4696_v26, %v21214_v30  ;;  %v7208_v46 = vrot.slane %v4697_v38, %v21215_v16  ;;  %v2733_v43 = vpack.c.bf16 %v2335_v0, %v2334_v9  ;;  %v2591_v2 = vmul.f32 0.0625, %v2022_v5  ;;  %12735 = vmatpush1.bf16.msra.mxu0 %v14772_v32  ;;  %13063 = vmatpush1.bf16.msra.mxu1 %v14774_v47 }
 0x464   :  { %v2019_v50 = vpop.xlane.xlu0 %2018  ;;  %12736 = vmatprep.subr.bf16.mxu0 %v14781_v13  ;;  %13064 = vmatprep.subr.bf16.mxu1 %v14783_v8  ;;  %v14790_v0 = vcombine.low %v20647_v22, %v20649_v49  ;;  %v5856_v5 = vsel %vm4721_vm1, %v5855_v18, %v5851_v6  ;;  %v3836_v8 = vld [vmem:[#allocation3 + $0x1e00] sm:$0xff]  ;;  %v7120_v14 = vsel %vm4721_vm1, %v7119_v41, %v7115_v24  ;;  %vm21241_vm1 = vcmask 326912  }
 0x465   :  { %v7204_v15 = vsel %vm4728_vm2, %v7203_v23, %v7199_v45  ;;  %v4424_v47 = vunpack.c.l.b16 %v2733_v43  ;;  %v4425_v51 = vunpack.c.h.b16 %v2733_v43  ;;  %v2590_v10 = vmul.f32 0.0625, %v2019_v50  ;;  %v3840_v43 = vld [vmem:[#allocation3 + $0x1e20] sm:$0xff]  ;;  %vm21243_vm3 = vmmov %vm21241_vm1 }
 0x466   :  { %v1308_v62 = vpop.xlane.xlu1 %1307  ;;  %v20675_v32 = vsel %vm21238_vm7, %v7208_v46, %v7204_v15  ;;  %v14805_v50 = vcombine.high %v3836_v8, %v3840_v43  ;;  %v3852_v41 = vld [vmem:[#allocation3 + $0x1e80] sm:$0xff]  ;;  %vm21245_vm0 = vmmov %vm21241_vm1 }
 0x467   :  { %v5860_v13 = vrot.slane %v4424_v47, %v21214_v30  ;;  %v5865_v26 = vrot.slane %v4425_v51, %v21215_v16  ;;  %v2861_v38 = vpack.c.bf16 %v2591_v2, %v2590_v10  ;;  %v2353_v29 = vmul.f32 0.0625, %v1308_v62  ;;  %12737 = vmatpush1.bf16.msra.mxu0 %v14780_v33  ;;  %13065 = vmatpush1.bf16.msra.mxu1 %v14782_v27  ;;  %v3837_v2 = vld [vmem:[#allocation3 + $0x1e08] sm:$0xff]  ;;  %v3848_v47 = vld [vmem:[#allocation3 + $0x1e60] sm:$0xff] }
 0x468   :  { %v1305_v22 = vpop.xlane.xlu0 %1304  ;;  %12738 = vmatprep.subr.bf16.mxu0 %v14789_v34  ;;  %13066 = vmatprep.subr.bf16.mxu1 %v14791_v39  ;;  %v3841_v33 = vld [vmem:[#allocation3 + $0x1e28] sm:$0xff] }
 0x469   :  { %v5861_v9 = vsel %vm4728_vm2, %v5860_v13, %v5856_v5  ;;  %v4680_v23 = vunpack.c.l.b16 %v2861_v38  ;;  %v4681_v46 = vunpack.c.h.b16 %v2861_v38  ;;  %v2352_v45 = vmul.f32 0.0625, %v1305_v22  ;;  %v3849_v51 = vld [vmem:[#allocation3 + $0x1e68] sm:$0xff] }
 0x46a   :  { %v2076_v49 = vpop.xlane.xlu1 %2075  ;;  %v20692_v27 = vsel %vm21239_vm5, %v5865_v26, %v5861_v9  ;;  %v14807_v62 = vcombine.high %v3837_v2, %v3841_v33  ;;  %v14813_v5 = vcombine.high %v3844_v40, %v3848_v47  ;;  %vm21247_vm5 = vmmov %vm21245_vm0 }
 0x46b   :  { %v7124_v34 = vrot.slane %v4680_v23, %v21214_v30  ;;  %v7129_v39 = vrot.slane %v4681_v46, %v21215_v16  ;;  %v2742_v6 = vpack.c.bf16 %v2353_v29, %v2352_v45  ;;  %v2609_v18 = vmul.f32 0.0625, %v2076_v49  ;;  %12739 = vmatpush1.bf16.msra.mxu0 %v14788_v48  ;;  %13067 = vmatpush1.bf16.msra.mxu1 %v14790_v0  ;;  %v3845_v16 = vld [vmem:[#allocation3 + $0x1e48] sm:$0xff]  ;;  %v3856_v23 = vld [vmem:[#allocation3 + $0x1ea0] sm:$0xff] }
 0x46c   :  { %v2073_v44 = vpop.xlane.xlu0 %2072  ;;  %12740 = vmatprep.subr.bf16.mxu0 %v14797_v53  ;;  %13068 = vmatprep.subr.bf16.mxu1 %v14799_v25  ;;  %v14804_v48 = vcombine.low %v3836_v8, %v3840_v43  ;;  %v14806_v0 = vcombine.low %v3837_v2, %v3841_v33  ;;  %v14815_v24 = vcombine.high %v3845_v16, %v3849_v51  ;;  %v3853_v46 = vld [vmem:[#allocation3 + $0x1e88] sm:$0xff] }
 0x46d   :  { %v7125_v57 = vsel %vm4728_vm2, %v7124_v34, %v7120_v14  ;;  %v4442_v61 = vunpack.c.l.b16 %v2742_v6  ;;  %v4443_v60 = vunpack.c.h.b16 %v2742_v6  ;;  %v2608_v30 = vmul.f32 0.0625, %v2073_v44  ;;  %v3857_v45 = vld [vmem:[#allocation3 + $0x1ea8] sm:$0xff]  ;;  %v3860_v44 = vld [vmem:[#allocation3 + $0x1ec0] sm:$0xff] }
 0x46e   :  { %v1260_v15 = vpop.xlane.xlu1 %1259  ;;  %v20703_v10 = vsel %vm21240_vm6, %v7129_v39, %v7125_v57  ;;  %vm21242_vm2 = vcmask 392512   ;;  %v14812_v2 = vcombine.low %v3844_v40, %v3848_v47  ;;  %v14814_v33 = vcombine.low %v3845_v16, %v3849_v51  ;;  %v3864_v57 = vld [vmem:[#allocation3 + $0x1ee0] sm:$0xff] }
 0x46f   :  { %v5949_v13 = vrot.slane %v4442_v61, %v21220_v28  ;;  %v5954_v53 = vrot.slane %v4443_v60, %v21221_v37  ;;  %v2870_v25 = vpack.c.bf16 %v2609_v18, %v2608_v30  ;;  %v2337_v26 = vmul.f32 0.0625, %v1260_v15  ;;  %12741 = vmatpush1.bf16.msra.mxu0 %v14796_v4  ;;  %13069 = vmatpush1.bf16.msra.mxu1 %v14798_v35  ;;  %v3861_v61 = vld [vmem:[#allocation3 + $0x1ec8] sm:$0xff]  ;;  %vm21244_vm4 = vmmov %vm21242_vm2 }
 0x470   :  { %v1257_v38 = vpop.xlane.xlu0 %1256  ;;  %12742 = vmatprep.subr.bf16.mxu0 %v14805_v50  ;;  %13070 = vmatprep.subr.bf16.mxu1 %v14807_v62  ;;  %v14821_v18 = vcombine.high %v3852_v41, %v3856_v23  ;;  %v14823_v14 = vcombine.high %v3853_v46, %v3857_v45  ;;  %v3865_v60 = vld [vmem:[#allocation3 + $0x1ee8] sm:$0xff]  ;;  %v14820_v47 = vcombine.low %v3852_v41, %v3856_v23  ;;  %vm21246_vm7 = vmmov %vm21242_vm2 }
 0x471   :  { %v5950_v22 = vsel %vm21241_vm1, %v5949_v13, %v20636_v7  ;;  %v4698_v49 = vunpack.c.l.b16 %v2870_v25  ;;  %v4699_v8 = vunpack.c.h.b16 %v2870_v25  ;;  %v2336_v9 = vmul.f32 0.0625, %v1257_v38  ;;  %v3869_v41 = vld [vmem:[#allocation3 + $0x1f08] sm:$0xff]  ;;  %vm21248_vm6 = vmmov %vm21242_vm2 }
 0x472   :  { %v2028_v29 = vpop.xlane.xlu1 %2027  ;;  %v20710_v43 = vsel %vm21242_vm2, %v5954_v53, %v5950_v22  ;;  %v14822_v16 = vcombine.low %v3853_v46, %v3857_v45  ;;  %v14829_v53 = vcombine.high %v3860_v44, %v3864_v57  ;;  %v14831_v25 = vcombine.high %v3861_v61, %v3865_v60  ;;  %v3873_v22 = vld [vmem:[#allocation3 + $0x1f28] sm:$0xff] }
 0x473   :  { %v7213_v4 = vrot.slane %v4698_v49, %v21220_v28  ;;  %v7218_v35 = vrot.slane %v4699_v8, %v21221_v37  ;;  %v2734_v34 = vpack.c.bf16 %v2337_v26, %v2336_v9  ;;  %v2593_v39 = vmul.f32 0.0625, %v2028_v29  ;;  %12743 = vmatpush1.bf16.msra.mxu0 %v14804_v48  ;;  %13071 = vmatpush1.bf16.msra.mxu1 %v14806_v0  ;;  %v3868_v26 = vld [vmem:[#allocation3 + $0x1f00] sm:$0xff] }
 0x474   :  { %v2025_v7 = vpop.xlane.xlu0 %2024  ;;  %12744 = vmatprep.subr.bf16.mxu0 %v14813_v5  ;;  %13072 = vmatprep.subr.bf16.mxu1 %v14815_v24  ;;  %v3872_v24 = vld [vmem:[#allocation3 + $0x1f20] sm:$0xff]  ;;  %v14828_v8 = vcombine.low %v3860_v44, %v3864_v57  ;;  %v14830_v46 = vcombine.low %v3861_v61, %v3865_v60  ;;  %v3889_v57 = vld [vmem:[#allocation3 + $0x1fa8] sm:$0xff]  ;;  %vm21249_vm1 = vcmask 458112   ;;  %vm21250_vm2 = vcmask 523712  }
 0x475   :  { %v7214_v15 = vsel %vm21243_vm3, %v7213_v4, %v20675_v32  ;;  %v4426_v50 = vunpack.c.l.b16 %v2734_v34  ;;  %v4427_v62 = vunpack.c.h.b16 %v2734_v34  ;;  %v2592_v40 = vmul.f32 0.0625, %v2025_v7  ;;  %v3876_v4 = vld [vmem:[#allocation3 + $0x1f40] sm:$0xff]  ;;  %vm21251_vm3 = vmmov %vm21249_vm1 }
 0x476   :  { %v20714_v6 = vpop.xlane.xlu1 %1313  ;;  %v20719_v30 = vsel %vm21244_vm4, %v7218_v35, %v7214_v15  ;;  %v3880_v34 = vld [vmem:[#allocation3 + $0x1f60] sm:$0xff]  ;;  %v14836_v7 = vcombine.low %v3868_v26, %v3872_v24  ;;  %vm21252_vm4 = vmmov %vm21249_vm1 }
 0x477   :  { %v5870_v51 = vrot.slane %v4426_v50, %v21220_v28  ;;  %v5875_v48 = vrot.slane %v4427_v62, %v21221_v37  ;;  %v2862_v0 = vpack.c.bf16 %v2593_v39, %v2592_v40  ;;  %12745 = vmatpush1.bf16.msra.mxu0 %v14812_v2  ;;  %13073 = vmatpush1.bf16.msra.mxu1 %v14814_v33  ;;  %v3877_v39 = vld [vmem:[#allocation3 + $0x1f48] sm:$0xff]  ;;  %v3884_v62 = vld [vmem:[#allocation3 + $0x1f80] sm:$0xff] }
 0x478   :  { %v20723_v13 = vpop.xlane.xlu0 %1310  ;;  %12746 = vmatprep.subr.bf16.mxu0 %v14821_v18  ;;  %13074 = vmatprep.subr.bf16.mxu1 %v14823_v14  ;;  %v14839_v33 = vcombine.high %v3869_v41, %v3873_v22  ;;  %v14838_v18 = vcombine.low %v3869_v41, %v3873_v22  ;;  %v14845_v15 = vcombine.high %v3876_v4, %v3880_v34  ;;  %v3888_v40 = vld [vmem:[#allocation3 + $0x1fa0] sm:$0xff] }
 0x479   :  { %v5871_v38 = vsel %vm21245_vm0, %v5870_v51, %v20692_v27  ;;  %v4682_v29 = vunpack.c.l.b16 %v2862_v0  ;;  %v4683_v5 = vunpack.c.h.b16 %v2862_v0  ;;  %v14837_v27 = vcombine.high %v3868_v26, %v3872_v24  ;;  %v3892_v0 = vld [vmem:[#allocation3 + $0x1fc0] sm:$0xff]  ;;  %v3897_v26 = vld [vmem:[#allocation3 + $0x1fe8] sm:$0xff]  ;;  %vm21253_vm0 = vmmov %vm21250_vm2 }
 0x47a   :  { %v20725_v32 = vpop.xlane.xlu1 %2081  ;;  %v20730_v49 = vsel %vm21246_vm7, %v5875_v48, %v5871_v38  ;;  %v14844_v61 = vcombine.low %v3876_v4, %v3880_v34  ;;  %v14853_v51 = vcombine.high %v3884_v62, %v3888_v40  ;;  %v14852_v38 = vcombine.low %v3884_v62, %v3888_v40  ;;  %vm21254_vm7 = vmmov %vm21253_vm0 }
 0x47b   :  { %v7134_v9 = vrot.slane %v4682_v29, %v21220_v28  ;;  %v7139_v23 = vrot.slane %v4683_v5, %v21221_v37  ;;  %12747 = vmatpush1.bf16.msra.mxu0 %v14820_v47  ;;  %13075 = vmatpush1.bf16.msra.mxu1 %v14822_v16  ;;  %v3881_v28 = vld [vmem:[#allocation3 + $0x1f68] sm:$0xff]  ;;  %v2355_v34 = vmul.f32 0.0625, %v20714_v6 }
 0x47c   :  { %v20734_v45 = vpop.xlane.xlu0 %2078  ;;  %12748 = vmatprep.subr.bf16.mxu0 %v14829_v53  ;;  %13076 = vmatprep.subr.bf16.mxu1 %v14831_v25  ;;  %v14847_v50 = vcombine.high %v3877_v39, %v3881_v28  ;;  %v14846_v60 = vcombine.low %v3877_v39, %v3881_v28  ;;  %v3896_v53 = vld [vmem:[#allocation3 + $0x1fe0] sm:$0xff]  ;;  %v3893_v25 = vld [vmem:[#allocation3 + $0x1fc8] sm:$0xff]  ;;  %v2354_v39 = vmul.f32 0.0625, %v20723_v13 }
 0x47d   :  { %v7135_v35 = vsel %vm21247_vm5, %v7134_v9, %v20703_v10  ;;  %v3885_v10 = vld [vmem:[#allocation3 + $0x1f88] sm:$0xff]  ;;  %v14861_v41 = vcombine.high %v3892_v0, %v3896_v53  ;;  %v14863_v22 = vcombine.high %v3893_v25, %v3897_v26  ;;  %v14862_v9 = vcombine.low %v3893_v25, %v3897_v26  ;;  %vm21255_vm5 = vmmov %vm21249_vm1 }
 0x47e   :  { %v20736_v2 = vpop.xlane.xlu1 %1265  ;;  %v20741_v37 = vsel %vm21248_vm6, %v7139_v23, %v7135_v35  ;;  %v14855_v48 = vcombine.high %v3885_v10, %v3889_v57  ;;  %v14854_v29 = vcombine.low %v3885_v10, %v3889_v57  ;;  %vm21256_vm6 = vcmask 589312  }
 0x47f   :  { %12749 = vmatpush1.bf16.msra.mxu0 %v14828_v8  ;;  %13077 = vmatpush1.bf16.msra.mxu1 %v14830_v46  ;;  %v14860_v8 = vcombine.low %v3892_v0, %v3896_v53  ;;  %v2339_v10 = vmul.f32 0.0625, %v20736_v2 }
 0x480   :  { %v1263_v14 = vpop.xlane.xlu0 %1262  ;;  %12750 = vmatprep.subr.bf16.mxu0 %v14837_v27  ;;  %13078 = vmatprep.subr.bf16.mxu1 %v14839_v33  ;;  %v13849_v27 = vcombine.high %v20597_v36, %v20599_v3  ;;  %v13851_v33 = vcombine.high %v20601_v12, %v20606_v19  ;;  %v2910_v19 = vld [vmem:[#allocation3 + $0x110] sm:$0xff] }
 0x481   :  { %v2338_v57 = vmul.f32 0.0625, %v1263_v14 }
 0x482   :  { %v20743_v44 = vpop.xlane.xlu1 %2033 }
 0x483   :  { %12751 = vmatpush1.bf16.msra.mxu0 %v14836_v7  ;;  %13079 = vmatpush1.bf16.msra.mxu1 %v14838_v18  ;;  %v2743_v18 = vpack.c.bf16 %v2355_v34, %v2354_v39  ;;  %v2735_v0 = vpack.c.bf16 %v2339_v10, %v2338_v57  ;;  %v2595_v6 = vmul.f32 0.0625, %v20743_v44 }
 0x484   :  { %v2031_v47 = vpop.xlane.xlu0 %2030  ;;  %12752 = vmatprep.subr.bf16.mxu0 %v14845_v15  ;;  %13080 = vmatprep.subr.bf16.mxu1 %v14847_v50  ;;  %v2611_v15 = vmul.f32 0.0625, %v20725_v32  ;;  %v2610_v50 = vmul.f32 0.0625, %v20734_v45 }
 0x485   :  { %v2594_v13 = vmul.f32 0.0625, %v2031_v47  ;;  %v4445_v26 = vunpack.c.h.b16 %v2743_v18  ;;  %v4428_v2 = vunpack.c.l.b16 %v2735_v0 }
 0x486   :  { %v1320_v16 = vpop.xlane.xlu1 %1319 }
 0x487   :  { %12753 = vmatpush1.bf16.msra.mxu0 %v14844_v61  ;;  %13081 = vmatpush1.bf16.msra.mxu1 %v14846_v60  ;;  %v4444_v61 = vunpack.c.l.b16 %v2743_v18  ;;  %v2871_v60 = vpack.c.bf16 %v2611_v15, %v2610_v50  ;;  %v2357_v53 = vmul.f32 0.0625, %v1320_v16  ;;  %v2863_v14 = vpack.c.bf16 %v2595_v6, %v2594_v13 }
 0x488   :  { %v1317_v5 = vpop.xlane.xlu0 %1316  ;;  %12754 = vmatprep.subr.bf16.mxu0 %v14853_v51  ;;  %13082 = vmatprep.subr.bf16.mxu1 %v14855_v48  ;;  %v5880_v39 = vrot.slane %v4428_v2, %v15755_v42 }
 0x489   :  { %v2356_v25 = vmul.f32 0.0625, %v1317_v5  ;;  %v5959_v32 = vrot.slane %v4444_v61, %v15755_v42  ;;  %v4701_v44 = vunpack.c.h.b16 %v2871_v60  ;;  %v4429_v5 = vunpack.c.h.b16 %v2735_v0 }
 0x48a   :  { %v2088_v24 = vpop.xlane.xlu1 %2087  ;;  %v4684_v18 = vunpack.c.l.b16 %v2863_v14  ;;  %v4685_v6 = vunpack.c.h.b16 %v2863_v14 }
 0x48b   :  { %12755 = vmatpush1.bf16.msra.mxu0 %v14852_v38  ;;  %13083 = vmatpush1.bf16.msra.mxu1 %v14854_v29  ;;  %v4700_v38 = vunpack.c.l.b16 %v2871_v60  ;;  %v2613_v45 = vmul.f32 0.0625, %v2088_v24  ;;  %v5960_v47 = vsel %vm21249_vm1, %v5959_v32, %v20710_v43  ;;  %v7228_v57 = vrot.slane %v4701_v44, %v15766_v52  ;;  %vm21257_vm1 = vmmov %vm21256_vm6 }
 0x48c   :  { %v2085_v23 = vpop.xlane.xlu0 %2084  ;;  %12756 = vmatprep.subr.bf16.mxu0 %v14861_v41  ;;  %13084 = vmatprep.subr.bf16.mxu1 %v14863_v22  ;;  %v5885_v0 = vrot.slane %v4429_v5, %v15766_v52 }
 0x48d   :  { %v2612_v29 = vmul.f32 0.0625, %v2085_v23  ;;  %v7223_v16 = vrot.slane %v4700_v38, %v15755_v42 }
 0x48e   :  { %v1272_v46 = vpop.xlane.xlu1 %1271 }
 0x48f   :  { %12757 = vmatpush1.bf16.msra.mxu0 %v14860_v8  ;;  %13085 = vmatpush1.bf16.msra.mxu1 %v14862_v9  ;;  %v2744_v8 = vpack.c.bf16 %v2357_v53, %v2356_v25  ;;  %v2341_v9 = vmul.f32 0.0625, %v1272_v46  ;;  %v2872_v34 = vpack.c.bf16 %v2613_v45, %v2612_v29  ;;  %v7224_v60 = vsel %vm21251_vm3, %v7223_v16, %v20719_v30  ;;  %vm21259_vm3 = vmmov %vm21257_vm1 }
 0x490   :  { %v1269_v4 = vpop.xlane.xlu0 %1268  ;;  %13095 = vmatprep.subr.bf16.mxu0 %v13849_v27  ;;  %13423 = vmatprep.subr.bf16.mxu1 %v13851_v33  ;;  %v5964_v33 = vrot.slane %v4445_v26, %v15766_v52  ;;  %v7229_v14 = vsel %vm21253_vm0, %v7228_v57, %v7224_v60 }
 0x491   :  { %v2340_v27 = vmul.f32 0.0625, %v1269_v4  ;;  %v4446_v46 = vunpack.c.l.b16 %v2744_v8  ;;  %v4702_v13 = vunpack.c.l.b16 %v2872_v34  ;;  %v4447_v26 = vunpack.c.h.b16 %v2744_v8 }
 0x492   :  { %v2040_v35 = vpop.xlane.xlu1 %2039  ;;  %v5965_v10 = vsel %vm21250_vm2, %v5964_v33, %v5960_v47  ;;  %v4703_v29 = vunpack.c.h.b16 %v2872_v34  ;;  %v7149_v33 = vrot.slane %v4685_v6, %v15766_v52  ;;  %vm21258_vm2 = vmmov %vm21253_vm0 }
 0x493   :  { %v2597_v15 = vmul.f32 0.0625, %v2040_v35  ;;  %v2736_v4 = vpack.c.bf16 %v2341_v9, %v2340_v27  ;;  %v5881_v35 = vsel %vm21252_vm4, %v5880_v39, %v20730_v49  ;;  %v5969_v38 = vrot.slane %v4446_v46, %v15769_v55  ;;  %vm21260_vm4 = vmmov %vm21257_vm1 }
 0x494   :  { %v2037_v28 = vpop.xlane.xlu0 %2036  ;;  %v5886_v27 = vsel %vm21254_vm7, %v5885_v0, %v5881_v35  ;;  %v7233_v49 = vrot.slane %v4702_v13, %v15769_v55  ;;  %v7238_v52 = vrot.slane %v4703_v29, %v15772_v56 }
 0x495   :  { %v2596_v50 = vmul.f32 0.0625, %v2037_v28  ;;  %v7144_v28 = vrot.slane %v4684_v18, %v15755_v42  ;;  %v4431_v44 = vunpack.c.h.b16 %v2736_v4  ;;  %v5970_v34 = vsel %vm21256_vm6, %v5969_v38, %v5965_v10 }
 0x496   :  { %v1326_v7 = vpop.xlane.xlu1 %1325 }
 0x497   :  { %v2359_v61 = vmul.f32 0.0625, %v1326_v7  ;;  %v2864_v32 = vpack.c.bf16 %v2597_v15, %v2596_v50  ;;  %v4430_v7 = vunpack.c.l.b16 %v2736_v4  ;;  %v7234_v15 = vsel %vm21257_vm1, %v7233_v49, %v7229_v14 }
 0x498   :  { %v1323_v62 = vpop.xlane.xlu0 %1322 }
 0x499   :  { %v2358_v43 = vmul.f32 0.0625, %v1323_v62  ;;  %v4686_v47 = vunpack.c.l.b16 %v2864_v32  ;;  %v4687_v50 = vunpack.c.h.b16 %v2864_v32 }
 0x49a   :  { %v2094_v40 = vpop.xlane.xlu1 %2093 }
 0x49b   :  { %v2615_v62 = vmul.f32 0.0625, %v2094_v40  ;;  %v2745_v30 = vpack.c.bf16 %v2359_v61, %v2358_v43  ;;  %v7145_v40 = vsel %vm21255_vm5, %v7144_v28, %v20741_v37  ;;  %v5895_v37 = vrot.slane %v4431_v44, %v15772_v56 }
 0x49c   :  { %v2091_v51 = vpop.xlane.xlu0 %2090  ;;  %v7154_v61 = vrot.slane %v4686_v47, %v15769_v55  ;;  %v7150_v0 = vsel %vm21258_vm2, %v7149_v33, %v7145_v40  ;;  %v7159_v28 = vrot.slane %v4687_v50, %v15772_v56 }
 0x49d   :  { %v2614_v45 = vmul.f32 0.0625, %v2091_v51  ;;  %v5974_v51 = vrot.slane %v4447_v26, %v15772_v56  ;;  %v4448_v39 = vunpack.c.l.b16 %v2745_v30  ;;  %v4449_v43 = vunpack.c.h.b16 %v2745_v30 }
 0x49e   :  { %v1278_v48 = vpop.xlane.xlu1 %1277 }
 0x49f   :  { %v2343_v2 = vmul.f32 0.0625, %v1278_v48  ;;  %v5890_v48 = vrot.slane %v4430_v7, %v15769_v55  ;;  %v5975_v13 = vsel %vm4777_vm9, %v5974_v51, %v5970_v34  ;;  %v5984_v29 = vrot.slane %v4449_v43, %v15798_v21 }
 0x4a0   :  { %v1275_v41 = vpop.xlane.xlu0 %1274 }
 0x4a1   :  { %v2342_v9 = vmul.f32 0.0625, %v1275_v41  ;;  %v2873_v41 = vpack.c.bf16 %v2615_v62, %v2614_v45  ;;  %v5891_v10 = vsel %vm21259_vm3, %v5890_v48, %v5886_v27  ;;  %v7155_v45 = vsel %vm21260_vm4, %v7154_v61, %v7150_v0 }
 0x4a2   :  { %v20756_v22 = vpop.xlane.xlu1 %2045  ;;  %v5896_v62 = vsel %vm4777_vm9, %v5895_v37, %v5891_v10  ;;  %v7160_v49 = vsel %vm4777_vm9, %v7159_v28, %v7155_v45 }
 0x4a3   :  { %v2737_v18 = vpack.c.bf16 %v2343_v2, %v2342_v9  ;;  %v4704_v6 = vunpack.c.l.b16 %v2873_v41  ;;  %v2599_v26 = vmul.f32 0.0625, %v20756_v22  ;;  %v4705_v2 = vunpack.c.h.b16 %v2873_v41 }
 0x4a4   :  { %v20762_v24 = vpop.xlane.xlu0 %2042 }
 0x4a5   :  { %v4432_v35 = vunpack.c.l.b16 %v2737_v18  ;;  %v2598_v55 = vmul.f32 0.0625, %v20762_v24  ;;  %v7243_v9 = vrot.slane %v4704_v6, %v15795_v11  ;;  %v4433_v22 = vunpack.c.h.b16 %v2737_v18 }
 0x4a6   :  { %v1332_v23 = vpop.xlane.xlu1 %1331 }
 0x4a7   :  { %v2361_v16 = vmul.f32 0.0625, %v1332_v23  ;;  %v5900_v24 = vrot.slane %v4432_v35, %v15795_v11 }
 0x4a8   :  { %v1329_v53 = vpop.xlane.xlu0 %1328 }
 0x4a9   :  { %v2360_v5 = vmul.f32 0.0625, %v1329_v53  ;;  %v7239_v53 = vsel %vm4777_vm9, %v7238_v52, %v7234_v15  ;;  %v7248_v52 = vrot.slane %v4705_v2, %v15798_v21  ;;  %v5901_v18 = vsel %vm4784_vm10, %v5900_v24, %v5896_v62 }
 0x4aa   :  { %v2100_v25 = vpop.xlane.xlu1 %2099  ;;  %v7244_v34 = vsel %vm4784_vm10, %v7243_v9, %v7239_v53  ;;  %v5905_v15 = vrot.slane %v4433_v22, %v15798_v21  ;;  %vm13836_vm9 = vcmask 1024  }
 0x4ab   :  { %v2617_v46 = vmul.f32 0.0625, %v2100_v25  ;;  %v2746_v60 = vpack.c.bf16 %v2361_v16, %v2360_v5  ;;  %v5979_v25 = vrot.slane %v4448_v39, %v15795_v11 }
 0x4ac   :  { %v2097_v42 = vpop.xlane.xlu0 %2096  ;;  %v5906_v28 = vsel %vm4791_vm11, %v5905_v15, %v5901_v18 }
 0x4ad   :  { %v2616_v23 = vmul.f32 0.0625, %v2097_v42  ;;  %v4450_v30 = vunpack.c.l.b16 %v2746_v60  ;;  %v5980_v56 = vsel %vm4784_vm10, %v5979_v25, %v5975_v13  ;;  %v2865_v42 = vpack.c.bf16 %v2599_v26, %v2598_v55 }
 0x4ae   :  { %v1284_v8 = vpop.xlane.xlu1 %1283  ;;  %v4451_v44 = vunpack.c.h.b16 %v2746_v60  ;;  %v7249_v13 = vsel %vm4791_vm11, %v7248_v52, %v7244_v34 }
 0x4af   :  { %v2874_v32 = vpack.c.bf16 %v2617_v46, %v2616_v23  ;;  %v2345_v14 = vmul.f32 0.0625, %v1284_v8  ;;  %v5989_v40 = vrot.slane %v4450_v30, %v15850_v1  ;;  %v5985_v8 = vsel %vm4791_vm11, %v5984_v29, %v5980_v56 }
 0x4b0   :  { %v1281_v4 = vpop.xlane.xlu0 %1280  ;;  %v4688_v23 = vunpack.c.l.b16 %v2865_v42  ;;  %v4689_v53 = vunpack.c.h.b16 %v2865_v42 }
 0x4b1   :  { %v2344_v27 = vmul.f32 0.0625, %v1281_v4  ;;  %v4706_v47 = vunpack.c.l.b16 %v2874_v32  ;;  %v5994_v4 = vrot.slane %v4451_v44, %v15866_v54  ;;  %v4707_v37 = vunpack.c.h.b16 %v2874_v32 }
 0x4b2   :  { %v2052_v57 = vpop.xlane.xlu1 %2051  ;;  %v5990_v60 = vsel %vm4798_vm12, %v5989_v40, %v5985_v8 }
 0x4b3   :  { %v2601_v51 = vmul.f32 0.0625, %v2052_v57  ;;  %v2738_v39 = vpack.c.bf16 %v2345_v14, %v2344_v27  ;;  %v7253_v57 = vrot.slane %v4706_v47, %v15850_v1  ;;  %v7258_v45 = vrot.slane %v4707_v37, %v15866_v54 }
 0x4b4   :  { %v2049_v38 = vpop.xlane.xlu0 %2048 }
 0x4b5   :  { %v2600_v48 = vmul.f32 0.0625, %v2049_v38  ;;  %v4434_v25 = vunpack.c.l.b16 %v2738_v39  ;;  %v7164_v38 = vrot.slane %v4688_v23, %v15795_v11  ;;  %v7254_v62 = vsel %vm4798_vm12, %v7253_v57, %v7249_v13 }
 0x4b6   :  { %v1338_v7 = vpop.xlane.xlu1 %1337  ;;  %v4435_v56 = vunpack.c.h.b16 %v2738_v39  ;;  %v7259_v40 = vsel %vm4805_vm13, %v7258_v45, %v7254_v62  ;;  %v2894_v62 = vld [vmem:[#allocation3 + $0x90] sm:$0xff] }
 0x4b7   :  { %v2363_v33 = vmul.f32 0.0625, %v1338_v7  ;;  %v2866_v0 = vpack.c.bf16 %v2601_v51, %v2600_v48  ;;  %v5995_v7 = vsel %vm4805_vm13, %v5994_v4, %v5990_v60  ;;  %v5910_v22 = vrot.slane %v4434_v25, %v15850_v1  ;;  %v2886_v25 = vld [vmem:[#allocation3 + $0x50] sm:$0xff] }
 0x4b8   :  { %v1335_v16 = vpop.xlane.xlu0 %1334  ;;  %v5915_v39 = vrot.slane %v4435_v56, %v15866_v54 }
 0x4b9   :  { %v2362_v41 = vmul.f32 0.0625, %v1335_v16  ;;  %v4690_v2 = vunpack.c.l.b16 %v2866_v0  ;;  %v7165_v16 = vsel %vm4784_vm10, %v7164_v38, %v7160_v49  ;;  %v4691_v51 = vunpack.c.h.b16 %v2866_v0 }
 0x4ba   :  { %v2106_v5 = vpop.xlane.xlu1 %2105  ;;  %v5911_v49 = vsel %vm4798_vm12, %v5910_v22, %v5906_v28  ;;  %v2902_v22 = vld [vmem:[#allocation3 + $0xd0] sm:$0xff] }
 0x4bb   :  { %v2747_v50 = vpack.c.bf16 %v2363_v33, %v2362_v41  ;;  %v2619_v46 = vmul.f32 0.0625, %v2106_v5  ;;  %v7169_v5 = vrot.slane %v4689_v53, %v15798_v21  ;;  %v7174_v41 = vrot.slane %v4690_v2, %v15850_v1 }
 0x4bc   :  { %v2103_v61 = vpop.xlane.xlu0 %2102  ;;  %v7179_v4 = vrot.slane %v4691_v51, %v15866_v54  ;;  %v5916_v60 = vsel %vm4805_vm13, %v5915_v39, %v5911_v49  ;;  %v2918_v51 = vld [vmem:[#allocation3 + $0x150] sm:$0xff]  ;;  %v2927_v49 = vld [vmem:[#allocation3 + $0x198] sm:$0xff] }
 0x4bd   :  { %v4452_v10 = vunpack.c.l.b16 %v2747_v50  ;;  %v2618_v6 = vmul.f32 0.0625, %v2103_v61  ;;  %v4453_v35 = vunpack.c.h.b16 %v2747_v50  ;;  %v7170_v1 = vsel %vm4791_vm11, %v7169_v5, %v7165_v16 }
 0x4be   :  { %v1290_v43 = vpop.xlane.xlu1 %1289  ;;  %v7175_v57 = vsel %vm4798_vm12, %v7174_v41, %v7170_v1  ;;  %v2919_v41 = vld [vmem:[#allocation3 + $0x158] sm:$0xff] }
 0x4bf   :  { %v5999_v26 = vrot.slane %v4452_v10, %v15911_v63  ;;  %v2875_v55 = vpack.c.bf16 %v2619_v46, %v2618_v6  ;;  %v2347_v32 = vmul.f32 0.0625, %v1290_v43  ;;  %v6004_v33 = vrot.slane %v4453_v35, %v21166_v31 }
 0x4c0   :  { %v1287_v29 = vpop.xlane.xlu0 %1286  ;;  %v7180_v13 = vsel %vm4805_vm13, %v7179_v4, %v7175_v57  ;;  %v2934_v57 = vld [vmem:[#allocation3 + $0x1d0] sm:$0xff] }
 0x4c1   :  { %v4708_v9 = vunpack.c.l.b16 %v2875_v55  ;;  %v4709_v14 = vunpack.c.h.b16 %v2875_v55  ;;  %v2346_v27 = vmul.f32 0.0625, %v1287_v29  ;;  %v6000_v24 = vsel %vm4812_vm14, %v5999_v26, %v5995_v7  ;;  %v2890_v26 = vld [vmem:[#allocation3 + $0x70] sm:$0xff]  ;;  %v2887_v55 = vld [vmem:[#allocation3 + $0x58] sm:$0xff] }
 0x4c2   :  { %v2058_v30 = vpop.xlane.xlu1 %2057  ;;  %v6005_v15 = vsel %vm4819_vm15, %v6004_v33, %v6000_v24  ;;  %v2895_v29 = vld [vmem:[#allocation3 + $0x98] sm:$0xff]  ;;  %v13856_v2 = vcombine.low %v2886_v25, %v2890_v26  ;;  %v2906_v24 = vld [vmem:[#allocation3 + $0xf0] sm:$0xff] }
 0x4c3   :  { %v7263_v11 = vrot.slane %v4708_v9, %v15911_v63  ;;  %v7268_v42 = vrot.slane %v4709_v14, %v21166_v31  ;;  %v2739_v44 = vpack.c.bf16 %v2347_v32, %v2346_v27  ;;  %v2603_v47 = vmul.f32 0.0625, %v2058_v30  ;;  %v2891_v32 = vld [vmem:[#allocation3 + $0x78] sm:$0xff]  ;;  %v21261_v14 = vld [vmem:[#allocation22_spill] sm:$0xff] }
 0x4c4   :  { %v2055_v48 = vpop.xlane.xlu0 %2054  ;;  %v13859_v45 = vcombine.high %v2887_v55, %v2891_v32  ;;  %v2899_v30 = vld [vmem:[#allocation3 + $0xb8] sm:$0xff]  ;;  %v13858_v9 = vcombine.low %v2887_v55, %v2891_v32  ;;  %v13873_v12 = vcombine.high %v2902_v22, %v2906_v24 }
 0x4c5   :  { %v7264_v8 = vsel %vm4812_vm14, %v7263_v11, %v7259_v40  ;;  %v4436_v34 = vunpack.c.l.b16 %v2739_v44  ;;  %v2602_v52 = vmul.f32 0.0625, %v2055_v48  ;;  %v4437_v18 = vunpack.c.h.b16 %v2739_v44  ;;  %v2903_v33 = vld [vmem:[#allocation3 + $0xd8] sm:$0xff]  ;;  %v2922_v48 = vld [vmem:[#allocation3 + $0x170] sm:$0xff] }
 0x4c6   :  { %v7269_v50 = vsel %vm4819_vm15, %v7268_v42, %v7264_v8  ;;  %v13867_v56 = vcombine.high %v2895_v29, %v2899_v30  ;;  %v2907_v11 = vld [vmem:[#allocation3 + $0xf8] sm:$0xff]  ;;  %v13866_v3 = vcombine.low %v2895_v29, %v2899_v30  ;;  %v13889_v39 = vcombine.high %v2918_v51, %v2922_v48 }
 0x4c7   :  { %v5920_v21 = vrot.slane %v4436_v34, %v15911_v63  ;;  %v2867_v46 = vpack.c.bf16 %v2603_v47, %v2602_v52  ;;  %v7286_v23 = vsel %vm7270_vm8, %v7269_v50, %v6005_v15  ;;  %v5925_v0 = vrot.slane %v4437_v18, %v21166_v31  ;;  %v2911_v42 = vld [vmem:[#allocation3 + $0x118] sm:$0xff]  ;;  %v2926_v15 = vld [vmem:[#allocation3 + $0x190] sm:$0xff] }
 0x4c8   :  { %v20836_v37 = vpack.c.b16 %v7286_v23, %v7286_v23  ;;  %v2915_v44 = vld [vmem:[#allocation3 + $0x138] sm:$0xff]  ;;  %v13872_v47 = vcombine.low %v2902_v22, %v2906_v24  ;;  %v13874_v16 = vcombine.low %v2903_v33, %v2907_v11  ;;  %v2930_v50 = vld [vmem:[#allocation3 + $0x1b0] sm:$0xff] }
 0x4c9   :  { %v4692_v61 = vunpack.c.l.b16 %v2867_v46  ;;  %v4693_v43 = vunpack.c.h.b16 %v2867_v46  ;;  %v5921_v10 = vsel %vm4812_vm14, %v5920_v21, %v5916_v60  ;;  %v13883_v40 = vcombine.high %v2911_v42, %v2915_v44  ;;  %v2923_v8 = vld [vmem:[#allocation3 + $0x178] sm:$0xff] }
 0x4ca   :  { %12758 = vmatprep.mubr.bf16.mxu0 %v20836_v37  ;;  %13086 = vmatprep.mubr.bf16.mxu1 %v20836_v37  ;;  %v5926_v35 = vsel %vm4819_vm15, %v5925_v0, %v5921_v10  ;;  %v13882_v52 = vcombine.low %v2911_v42, %v2915_v44  ;;  %v13891_v18 = vcombine.high %v2919_v41, %v2923_v8  ;;  %v2931_v21 = vld [vmem:[#allocation3 + $0x1b8] sm:$0xff] }
 0x4cb   :  { %v7184_v6 = vrot.slane %v4692_v61, %v15911_v63  ;;  %v7189_v54 = vrot.slane %v4693_v43, %v21166_v31  ;;  %v13857_v63 = vcombine.high %v2886_v25, %v2890_v26  ;;  %v2898_v31 = vld [vmem:[#allocation3 + $0xb0] sm:$0xff]  ;;  %v13888_v46 = vcombine.low %v2918_v51, %v2922_v48  ;;  %v2935_v43 = vld [vmem:[#allocation3 + $0x1d8] sm:$0xff] }
 0x4cc   :  { %v13865_v27 = vcombine.high %v2894_v62, %v2898_v31  ;;  %v13864_v36 = vcombine.low %v2894_v62, %v2898_v31  ;;  %v13890_v23 = vcombine.low %v2919_v41, %v2923_v8  ;;  %v13897_v1 = vcombine.high %v2926_v15, %v2930_v50  ;;  %v2938_v61 = vld [vmem:[#allocation3 + $0x1f0] sm:$0xff]  ;;  %v2939_v60 = vld [vmem:[#allocation3 + $0x1f8] sm:$0xff] }
 0x4cd   :  { %v7185_v53 = vsel %vm4812_vm14, %v7184_v6, %v7180_v13  ;;  %v13899_v4 = vcombine.high %v2927_v49, %v2931_v21  ;;  %v13896_v0 = vcombine.low %v2926_v15, %v2930_v50  ;;  %v13898_v10 = vcombine.low %v2927_v49, %v2931_v21  ;;  %v2942_v13 = vld [vmem:[#allocation3 + $0x210] sm:$0xff]  ;;  %v2943_v25 = vld [vmem:[#allocation3 + $0x218] sm:$0xff] }
 0x4ce   :  { %v7190_v28 = vsel %vm4819_vm15, %v7189_v54, %v7185_v53  ;;  %v13905_v6 = vcombine.high %v2934_v57, %v2938_v61  ;;  %v13907_v54 = vcombine.high %v2935_v43, %v2939_v60  ;;  %v2946_v53 = vld [vmem:[#allocation3 + $0x230] sm:$0xff]  ;;  %v13906_v26 = vcombine.low %v2935_v43, %v2939_v60 }
 0x4cf   :  { %v7285_v38 = vsel %vm7270_vm8, %v7190_v28, %v5926_v35  ;;  %v2947_v35 = vld [vmem:[#allocation3 + $0x238] sm:$0xff]  ;;  %v13904_v28 = vcombine.low %v2934_v57, %v2938_v61  ;;  %v13913_v55 = vcombine.high %v2942_v13, %v2946_v53  ;;  %v2954_v62 = vld [vmem:[#allocation3 + $0x270] sm:$0xff]  ;;  %v13912_v31 = vcombine.low %v2942_v13, %v2946_v53 }
 0x4d0   :  { %v20851_v7 = vpack.c.b16 %v7285_v38, %v7285_v38  ;;  %v13915_v32 = vcombine.high %v2943_v25, %v2947_v35  ;;  %v2950_v38 = vld [vmem:[#allocation3 + $0x250] sm:$0xff]  ;;  %v13914_v29 = vcombine.low %v2943_v25, %v2947_v35  ;;  %vm13809_vm8 = vcmask 1041408  }
 0x4d1   :  { %v13921_v30 = vcombine.high %v2950_v38, %v2954_v62  ;;  %v13920_v22 = vcombine.low %v2950_v38, %v2954_v62 }
 0x4d2   :  { %12759 = vmatmul.mubr.bf16.vlgmr.msra.gmra.mrb[0].mxu0 %v20851_v7  ;;  %13087 = vmatmul.mubr.bf16.vlgmr.msra.gmra.mrb[0].mxu1 %v20851_v7 }
 0x4d3   :  { %13096 = vmatpush1.bf16.msra.mxu0 %v13848_v59  ;;  %13424 = vmatpush1.bf16.msra.mxu1 %v13850_v17  ;;  %v13875_v59 = vcombine.high %v2903_v33, %v2907_v11  ;;  %v2914_v17 = vld [vmem:[#allocation3 + $0x130] sm:$0xff] }
 0x4d4   :  { %13127 = vmatprep.mubr.bf16.mxu0 %v21261_v14  ;;  %13455 = vmatprep.mubr.bf16.mxu1 %v21261_v14  ;;  %v13881_v5 = vcombine.high %v2910_v19, %v2914_v17  ;;  %v13880_v34 = vcombine.low %v2910_v19, %v2914_v17  ;;  %v2962_v14 = vld [vmem:[#allocation3 + $0x2b0] sm:$0xff] }
 0x4d5   :  { %13097 = vmatprep.subr.bf16.mxu0 %v13857_v63  ;;  %13425 = vmatprep.subr.bf16.mxu1 %v13859_v45  ;;  %v2951_v63 = vld [vmem:[#allocation3 + $0x258] sm:$0xff] }
 0x4d6   :  { %v2955_v45 = vld [vmem:[#allocation3 + $0x278] sm:$0xff] }
 0x4d7   :  { %13098 = vmatpush1.bf16.msra.mxu0 %v13856_v2  ;;  %13426 = vmatpush1.bf16.msra.mxu1 %v13858_v9  ;;  %v13923_v2 = vcombine.high %v2951_v63, %v2955_v45  ;;  %v2958_v9 = vld [vmem:[#allocation3 + $0x290] sm:$0xff]  ;;  %v13922_v24 = vcombine.low %v2951_v63, %v2955_v45 }
 0x4d8   :  { %13099 = vmatprep.subr.bf16.mxu0 %v13865_v27  ;;  %13427 = vmatprep.subr.bf16.mxu1 %v13867_v56  ;;  %v2959_v27 = vld [vmem:[#allocation3 + $0x298] sm:$0xff]  ;;  %v13929_v33 = vcombine.high %v2958_v9, %v2962_v14  ;;  %v13928_v19 = vcombine.low %v2958_v9, %v2962_v14 }
 0x4d9   :  { %v2963_v56 = vld [vmem:[#allocation3 + $0x2b8] sm:$0xff] }
 0x4da   :  { %v13931_v11 = vcombine.high %v2959_v27, %v2963_v56  ;;  %v13930_v17 = vcombine.low %v2959_v27, %v2963_v56 }
 0x4db   :  { %13100 = vmatpush1.bf16.msra.mxu0 %v13864_v36  ;;  %13428 = vmatpush1.bf16.msra.mxu1 %v13866_v3  ;;  %v2966_v36 = vld [vmem:[#allocation3 + $0x2d0] sm:$0xff] }
 0x4dc   :  { %13101 = vmatprep.subr.bf16.mxu0 %v13873_v12  ;;  %13429 = vmatprep.subr.bf16.mxu1 %v13875_v59  ;;  %v2970_v3 = vld [vmem:[#allocation3 + $0x2f0] sm:$0xff]  ;;  %v2967_v12 = vld [vmem:[#allocation3 + $0x2d8] sm:$0xff] }
 0x4dd   :  { %v2971_v59 = vld [vmem:[#allocation3 + $0x2f8] sm:$0xff]  ;;  %v13937_v42 = vcombine.high %v2966_v36, %v2970_v3  ;;  %v13936_v51 = vcombine.low %v2966_v36, %v2970_v3  ;;  %v21263_v3 = vld [vmem:[#allocation24_spill] sm:$0xff] }
 0x4de   :  { %v13939_v44 = vcombine.high %v2967_v12, %v2971_v59  ;;  %v13938_v48 = vcombine.low %v2967_v12, %v2971_v59  ;;  %v3027_v36 = vld [vmem:[#allocation3 + $0x4b8] sm:$0xff] }
 0x4df   :  { %13102 = vmatpush1.bf16.msra.mxu0 %v13872_v47  ;;  %13430 = vmatpush1.bf16.msra.mxu1 %v13874_v16  ;;  %v2974_v47 = vld [vmem:[#allocation3 + $0x310] sm:$0xff] }
 0x4e0   :  { %13103 = vmatprep.subr.bf16.mxu0 %v13881_v5  ;;  %13431 = vmatprep.subr.bf16.mxu1 %v13883_v40  ;;  %v2978_v16 = vld [vmem:[#allocation3 + $0x330] sm:$0xff]  ;;  %v2975_v5 = vld [vmem:[#allocation3 + $0x318] sm:$0xff] }
 0x4e1   :  { %v2979_v40 = vld [vmem:[#allocation3 + $0x338] sm:$0xff]  ;;  %v13945_v41 = vcombine.high %v2974_v47, %v2978_v16  ;;  %v13944_v15 = vcombine.low %v2974_v47, %v2978_v16 }
 0x4e2   :  { %v13947_v8 = vcombine.high %v2975_v5, %v2979_v40  ;;  %v13946_v50 = vcombine.low %v2975_v5, %v2979_v40  ;;  %v3031_v47 = vld [vmem:[#allocation3 + $0x4d8] sm:$0xff] }
 0x4e3   :  { %13104 = vmatpush1.bf16.msra.mxu0 %v13880_v34  ;;  %13432 = vmatpush1.bf16.msra.mxu1 %v13882_v52  ;;  %v2982_v34 = vld [vmem:[#allocation3 + $0x350] sm:$0xff]  ;;  %v3035_v16 = vld [vmem:[#allocation3 + $0x4f8] sm:$0xff] }
 0x4e4   :  { %13105 = vmatprep.subr.bf16.mxu0 %v13889_v39  ;;  %13433 = vmatprep.subr.bf16.mxu1 %v13891_v18  ;;  %v2986_v52 = vld [vmem:[#allocation3 + $0x370] sm:$0xff]  ;;  %v2983_v39 = vld [vmem:[#allocation3 + $0x358] sm:$0xff] }
 0x4e5   :  { %v2987_v18 = vld [vmem:[#allocation3 + $0x378] sm:$0xff]  ;;  %v13953_v49 = vcombine.high %v2982_v34, %v2986_v52  ;;  %v13952_v57 = vcombine.low %v2982_v34, %v2986_v52 }
 0x4e6   :  { %v13955_v21 = vcombine.high %v2983_v39, %v2987_v18  ;;  %v13954_v61 = vcombine.low %v2983_v39, %v2987_v18  ;;  %v3039_v34 = vld [vmem:[#allocation3 + $0x518] sm:$0xff]  ;;  %v14002_v18 = vcombine.low %v3031_v47, %v3035_v16 }
 0x4e7   :  { %13106 = vmatpush1.bf16.msra.mxu0 %v13888_v46  ;;  %13434 = vmatpush1.bf16.msra.mxu1 %v13890_v23  ;;  %v2990_v46 = vld [vmem:[#allocation3 + $0x390] sm:$0xff]  ;;  %v3043_v52 = vld [vmem:[#allocation3 + $0x538] sm:$0xff] }
 0x4e8   :  { %13107 = vmatprep.subr.bf16.mxu0 %v13897_v1  ;;  %13435 = vmatprep.subr.bf16.mxu1 %v13899_v4  ;;  %v2994_v23 = vld [vmem:[#allocation3 + $0x3b0] sm:$0xff]  ;;  %v2991_v1 = vld [vmem:[#allocation3 + $0x398] sm:$0xff] }
 0x4e9   :  { %v2995_v4 = vld [vmem:[#allocation3 + $0x3b8] sm:$0xff]  ;;  %v13961_v43 = vcombine.high %v2990_v46, %v2994_v23  ;;  %v13960_v13 = vcombine.low %v2990_v46, %v2994_v23 }
 0x4ea   :  { %v13963_v60 = vcombine.high %v2991_v1, %v2995_v4  ;;  %v13962_v53 = vcombine.low %v2991_v1, %v2995_v4  ;;  %v3047_v46 = vld [vmem:[#allocation3 + $0x558] sm:$0xff]  ;;  %v14010_v4 = vcombine.low %v3039_v34, %v3043_v52 }
 0x4eb   :  { %13108 = vmatpush1.bf16.msra.mxu0 %v13896_v0  ;;  %13436 = vmatpush1.bf16.msra.mxu1 %v13898_v10  ;;  %v2998_v0 = vld [vmem:[#allocation3 + $0x3d0] sm:$0xff]  ;;  %v3051_v23 = vld [vmem:[#allocation3 + $0x578] sm:$0xff] }
 0x4ec   :  { %13109 = vmatprep.subr.bf16.mxu0 %v13905_v6  ;;  %13437 = vmatprep.subr.bf16.mxu1 %v13907_v54  ;;  %v3002_v10 = vld [vmem:[#allocation3 + $0x3f0] sm:$0xff]  ;;  %v2999_v6 = vld [vmem:[#allocation3 + $0x3d8] sm:$0xff] }
 0x4ed   :  { %v3003_v54 = vld [vmem:[#allocation3 + $0x3f8] sm:$0xff]  ;;  %v13969_v25 = vcombine.high %v2998_v0, %v3002_v10  ;;  %v13968_v38 = vcombine.low %v2998_v0, %v3002_v10 }
 0x4ee   :  { %v13971_v35 = vcombine.high %v2999_v6, %v3003_v54  ;;  %v13970_v62 = vcombine.low %v2999_v6, %v3003_v54  ;;  %v3055_v0 = vld [vmem:[#allocation3 + $0x598] sm:$0xff]  ;;  %v14018_v54 = vcombine.low %v3047_v46, %v3051_v23 }
 0x4ef   :  { %13110 = vmatpush1.bf16.msra.mxu0 %v13904_v28  ;;  %13438 = vmatpush1.bf16.msra.mxu1 %v13906_v26  ;;  %v3006_v28 = vld [vmem:[#allocation3 + $0x410] sm:$0xff]  ;;  %v3059_v10 = vld [vmem:[#allocation3 + $0x5b8] sm:$0xff] }
 0x4f0   :  { %13111 = vmatprep.subr.bf16.mxu0 %v13913_v55  ;;  %13439 = vmatprep.subr.bf16.mxu1 %v13915_v32  ;;  %v3010_v26 = vld [vmem:[#allocation3 + $0x430] sm:$0xff]  ;;  %v3007_v55 = vld [vmem:[#allocation3 + $0x418] sm:$0xff] }
 0x4f1   :  { %v3011_v32 = vld [vmem:[#allocation3 + $0x438] sm:$0xff]  ;;  %v13977_v63 = vcombine.high %v3006_v28, %v3010_v26  ;;  %v13976_v9 = vcombine.low %v3006_v28, %v3010_v26 }
 0x4f2   :  { %v13979_v45 = vcombine.high %v3007_v55, %v3011_v32  ;;  %v13978_v14 = vcombine.low %v3007_v55, %v3011_v32  ;;  %v3063_v28 = vld [vmem:[#allocation3 + $0x5d8] sm:$0xff]  ;;  %v14026_v32 = vcombine.low %v3055_v0, %v3059_v10 }
 0x4f3   :  { %13112 = vmatpush1.bf16.msra.mxu0 %v13912_v31  ;;  %13440 = vmatpush1.bf16.msra.mxu1 %v13914_v29  ;;  %v3014_v31 = vld [vmem:[#allocation3 + $0x450] sm:$0xff]  ;;  %v3067_v26 = vld [vmem:[#allocation3 + $0x5f8] sm:$0xff] }
 0x4f4   :  { %13113 = vmatprep.subr.bf16.mxu0 %v13921_v30  ;;  %13441 = vmatprep.subr.bf16.mxu1 %v13923_v2  ;;  %v3018_v29 = vld [vmem:[#allocation3 + $0x470] sm:$0xff]  ;;  %v3015_v30 = vld [vmem:[#allocation3 + $0x458] sm:$0xff] }
 0x4f5   :  { %v3019_v2 = vld [vmem:[#allocation3 + $0x478] sm:$0xff]  ;;  %v13985_v27 = vcombine.high %v3014_v31, %v3018_v29  ;;  %v13984_v12 = vcombine.low %v3014_v31, %v3018_v29 }
 0x4f6   :  { %v13987_v56 = vcombine.high %v3015_v30, %v3019_v2  ;;  %v13986_v59 = vcombine.low %v3015_v30, %v3019_v2  ;;  %v3071_v31 = vld [vmem:[#allocation3 + $0x618] sm:$0xff]  ;;  %v14034_v2 = vcombine.low %v3063_v28, %v3067_v26 }
 0x4f7   :  { %13114 = vmatpush1.bf16.msra.mxu0 %v13920_v22  ;;  %13442 = vmatpush1.bf16.msra.mxu1 %v13922_v24  ;;  %v3022_v22 = vld [vmem:[#allocation3 + $0x490] sm:$0xff]  ;;  %v3075_v29 = vld [vmem:[#allocation3 + $0x638] sm:$0xff] }
 0x4f8   :  { %13115 = vmatprep.subr.bf16.mxu0 %v13929_v33  ;;  %13443 = vmatprep.subr.bf16.mxu1 %v13931_v11  ;;  %v3026_v24 = vld [vmem:[#allocation3 + $0x4b0] sm:$0xff]  ;;  %v21262_v33 = vld [vmem:[#allocation23_spill] sm:$0xff] }
 0x4f9   :  { %v3023_v11 = vld [vmem:[#allocation3 + $0x498] sm:$0xff]  ;;  %v13992_v5 = vcombine.low %v3022_v22, %v3026_v24 }
 0x4fa   :  { %v13994_v40 = vcombine.low %v3023_v11, %v3027_v36 }
 0x4fb   :  { %13116 = vmatpush1.bf16.msra.mxu0 %v13928_v19  ;;  %13444 = vmatpush1.bf16.msra.mxu1 %v13930_v17  ;;  %v13993_v19 = vcombine.high %v3022_v22, %v3026_v24  ;;  %v13995_v17 = vcombine.high %v3023_v11, %v3027_v36  ;;  %v3079_v22 = vld [vmem:[#allocation3 + $0x658] sm:$0xff]  ;;  %v14042_v11 = vcombine.low %v3071_v31, %v3075_v29 }
 0x4fc   :  { %13117 = vmatprep.subr.bf16.mxu0 %v13937_v42  ;;  %13445 = vmatprep.subr.bf16.mxu1 %v13939_v44  ;;  %v3030_v42 = vld [vmem:[#allocation3 + $0x4d0] sm:$0xff]  ;;  %v3083_v24 = vld [vmem:[#allocation3 + $0x678] sm:$0xff] }
 0x4fd   :  { %v3034_v44 = vld [vmem:[#allocation3 + $0x4f0] sm:$0xff] }
 0x4fe   :  { %v14000_v39 = vcombine.low %v3030_v42, %v3034_v44 }
 0x4ff   :  { %13118 = vmatpush1.bf16.msra.mxu0 %v13936_v51  ;;  %13446 = vmatpush1.bf16.msra.mxu1 %v13938_v48  ;;  %v14001_v51 = vcombine.high %v3030_v42, %v3034_v44  ;;  %v14003_v48 = vcombine.high %v3031_v47, %v3035_v16  ;;  %v14050_v44 = vcombine.low %v3079_v22, %v3083_v24 }
 0x500   :  { %13119 = vmatprep.subr.bf16.mxu0 %v13945_v41  ;;  %13447 = vmatprep.subr.bf16.mxu1 %v13947_v8  ;;  %v3038_v41 = vld [vmem:[#allocation3 + $0x510] sm:$0xff] }
 0x501   :  { %v3042_v8 = vld [vmem:[#allocation3 + $0x530] sm:$0xff] }
 0x502   :  { %v14008_v1 = vcombine.low %v3038_v41, %v3042_v8 }
 0x503   :  { %13120 = vmatpush1.bf16.msra.mxu0 %v13944_v15  ;;  %13448 = vmatpush1.bf16.msra.mxu1 %v13946_v50  ;;  %v14009_v15 = vcombine.high %v3038_v41, %v3042_v8  ;;  %v14011_v50 = vcombine.high %v3039_v34, %v3043_v52 }
 0x504   :  { %13121 = vmatprep.subr.bf16.mxu0 %v13953_v49  ;;  %13449 = vmatprep.subr.bf16.mxu1 %v13955_v21  ;;  %v3046_v49 = vld [vmem:[#allocation3 + $0x550] sm:$0xff] }
 0x505   :  { %v3050_v21 = vld [vmem:[#allocation3 + $0x570] sm:$0xff] }
 0x506   :  { %v14016_v6 = vcombine.low %v3046_v49, %v3050_v21 }
 0x507   :  { %13122 = vmatpush1.bf16.msra.mxu0 %v13952_v57  ;;  %13450 = vmatpush1.bf16.msra.mxu1 %v13954_v61  ;;  %v14017_v57 = vcombine.high %v3046_v49, %v3050_v21  ;;  %v14019_v61 = vcombine.high %v3047_v46, %v3051_v23 }
 0x508   :  { %13123 = vmatprep.subr.bf16.mxu0 %v13961_v43  ;;  %13451 = vmatprep.subr.bf16.mxu1 %v13963_v60  ;;  %v3054_v43 = vld [vmem:[#allocation3 + $0x590] sm:$0xff] }
 0x509   :  { %v3058_v60 = vld [vmem:[#allocation3 + $0x5b0] sm:$0xff] }
 0x50a   :  { %v14024_v55 = vcombine.low %v3054_v43, %v3058_v60 }
 0x50b   :  { %13124 = vmatpush1.bf16.msra.mxu0 %v13960_v13  ;;  %13452 = vmatpush1.bf16.msra.mxu1 %v13962_v53  ;;  %v14025_v13 = vcombine.high %v3054_v43, %v3058_v60  ;;  %v14027_v53 = vcombine.high %v3055_v0, %v3059_v10 }
 0x50c   :  { %13125 = vmatprep.subr.bf16.mxu0 %v13969_v25  ;;  %13453 = vmatprep.subr.bf16.mxu1 %v13971_v35  ;;  %v3062_v25 = vld [vmem:[#allocation3 + $0x5d0] sm:$0xff] }
 0x50d   :  { %v3066_v35 = vld [vmem:[#allocation3 + $0x5f0] sm:$0xff] }
 0x50e   :  { %v14032_v30 = vcombine.low %v3062_v25, %v3066_v35 }
 0x50f   :  { %13126 = vmatpush1.bf16.msra.mxu0 %v13968_v38  ;;  %13454 = vmatpush1.bf16.msra.mxu1 %v13970_v62  ;;  %v14033_v38 = vcombine.high %v3062_v25, %v3066_v35  ;;  %v14035_v62 = vcombine.high %v3063_v28, %v3067_v26 }
 0x510   :  { %13136 = vmatprep.subr.bf16.mxu0 %v13977_v63  ;;  %13464 = vmatprep.subr.bf16.mxu1 %v13979_v45  ;;  %v3070_v63 = vld [vmem:[#allocation3 + $0x610] sm:$0xff] }
 0x511   :  { %v3074_v45 = vld [vmem:[#allocation3 + $0x630] sm:$0xff] }
 0x512   :  { %13128 = vmatmul.mubr.bf16.vlgmr.msra.gmra.mrb[4].mxu0 %v21262_v33  ;;  %13456 = vmatmul.mubr.bf16.vlgmr.msra.gmra.mrb[4].mxu1 %v21262_v33  ;;  %v14040_v33 = vcombine.low %v3070_v63, %v3074_v45 }
 0x513   :  { %13137 = vmatpush1.bf16.msra.mxu0 %v13976_v9  ;;  %13168 = vmatprep.mubr.bf16.mxu0 %v21263_v3  ;;  %v14041_v9 = vcombine.high %v3070_v63, %v3074_v45 }
 0x514   :  { %13465 = vmatpush1.bf16.msra.mxu1 %v13978_v14  ;;  %13496 = vmatprep.mubr.bf16.mxu1 %v21263_v3  ;;  %v14043_v14 = vcombine.high %v3071_v31, %v3075_v29  ;;  %v14051_v3 = vcombine.high %v3079_v22, %v3083_v24 }
 0x515   :  { %13138 = vmatprep.subr.bf16.mxu0 %v13985_v27  ;;  %13466 = vmatprep.subr.bf16.mxu1 %v13987_v56  ;;  %v3078_v27 = vld [vmem:[#allocation3 + $0x650] sm:$0xff] }
 0x516   :  { %v3082_v56 = vld [vmem:[#allocation3 + $0x670] sm:$0xff] }
 0x517   :  { %13139 = vmatpush1.bf16.msra.mxu0 %v13984_v12  ;;  %v14049_v36 = vcombine.high %v3078_v27, %v3082_v56  ;;  %v3086_v12 = vld [vmem:[#allocation3 + $0x690] sm:$0xff]  ;;  %v14048_v42 = vcombine.low %v3078_v27, %v3082_v56 }
 0x518   :  { %13467 = vmatpush1.bf16.msra.mxu1 %v13986_v59  ;;  %13140 = vmatprep.subr.bf16.mxu0 %v13993_v19  ;;  %v3090_v59 = vld [vmem:[#allocation3 + $0x6b0] sm:$0xff]  ;;  %v3087_v19 = vld [vmem:[#allocation3 + $0x698] sm:$0xff] }
 0x519   :  { %13468 = vmatprep.subr.bf16.mxu1 %v13995_v17  ;;  %v3091_v17 = vld [vmem:[#allocation3 + $0x6b8] sm:$0xff]  ;;  %v14057_v47 = vcombine.high %v3086_v12, %v3090_v59  ;;  %v14056_v41 = vcombine.low %v3086_v12, %v3090_v59 }
 0x51a   :  { %v14059_v16 = vcombine.high %v3087_v19, %v3091_v17  ;;  %v14058_v8 = vcombine.low %v3087_v19, %v3091_v17  ;;  %v3147_v12 = vld [vmem:[#allocation3 + $0x878] sm:$0xff]  ;;  %v3150_v17 = vld [vmem:[#allocation3 + $0x890] sm:$0xff] }
 0x51b   :  { %13141 = vmatpush1.bf16.msra.mxu0 %v13992_v5  ;;  %v3094_v5 = vld [vmem:[#allocation3 + $0x6d0] sm:$0xff] }
 0x51c   :  { %13469 = vmatpush1.bf16.msra.mxu1 %v13994_v40  ;;  %13142 = vmatprep.subr.bf16.mxu0 %v14001_v51  ;;  %v3098_v40 = vld [vmem:[#allocation3 + $0x6f0] sm:$0xff]  ;;  %v3095_v51 = vld [vmem:[#allocation3 + $0x6d8] sm:$0xff] }
 0x51d   :  { %13470 = vmatprep.subr.bf16.mxu1 %v14003_v48  ;;  %v3099_v48 = vld [vmem:[#allocation3 + $0x6f8] sm:$0xff]  ;;  %v14065_v34 = vcombine.high %v3094_v5, %v3098_v40  ;;  %v14064_v49 = vcombine.low %v3094_v5, %v3098_v40 }
 0x51e   :  { %v14067_v52 = vcombine.high %v3095_v51, %v3099_v48  ;;  %v14066_v21 = vcombine.low %v3095_v51, %v3099_v48  ;;  %v3155_v5 = vld [vmem:[#allocation3 + $0x8b8] sm:$0xff] }
 0x51f   :  { %13143 = vmatpush1.bf16.msra.mxu0 %v14000_v39  ;;  %v3102_v39 = vld [vmem:[#allocation3 + $0x710] sm:$0xff]  ;;  %v21265_v51 = vld [vmem:[#allocation19_spill] sm:$0xff] }
 0x520   :  { %13471 = vmatpush1.bf16.msra.mxu1 %v14002_v18  ;;  %13144 = vmatprep.subr.bf16.mxu0 %v14009_v15  ;;  %v3106_v18 = vld [vmem:[#allocation3 + $0x730] sm:$0xff]  ;;  %v3103_v15 = vld [vmem:[#allocation3 + $0x718] sm:$0xff] }
 0x521   :  { %13472 = vmatprep.subr.bf16.mxu1 %v14011_v50  ;;  %v3107_v50 = vld [vmem:[#allocation3 + $0x738] sm:$0xff]  ;;  %v14073_v46 = vcombine.high %v3102_v39, %v3106_v18  ;;  %v14072_v43 = vcombine.low %v3102_v39, %v3106_v18 }
 0x522   :  { %v14075_v23 = vcombine.high %v3103_v15, %v3107_v50  ;;  %v14074_v60 = vcombine.low %v3103_v15, %v3107_v50  ;;  %v3159_v39 = vld [vmem:[#allocation3 + $0x8d8] sm:$0xff] }
 0x523   :  { %13145 = vmatpush1.bf16.msra.mxu0 %v14008_v1  ;;  %v3110_v1 = vld [vmem:[#allocation3 + $0x750] sm:$0xff]  ;;  %v3163_v18 = vld [vmem:[#allocation3 + $0x8f8] sm:$0xff] }
 0x524   :  { %13473 = vmatpush1.bf16.msra.mxu1 %v14010_v4  ;;  %13146 = vmatprep.subr.bf16.mxu0 %v14017_v57  ;;  %v3114_v4 = vld [vmem:[#allocation3 + $0x770] sm:$0xff]  ;;  %v3111_v57 = vld [vmem:[#allocation3 + $0x758] sm:$0xff] }
 0x525   :  { %13474 = vmatprep.subr.bf16.mxu1 %v14019_v61  ;;  %v3115_v61 = vld [vmem:[#allocation3 + $0x778] sm:$0xff]  ;;  %v14081_v0 = vcombine.high %v3110_v1, %v3114_v4  ;;  %v14080_v25 = vcombine.low %v3110_v1, %v3114_v4 }
 0x526   :  { %v14083_v10 = vcombine.high %v3111_v57, %v3115_v61  ;;  %v14082_v35 = vcombine.low %v3111_v57, %v3115_v61  ;;  %v3167_v1 = vld [vmem:[#allocation3 + $0x918] sm:$0xff]  ;;  %v14130_v61 = vcombine.low %v3159_v39, %v3163_v18 }
 0x527   :  { %13147 = vmatpush1.bf16.msra.mxu0 %v14016_v6  ;;  %v3118_v6 = vld [vmem:[#allocation3 + $0x790] sm:$0xff]  ;;  %v3171_v4 = vld [vmem:[#allocation3 + $0x938] sm:$0xff] }
 0x528   :  { %13475 = vmatpush1.bf16.msra.mxu1 %v14018_v54  ;;  %13148 = vmatprep.subr.bf16.mxu0 %v14025_v13  ;;  %v3122_v54 = vld [vmem:[#allocation3 + $0x7b0] sm:$0xff]  ;;  %v3119_v13 = vld [vmem:[#allocation3 + $0x798] sm:$0xff] }
 0x529   :  { %13476 = vmatprep.subr.bf16.mxu1 %v14027_v53  ;;  %v3123_v53 = vld [vmem:[#allocation3 + $0x7b8] sm:$0xff]  ;;  %v14089_v28 = vcombine.high %v3118_v6, %v3122_v54  ;;  %v14088_v63 = vcombine.low %v3118_v6, %v3122_v54 }
 0x52a   :  { %v14091_v26 = vcombine.high %v3119_v13, %v3123_v53  ;;  %v14090_v45 = vcombine.low %v3119_v13, %v3123_v53  ;;  %v3175_v6 = vld [vmem:[#allocation3 + $0x958] sm:$0xff]  ;;  %v14138_v53 = vcombine.low %v3167_v1, %v3171_v4 }
 0x52b   :  { %13149 = vmatpush1.bf16.msra.mxu0 %v14024_v55  ;;  %v3126_v55 = vld [vmem:[#allocation3 + $0x7d0] sm:$0xff]  ;;  %v3179_v54 = vld [vmem:[#allocation3 + $0x978] sm:$0xff] }
 0x52c   :  { %13477 = vmatpush1.bf16.msra.mxu1 %v14026_v32  ;;  %13150 = vmatprep.subr.bf16.mxu0 %v14033_v38  ;;  %v3130_v32 = vld [vmem:[#allocation3 + $0x7f0] sm:$0xff]  ;;  %v3127_v38 = vld [vmem:[#allocation3 + $0x7d8] sm:$0xff] }
 0x52d   :  { %13478 = vmatprep.subr.bf16.mxu1 %v14035_v62  ;;  %v3131_v62 = vld [vmem:[#allocation3 + $0x7f8] sm:$0xff]  ;;  %v14097_v31 = vcombine.high %v3126_v55, %v3130_v32  ;;  %v14096_v27 = vcombine.low %v3126_v55, %v3130_v32 }
 0x52e   :  { %v14099_v29 = vcombine.high %v3127_v38, %v3131_v62  ;;  %v14098_v56 = vcombine.low %v3127_v38, %v3131_v62  ;;  %v3183_v55 = vld [vmem:[#allocation3 + $0x998] sm:$0xff]  ;;  %v14146_v62 = vcombine.low %v3175_v6, %v3179_v54 }
 0x52f   :  { %13151 = vmatpush1.bf16.msra.mxu0 %v14032_v30  ;;  %v3134_v30 = vld [vmem:[#allocation3 + $0x810] sm:$0xff]  ;;  %v3187_v32 = vld [vmem:[#allocation3 + $0x9b8] sm:$0xff] }
 0x530   :  { %13479 = vmatpush1.bf16.msra.mxu1 %v14034_v2  ;;  %13152 = vmatprep.subr.bf16.mxu0 %v14041_v9  ;;  %v3138_v2 = vld [vmem:[#allocation3 + $0x830] sm:$0xff]  ;;  %v3135_v9 = vld [vmem:[#allocation3 + $0x818] sm:$0xff] }
 0x531   :  { %13480 = vmatprep.subr.bf16.mxu1 %v14043_v14  ;;  %v3139_v14 = vld [vmem:[#allocation3 + $0x838] sm:$0xff]  ;;  %v14105_v22 = vcombine.high %v3134_v30, %v3138_v2 }
 0x532   :  { %v14107_v24 = vcombine.high %v3135_v9, %v3139_v14  ;;  %v14106_v59 = vcombine.low %v3135_v9, %v3139_v14  ;;  %v14154_v14 = vcombine.low %v3183_v55, %v3187_v32 }
 0x533   :  { %13153 = vmatpush1.bf16.msra.mxu0 %v14040_v33  ;;  %v3142_v33 = vld [vmem:[#allocation3 + $0x850] sm:$0xff] }
 0x534   :  { %13481 = vmatpush1.bf16.msra.mxu1 %v14042_v11  ;;  %13154 = vmatprep.subr.bf16.mxu0 %v14049_v36  ;;  %v3146_v11 = vld [vmem:[#allocation3 + $0x870] sm:$0xff]  ;;  %v14104_v36 = vcombine.low %v3134_v30, %v3138_v2  ;;  %v3191_v30 = vld [vmem:[#allocation3 + $0x9d8] sm:$0xff] }
 0x535   :  { %13482 = vmatprep.subr.bf16.mxu1 %v14051_v3  ;;  %v3143_v3 = vld [vmem:[#allocation3 + $0x858] sm:$0xff]  ;;  %v14113_v19 = vcombine.high %v3142_v33, %v3146_v11  ;;  %v14112_v40 = vcombine.low %v3142_v33, %v3146_v11 }
 0x536   :  { %v14114_v48 = vcombine.low %v3143_v3, %v3147_v12  ;;  %v3195_v2 = vld [vmem:[#allocation3 + $0x9f8] sm:$0xff] }
 0x537   :  { %13155 = vmatpush1.bf16.msra.mxu0 %v14048_v42  ;;  %v3154_v42 = vld [vmem:[#allocation3 + $0x8b0] sm:$0xff]  ;;  %v3199_v33 = vld [vmem:[#allocation3 + $0xa18] sm:$0xff] }
 0x538   :  { %13483 = vmatpush1.bf16.msra.mxu1 %v14050_v44  ;;  %13156 = vmatprep.subr.bf16.mxu0 %v14057_v47  ;;  %v21264_v44 = vld [vmem:[#allocation25_spill] sm:$0xff]  ;;  %v14115_v47 = vcombine.high %v3143_v3, %v3147_v12  ;;  %v14120_v15 = vcombine.low %v3150_v17, %v3154_v42  ;;  %v3203_v11 = vld [vmem:[#allocation3 + $0xa38] sm:$0xff]  ;;  %v14162_v3 = vcombine.low %v3191_v30, %v3195_v2 }
 0x539   :  { %13484 = vmatprep.subr.bf16.mxu1 %v14059_v16  ;;  %v3151_v16 = vld [vmem:[#allocation3 + $0x898] sm:$0xff] }
 0x53a   :  { %v14122_v50 = vcombine.low %v3151_v16, %v3155_v5 }
 0x53b   :  { %13157 = vmatpush1.bf16.msra.mxu0 %v14056_v41  ;;  %v14121_v41 = vcombine.high %v3150_v17, %v3154_v42  ;;  %v3210_v17 = vld [vmem:[#allocation3 + $0xa70] sm:$0xff]  ;;  %v3207_v42 = vld [vmem:[#allocation3 + $0xa58] sm:$0xff] }
 0x53c   :  { %13485 = vmatpush1.bf16.msra.mxu1 %v14058_v8  ;;  %13158 = vmatprep.subr.bf16.mxu0 %v14065_v34  ;;  %v14123_v8 = vcombine.high %v3151_v16, %v3155_v5  ;;  %v3158_v34 = vld [vmem:[#allocation3 + $0x8d0] sm:$0xff]  ;;  %v14170_v16 = vcombine.low %v3199_v33, %v3203_v11 }
 0x53d   :  { %13486 = vmatprep.subr.bf16.mxu1 %v14067_v52  ;;  %v3162_v52 = vld [vmem:[#allocation3 + $0x8f0] sm:$0xff] }
 0x53e   :  { %v14128_v57 = vcombine.low %v3158_v34, %v3162_v52 }
 0x53f   :  { %13159 = vmatpush1.bf16.msra.mxu0 %v14064_v49  ;;  %v14129_v49 = vcombine.high %v3158_v34, %v3162_v52 }
 0x540   :  { %13487 = vmatpush1.bf16.msra.mxu1 %v14066_v21  ;;  %13160 = vmatprep.subr.bf16.mxu0 %v14073_v46  ;;  %v14131_v21 = vcombine.high %v3159_v39, %v3163_v18  ;;  %v3166_v46 = vld [vmem:[#allocation3 + $0x910] sm:$0xff] }
 0x541   :  { %13488 = vmatprep.subr.bf16.mxu1 %v14075_v23  ;;  %v3170_v23 = vld [vmem:[#allocation3 + $0x930] sm:$0xff] }
 0x542   :  { %v14136_v13 = vcombine.low %v3166_v46, %v3170_v23 }
 0x543   :  { %13161 = vmatpush1.bf16.msra.mxu0 %v14072_v43  ;;  %v14137_v43 = vcombine.high %v3166_v46, %v3170_v23 }
 0x544   :  { %13489 = vmatpush1.bf16.msra.mxu1 %v14074_v60  ;;  %13162 = vmatprep.subr.bf16.mxu0 %v14081_v0  ;;  %v14139_v60 = vcombine.high %v3167_v1, %v3171_v4  ;;  %v3174_v0 = vld [vmem:[#allocation3 + $0x950] sm:$0xff] }
 0x545   :  { %13490 = vmatprep.subr.bf16.mxu1 %v14083_v10  ;;  %v3178_v10 = vld [vmem:[#allocation3 + $0x970] sm:$0xff] }
 0x546   :  { %v14144_v38 = vcombine.low %v3174_v0, %v3178_v10 }
 0x547   :  { %13163 = vmatpush1.bf16.msra.mxu0 %v14080_v25  ;;  %v14145_v25 = vcombine.high %v3174_v0, %v3178_v10 }
 0x548   :  { %13491 = vmatpush1.bf16.msra.mxu1 %v14082_v35  ;;  %13164 = vmatprep.subr.bf16.mxu0 %v14089_v28  ;;  %v14147_v35 = vcombine.high %v3175_v6, %v3179_v54  ;;  %v3182_v28 = vld [vmem:[#allocation3 + $0x990] sm:$0xff] }
 0x549   :  { %13492 = vmatprep.subr.bf16.mxu1 %v14091_v26  ;;  %v3186_v26 = vld [vmem:[#allocation3 + $0x9b0] sm:$0xff] }
 0x54a   :  { %v14152_v9 = vcombine.low %v3182_v28, %v3186_v26 }
 0x54b   :  { %13165 = vmatpush1.bf16.msra.mxu0 %v14088_v63  ;;  %v14153_v63 = vcombine.high %v3182_v28, %v3186_v26 }
 0x54c   :  { %13493 = vmatpush1.bf16.msra.mxu1 %v14090_v45  ;;  %13166 = vmatprep.subr.bf16.mxu0 %v14097_v31  ;;  %v14155_v45 = vcombine.high %v3183_v55, %v3187_v32  ;;  %v3190_v31 = vld [vmem:[#allocation3 + $0x9d0] sm:$0xff] }
 0x54d   :  { %13494 = vmatprep.subr.bf16.mxu1 %v14099_v29  ;;  %v3194_v29 = vld [vmem:[#allocation3 + $0x9f0] sm:$0xff] }
 0x54f   :  { %13167 = vmatpush1.bf16.msra.mxu0 %v14096_v27  ;;  %v14161_v27 = vcombine.high %v3190_v31, %v3194_v29 }
 0x550   :  { %13495 = vmatpush1.bf16.msra.mxu1 %v14098_v56  ;;  %13177 = vmatprep.subr.bf16.mxu0 %v14105_v22  ;;  %v14163_v56 = vcombine.high %v3191_v30, %v3195_v2  ;;  %v3198_v22 = vld [vmem:[#allocation3 + $0xa10] sm:$0xff] }
 0x551   :  { %13505 = vmatprep.subr.bf16.mxu1 %v14107_v24  ;;  %v3202_v24 = vld [vmem:[#allocation3 + $0xa30] sm:$0xff] }
 0x552   :  { %13169 = vmatmul.mubr.bf16.vlgmr.msra.gmra.mrb[4].mxu0 %v21264_v44  ;;  %v14169_v12 = vcombine.high %v3198_v22, %v3202_v24 }
 0x553   :  { %13497 = vmatmul.mubr.bf16.vlgmr.msra.gmra.mrb[4].mxu1 %v21264_v44  ;;  %13178 = vmatpush1.bf16.msra.mxu0 %v14104_v36  ;;  %v14160_v36 = vcombine.low %v3190_v31, %v3194_v29  ;;  %v3211_v44 = vld [vmem:[#allocation3 + $0xa78] sm:$0xff] }
 0x554   :  { %13209 = vmatprep.mubr.bf16.mxu0 %v21265_v51  ;;  %13506 = vmatpush1.bf16.msra.mxu1 %v14106_v59  ;;  %v14171_v59 = vcombine.high %v3199_v33, %v3203_v11  ;;  %v14178_v52 = vcombine.low %v3207_v42, %v3211_v44 }
 0x555   :  { %13537 = vmatprep.mubr.bf16.mxu1 %v21265_v51  ;;  %13179 = vmatprep.subr.bf16.mxu0 %v14113_v19  ;;  %v3206_v19 = vld [vmem:[#allocation3 + $0xa50] sm:$0xff] }
 0x556   :  { %13507 = vmatprep.subr.bf16.mxu1 %v14115_v47  ;;  %v14168_v47 = vcombine.low %v3198_v22, %v3202_v24  ;;  %v14177_v5 = vcombine.high %v3206_v19, %v3210_v17  ;;  %v3214_v51 = vld [vmem:[#allocation3 + $0xa90] sm:$0xff]  ;;  %v14176_v34 = vcombine.low %v3206_v19, %v3210_v17 }
 0x557   :  { %13180 = vmatpush1.bf16.msra.mxu0 %v14112_v40  ;;  %v14179_v40 = vcombine.high %v3207_v42, %v3211_v44 }
 0x558   :  { %13508 = vmatpush1.bf16.msra.mxu1 %v14114_v48  ;;  %13181 = vmatprep.subr.bf16.mxu0 %v14121_v41  ;;  %v3218_v48 = vld [vmem:[#allocation3 + $0xab0] sm:$0xff]  ;;  %v3215_v41 = vld [vmem:[#allocation3 + $0xa98] sm:$0xff] }
 0x559   :  { %13509 = vmatprep.subr.bf16.mxu1 %v14123_v8  ;;  %v3219_v8 = vld [vmem:[#allocation3 + $0xab8] sm:$0xff]  ;;  %v14185_v39 = vcombine.high %v3214_v51, %v3218_v48  ;;  %v14184_v46 = vcombine.low %v3214_v51, %v3218_v48 }
 0x55a   :  { %v14187_v18 = vcombine.high %v3215_v41, %v3219_v8  ;;  %v14186_v23 = vcombine.low %v3215_v41, %v3219_v8  ;;  %v3275_v51 = vld [vmem:[#allocation3 + $0xc78] sm:$0xff]  ;;  %v3278_v8 = vld [vmem:[#allocation3 + $0xc90] sm:$0xff] }
 0x55b   :  { %13182 = vmatpush1.bf16.msra.mxu0 %v14120_v15  ;;  %v3222_v15 = vld [vmem:[#allocation3 + $0xad0] sm:$0xff] }
 0x55c   :  { %13510 = vmatpush1.bf16.msra.mxu1 %v14122_v50  ;;  %13183 = vmatprep.subr.bf16.mxu0 %v14129_v49  ;;  %v3226_v50 = vld [vmem:[#allocation3 + $0xaf0] sm:$0xff]  ;;  %v3223_v49 = vld [vmem:[#allocation3 + $0xad8] sm:$0xff] }
 0x55d   :  { %13511 = vmatprep.subr.bf16.mxu1 %v14131_v21  ;;  %v3227_v21 = vld [vmem:[#allocation3 + $0xaf8] sm:$0xff]  ;;  %v14193_v1 = vcombine.high %v3222_v15, %v3226_v50  ;;  %v14192_v0 = vcombine.low %v3222_v15, %v3226_v50 }
 0x55e   :  { %v14195_v4 = vcombine.high %v3223_v49, %v3227_v21  ;;  %v14194_v10 = vcombine.low %v3223_v49, %v3227_v21  ;;  %v3283_v15 = vld [vmem:[#allocation3 + $0xcb8] sm:$0xff]  ;;  %v21267_v49 = vld [vmem:[#allocation28_spill] sm:$0xff] }
 0x55f   :  { %13184 = vmatpush1.bf16.msra.mxu0 %v14128_v57  ;;  %v3230_v57 = vld [vmem:[#allocation3 + $0xb10] sm:$0xff] }
 0x560   :  { %13512 = vmatpush1.bf16.msra.mxu1 %v14130_v61  ;;  %13185 = vmatprep.subr.bf16.mxu0 %v14137_v43  ;;  %v3234_v61 = vld [vmem:[#allocation3 + $0xb30] sm:$0xff]  ;;  %v3231_v43 = vld [vmem:[#allocation3 + $0xb18] sm:$0xff] }
 0x561   :  { %13513 = vmatprep.subr.bf16.mxu1 %v14139_v60  ;;  %v3235_v60 = vld [vmem:[#allocation3 + $0xb38] sm:$0xff]  ;;  %v14201_v6 = vcombine.high %v3230_v57, %v3234_v61  ;;  %v14200_v28 = vcombine.low %v3230_v57, %v3234_v61 }
 0x562   :  { %v14203_v54 = vcombine.high %v3231_v43, %v3235_v60  ;;  %v14202_v26 = vcombine.low %v3231_v43, %v3235_v60  ;;  %v3287_v57 = vld [vmem:[#allocation3 + $0xcd8] sm:$0xff] }
 0x563   :  { %13186 = vmatpush1.bf16.msra.mxu0 %v14136_v13  ;;  %v3238_v13 = vld [vmem:[#allocation3 + $0xb50] sm:$0xff]  ;;  %v3291_v61 = vld [vmem:[#allocation3 + $0xcf8] sm:$0xff] }
 0x564   :  { %13514 = vmatpush1.bf16.msra.mxu1 %v14138_v53  ;;  %13187 = vmatprep.subr.bf16.mxu0 %v14145_v25  ;;  %v3242_v53 = vld [vmem:[#allocation3 + $0xb70] sm:$0xff]  ;;  %v3239_v25 = vld [vmem:[#allocation3 + $0xb58] sm:$0xff] }
 0x565   :  { %13515 = vmatprep.subr.bf16.mxu1 %v14147_v35  ;;  %v3243_v35 = vld [vmem:[#allocation3 + $0xb78] sm:$0xff]  ;;  %v14209_v55 = vcombine.high %v3238_v13, %v3242_v53  ;;  %v14208_v31 = vcombine.low %v3238_v13, %v3242_v53 }
 0x566   :  { %v14211_v32 = vcombine.high %v3239_v25, %v3243_v35  ;;  %v14210_v29 = vcombine.low %v3239_v25, %v3243_v35  ;;  %v3295_v13 = vld [vmem:[#allocation3 + $0xd18] sm:$0xff]  ;;  %v14258_v35 = vcombine.low %v3287_v57, %v3291_v61 }
 0x567   :  { %13188 = vmatpush1.bf16.msra.mxu0 %v14144_v38  ;;  %v3246_v38 = vld [vmem:[#allocation3 + $0xb90] sm:$0xff]  ;;  %v3299_v53 = vld [vmem:[#allocation3 + $0xd38] sm:$0xff] }
 0x568   :  { %13516 = vmatpush1.bf16.msra.mxu1 %v14146_v62  ;;  %13189 = vmatprep.subr.bf16.mxu0 %v14153_v63  ;;  %v3250_v62 = vld [vmem:[#allocation3 + $0xbb0] sm:$0xff]  ;;  %v3247_v63 = vld [vmem:[#allocation3 + $0xb98] sm:$0xff] }
 0x569   :  { %13517 = vmatprep.subr.bf16.mxu1 %v14155_v45  ;;  %v3251_v45 = vld [vmem:[#allocation3 + $0xbb8] sm:$0xff]  ;;  %v14217_v30 = vcombine.high %v3246_v38, %v3250_v62  ;;  %v14216_v22 = vcombine.low %v3246_v38, %v3250_v62  ;;  %v21268_v38 = vld [vmem:[#allocation10_spill] sm:$0xff] }
 0x56a   :  { %v14219_v2 = vcombine.high %v3247_v63, %v3251_v45  ;;  %v14218_v24 = vcombine.low %v3247_v63, %v3251_v45  ;;  %v3904_v62 = vsub.s32 0, %v21268_v38  ;;  %v3912_v63 = vsub.s32 2, %v21268_v38  ;;  %v3303_v45 = vld [vmem:[#allocation3 + $0xd58] sm:$0xff] }
 0x56b   :  { %13190 = vmatpush1.bf16.msra.mxu0 %v14152_v9  ;;  %v3254_v9 = vld [vmem:[#allocation3 + $0xbd0] sm:$0xff] }
 0x56c   :  { %13518 = vmatpush1.bf16.msra.mxu1 %v14154_v14  ;;  %13191 = vmatprep.subr.bf16.mxu0 %v14161_v27  ;;  %v3258_v14 = vld [vmem:[#allocation3 + $0xbf0] sm:$0xff]  ;;  %v3255_v27 = vld [vmem:[#allocation3 + $0xbd8] sm:$0xff] }
 0x56d   :  { %13519 = vmatprep.subr.bf16.mxu1 %v14163_v56  ;;  %v3259_v56 = vld [vmem:[#allocation3 + $0xbf8] sm:$0xff]  ;;  %v14225_v33 = vcombine.high %v3254_v9, %v3258_v14  ;;  %v14224_v19 = vcombine.low %v3254_v9, %v3258_v14  ;;  %v3916_v9 = vsub.s32 3, %v21268_v38  ;;  %v14266_v14 = vcombine.low %v3295_v13, %v3299_v53 }
 0x56e   :  { %v14227_v11 = vcombine.high %v3255_v27, %v3259_v56  ;;  %v14226_v17 = vcombine.low %v3255_v27, %v3259_v56 }
 0x56f   :  { %13192 = vmatpush1.bf16.msra.mxu0 %v14160_v36  ;;  %v3262_v36 = vld [vmem:[#allocation3 + $0xc10] sm:$0xff] }
 0x570   :  { %13520 = vmatpush1.bf16.msra.mxu1 %v14162_v3  ;;  %13193 = vmatprep.subr.bf16.mxu0 %v14169_v12  ;;  %v3266_v3 = vld [vmem:[#allocation3 + $0xc30] sm:$0xff]  ;;  %v3263_v12 = vld [vmem:[#allocation3 + $0xc18] sm:$0xff] }
 0x571   :  { %13521 = vmatprep.subr.bf16.mxu1 %v14171_v59  ;;  %v3267_v59 = vld [vmem:[#allocation3 + $0xc38] sm:$0xff]  ;;  %v14233_v42 = vcombine.high %v3262_v36, %v3266_v3 }
 0x572   :  { %v14235_v44 = vcombine.high %v3263_v12, %v3267_v59  ;;  %v14234_v48 = vcombine.low %v3263_v12, %v3267_v59  ;;  %v3315_v12 = vld [vmem:[#allocation3 + $0xdb8] sm:$0xff] }
 0x573   :  { %13194 = vmatpush1.bf16.msra.mxu0 %v14168_v47  ;;  %v3270_v47 = vld [vmem:[#allocation3 + $0xc50] sm:$0xff] }
 0x574   :  { %13522 = vmatpush1.bf16.msra.mxu1 %v14170_v16  ;;  %13195 = vmatprep.subr.bf16.mxu0 %v14177_v5  ;;  %v3274_v16 = vld [vmem:[#allocation3 + $0xc70] sm:$0xff]  ;;  %v14232_v5 = vcombine.low %v3262_v36, %v3266_v3  ;;  %v3311_v3 = vld [vmem:[#allocation3 + $0xd98] sm:$0xff] }
 0x575   :  { %13523 = vmatprep.subr.bf16.mxu1 %v14179_v40  ;;  %v3271_v40 = vld [vmem:[#allocation3 + $0xc58] sm:$0xff]  ;;  %v14241_v41 = vcombine.high %v3270_v47, %v3274_v16  ;;  %v14240_v50 = vcombine.low %v3270_v47, %v3274_v16 }
 0x576   :  { %v14242_v21 = vcombine.low %v3271_v40, %v3275_v51 }
 0x577   :  { %13196 = vmatpush1.bf16.msra.mxu0 %v14176_v34  ;;  %v3282_v34 = vld [vmem:[#allocation3 + $0xcb0] sm:$0xff] }
 0x578   :  { %13524 = vmatpush1.bf16.msra.mxu1 %v14178_v52  ;;  %13197 = vmatprep.subr.bf16.mxu0 %v14185_v39  ;;  %v21266_v52 = vld [vmem:[#allocation27_spill] sm:$0xff]  ;;  %v14243_v39 = vcombine.high %v3271_v40, %v3275_v51  ;;  %v14248_v43 = vcombine.low %v3278_v8, %v3282_v34  ;;  %v14283_v40 = vcombine.high %v3311_v3, %v3315_v12  ;;  %v3318_v51 = vld [vmem:[#allocation3 + $0xdd0] sm:$0xff] }
 0x579   :  { %13525 = vmatprep.subr.bf16.mxu1 %v14187_v18  ;;  %v3279_v18 = vld [vmem:[#allocation3 + $0xc98] sm:$0xff] }
 0x57a   :  { %v14250_v60 = vcombine.low %v3279_v18, %v3283_v15 }
 0x57b   :  { %13198 = vmatpush1.bf16.msra.mxu0 %v14184_v46  ;;  %v14249_v46 = vcombine.high %v3278_v8, %v3282_v34 }
 0x57c   :  { %13526 = vmatpush1.bf16.msra.mxu1 %v14186_v23  ;;  %13199 = vmatprep.subr.bf16.mxu0 %v14193_v1  ;;  %v14251_v23 = vcombine.high %v3279_v18, %v3283_v15  ;;  %v3286_v1 = vld [vmem:[#allocation3 + $0xcd0] sm:$0xff]  ;;  %v3319_v18 = vld [vmem:[#allocation3 + $0xdd8] sm:$0xff] }
 0x57d   :  { %13527 = vmatprep.subr.bf16.mxu1 %v14195_v4  ;;  %v3290_v4 = vld [vmem:[#allocation3 + $0xcf0] sm:$0xff]  ;;  %v3323_v15 = vld [vmem:[#allocation3 + $0xdf8] sm:$0xff] }
 0x57e   :  { %v14256_v25 = vcombine.low %v3286_v1, %v3290_v4 }
 0x57f   :  { %13200 = vmatpush1.bf16.msra.mxu0 %v14192_v0  ;;  %v14257_v0 = vcombine.high %v3286_v1, %v3290_v4 }
 0x580   :  { %13528 = vmatpush1.bf16.msra.mxu1 %v14194_v10  ;;  %13201 = vmatprep.subr.bf16.mxu0 %v14201_v6  ;;  %v14259_v10 = vcombine.high %v3287_v57, %v3291_v61  ;;  %v3294_v6 = vld [vmem:[#allocation3 + $0xd10] sm:$0xff] }
 0x581   :  { %13529 = vmatprep.subr.bf16.mxu1 %v14203_v54  ;;  %v3298_v54 = vld [vmem:[#allocation3 + $0xd30] sm:$0xff] }
 0x583   :  { %13202 = vmatpush1.bf16.msra.mxu0 %v14200_v28  ;;  %v14265_v28 = vcombine.high %v3294_v6, %v3298_v54 }
 0x584   :  { %13530 = vmatpush1.bf16.msra.mxu1 %v14202_v26  ;;  %13203 = vmatprep.subr.bf16.mxu0 %v14209_v55  ;;  %v14267_v26 = vcombine.high %v3295_v13, %v3299_v53  ;;  %v3302_v55 = vld [vmem:[#allocation3 + $0xd50] sm:$0xff]  ;;  %v14291_v13 = vcombine.high %v3319_v18, %v3323_v15 }
 0x585   :  { %13531 = vmatprep.subr.bf16.mxu1 %v14211_v32  ;;  %v3306_v32 = vld [vmem:[#allocation3 + $0xd70] sm:$0xff] }
 0x586   :  { %v14273_v27 = vcombine.high %v3302_v55, %v3306_v32  ;;  %v14272_v59 = vcombine.low %v3302_v55, %v3306_v32  ;;  %v3326_v53 = vld [vmem:[#allocation3 + $0xe10] sm:$0xff] }
 0x587   :  { %13204 = vmatpush1.bf16.msra.mxu0 %v14208_v31  ;;  %v3307_v31 = vld [vmem:[#allocation3 + $0xd78] sm:$0xff] }
 0x588   :  { %13532 = vmatpush1.bf16.msra.mxu1 %v14210_v29  ;;  %13205 = vmatprep.subr.bf16.mxu0 %v14217_v30  ;;  %v14264_v29 = vcombine.low %v3294_v6, %v3298_v54  ;;  %v3900_v30 = vld [vmem:[#allocation5] sm:$0xff]  ;;  %v14275_v56 = vcombine.high %v3303_v45, %v3307_v31 }
 0x589   :  { %13533 = vmatprep.subr.bf16.mxu1 %v14219_v2  ;;  %v3908_v2 = vsub.s32 1, %v21268_v38  ;;  %v3913_v36 = vrot.slane %v3900_v30, %v3912_v63 }
 0x58b   :  { %13206 = vmatpush1.bf16.msra.mxu0 %v14216_v22  ;;  %v3310_v22 = vld [vmem:[#allocation3 + $0xd90] sm:$0xff] }
 0x58c   :  { %13534 = vmatpush1.bf16.msra.mxu1 %v14218_v24  ;;  %13207 = vmatprep.subr.bf16.mxu0 %v14225_v33  ;;  %v3314_v24 = vld [vmem:[#allocation3 + $0xdb0] sm:$0xff]  ;;  %v3905_v33 = vrot.slane %v3900_v30, %v3904_v62 }
 0x58d   :  { %13535 = vmatprep.subr.bf16.mxu1 %v14227_v11  ;;  %v13759_v11 = vld [vmem:[#allocation7] sm:$0xff]  ;;  %v14280_v1 = vcombine.low %v3310_v22, %v3314_v24 }
 0x58e   :  { %v13764_v16 = vrot.slane %v13759_v11, %v3904_v62  ;;  %v13772_v34 = vrot.slane %v13759_v11, %v3912_v63  ;;  %v13776_v54 = vrot.slane %v13759_v11, %v3916_v9 }
 0x58f   :  { %13208 = vmatpush1.bf16.msra.mxu0 %v14224_v19  ;;  %v3909_v19 = vrot.slane %v3900_v30, %v3908_v2 }
 0x590   :  { %13536 = vmatpush1.bf16.msra.mxu1 %v14226_v17  ;;  %13218 = vmatprep.subr.bf16.mxu0 %v14233_v42  ;;  %v3917_v17 = vrot.slane %v3900_v30, %v3916_v9  ;;  %v14274_v42 = vcombine.low %v3303_v45, %v3307_v31  ;;  %v14290_v45 = vcombine.low %v3319_v18, %v3323_v15  ;;  %v3334_v9 = vld [vmem:[#allocation3 + $0xe50] sm:$0xff] }
 0x591   :  { %13546 = vmatprep.subr.bf16.mxu1 %v14235_v44  ;;  %v14281_v44 = vcombine.high %v3310_v22, %v3314_v24  ;;  %v3339_v22 = vld [vmem:[#allocation3 + $0xe78] sm:$0xff] }
 0x592   :  { %13210 = vmatmul.mubr.bf16.vlgmr.msra.gmra.mrb[4].mxu0 %v21266_v52 }
 0x593   :  { %13538 = vmatmul.mubr.bf16.vlgmr.msra.gmra.mrb[4].mxu1 %v21266_v52  ;;  %13219 = vmatpush1.bf16.msra.mxu0 %v14232_v5 }
 0x594   :  { %13250 = vmatprep.mubr.bf16.mxu0 %v21267_v49  ;;  %13547 = vmatpush1.bf16.msra.mxu1 %v14234_v48  ;;  %v3322_v48 = vld [vmem:[#allocation3 + $0xdf0] sm:$0xff] }
 0x595   :  { %13578 = vmatprep.mubr.bf16.mxu1 %v21267_v49  ;;  %13220 = vmatprep.subr.bf16.mxu0 %v14241_v41  ;;  %v13768_v49 = vrot.slane %v13759_v11, %v3908_v2  ;;  %v14288_v62 = vcombine.low %v3318_v51, %v3322_v48 }
 0x596   :  { %13548 = vmatprep.subr.bf16.mxu1 %v14243_v39 }
 0x597   :  { %13221 = vmatpush1.bf16.msra.mxu0 %v14240_v50 }
 0x598   :  { %13549 = vmatpush1.bf16.msra.mxu1 %v14242_v21  ;;  %13222 = vmatprep.subr.bf16.mxu0 %v14249_v46 }
 0x599   :  { %13550 = vmatprep.subr.bf16.mxu1 %v14251_v23 }
 0x59b   :  { %13223 = vmatpush1.bf16.msra.mxu0 %v14248_v43 }
 0x59c   :  { %13551 = vmatpush1.bf16.msra.mxu1 %v14250_v60  ;;  %13224 = vmatprep.subr.bf16.mxu0 %v14257_v0  ;;  %v14282_v60 = vcombine.low %v3311_v3, %v3315_v12  ;;  %v14289_v0 = vcombine.high %v3318_v51, %v3322_v48  ;;  %v3350_v48 = vld [vmem:[#allocation3 + $0xed0] sm:$0xff] }
 0x59d   :  { %13552 = vmatprep.subr.bf16.mxu1 %v14259_v10 }
 0x59f   :  { %13225 = vmatpush1.bf16.msra.mxu0 %v14256_v25  ;;  %v3330_v25 = vld [vmem:[#allocation3 + $0xe30] sm:$0xff] }
 0x5a0   :  { %13553 = vmatpush1.bf16.msra.mxu1 %v14258_v35  ;;  %13226 = vmatprep.subr.bf16.mxu0 %v14265_v28  ;;  %v3327_v28 = vld [vmem:[#allocation3 + $0xe18] sm:$0xff]  ;;  %v14297_v31 = vcombine.high %v3326_v53, %v3330_v25 }
 0x5a1   :  { %13554 = vmatprep.subr.bf16.mxu1 %v14267_v26  ;;  %v3331_v26 = vld [vmem:[#allocation3 + $0xe38] sm:$0xff] }
 0x5a2   :  { %v14299_v2 = vcombine.high %v3327_v28, %v3331_v26 }
 0x5a3   :  { %13227 = vmatpush1.bf16.msra.mxu0 %v14264_v29 }
 0x5a4   :  { %13555 = vmatpush1.bf16.msra.mxu1 %v14266_v14  ;;  %13228 = vmatprep.subr.bf16.mxu0 %v14273_v27  ;;  %v3338_v14 = vld [vmem:[#allocation3 + $0xe70] sm:$0xff] }
 0x5a5   :  { %v12760_v47 = vpop.f32.mrb[0].mxu0  ;;  %v13088_v5 = vpop.f32.mrb[0].mxu1  ;;  %13556 = vmatprep.subr.bf16.mxu1 %v14275_v56  ;;  %v3335_v56 = vld [vmem:[#allocation3 + $0xe58] sm:$0xff]  ;;  %v14305_v3 = vcombine.high %v3334_v9, %v3338_v14 }
 0x5a6   :  { %v14869_v41 = vadd.f32 %v12760_v47, %v3905_v33  ;;  %v14871_v8 = vadd.f32 %v13088_v5, %v3913_v36  ;;  %v12762_v52 = vpop.f32.mrb[1].mxu0  ;;  %v13090_v39 = vpop.f32.mrb[1].mxu1  ;;  %v14296_v33 = vcombine.low %v3326_v53, %v3330_v25  ;;  %v14298_v36 = vcombine.low %v3327_v28, %v3331_v26  ;;  %v3347_v47 = vld [vmem:[#allocation3 + $0xeb8] sm:$0xff]  ;;  %v3374_v53 = vld [vmem:[#allocation3 + $0xf90] sm:$0xff] }
 0x5a7   :  { %v14870_v50 = vadd.f32 %v12762_v52, %v3909_v19  ;;  %v14872_v21 = vadd.f32 %v13090_v39, %v3917_v17  ;;  %13229 = vmatpush1.bf16.msra.mxu0 %v14272_v59  ;;  %v12764_v46 = vpop.f32.mrb[2].mxu0  ;;  %v13092_v23 = vpop.f32.mrb[2].mxu1  ;;  %v14307_v59 = vcombine.high %v3335_v56, %v3339_v22  ;;  %v3342_v19 = vld [vmem:[#allocation3 + $0xe90] sm:$0xff]  ;;  %v14306_v5 = vcombine.low %v3335_v56, %v3339_v22  ;;  %v3379_v28 = vld [vmem:[#allocation3 + $0xfb8] sm:$0xff] }
 0x5a8   :  { %v13751_v4 = vmax.f32 %v14869_v41, 0.0  ;;  %v13753_v57 = vmax.f32 %v14871_v8, 0.0  ;;  %13557 = vmatpush1.bf16.msra.mxu1 %v14274_v42  ;;  %v12765_v61 = vpop.f32.mrb[3].mxu0  ;;  %v13093_v43 = vpop.f32.mrb[3].mxu1  ;;  %13230 = vmatprep.subr.bf16.mxu0 %v14281_v44  ;;  %v3346_v17 = vld [vmem:[#allocation3 + $0xeb0] sm:$0xff]  ;;  %v3343_v44 = vld [vmem:[#allocation3 + $0xe98] sm:$0xff] }
 0x5a9   :  { %v13752_v10 = vmax.f32 %v14870_v50, 0.0  ;;  %v13754_v6 = vmax.f32 %v14872_v21, 0.0  ;;  %13558 = vmatprep.subr.bf16.mxu1 %v14283_v40  ;;  %v14313_v40 = vcombine.high %v3342_v19, %v3346_v17  ;;  %v14315_v51 = vcombine.high %v3343_v44, %v3347_v47  ;;  %v3354_v41 = vld [vmem:[#allocation3 + $0xef0] sm:$0xff]  ;;  %v3351_v8 = vld [vmem:[#allocation3 + $0xed8] sm:$0xff] }
 0x5aa   :  { %v13801_v35 = vmul.f32 %v13764_v16, %v13751_v4  ;;  %v13803_v55 = vmul.f32 %v13772_v34, %v13753_v57  ;;  %v14304_v16 = vcombine.low %v3334_v9, %v3338_v14  ;;  %v3355_v34 = vld [vmem:[#allocation3 + $0xef8] sm:$0xff]  ;;  %v14312_v52 = vcombine.low %v3342_v19, %v3346_v17  ;;  %v3358_v50 = vld [vmem:[#allocation3 + $0xf10] sm:$0xff] }
 0x5ab   :  { %v13802_v32 = vmul.f32 %v13768_v49, %v13752_v10  ;;  %13231 = vmatpush1.bf16.msra.mxu0 %v14280_v1  ;;  %v13804_v30 = vmul.f32 %v13776_v54, %v13754_v6  ;;  %v14314_v39 = vcombine.low %v3343_v44, %v3347_v47  ;;  %v14321_v18 = vcombine.high %v3350_v48, %v3354_v41  ;;  %v3362_v49 = vld [vmem:[#allocation3 + $0xf30] sm:$0xff]  ;;  %v3359_v21 = vld [vmem:[#allocation3 + $0xf18] sm:$0xff] }
 0x5ac   :  { %v13810_v63 = vsel %vm13809_vm8, %v13801_v35, 0.0  ;;  %13559 = vmatpush1.bf16.msra.mxu1 %v14282_v60  ;;  %13232 = vmatprep.subr.bf16.mxu0 %v14289_v0  ;;  %v13813_v24 = vsel %vm13809_vm8, %v13803_v55, 0.0  ;;  %v14323_v15 = vcombine.high %v3351_v8, %v3355_v34  ;;  %v3363_v46 = vld [vmem:[#allocation3 + $0xf38] sm:$0xff]  ;;  %v14320_v23 = vcombine.low %v3350_v48, %v3354_v41  ;;  %v3366_v61 = vld [vmem:[#allocation3 + $0xf50] sm:$0xff] }
 0x5ad   :  { %v13811_v29 = vsel %vm13809_vm8, %v13802_v32, 0.0  ;;  %13560 = vmatprep.subr.bf16.mxu1 %v14291_v13  ;;  %v13815_v12 = vsel %vm13809_vm8, %v13804_v30, 0.0  ;;  %v14322_v1 = vcombine.low %v3351_v8, %v3355_v34  ;;  %v14329_v4 = vcombine.high %v3358_v50, %v3362_v49  ;;  %v3370_v43 = vld [vmem:[#allocation3 + $0xf70] sm:$0xff]  ;;  %v3367_v60 = vld [vmem:[#allocation3 + $0xf58] sm:$0xff] }
 0x5ae   :  { %v13812_v27 = vadd.f32 %v13811_v29, %v13810_v63  ;;  %v14331_v57 = vcombine.high %v3359_v21, %v3363_v46  ;;  %v3371_v0 = vld [vmem:[#allocation3 + $0xf78] sm:$0xff]  ;;  %v14328_v10 = vcombine.low %v3358_v50, %v3362_v49  ;;  %v14330_v6 = vcombine.low %v3359_v21, %v3363_v46  ;;  %v3378_v25 = vld [vmem:[#allocation3 + $0xfb0] sm:$0xff] }
 0x5af   :  { %13233 = vmatpush1.bf16.msra.mxu0 %v14288_v62  ;;  %v14337_v54 = vcombine.high %v3366_v61, %v3370_v43  ;;  %v14339_v13 = vcombine.high %v3367_v60, %v3371_v0  ;;  %v3375_v35 = vld [vmem:[#allocation3 + $0xf98] sm:$0xff]  ;;  %v14336_v26 = vcombine.low %v3366_v61, %v3370_v43  ;;  %v14338_v55 = vcombine.low %v3367_v60, %v3371_v0  ;;  %v3382_v63 = vld [vmem:[#allocation3 + $0xfd0] sm:$0xff] }
 0x5b0   :  { %v13814_v11 = vadd.f32 %v13813_v24, %v13812_v27  ;;  %13561 = vmatpush1.bf16.msra.mxu1 %v14290_v45  ;;  %13234 = vmatprep.subr.bf16.mxu0 %v14297_v31  ;;  %v14345_v32 = vcombine.high %v3374_v53, %v3378_v25  ;;  %v14347_v62 = vcombine.high %v3375_v35, %v3379_v28  ;;  %v3386_v45 = vld [vmem:[#allocation3 + $0xff0] sm:$0xff]  ;;  %v3383_v31 = vld [vmem:[#allocation3 + $0xfd8] sm:$0xff] }
 0x5b1   :  { %13562 = vmatprep.subr.bf16.mxu1 %v14299_v2  ;;  %v3387_v29 = vld [vmem:[#allocation3 + $0xff8] sm:$0xff]  ;;  %v14344_v30 = vcombine.low %v3374_v53, %v3378_v25  ;;  %v14346_v2 = vcombine.low %v3375_v35, %v3379_v28  ;;  %v14353_v9 = vcombine.high %v3382_v63, %v3386_v45  ;;  %v3390_v27 = vld [vmem:[#allocation3 + $0x1010] sm:$0xff] }
 0x5b2   :  { %v20883_v42 = vadd.f32 %v13815_v12, %v13814_v11  ;;  %v14355_v14 = vcombine.high %v3383_v31, %v3387_v29  ;;  %v3394_v56 = vld [vmem:[#allocation3 + $0x1030] sm:$0xff]  ;;  %v3391_v22 = vld [vmem:[#allocation3 + $0x1018] sm:$0xff]  ;;  %v14354_v11 = vcombine.low %v3383_v31, %v3387_v29 }
 0x5b3   :  { %13235 = vmatpush1.bf16.msra.mxu0 %v14296_v33  ;;  %v3395_v24 = vld [vmem:[#allocation3 + $0x1038] sm:$0xff]  ;;  %v14352_v33 = vcombine.low %v3382_v63, %v3386_v45  ;;  %v3398_v12 = vld [vmem:[#allocation3 + $0x1050] sm:$0xff]  ;;  %v14360_v19 = vcombine.low %v3390_v27, %v3394_v56 }
 0x5b4   :  { %13563 = vmatpush1.bf16.msra.mxu1 %v14298_v36  ;;  %13236 = vmatprep.subr.bf16.mxu0 %v14305_v3  ;;  %v14361_v36 = vcombine.high %v3390_v27, %v3394_v56  ;;  %v14363_v3 = vcombine.high %v3391_v22, %v3395_v24  ;;  %v3399_v17 = vld [vmem:[#allocation3 + $0x1058] sm:$0xff]  ;;  %v14362_v47 = vcombine.low %v3391_v22, %v3395_v24  ;;  %v3414_v50 = vld [vmem:[#allocation3 + $0x10d0] sm:$0xff] }
 0x5b5   :  { %13564 = vmatprep.subr.bf16.mxu1 %v14307_v59  ;;  %v3402_v59 = vld [vmem:[#allocation3 + $0x1070] sm:$0xff]  ;;  %v3403_v44 = vld [vmem:[#allocation3 + $0x1078] sm:$0xff] }
 0x5b6   :  { %v14371_v48 = vcombine.high %v3399_v17, %v3403_v44  ;;  %v3407_v41 = vld [vmem:[#allocation3 + $0x1098] sm:$0xff]  ;;  %v14368_v34 = vcombine.low %v3398_v12, %v3402_v59  ;;  %v3418_v49 = vld [vmem:[#allocation3 + $0x10f0] sm:$0xff] }
 0x5b7   :  { %13237 = vmatpush1.bf16.msra.mxu0 %v14304_v16  ;;  %v14369_v16 = vcombine.high %v3398_v12, %v3402_v59  ;;  %v3411_v8 = vld [vmem:[#allocation3 + $0x10b8] sm:$0xff]  ;;  %v3422_v61 = vld [vmem:[#allocation3 + $0x1110] sm:$0xff] }
 0x5b8   :  { %13565 = vmatpush1.bf16.msra.mxu1 %v14306_v5  ;;  %13238 = vmatprep.subr.bf16.mxu0 %v14313_v40  ;;  %v3406_v5 = vld [vmem:[#allocation3 + $0x1090] sm:$0xff]  ;;  %v3415_v21 = vld [vmem:[#allocation3 + $0x10d8] sm:$0xff] }
 0x5b9   :  { %13566 = vmatprep.subr.bf16.mxu1 %v14315_v51  ;;  %v3410_v40 = vld [vmem:[#allocation3 + $0x10b0] sm:$0xff]  ;;  %v21269_v51 = vld [vmem:[#allocation29_spill] sm:$0xff]  ;;  %v3419_v46 = vld [vmem:[#allocation3 + $0x10f8] sm:$0xff] }
 0x5ba   :  { %v3426_v43 = vld [vmem:[#allocation3 + $0x1130] sm:$0xff]  ;;  %v3423_v60 = vld [vmem:[#allocation3 + $0x1118] sm:$0xff] }
 0x5bb   :  { %13239 = vmatpush1.bf16.msra.mxu0 %v14312_v52  ;;  %v21270_v52 = vld [vmem:[#allocation21_spill] sm:$0xff]  ;;  %v3427_v0 = vld [vmem:[#allocation3 + $0x1138] sm:$0xff]  ;;  %v3430_v53 = vld [vmem:[#allocation3 + $0x1150] sm:$0xff] }
 0x5bc   :  { %13567 = vmatpush1.bf16.msra.mxu1 %v14314_v39  ;;  %13240 = vmatprep.subr.bf16.mxu0 %v14321_v18  ;;  %v14370_v39 = vcombine.low %v3399_v17, %v3403_v44  ;;  %v14377_v18 = vcombine.high %v3406_v5, %v3410_v40  ;;  %v3434_v25 = vld [vmem:[#allocation3 + $0x1170] sm:$0xff]  ;;  %v3431_v35 = vld [vmem:[#allocation3 + $0x1158] sm:$0xff] }
 0x5bd   :  { %13568 = vmatprep.subr.bf16.mxu1 %v14323_v15  ;;  %v14379_v15 = vcombine.high %v3407_v41, %v3411_v8  ;;  %v3435_v28 = vld [vmem:[#allocation3 + $0x1178] sm:$0xff]  ;;  %v3438_v63 = vld [vmem:[#allocation3 + $0x1190] sm:$0xff] }
 0x5be   :  { %v3442_v45 = vld [vmem:[#allocation3 + $0x11b0] sm:$0xff]  ;;  %v3439_v31 = vld [vmem:[#allocation3 + $0x1198] sm:$0xff] }
 0x5bf   :  { %13241 = vmatpush1.bf16.msra.mxu0 %v14320_v23  ;;  %v14376_v23 = vcombine.low %v3406_v5, %v3410_v40  ;;  %v3443_v29 = vld [vmem:[#allocation3 + $0x11b8] sm:$0xff]  ;;  %v3446_v27 = vld [vmem:[#allocation3 + $0x11d0] sm:$0xff] }
 0x5c0   :  { %13569 = vmatpush1.bf16.msra.mxu1 %v14322_v1  ;;  %13242 = vmatprep.subr.bf16.mxu0 %v14329_v4  ;;  %v14378_v1 = vcombine.low %v3407_v41, %v3411_v8  ;;  %v14385_v4 = vcombine.high %v3414_v50, %v3418_v49  ;;  %v3450_v56 = vld [vmem:[#allocation3 + $0x11f0] sm:$0xff]  ;;  %v3447_v22 = vld [vmem:[#allocation3 + $0x11d8] sm:$0xff] }
 0x5c1   :  { %13570 = vmatprep.subr.bf16.mxu1 %v14331_v57  ;;  %v14387_v57 = vcombine.high %v3415_v21, %v3419_v46  ;;  %v3451_v24 = vld [vmem:[#allocation3 + $0x11f8] sm:$0xff]  ;;  %v3454_v12 = vld [vmem:[#allocation3 + $0x1210] sm:$0xff]  ;;  %v14416_v44 = vcombine.low %v3446_v27, %v3450_v56 }
 0x5c2   :  { %v3458_v59 = vld [vmem:[#allocation3 + $0x1230] sm:$0xff]  ;;  %v3459_v17 = vld [vmem:[#allocation3 + $0x1238] sm:$0xff] }
 0x5c3   :  { %13243 = vmatpush1.bf16.msra.mxu0 %v14328_v10  ;;  %v14384_v10 = vcombine.low %v3414_v50, %v3418_v49  ;;  %v3462_v40 = vld [vmem:[#allocation3 + $0x1250] sm:$0xff]  ;;  %v3467_v41 = vld [vmem:[#allocation3 + $0x1278] sm:$0xff]  ;;  %v14424_v8 = vcombine.low %v3454_v12, %v3458_v59 }
 0x5c4   :  { %13571 = vmatpush1.bf16.msra.mxu1 %v14330_v6  ;;  %13244 = vmatprep.subr.bf16.mxu0 %v14337_v54  ;;  %v14386_v6 = vcombine.low %v3415_v21, %v3419_v46  ;;  %v14393_v54 = vcombine.high %v3422_v61, %v3426_v43  ;;  %v3471_v50 = vld [vmem:[#allocation3 + $0x1298] sm:$0xff] }
 0x5c5   :  { %13572 = vmatprep.subr.bf16.mxu1 %v14339_v13  ;;  %v14395_v13 = vcombine.high %v3423_v60, %v3427_v0  ;;  %v3475_v49 = vld [vmem:[#allocation3 + $0x12b8] sm:$0xff] }
 0x5c7   :  { %13245 = vmatpush1.bf16.msra.mxu0 %v14336_v26  ;;  %v14392_v26 = vcombine.low %v3422_v61, %v3426_v43  ;;  %v3479_v61 = vld [vmem:[#allocation3 + $0x12d8] sm:$0xff] }
 0x5c8   :  { %13573 = vmatpush1.bf16.msra.mxu1 %v14338_v55  ;;  %13246 = vmatprep.subr.bf16.mxu0 %v14345_v32  ;;  %v14394_v55 = vcombine.low %v3423_v60, %v3427_v0  ;;  %v14401_v32 = vcombine.high %v3430_v53, %v3434_v25  ;;  %v3483_v43 = vld [vmem:[#allocation3 + $0x12f8] sm:$0xff]  ;;  %v14442_v0 = vcombine.low %v3471_v50, %v3475_v49 }
 0x5c9   :  { %13574 = vmatprep.subr.bf16.mxu1 %v14347_v62  ;;  %v14403_v62 = vcombine.high %v3431_v35, %v3435_v28 }
 0x5cb   :  { %13247 = vmatpush1.bf16.msra.mxu0 %v14344_v30  ;;  %v14400_v30 = vcombine.low %v3430_v53, %v3434_v25  ;;  %v3487_v53 = vld [vmem:[#allocation3 + $0x1318] sm:$0xff] }
 0x5cc   :  { %13575 = vmatpush1.bf16.msra.mxu1 %v14346_v2  ;;  %13248 = vmatprep.subr.bf16.mxu0 %v14353_v9  ;;  %v14402_v2 = vcombine.low %v3431_v35, %v3435_v28  ;;  %v14409_v9 = vcombine.high %v3438_v63, %v3442_v45  ;;  %v3491_v25 = vld [vmem:[#allocation3 + $0x1338] sm:$0xff]  ;;  %v14450_v28 = vcombine.low %v3479_v61, %v3483_v43 }
 0x5cd   :  { %13576 = vmatprep.subr.bf16.mxu1 %v14355_v14  ;;  %v14411_v14 = vcombine.high %v3439_v31, %v3443_v29 }
 0x5cf   :  { %13249 = vmatpush1.bf16.msra.mxu0 %v14352_v33  ;;  %v14408_v33 = vcombine.low %v3438_v63, %v3442_v45  ;;  %v3495_v63 = vld [vmem:[#allocation3 + $0x1358] sm:$0xff] }
 0x5d0   :  { %13577 = vmatpush1.bf16.msra.mxu1 %v14354_v11  ;;  %13259 = vmatprep.subr.bf16.mxu0 %v14361_v36  ;;  %v14410_v11 = vcombine.low %v3439_v31, %v3443_v29  ;;  %v14417_v36 = vcombine.high %v3446_v27, %v3450_v56  ;;  %v3499_v45 = vld [vmem:[#allocation3 + $0x1378] sm:$0xff]  ;;  %v14458_v29 = vcombine.low %v3487_v53, %v3491_v25 }
 0x5d1   :  { %13587 = vmatprep.subr.bf16.mxu1 %v14363_v3  ;;  %v14419_v3 = vcombine.high %v3447_v22, %v3451_v24  ;;  %v3503_v27 = vld [vmem:[#allocation3 + $0x1398] sm:$0xff] }
 0x5d2   :  { %13251 = vmatmul.mubr.bf16.vlgmr.msra.gmra.mrb[4].mxu0 %v21269_v51  ;;  %v3507_v56 = vld [vmem:[#allocation3 + $0x13b8] sm:$0xff] }
 0x5d3   :  { %13579 = vmatmul.mubr.bf16.vlgmr.msra.gmra.mrb[4].mxu1 %v21269_v51  ;;  %13260 = vmatpush1.bf16.msra.mxu0 %v14360_v19  ;;  %v3455_v19 = vld [vmem:[#allocation3 + $0x1218] sm:$0xff]  ;;  %v3466_v51 = vld [vmem:[#allocation3 + $0x1270] sm:$0xff] }
 0x5d4   :  { %13291 = vmatprep.mubr.bf16.mxu0 %v21270_v52  ;;  %13588 = vmatpush1.bf16.msra.mxu1 %v14362_v47  ;;  %v14418_v47 = vcombine.low %v3447_v22, %v3451_v24  ;;  %v14427_v5 = vcombine.high %v3455_v19, %v3459_v17  ;;  %v14432_v21 = vcombine.low %v3462_v40, %v3466_v51 }
 0x5d5   :  { %13619 = vmatprep.mubr.bf16.mxu1 %v21270_v52  ;;  %13261 = vmatprep.subr.bf16.mxu0 %v14369_v16  ;;  %v14425_v16 = vcombine.high %v3454_v12, %v3458_v59  ;;  %v14433_v52 = vcombine.high %v3462_v40, %v3466_v51  ;;  %v14466_v24 = vcombine.low %v3495_v63, %v3499_v45  ;;  %v3511_v12 = vld [vmem:[#allocation3 + $0x13d8] sm:$0xff] }
 0x5d6   :  { %13589 = vmatprep.subr.bf16.mxu1 %v14371_v48  ;;  %v3463_v48 = vld [vmem:[#allocation3 + $0x1258] sm:$0xff] }
 0x5d7   :  { %13262 = vmatpush1.bf16.msra.mxu0 %v14368_v34  ;;  %v14426_v34 = vcombine.low %v3455_v19, %v3459_v17  ;;  %v14434_v46 = vcombine.low %v3463_v48, %v3467_v41  ;;  %v3515_v59 = vld [vmem:[#allocation3 + $0x13f8] sm:$0xff]  ;;  %v14474_v17 = vcombine.low %v3503_v27, %v3507_v56 }
 0x5d8   :  { %13590 = vmatpush1.bf16.msra.mxu1 %v14370_v39  ;;  %13263 = vmatprep.subr.bf16.mxu0 %v14377_v18  ;;  %v14435_v39 = vcombine.high %v3463_v48, %v3467_v41  ;;  %v3470_v18 = vld [vmem:[#allocation3 + $0x1290] sm:$0xff]  ;;  %v3519_v40 = vld [vmem:[#allocation3 + $0x1418] sm:$0xff]  ;;  %v14482_v41 = vcombine.low %v3511_v12, %v3515_v59 }
 0x5d9   :  { %13591 = vmatprep.subr.bf16.mxu1 %v14379_v15  ;;  %v3474_v15 = vld [vmem:[#allocation3 + $0x12b0] sm:$0xff]  ;;  %v3523_v51 = vld [vmem:[#allocation3 + $0x1438] sm:$0xff] }
 0x5da   :  { %v14440_v60 = vcombine.low %v3470_v18, %v3474_v15 }
 0x5db   :  { %13264 = vmatpush1.bf16.msra.mxu0 %v14376_v23  ;;  %v14441_v23 = vcombine.high %v3470_v18, %v3474_v15  ;;  %v3527_v15 = vld [vmem:[#allocation3 + $0x1458] sm:$0xff] }
 0x5dc   :  { %13592 = vmatpush1.bf16.msra.mxu1 %v14378_v1  ;;  %13265 = vmatprep.subr.bf16.mxu0 %v14385_v4  ;;  %v14443_v1 = vcombine.high %v3471_v50, %v3475_v49  ;;  %v3478_v4 = vld [vmem:[#allocation3 + $0x12d0] sm:$0xff]  ;;  %v3531_v50 = vld [vmem:[#allocation3 + $0x1478] sm:$0xff]  ;;  %v14490_v49 = vcombine.low %v3519_v40, %v3523_v51 }
 0x5dd   :  { %13593 = vmatprep.subr.bf16.mxu1 %v14387_v57  ;;  %v3482_v57 = vld [vmem:[#allocation3 + $0x12f0] sm:$0xff] }
 0x5de   :  { %v14448_v35 = vcombine.low %v3478_v4, %v3482_v57 }
 0x5df   :  { %13266 = vmatpush1.bf16.msra.mxu0 %v14384_v10  ;;  %v14449_v10 = vcombine.high %v3478_v4, %v3482_v57  ;;  %v14499_v4 = vcombine.high %v3527_v15, %v3531_v50  ;;  %v3535_v57 = vld [vmem:[#allocation3 + $0x1498] sm:$0xff] }
 0x5e0   :  { %13594 = vmatpush1.bf16.msra.mxu1 %v14386_v6  ;;  %13267 = vmatprep.subr.bf16.mxu0 %v14393_v54  ;;  %v14451_v6 = vcombine.high %v3479_v61, %v3483_v43  ;;  %v3486_v54 = vld [vmem:[#allocation3 + $0x1310] sm:$0xff]  ;;  %v3539_v61 = vld [vmem:[#allocation3 + $0x14b8] sm:$0xff] }
 0x5e1   :  { %13595 = vmatprep.subr.bf16.mxu1 %v14395_v13  ;;  %v3490_v13 = vld [vmem:[#allocation3 + $0x1330] sm:$0xff] }
 0x5e2   :  { %v14456_v31 = vcombine.low %v3486_v54, %v3490_v13 }
 0x5e3   :  { %13268 = vmatpush1.bf16.msra.mxu0 %v14392_v26  ;;  %v14457_v26 = vcombine.high %v3486_v54, %v3490_v13  ;;  %v3542_v54 = vld [vmem:[#allocation3 + $0x14d0] sm:$0xff] }
 0x5e4   :  { %13596 = vmatpush1.bf16.msra.mxu1 %v14394_v55  ;;  %13269 = vmatprep.subr.bf16.mxu0 %v14401_v32  ;;  %v14459_v55 = vcombine.high %v3487_v53, %v3491_v25  ;;  %v3494_v32 = vld [vmem:[#allocation3 + $0x1350] sm:$0xff]  ;;  %v3543_v53 = vld [vmem:[#allocation3 + $0x14d8] sm:$0xff] }
 0x5e5   :  { %13597 = vmatprep.subr.bf16.mxu1 %v14403_v62  ;;  %v3498_v62 = vld [vmem:[#allocation3 + $0x1370] sm:$0xff]  ;;  %v3547_v25 = vld [vmem:[#allocation3 + $0x14f8] sm:$0xff] }
 0x5e6   :  { %v14464_v22 = vcombine.low %v3494_v32, %v3498_v62  ;;  %v3546_v13 = vld [vmem:[#allocation3 + $0x14f0] sm:$0xff] }
 0x5e7   :  { %13270 = vmatpush1.bf16.msra.mxu0 %v14400_v30  ;;  %v14465_v30 = vcombine.high %v3494_v32, %v3498_v62  ;;  %v3550_v32 = vld [vmem:[#allocation3 + $0x1510] sm:$0xff] }
 0x5e8   :  { %13598 = vmatpush1.bf16.msra.mxu1 %v14402_v2  ;;  %13271 = vmatprep.subr.bf16.mxu0 %v14409_v9  ;;  %v14467_v2 = vcombine.high %v3495_v63, %v3499_v45  ;;  %v3502_v9 = vld [vmem:[#allocation3 + $0x1390] sm:$0xff]  ;;  %v3551_v63 = vld [vmem:[#allocation3 + $0x1518] sm:$0xff] }
 0x5e9   :  { %13599 = vmatprep.subr.bf16.mxu1 %v14411_v14  ;;  %v3506_v14 = vld [vmem:[#allocation3 + $0x13b0] sm:$0xff]  ;;  %v3555_v45 = vld [vmem:[#allocation3 + $0x1538] sm:$0xff] }
 0x5ea   :  { %v14472_v19 = vcombine.low %v3502_v9, %v3506_v14  ;;  %v3554_v62 = vld [vmem:[#allocation3 + $0x1530] sm:$0xff] }
 0x5eb   :  { %13272 = vmatpush1.bf16.msra.mxu0 %v14408_v33  ;;  %v14473_v33 = vcombine.high %v3502_v9, %v3506_v14  ;;  %v3558_v9 = vld [vmem:[#allocation3 + $0x1550] sm:$0xff] }
 0x5ec   :  { %13600 = vmatpush1.bf16.msra.mxu1 %v14410_v11  ;;  %13273 = vmatprep.subr.bf16.mxu0 %v14417_v36  ;;  %v14475_v11 = vcombine.high %v3503_v27, %v3507_v56  ;;  %v3510_v36 = vld [vmem:[#allocation3 + $0x13d0] sm:$0xff]  ;;  %v3559_v27 = vld [vmem:[#allocation3 + $0x1558] sm:$0xff] }
 0x5ed   :  { %13601 = vmatprep.subr.bf16.mxu1 %v14419_v3  ;;  %v3514_v3 = vld [vmem:[#allocation3 + $0x13f0] sm:$0xff]  ;;  %v3563_v56 = vld [vmem:[#allocation3 + $0x1578] sm:$0xff] }
 0x5ee   :  { %v14480_v48 = vcombine.low %v3510_v36, %v3514_v3  ;;  %v3562_v14 = vld [vmem:[#allocation3 + $0x1570] sm:$0xff] }
 0x5ef   :  { %13274 = vmatpush1.bf16.msra.mxu0 %v14416_v44  ;;  %v14481_v44 = vcombine.high %v3510_v36, %v3514_v3  ;;  %v3566_v36 = vld [vmem:[#allocation3 + $0x1590] sm:$0xff] }
 0x5f0   :  { %13602 = vmatpush1.bf16.msra.mxu1 %v14418_v47  ;;  %13275 = vmatprep.subr.bf16.mxu0 %v14425_v16  ;;  %v14483_v47 = vcombine.high %v3511_v12, %v3515_v59  ;;  %v3518_v16 = vld [vmem:[#allocation3 + $0x1410] sm:$0xff]  ;;  %v3567_v12 = vld [vmem:[#allocation3 + $0x1598] sm:$0xff] }
 0x5f1   :  { %13603 = vmatprep.subr.bf16.mxu1 %v14427_v5  ;;  %v3522_v5 = vld [vmem:[#allocation3 + $0x1430] sm:$0xff]  ;;  %v3571_v59 = vld [vmem:[#allocation3 + $0x15b8] sm:$0xff] }
 0x5f2   :  { %v14488_v18 = vcombine.low %v3518_v16, %v3522_v5  ;;  %v3570_v3 = vld [vmem:[#allocation3 + $0x15b0] sm:$0xff] }
 0x5f3   :  { %13276 = vmatpush1.bf16.msra.mxu0 %v14424_v8  ;;  %v14489_v8 = vcombine.high %v3518_v16, %v3522_v5  ;;  %v3574_v16 = vld [vmem:[#allocation3 + $0x15d0] sm:$0xff] }
 0x5f4   :  { %13604 = vmatpush1.bf16.msra.mxu1 %v14426_v34  ;;  %13277 = vmatprep.subr.bf16.mxu0 %v14433_v52  ;;  %v14491_v34 = vcombine.high %v3519_v40, %v3523_v51  ;;  %v3526_v52 = vld [vmem:[#allocation3 + $0x1450] sm:$0xff]  ;;  %v3575_v40 = vld [vmem:[#allocation3 + $0x15d8] sm:$0xff] }
 0x5f5   :  { %13605 = vmatprep.subr.bf16.mxu1 %v14435_v39  ;;  %v3530_v39 = vld [vmem:[#allocation3 + $0x1470] sm:$0xff]  ;;  %v3579_v51 = vld [vmem:[#allocation3 + $0x15f8] sm:$0xff] }
 0x5f6   :  { %v14496_v43 = vcombine.low %v3526_v52, %v3530_v39  ;;  %v3578_v5 = vld [vmem:[#allocation3 + $0x15f0] sm:$0xff] }
 0x5f7   :  { %13278 = vmatpush1.bf16.msra.mxu0 %v14432_v21  ;;  %v14497_v21 = vcombine.high %v3526_v52, %v3530_v39  ;;  %v3582_v52 = vld [vmem:[#allocation3 + $0x1610] sm:$0xff] }
 0x5f8   :  { %13606 = vmatpush1.bf16.msra.mxu1 %v14434_v46  ;;  %13279 = vmatprep.subr.bf16.mxu0 %v14441_v23  ;;  %v3534_v46 = vld [vmem:[#allocation3 + $0x1490] sm:$0xff] }
 0x5f9   :  { %13607 = vmatprep.subr.bf16.mxu1 %v14443_v1  ;;  %v3538_v23 = vld [vmem:[#allocation3 + $0x14b0] sm:$0xff] }
 0x5fa   :  { %v21271_v1 = vld [vmem:[#allocation30_spill] sm:$0xff] }
 0x5fb   :  { %13280 = vmatpush1.bf16.msra.mxu0 %v14440_v60  ;;  %v21272_v60 = vld [vmem:[#allocation31_spill] sm:$0xff]  ;;  %v3586_v39 = vld [vmem:[#allocation3 + $0x1630] sm:$0xff] }
 0x5fc   :  { %13608 = vmatpush1.bf16.msra.mxu1 %v14442_v0  ;;  %13281 = vmatprep.subr.bf16.mxu0 %v14449_v10  ;;  %v14498_v0 = vcombine.low %v3527_v15, %v3531_v50  ;;  %v14505_v10 = vcombine.high %v3534_v46, %v3538_v23  ;;  %v3587_v15 = vld [vmem:[#allocation3 + $0x1638] sm:$0xff]  ;;  %v14544_v50 = vcombine.low %v3574_v16, %v3578_v5 }
 0x5fd   :  { %13609 = vmatprep.subr.bf16.mxu1 %v14451_v6  ;;  %v14507_v6 = vcombine.high %v3535_v57, %v3539_v61 }
 0x5ff   :  { %13282 = vmatpush1.bf16.msra.mxu0 %v14448_v35  ;;  %v14504_v35 = vcombine.low %v3534_v46, %v3538_v23  ;;  %v3590_v23 = vld [vmem:[#allocation3 + $0x1650] sm:$0xff] }
 0x600   :  { %13610 = vmatpush1.bf16.msra.mxu1 %v14450_v28  ;;  %13283 = vmatprep.subr.bf16.mxu0 %v14457_v26  ;;  %v14506_v28 = vcombine.low %v3535_v57, %v3539_v61  ;;  %v14513_v26 = vcombine.high %v3542_v54, %v3546_v13  ;;  %v3595_v57 = vld [vmem:[#allocation3 + $0x1678] sm:$0xff]  ;;  %v14552_v61 = vcombine.low %v3582_v52, %v3586_v39 }
 0x601   :  { %13611 = vmatprep.subr.bf16.mxu1 %v14459_v55  ;;  %v14515_v55 = vcombine.high %v3543_v53, %v3547_v25 }
 0x603   :  { %13284 = vmatpush1.bf16.msra.mxu0 %v14456_v31  ;;  %v14512_v31 = vcombine.low %v3542_v54, %v3546_v13  ;;  %v3599_v54 = vld [vmem:[#allocation3 + $0x1698] sm:$0xff] }
 0x604   :  { %13612 = vmatpush1.bf16.msra.mxu1 %v14458_v29  ;;  %13285 = vmatprep.subr.bf16.mxu0 %v14465_v30  ;;  %v14514_v29 = vcombine.low %v3543_v53, %v3547_v25  ;;  %v14521_v30 = vcombine.high %v3550_v32, %v3554_v62  ;;  %v3603_v13 = vld [vmem:[#allocation3 + $0x16b8] sm:$0xff] }
 0x605   :  { %13613 = vmatprep.subr.bf16.mxu1 %v14467_v2  ;;  %v14523_v2 = vcombine.high %v3551_v63, %v3555_v45 }
 0x607   :  { %13286 = vmatpush1.bf16.msra.mxu0 %v14464_v22  ;;  %v14520_v22 = vcombine.low %v3550_v32, %v3554_v62  ;;  %v3607_v32 = vld [vmem:[#allocation3 + $0x16d8] sm:$0xff] }
 0x608   :  { %13614 = vmatpush1.bf16.msra.mxu1 %v14466_v24  ;;  %13287 = vmatprep.subr.bf16.mxu0 %v14473_v33  ;;  %v14522_v24 = vcombine.low %v3551_v63, %v3555_v45  ;;  %v14529_v33 = vcombine.high %v3558_v9, %v3562_v14  ;;  %v3611_v62 = vld [vmem:[#allocation3 + $0x16f8] sm:$0xff]  ;;  %v14570_v45 = vcombine.low %v3599_v54, %v3603_v13 }
 0x609   :  { %13615 = vmatprep.subr.bf16.mxu1 %v14475_v11  ;;  %v14531_v11 = vcombine.high %v3559_v27, %v3563_v56 }
 0x60b   :  { %13288 = vmatpush1.bf16.msra.mxu0 %v14472_v19  ;;  %v14528_v19 = vcombine.low %v3558_v9, %v3562_v14  ;;  %v3615_v9 = vld [vmem:[#allocation3 + $0x1718] sm:$0xff] }
 0x60c   :  { %13616 = vmatpush1.bf16.msra.mxu1 %v14474_v17  ;;  %13289 = vmatprep.subr.bf16.mxu0 %v14481_v44  ;;  %v14530_v17 = vcombine.low %v3559_v27, %v3563_v56  ;;  %v14537_v44 = vcombine.high %v3566_v36, %v3570_v3  ;;  %v3619_v14 = vld [vmem:[#allocation3 + $0x1738] sm:$0xff]  ;;  %v14578_v56 = vcombine.low %v3607_v32, %v3611_v62 }
 0x60d   :  { %13617 = vmatprep.subr.bf16.mxu1 %v14483_v47  ;;  %v14539_v47 = vcombine.high %v3567_v12, %v3571_v59 }
 0x60f   :  { %13290 = vmatpush1.bf16.msra.mxu0 %v14480_v48  ;;  %v14536_v48 = vcombine.low %v3566_v36, %v3570_v3  ;;  %v3623_v36 = vld [vmem:[#allocation3 + $0x1758] sm:$0xff] }
 0x610   :  { %13618 = vmatpush1.bf16.msra.mxu1 %v14482_v41  ;;  %13300 = vmatprep.subr.bf16.mxu0 %v14489_v8  ;;  %v14538_v41 = vcombine.low %v3567_v12, %v3571_v59  ;;  %v14545_v8 = vcombine.high %v3574_v16, %v3578_v5  ;;  %v3627_v3 = vld [vmem:[#allocation3 + $0x1778] sm:$0xff]  ;;  %v14586_v59 = vcombine.low %v3615_v9, %v3619_v14 }
 0x611   :  { %13628 = vmatprep.subr.bf16.mxu1 %v14491_v34  ;;  %v14547_v34 = vcombine.high %v3575_v40, %v3579_v51  ;;  %v3631_v16 = vld [vmem:[#allocation3 + $0x1798] sm:$0xff] }
 0x612   :  { %13292 = vmatmul.mubr.bf16.vlgmr.msra.gmra.mrb[4].mxu0 %v21271_v1  ;;  %v3635_v5 = vld [vmem:[#allocation3 + $0x17b8] sm:$0xff] }
 0x613   :  { %13620 = vmatmul.mubr.bf16.vlgmr.msra.gmra.mrb[4].mxu1 %v21271_v1  ;;  %13301 = vmatpush1.bf16.msra.mxu0 %v14488_v18  ;;  %v3583_v18 = vld [vmem:[#allocation3 + $0x1618] sm:$0xff]  ;;  %v3594_v1 = vld [vmem:[#allocation3 + $0x1670] sm:$0xff] }
 0x614   :  { %13332 = vmatprep.mubr.bf16.mxu0 %v21272_v60  ;;  %13629 = vmatpush1.bf16.msra.mxu1 %v14490_v49  ;;  %v14546_v49 = vcombine.low %v3575_v40, %v3579_v51  ;;  %v14555_v46 = vcombine.high %v3583_v18, %v3587_v15  ;;  %v14560_v53 = vcombine.low %v3590_v23, %v3594_v1 }
 0x615   :  { %13660 = vmatprep.mubr.bf16.mxu1 %v21272_v60  ;;  %13302 = vmatprep.subr.bf16.mxu0 %v14497_v21  ;;  %v14553_v21 = vcombine.high %v3582_v52, %v3586_v39  ;;  %v14561_v60 = vcombine.high %v3590_v23, %v3594_v1  ;;  %v14594_v51 = vcombine.low %v3623_v36, %v3627_v3  ;;  %v3639_v52 = vld [vmem:[#allocation3 + $0x17d8] sm:$0xff] }
 0x616   :  { %13630 = vmatprep.subr.bf16.mxu1 %v14499_v4  ;;  %v3591_v4 = vld [vmem:[#allocation3 + $0x1658] sm:$0xff] }
 0x617   :  { %13303 = vmatpush1.bf16.msra.mxu0 %v14496_v43  ;;  %v14554_v43 = vcombine.low %v3583_v18, %v3587_v15  ;;  %v14562_v25 = vcombine.low %v3591_v4, %v3595_v57  ;;  %v3643_v39 = vld [vmem:[#allocation3 + $0x17f8] sm:$0xff]  ;;  %v14602_v15 = vcombine.low %v3631_v16, %v3635_v5 }
 0x618   :  { %13631 = vmatpush1.bf16.msra.mxu1 %v14498_v0  ;;  %13304 = vmatprep.subr.bf16.mxu0 %v14505_v10  ;;  %v14563_v0 = vcombine.high %v3591_v4, %v3595_v57  ;;  %v3598_v10 = vld [vmem:[#allocation3 + $0x1690] sm:$0xff]  ;;  %v3647_v23 = vld [vmem:[#allocation3 + $0x1818] sm:$0xff]  ;;  %v14610_v57 = vcombine.low %v3639_v52, %v3643_v39 }
 0x619   :  { %13632 = vmatprep.subr.bf16.mxu1 %v14507_v6  ;;  %v3602_v6 = vld [vmem:[#allocation3 + $0x16b0] sm:$0xff]  ;;  %v3651_v1 = vld [vmem:[#allocation3 + $0x1838] sm:$0xff] }
 0x61a   :  { %v14568_v63 = vcombine.low %v3598_v10, %v3602_v6 }
 0x61b   :  { %13305 = vmatpush1.bf16.msra.mxu0 %v14504_v35  ;;  %v14569_v35 = vcombine.high %v3598_v10, %v3602_v6  ;;  %v3655_v6 = vld [vmem:[#allocation3 + $0x1858] sm:$0xff] }
 0x61c   :  { %13633 = vmatpush1.bf16.msra.mxu1 %v14506_v28  ;;  %13306 = vmatprep.subr.bf16.mxu0 %v14513_v26  ;;  %v14571_v28 = vcombine.high %v3599_v54, %v3603_v13  ;;  %v3606_v26 = vld [vmem:[#allocation3 + $0x16d0] sm:$0xff]  ;;  %v3659_v54 = vld [vmem:[#allocation3 + $0x1878] sm:$0xff]  ;;  %v14618_v13 = vcombine.low %v3647_v23, %v3651_v1 }
 0x61d   :  { %13634 = vmatprep.subr.bf16.mxu1 %v14515_v55  ;;  %v3610_v55 = vld [vmem:[#allocation3 + $0x16f0] sm:$0xff] }
 0x61e   :  { %v14576_v27 = vcombine.low %v3606_v26, %v3610_v55 }
 0x61f   :  { %13307 = vmatpush1.bf16.msra.mxu0 %v14512_v31  ;;  %v14577_v31 = vcombine.high %v3606_v26, %v3610_v55  ;;  %v14627_v26 = vcombine.high %v3655_v6, %v3659_v54  ;;  %v3663_v55 = vld [vmem:[#allocation3 + $0x1898] sm:$0xff] }
 0x620   :  { %13635 = vmatpush1.bf16.msra.mxu1 %v14514_v29  ;;  %13308 = vmatprep.subr.bf16.mxu0 %v14521_v30  ;;  %v14579_v29 = vcombine.high %v3607_v32, %v3611_v62  ;;  %v3614_v30 = vld [vmem:[#allocation3 + $0x1710] sm:$0xff]  ;;  %v3667_v32 = vld [vmem:[#allocation3 + $0x18b8] sm:$0xff] }
 0x621   :  { %13636 = vmatprep.subr.bf16.mxu1 %v14523_v2  ;;  %v3618_v2 = vld [vmem:[#allocation3 + $0x1730] sm:$0xff] }
 0x622   :  { %v14584_v12 = vcombine.low %v3614_v30, %v3618_v2 }
 0x623   :  { %13309 = vmatpush1.bf16.msra.mxu0 %v14520_v22  ;;  %v14585_v22 = vcombine.high %v3614_v30, %v3618_v2  ;;  %v3674_v30 = vld [vmem:[#allocation3 + $0x18f0] sm:$0xff]  ;;  %v3671_v2 = vld [vmem:[#allocation3 + $0x18d8] sm:$0xff] }
 0x624   :  { %13637 = vmatpush1.bf16.msra.mxu1 %v14522_v24  ;;  %13310 = vmatprep.subr.bf16.mxu0 %v14529_v33  ;;  %v14587_v24 = vcombine.high %v3615_v9, %v3619_v14  ;;  %v3622_v33 = vld [vmem:[#allocation3 + $0x1750] sm:$0xff]  ;;  %v3675_v9 = vld [vmem:[#allocation3 + $0x18f8] sm:$0xff] }
 0x625   :  { %13638 = vmatprep.subr.bf16.mxu1 %v14531_v11  ;;  %v3626_v11 = vld [vmem:[#allocation3 + $0x1770] sm:$0xff] }
 0x626   :  { %v14592_v40 = vcombine.low %v3622_v33, %v3626_v11 }
 0x627   :  { %13311 = vmatpush1.bf16.msra.mxu0 %v14528_v19  ;;  %v14593_v19 = vcombine.high %v3622_v33, %v3626_v11  ;;  %v3682_v33 = vld [vmem:[#allocation3 + $0x1930] sm:$0xff]  ;;  %v3679_v11 = vld [vmem:[#allocation3 + $0x1918] sm:$0xff] }
 0x628   :  { %13639 = vmatpush1.bf16.msra.mxu1 %v14530_v17  ;;  %13312 = vmatprep.subr.bf16.mxu0 %v14537_v44  ;;  %v14595_v17 = vcombine.high %v3623_v36, %v3627_v3  ;;  %v3630_v44 = vld [vmem:[#allocation3 + $0x1790] sm:$0xff]  ;;  %v3683_v36 = vld [vmem:[#allocation3 + $0x1938] sm:$0xff]  ;;  %v14642_v3 = vcombine.low %v3671_v2, %v3675_v9 }
 0x629   :  { %13640 = vmatprep.subr.bf16.mxu1 %v14539_v47  ;;  %v3634_v47 = vld [vmem:[#allocation3 + $0x17b0] sm:$0xff] }
 0x62a   :  { %v14600_v18 = vcombine.low %v3630_v44, %v3634_v47 }
 0x62b   :  { %13313 = vmatpush1.bf16.msra.mxu0 %v14536_v48  ;;  %v14601_v48 = vcombine.high %v3630_v44, %v3634_v47  ;;  %v3687_v44 = vld [vmem:[#allocation3 + $0x1958] sm:$0xff] }
 0x62c   :  { %13641 = vmatpush1.bf16.msra.mxu1 %v14538_v41  ;;  %13314 = vmatprep.subr.bf16.mxu0 %v14545_v8  ;;  %v14603_v41 = vcombine.high %v3631_v16, %v3635_v5  ;;  %v3638_v8 = vld [vmem:[#allocation3 + $0x17d0] sm:$0xff]  ;;  %v3691_v47 = vld [vmem:[#allocation3 + $0x1978] sm:$0xff]  ;;  %v14650_v5 = vcombine.low %v3679_v11, %v3683_v36 }
 0x62d   :  { %13642 = vmatprep.subr.bf16.mxu1 %v14547_v34  ;;  %v3642_v34 = vld [vmem:[#allocation3 + $0x17f0] sm:$0xff] }
 0x62e   :  { %v14608_v4 = vcombine.low %v3638_v8, %v3642_v34 }
 0x62f   :  { %13315 = vmatpush1.bf16.msra.mxu0 %v14544_v50  ;;  %v14609_v50 = vcombine.high %v3638_v8, %v3642_v34  ;;  %v3695_v8 = vld [vmem:[#allocation3 + $0x1998] sm:$0xff] }
 0x630   :  { %13643 = vmatpush1.bf16.msra.mxu1 %v14546_v49  ;;  %13316 = vmatprep.subr.bf16.mxu0 %v14553_v21  ;;  %v14611_v49 = vcombine.high %v3639_v52, %v3643_v39  ;;  %v3646_v21 = vld [vmem:[#allocation3 + $0x1810] sm:$0xff]  ;;  %v3699_v34 = vld [vmem:[#allocation3 + $0x19b8] sm:$0xff]  ;;  %v14658_v39 = vcombine.low %v3687_v44, %v3691_v47 }
 0x631   :  { %13644 = vmatprep.subr.bf16.mxu1 %v14555_v46  ;;  %v3650_v46 = vld [vmem:[#allocation3 + $0x1830] sm:$0xff] }
 0x632   :  { %v14616_v10 = vcombine.low %v3646_v21, %v3650_v46 }
 0x633   :  { %13317 = vmatpush1.bf16.msra.mxu0 %v14552_v61  ;;  %v14617_v61 = vcombine.high %v3646_v21, %v3650_v46  ;;  %v3703_v21 = vld [vmem:[#allocation3 + $0x19d8] sm:$0xff] }
 0x634   :  { %13645 = vmatpush1.bf16.msra.mxu1 %v14554_v43  ;;  %13318 = vmatprep.subr.bf16.mxu0 %v14561_v60  ;;  %v14619_v43 = vcombine.high %v3647_v23, %v3651_v1  ;;  %v3654_v60 = vld [vmem:[#allocation3 + $0x1850] sm:$0xff]  ;;  %v3707_v46 = vld [vmem:[#allocation3 + $0x19f8] sm:$0xff]  ;;  %v14666_v1 = vcombine.low %v3695_v8, %v3699_v34 }
 0x635   :  { %13646 = vmatprep.subr.bf16.mxu1 %v14563_v0  ;;  %v3658_v0 = vld [vmem:[#allocation3 + $0x1870] sm:$0xff] }
 0x636   :  { %v14624_v62 = vcombine.low %v3654_v60, %v3658_v0 }
 0x637   :  { %13319 = vmatpush1.bf16.msra.mxu0 %v14560_v53  ;;  %v14625_v53 = vcombine.high %v3654_v60, %v3658_v0  ;;  %v3711_v60 = vld [vmem:[#allocation3 + $0x1a18] sm:$0xff] }
 0x638   :  { %13647 = vmatpush1.bf16.msra.mxu1 %v14562_v25  ;;  %13320 = vmatprep.subr.bf16.mxu0 %v14569_v35  ;;  %v3662_v25 = vld [vmem:[#allocation3 + $0x1890] sm:$0xff]  ;;  %v3715_v0 = vld [vmem:[#allocation3 + $0x1a38] sm:$0xff] }
 0x639   :  { %13648 = vmatprep.subr.bf16.mxu1 %v14571_v28  ;;  %v3666_v35 = vld [vmem:[#allocation3 + $0x18b0] sm:$0xff]  ;;  %v21273_v28 = vld [vmem:[#allocation32_spill] sm:$0xff] }
 0x63a   :  { %v14632_v14 = vcombine.low %v3662_v25, %v3666_v35 }
 0x63b   :  { %13321 = vmatpush1.bf16.msra.mxu0 %v14568_v63  ;;  %v14626_v63 = vcombine.low %v3655_v6, %v3659_v54  ;;  %v14674_v6 = vcombine.low %v3703_v21, %v3707_v46 }
 0x63c   :  { %13649 = vmatpush1.bf16.msra.mxu1 %v14570_v45  ;;  %13322 = vmatprep.subr.bf16.mxu0 %v14577_v31  ;;  %v14633_v45 = vcombine.high %v3662_v25, %v3666_v35  ;;  %v14635_v31 = vcombine.high %v3663_v55, %v3667_v32  ;;  %v3722_v25 = vld [vmem:[#allocation3 + $0x1a70] sm:$0xff]  ;;  %v3719_v35 = vld [vmem:[#allocation3 + $0x1a58] sm:$0xff] }
 0x63d   :  { %13650 = vmatprep.subr.bf16.mxu1 %v14579_v29  ;;  %v3670_v29 = vld [vmem:[#allocation3 + $0x18d0] sm:$0xff] }
 0x63f   :  { %13323 = vmatpush1.bf16.msra.mxu0 %v14576_v27  ;;  %v14634_v27 = vcombine.low %v3663_v55, %v3667_v32  ;;  %v14682_v55 = vcombine.low %v3711_v60, %v3715_v0 }
 0x640   :  { %13651 = vmatpush1.bf16.msra.mxu1 %v14578_v56  ;;  %13324 = vmatprep.subr.bf16.mxu0 %v14585_v22  ;;  %v14641_v56 = vcombine.high %v3670_v29, %v3674_v30  ;;  %v14643_v22 = vcombine.high %v3671_v2, %v3675_v9 }
 0x641   :  { %13652 = vmatprep.subr.bf16.mxu1 %v14587_v24  ;;  %v3678_v24 = vld [vmem:[#allocation3 + $0x1910] sm:$0xff] }
 0x642   :  { %v14648_v16 = vcombine.low %v3678_v24, %v3682_v33 }
 0x643   :  { %13325 = vmatpush1.bf16.msra.mxu0 %v14584_v12  ;;  %v14649_v12 = vcombine.high %v3678_v24, %v3682_v33  ;;  %v3739_v24 = vld [vmem:[#allocation3 + $0x1af8] sm:$0xff] }
 0x644   :  { %13653 = vmatpush1.bf16.msra.mxu1 %v14586_v59  ;;  %13326 = vmatprep.subr.bf16.mxu0 %v14593_v19  ;;  %v14651_v59 = vcombine.high %v3679_v11, %v3683_v36  ;;  %v3686_v19 = vld [vmem:[#allocation3 + $0x1950] sm:$0xff] }
 0x645   :  { %13654 = vmatprep.subr.bf16.mxu1 %v14595_v17  ;;  %v3690_v17 = vld [vmem:[#allocation3 + $0x1970] sm:$0xff] }
 0x646   :  { %v14656_v52 = vcombine.low %v3686_v19, %v3690_v17 }
 0x647   :  { %13327 = vmatpush1.bf16.msra.mxu0 %v14592_v40  ;;  %v14657_v40 = vcombine.high %v3686_v19, %v3690_v17  ;;  %v3747_v19 = vld [vmem:[#allocation3 + $0x1b38] sm:$0xff] }
 0x648   :  { %13655 = vmatpush1.bf16.msra.mxu1 %v14594_v51  ;;  %13328 = vmatprep.subr.bf16.mxu0 %v14601_v48  ;;  %v14659_v51 = vcombine.high %v3687_v44, %v3691_v47  ;;  %v3694_v48 = vld [vmem:[#allocation3 + $0x1990] sm:$0xff] }
 0x649   :  { %13656 = vmatprep.subr.bf16.mxu1 %v14603_v41  ;;  %v3698_v41 = vld [vmem:[#allocation3 + $0x19b0] sm:$0xff] }
 0x64a   :  { %v14664_v23 = vcombine.low %v3694_v48, %v3698_v41 }
 0x64b   :  { %13329 = vmatpush1.bf16.msra.mxu0 %v14600_v18  ;;  %v14665_v18 = vcombine.high %v3694_v48, %v3698_v41  ;;  %v3755_v48 = vld [vmem:[#allocation3 + $0x1b78] sm:$0xff] }
 0x64c   :  { %13657 = vmatpush1.bf16.msra.mxu1 %v14602_v15  ;;  %13330 = vmatprep.subr.bf16.mxu0 %v14609_v50  ;;  %v14667_v15 = vcombine.high %v3695_v8, %v3699_v34  ;;  %v3702_v50 = vld [vmem:[#allocation3 + $0x19d0] sm:$0xff] }
 0x64d   :  { %13658 = vmatprep.subr.bf16.mxu1 %v14611_v49  ;;  %v3706_v49 = vld [vmem:[#allocation3 + $0x19f0] sm:$0xff] }
 0x64f   :  { %13331 = vmatpush1.bf16.msra.mxu0 %v14608_v4  ;;  %v14673_v4 = vcombine.high %v3702_v50, %v3706_v49 }
 0x650   :  { %13659 = vmatpush1.bf16.msra.mxu1 %v14610_v57  ;;  %13341 = vmatprep.subr.bf16.mxu0 %v14617_v61  ;;  %v14675_v57 = vcombine.high %v3703_v21, %v3707_v46  ;;  %v3710_v61 = vld [vmem:[#allocation3 + $0x1a10] sm:$0xff] }
 0x651   :  { %13669 = vmatprep.subr.bf16.mxu1 %v14619_v43  ;;  %v3714_v43 = vld [vmem:[#allocation3 + $0x1a30] sm:$0xff] }
 0x652   :  { %13333 = vmatmul.mubr.bf16.vlgmr.msra.gmra.mrb[4].mxu0 %v21273_v28  ;;  %v14681_v54 = vcombine.high %v3710_v61, %v3714_v43 }
 0x653   :  { %13661 = vmatmul.mubr.bf16.vlgmr.msra.gmra.mrb[4].mxu1 %v21273_v28  ;;  %13342 = vmatpush1.bf16.msra.mxu0 %v14616_v10  ;;  %v14672_v10 = vcombine.low %v3702_v50, %v3706_v49  ;;  %v3723_v28 = vld [vmem:[#allocation3 + $0x1a78] sm:$0xff] }
 0x654   :  { %13373 = vmatprep.mubr.bf16.mxu0 %v20584_v58  ;;  %13670 = vmatpush1.bf16.msra.mxu1 %v14618_v13  ;;  %v14683_v13 = vcombine.high %v3711_v60, %v3715_v0  ;;  %v14690_v2 = vcombine.low %v3719_v35, %v3723_v28  ;;  %v3763_v50 = vld [vmem:[#allocation3 + $0x1bb8] sm:$0xff] }
 0x655   :  { %13701 = vmatprep.mubr.bf16.mxu1 %v20584_v58  ;;  %13343 = vmatprep.subr.bf16.mxu0 %v14625_v53  ;;  %v14640_v58 = vcombine.low %v3670_v29, %v3674_v30  ;;  %v3718_v53 = vld [vmem:[#allocation3 + $0x1a50] sm:$0xff]  ;;  %v3731_v29 = vld [vmem:[#allocation3 + $0x1ab8] sm:$0xff] }
 0x656   :  { %13671 = vmatprep.subr.bf16.mxu1 %v14627_v26  ;;  %v14680_v26 = vcombine.low %v3710_v61, %v3714_v43  ;;  %v14689_v32 = vcombine.high %v3718_v53, %v3722_v25  ;;  %v14688_v30 = vcombine.low %v3718_v53, %v3722_v25  ;;  %v3771_v61 = vld [vmem:[#allocation3 + $0x1bf8] sm:$0xff] }
 0x657   :  { %13344 = vmatpush1.bf16.msra.mxu0 %v14624_v62  ;;  %v14691_v62 = vcombine.high %v3719_v35, %v3723_v28  ;;  %v3779_v53 = vld [vmem:[#allocation3 + $0x1c38] sm:$0xff] }
 0x658   :  { %13672 = vmatpush1.bf16.msra.mxu1 %v14626_v63  ;;  %13345 = vmatprep.subr.bf16.mxu0 %v14633_v45  ;;  %v3726_v63 = vld [vmem:[#allocation3 + $0x1a90] sm:$0xff] }
 0x659   :  { %13673 = vmatprep.subr.bf16.mxu1 %v14635_v31  ;;  %v3730_v45 = vld [vmem:[#allocation3 + $0x1ab0] sm:$0xff]  ;;  %v3727_v31 = vld [vmem:[#allocation3 + $0x1a98] sm:$0xff] }
 0x65a   :  { %v14697_v9 = vcombine.high %v3726_v63, %v3730_v45  ;;  %v14696_v33 = vcombine.low %v3726_v63, %v3730_v45  ;;  %v14698_v11 = vcombine.low %v3727_v31, %v3731_v29  ;;  %v3783_v63 = vld [vmem:[#allocation3 + $0x1c58] sm:$0xff] }
 0x65b   :  { %13346 = vmatpush1.bf16.msra.mxu0 %v14632_v14  ;;  %v14699_v14 = vcombine.high %v3727_v31, %v3731_v29  ;;  %v3787_v45 = vld [vmem:[#allocation3 + $0x1c78] sm:$0xff] }
 0x65c   :  { %13674 = vmatpush1.bf16.msra.mxu1 %v14634_v27  ;;  %13347 = vmatprep.subr.bf16.mxu0 %v14641_v56  ;;  %v3734_v27 = vld [vmem:[#allocation3 + $0x1ad0] sm:$0xff] }
 0x65d   :  { %13675 = vmatprep.subr.bf16.mxu1 %v14643_v22  ;;  %v3738_v56 = vld [vmem:[#allocation3 + $0x1af0] sm:$0xff]  ;;  %v3735_v22 = vld [vmem:[#allocation3 + $0x1ad8] sm:$0xff] }
 0x65e   :  { %v14705_v36 = vcombine.high %v3734_v27, %v3738_v56  ;;  %v14704_v17 = vcombine.low %v3734_v27, %v3738_v56  ;;  %v14706_v44 = vcombine.low %v3735_v22, %v3739_v24  ;;  %v3795_v27 = vld [vmem:[#allocation3 + $0x1cb8] sm:$0xff] }
 0x65f   :  { %13348 = vmatpush1.bf16.msra.mxu0 %v14640_v58  ;;  %v14707_v58 = vcombine.high %v3735_v22, %v3739_v24  ;;  %v14754_v22 = vcombine.low %v3783_v63, %v3787_v45 }
 0x660   :  { %13676 = vmatpush1.bf16.msra.mxu1 %v14642_v3  ;;  %13349 = vmatprep.subr.bf16.mxu0 %v14649_v12  ;;  %v3742_v3 = vld [vmem:[#allocation3 + $0x1b10] sm:$0xff] }
 0x661   :  { %13677 = vmatprep.subr.bf16.mxu1 %v14651_v59  ;;  %v3746_v12 = vld [vmem:[#allocation3 + $0x1b30] sm:$0xff]  ;;  %v3743_v59 = vld [vmem:[#allocation3 + $0x1b18] sm:$0xff] }
 0x662   :  { %v14713_v47 = vcombine.high %v3742_v3, %v3746_v12  ;;  %v14712_v41 = vcombine.low %v3742_v3, %v3746_v12  ;;  %v14714_v8 = vcombine.low %v3743_v59, %v3747_v19  ;;  %v3803_v3 = vld [vmem:[#allocation3 + $0x1cf8] sm:$0xff] }
 0x663   :  { %13350 = vmatpush1.bf16.msra.mxu0 %v14648_v16  ;;  %v14715_v16 = vcombine.high %v3743_v59, %v3747_v19 }
 0x664   :  { %13678 = vmatpush1.bf16.msra.mxu1 %v14650_v5  ;;  %13351 = vmatprep.subr.bf16.mxu0 %v14657_v40  ;;  %v3750_v5 = vld [vmem:[#allocation3 + $0x1b50] sm:$0xff] }
 0x665   :  { %13679 = vmatprep.subr.bf16.mxu1 %v14659_v51  ;;  %v3754_v40 = vld [vmem:[#allocation3 + $0x1b70] sm:$0xff]  ;;  %v3751_v51 = vld [vmem:[#allocation3 + $0x1b58] sm:$0xff] }
 0x666   :  { %v14721_v34 = vcombine.high %v3750_v5, %v3754_v40  ;;  %v14720_v49 = vcombine.low %v3750_v5, %v3754_v40  ;;  %v14722_v21 = vcombine.low %v3751_v51, %v3755_v48 }
 0x667   :  { %13352 = vmatpush1.bf16.msra.mxu0 %v14656_v52  ;;  %v14723_v52 = vcombine.high %v3751_v51, %v3755_v48  ;;  %v3814_v48 = vld [vmem:[#allocation3 + $0x1d50] sm:$0xff] }
 0x668   :  { %13680 = vmatpush1.bf16.msra.mxu1 %v14658_v39  ;;  %13353 = vmatprep.subr.bf16.mxu0 %v14665_v18  ;;  %v3758_v39 = vld [vmem:[#allocation3 + $0x1b90] sm:$0xff] }
 0x669   :  { %13681 = vmatprep.subr.bf16.mxu1 %v14667_v15  ;;  %v3762_v18 = vld [vmem:[#allocation3 + $0x1bb0] sm:$0xff]  ;;  %v3759_v15 = vld [vmem:[#allocation3 + $0x1b98] sm:$0xff] }
 0x66a   :  { %v14729_v46 = vcombine.high %v3758_v39, %v3762_v18  ;;  %v14728_v43 = vcombine.low %v3758_v39, %v3762_v18  ;;  %v14730_v60 = vcombine.low %v3759_v15, %v3763_v50 }
 0x66b   :  { %13354 = vmatpush1.bf16.msra.mxu0 %v14664_v23  ;;  %v14731_v23 = vcombine.high %v3759_v15, %v3763_v50  ;;  %v3822_v50 = vld [vmem:[#allocation3 + $0x1d90] sm:$0xff] }
 0x66c   :  { %13682 = vmatpush1.bf16.msra.mxu1 %v14666_v1  ;;  %13355 = vmatprep.subr.bf16.mxu0 %v14673_v4  ;;  %v3766_v1 = vld [vmem:[#allocation3 + $0x1bd0] sm:$0xff] }
 0x66d   :  { %13683 = vmatprep.subr.bf16.mxu1 %v14675_v57  ;;  %v3770_v4 = vld [vmem:[#allocation3 + $0x1bf0] sm:$0xff]  ;;  %v3767_v57 = vld [vmem:[#allocation3 + $0x1bd8] sm:$0xff] }
 0x66e   :  { %v14737_v0 = vcombine.high %v3766_v1, %v3770_v4  ;;  %v14736_v25 = vcombine.low %v3766_v1, %v3770_v4  ;;  %v14738_v35 = vcombine.low %v3767_v57, %v3771_v61 }
 0x66f   :  { %13356 = vmatpush1.bf16.msra.mxu0 %v14672_v10  ;;  %v14739_v10 = vcombine.high %v3767_v57, %v3771_v61  ;;  %v3830_v61 = vld [vmem:[#allocation3 + $0x1dd0] sm:$0xff] }
 0x670   :  { %13684 = vmatpush1.bf16.msra.mxu1 %v14674_v6  ;;  %13357 = vmatprep.subr.bf16.mxu0 %v14681_v54  ;;  %v3774_v6 = vld [vmem:[#allocation3 + $0x1c10] sm:$0xff] }
 0x671   :  { %13685 = vmatprep.subr.bf16.mxu1 %v14683_v13  ;;  %v3778_v54 = vld [vmem:[#allocation3 + $0x1c30] sm:$0xff]  ;;  %v3775_v13 = vld [vmem:[#allocation3 + $0x1c18] sm:$0xff] }
 0x672   :  { %v14745_v28 = vcombine.high %v3774_v6, %v3778_v54  ;;  %v14746_v31 = vcombine.low %v3775_v13, %v3779_v53 }
 0x673   :  { %13358 = vmatpush1.bf16.msra.mxu0 %v14680_v26  ;;  %v14747_v26 = vcombine.high %v3775_v13, %v3779_v53  ;;  %v3838_v53 = vld [vmem:[#allocation3 + $0x1e10] sm:$0xff] }
 0x674   :  { %13686 = vmatpush1.bf16.msra.mxu1 %v14682_v55  ;;  %13359 = vmatprep.subr.bf16.mxu0 %v14689_v32  ;;  %v3782_v55 = vld [vmem:[#allocation3 + $0x1c50] sm:$0xff] }
 0x675   :  { %13687 = vmatprep.subr.bf16.mxu1 %v14691_v62  ;;  %v3786_v32 = vld [vmem:[#allocation3 + $0x1c70] sm:$0xff]  ;;  %v14744_v62 = vcombine.low %v3774_v6, %v3778_v54 }
 0x676   :  { %v14753_v29 = vcombine.high %v3782_v55, %v3786_v32  ;;  %v14752_v56 = vcombine.low %v3782_v55, %v3786_v32 }
 0x677   :  { %13360 = vmatpush1.bf16.msra.mxu0 %v14688_v30  ;;  %v3790_v30 = vld [vmem:[#allocation3 + $0x1c90] sm:$0xff] }
 0x678   :  { %13688 = vmatpush1.bf16.msra.mxu1 %v14690_v2  ;;  %13361 = vmatprep.subr.bf16.mxu0 %v14697_v9  ;;  %v3794_v2 = vld [vmem:[#allocation3 + $0x1cb0] sm:$0xff]  ;;  %v14755_v9 = vcombine.high %v3783_v63, %v3787_v45 }
 0x679   :  { %13689 = vmatprep.subr.bf16.mxu1 %v14699_v14  ;;  %v3791_v14 = vld [vmem:[#allocation3 + $0x1c98] sm:$0xff]  ;;  %v14761_v24 = vcombine.high %v3790_v30, %v3794_v2  ;;  %v14760_v12 = vcombine.low %v3790_v30, %v3794_v2  ;;  %v3846_v63 = vld [vmem:[#allocation3 + $0x1e50] sm:$0xff] }
 0x67a   :  { %v3850_v45 = vld [vmem:[#allocation3 + $0x1e70] sm:$0xff] }
 0x67b   :  { %13362 = vmatpush1.bf16.msra.mxu0 %v14696_v33  ;;  %v14763_v33 = vcombine.high %v3791_v14, %v3795_v27 }
 0x67c   :  { %13690 = vmatpush1.bf16.msra.mxu1 %v14698_v11  ;;  %13363 = vmatprep.subr.bf16.mxu0 %v14705_v36  ;;  %v3798_v11 = vld [vmem:[#allocation3 + $0x1cd0] sm:$0xff] }
 0x67d   :  { %13691 = vmatprep.subr.bf16.mxu1 %v14707_v58  ;;  %v3802_v36 = vld [vmem:[#allocation3 + $0x1cf0] sm:$0xff]  ;;  %v3799_v58 = vld [vmem:[#allocation3 + $0x1cd8] sm:$0xff] }
 0x67e   :  { %v14769_v59 = vcombine.high %v3798_v11, %v3802_v36  ;;  %v14771_v19 = vcombine.high %v3799_v58, %v3803_v3  ;;  %v14770_v5 = vcombine.low %v3799_v58, %v3803_v3  ;;  %v3862_v3 = vld [vmem:[#allocation3 + $0x1ed0] sm:$0xff] }
 0x67f   :  { %13364 = vmatpush1.bf16.msra.mxu0 %v14704_v17  ;;  %v3806_v17 = vld [vmem:[#allocation3 + $0x1d10] sm:$0xff] }
 0x680   :  { %13692 = vmatpush1.bf16.msra.mxu1 %v14706_v44  ;;  %13365 = vmatprep.subr.bf16.mxu0 %v14713_v47  ;;  %v3810_v44 = vld [vmem:[#allocation3 + $0x1d30] sm:$0xff]  ;;  %v3807_v47 = vld [vmem:[#allocation3 + $0x1d18] sm:$0xff] }
 0x681   :  { %13693 = vmatprep.subr.bf16.mxu1 %v14715_v16  ;;  %v3811_v16 = vld [vmem:[#allocation3 + $0x1d38] sm:$0xff]  ;;  %v14777_v40 = vcombine.high %v3806_v17, %v3810_v44 }
 0x682   :  { %v14779_v51 = vcombine.high %v3807_v47, %v3811_v16  ;;  %v14778_v39 = vcombine.low %v3807_v47, %v3811_v16  ;;  %v3870_v16 = vld [vmem:[#allocation3 + $0x1f10] sm:$0xff] }
 0x683   :  { %13366 = vmatpush1.bf16.msra.mxu0 %v14712_v41  ;;  %v3818_v41 = vld [vmem:[#allocation3 + $0x1d70] sm:$0xff] }
 0x684   :  { %13694 = vmatpush1.bf16.msra.mxu1 %v14714_v8  ;;  %13367 = vmatprep.subr.bf16.mxu0 %v14721_v34  ;;  %v3815_v8 = vld [vmem:[#allocation3 + $0x1d58] sm:$0xff]  ;;  %v14785_v18 = vcombine.high %v3814_v48, %v3818_v41 }
 0x685   :  { %13695 = vmatprep.subr.bf16.mxu1 %v14723_v52  ;;  %v3819_v34 = vld [vmem:[#allocation3 + $0x1d78] sm:$0xff]  ;;  %v14776_v52 = vcombine.low %v3806_v17, %v3810_v44 }
 0x686   :  { %v14787_v15 = vcombine.high %v3815_v8, %v3819_v34  ;;  %v14786_v1 = vcombine.low %v3815_v8, %v3819_v34  ;;  %v3878_v34 = vld [vmem:[#allocation3 + $0x1f50] sm:$0xff] }
 0x687   :  { %13368 = vmatpush1.bf16.msra.mxu0 %v14720_v49  ;;  %v3826_v49 = vld [vmem:[#allocation3 + $0x1db0] sm:$0xff] }
 0x688   :  { %13696 = vmatpush1.bf16.msra.mxu1 %v14722_v21  ;;  %13369 = vmatprep.subr.bf16.mxu0 %v14729_v46  ;;  %v3823_v21 = vld [vmem:[#allocation3 + $0x1d98] sm:$0xff]  ;;  %v14793_v4 = vcombine.high %v3822_v50, %v3826_v49 }
 0x689   :  { %13697 = vmatprep.subr.bf16.mxu1 %v14731_v23  ;;  %v3827_v46 = vld [vmem:[#allocation3 + $0x1db8] sm:$0xff]  ;;  %v14784_v23 = vcombine.low %v3814_v48, %v3818_v41 }
 0x68a   :  { %v14795_v57 = vcombine.high %v3823_v21, %v3827_v46  ;;  %v14794_v6 = vcombine.low %v3823_v21, %v3827_v46  ;;  %v3886_v46 = vld [vmem:[#allocation3 + $0x1f90] sm:$0xff] }
 0x68b   :  { %13370 = vmatpush1.bf16.msra.mxu0 %v14728_v43  ;;  %v3834_v43 = vld [vmem:[#allocation3 + $0x1df0] sm:$0xff] }
 0x68c   :  { %13698 = vmatpush1.bf16.msra.mxu1 %v14730_v60  ;;  %13371 = vmatprep.subr.bf16.mxu0 %v14737_v0  ;;  %v3831_v60 = vld [vmem:[#allocation3 + $0x1dd8] sm:$0xff]  ;;  %v14801_v54 = vcombine.high %v3830_v61, %v3834_v43 }
 0x68d   :  { %13699 = vmatprep.subr.bf16.mxu1 %v14739_v10  ;;  %v3835_v0 = vld [vmem:[#allocation3 + $0x1df8] sm:$0xff]  ;;  %v14792_v10 = vcombine.low %v3822_v50, %v3826_v49 }
 0x68e   :  { %v14803_v13 = vcombine.high %v3831_v60, %v3835_v0  ;;  %v14802_v55 = vcombine.low %v3831_v60, %v3835_v0  ;;  %v3894_v0 = vld [vmem:[#allocation3 + $0x1fd0] sm:$0xff] }
 0x68f   :  { %13372 = vmatpush1.bf16.msra.mxu0 %v14736_v25  ;;  %v3842_v25 = vld [vmem:[#allocation3 + $0x1e30] sm:$0xff] }
 0x690   :  { %13700 = vmatpush1.bf16.msra.mxu1 %v14738_v35  ;;  %13382 = vmatprep.subr.bf16.mxu0 %v14745_v28  ;;  %v3839_v35 = vld [vmem:[#allocation3 + $0x1e18] sm:$0xff]  ;;  %v14809_v32 = vcombine.high %v3838_v53, %v3842_v25  ;;  %v14808_v30 = vcombine.low %v3838_v53, %v3842_v25 }
 0x691   :  { %13710 = vmatprep.subr.bf16.mxu1 %v14747_v26  ;;  %v3843_v28 = vld [vmem:[#allocation3 + $0x1e38] sm:$0xff]  ;;  %v14800_v26 = vcombine.low %v3830_v61, %v3834_v43 }
 0x692   :  { %13374 = vmatmul.mubr.bf16.vlgmr.msra.gmra.mrb[4].mxu0 %v20610_v20  ;;  %v14810_v2 = vcombine.low %v3839_v35, %v3843_v28 }
 0x693   :  { %13702 = vmatmul.mubr.bf16.vlgmr.msra.gmra.mrb[4].mxu1 %v20610_v20  ;;  %13383 = vmatpush1.bf16.msra.mxu0 %v14744_v62  ;;  %v14762_v20 = vcombine.low %v3791_v14, %v3795_v27  ;;  %v14811_v62 = vcombine.high %v3839_v35, %v3843_v28  ;;  %v3854_v27 = vld [vmem:[#allocation3 + $0x1e90] sm:$0xff] }
 0x694   :  { %13414 = vmatprep.mubr.bf16.mxu0 %v20836_v37  ;;  %13711 = vmatpush1.bf16.msra.mxu1 %v14746_v31  ;;  %v3847_v31 = vld [vmem:[#allocation3 + $0x1e58] sm:$0xff] }
 0x695   :  { %13742 = vmatprep.mubr.bf16.mxu1 %v20836_v37  ;;  %13384 = vmatprep.subr.bf16.mxu0 %v14753_v29  ;;  %v14768_v37 = vcombine.low %v3798_v11, %v3802_v36  ;;  %v3851_v29 = vld [vmem:[#allocation3 + $0x1e78] sm:$0xff] }
 0x696   :  { %13712 = vmatprep.subr.bf16.mxu1 %v14755_v9  ;;  %v14817_v9 = vcombine.high %v3846_v63, %v3850_v45  ;;  %v14819_v14 = vcombine.high %v3847_v31, %v3851_v29  ;;  %v14818_v11 = vcombine.low %v3847_v31, %v3851_v29 }
 0x697   :  { %13385 = vmatpush1.bf16.msra.mxu0 %v14752_v56  ;;  %v3858_v56 = vld [vmem:[#allocation3 + $0x1eb0] sm:$0xff] }
 0x698   :  { %13713 = vmatpush1.bf16.msra.mxu1 %v14754_v22  ;;  %13386 = vmatprep.subr.bf16.mxu0 %v14761_v24  ;;  %v3855_v22 = vld [vmem:[#allocation3 + $0x1e98] sm:$0xff]  ;;  %v14825_v36 = vcombine.high %v3854_v27, %v3858_v56 }
 0x699   :  { %13714 = vmatprep.subr.bf16.mxu1 %v14763_v33  ;;  %v3859_v24 = vld [vmem:[#allocation3 + $0x1eb8] sm:$0xff]  ;;  %v14816_v33 = vcombine.low %v3846_v63, %v3850_v45  ;;  %v3932_v63 = vsub.s32 7, %v21268_v38  ;;  %v14998_v45 = vld [vmem:[#allocation5] sm:$0xff] }
 0x69a   :  { %v14827_v58 = vcombine.high %v3855_v22, %v3859_v24  ;;  %v14826_v17 = vcombine.low %v3855_v22, %v3859_v24 }
 0x69b   :  { %13387 = vmatpush1.bf16.msra.mxu0 %v14760_v12  ;;  %v3866_v12 = vld [vmem:[#allocation3 + $0x1ef0] sm:$0xff] }
 0x69c   :  { %13715 = vmatpush1.bf16.msra.mxu1 %v14762_v20  ;;  %13388 = vmatprep.subr.bf16.mxu0 %v14769_v59  ;;  %v3863_v20 = vld [vmem:[#allocation3 + $0x1ed8] sm:$0xff]  ;;  %v14833_v44 = vcombine.high %v3862_v3, %v3866_v12 }
 0x69d   :  { %13716 = vmatprep.subr.bf16.mxu1 %v14771_v19  ;;  %v3867_v59 = vld [vmem:[#allocation3 + $0x1ef8] sm:$0xff]  ;;  %v14824_v19 = vcombine.low %v3854_v27, %v3858_v56  ;;  %v14999_v27 = vld [vmem:[#allocation7] sm:$0xff] }
 0x69e   :  { %v14835_v47 = vcombine.high %v3863_v20, %v3867_v59  ;;  %v14834_v48 = vcombine.low %v3863_v20, %v3867_v59 }
 0x69f   :  { %13389 = vmatpush1.bf16.msra.mxu0 %v14768_v37  ;;  %v3874_v37 = vld [vmem:[#allocation3 + $0x1f30] sm:$0xff] }
 0x6a0   :  { %13717 = vmatpush1.bf16.msra.mxu1 %v14770_v5  ;;  %13390 = vmatprep.subr.bf16.mxu0 %v14777_v40  ;;  %v3871_v5 = vld [vmem:[#allocation3 + $0x1f18] sm:$0xff]  ;;  %v14841_v41 = vcombine.high %v3870_v16, %v3874_v37 }
 0x6a1   :  { %13718 = vmatprep.subr.bf16.mxu1 %v14779_v51  ;;  %v3875_v40 = vld [vmem:[#allocation3 + $0x1f38] sm:$0xff]  ;;  %v14832_v51 = vcombine.low %v3862_v3, %v3866_v12 }
 0x6a2   :  { %v14843_v8 = vcombine.high %v3871_v5, %v3875_v40  ;;  %v14842_v50 = vcombine.low %v3871_v5, %v3875_v40 }
 0x6a3   :  { %13391 = vmatpush1.bf16.msra.mxu0 %v14776_v52  ;;  %v3882_v52 = vld [vmem:[#allocation3 + $0x1f70] sm:$0xff] }
 0x6a4   :  { %13719 = vmatpush1.bf16.msra.mxu1 %v14778_v39  ;;  %13392 = vmatprep.subr.bf16.mxu0 %v14785_v18  ;;  %v3879_v39 = vld [vmem:[#allocation3 + $0x1f58] sm:$0xff]  ;;  %v14849_v49 = vcombine.high %v3878_v34, %v3882_v52 }
 0x6a5   :  { %13720 = vmatprep.subr.bf16.mxu1 %v14787_v15  ;;  %v3883_v18 = vld [vmem:[#allocation3 + $0x1f78] sm:$0xff]  ;;  %v14840_v15 = vcombine.low %v3870_v16, %v3874_v37  ;;  %v13792_v37 = vrot.slane %v14999_v27, %v3932_v63 }
 0x6a6   :  { %v14851_v21 = vcombine.high %v3879_v39, %v3883_v18  ;;  %v14850_v61 = vcombine.low %v3879_v39, %v3883_v18 }
 0x6a7   :  { %13393 = vmatpush1.bf16.msra.mxu0 %v14784_v23  ;;  %v3890_v23 = vld [vmem:[#allocation3 + $0x1fb0] sm:$0xff] }
 0x6a8   :  { %13721 = vmatpush1.bf16.msra.mxu1 %v14786_v1  ;;  %13394 = vmatprep.subr.bf16.mxu0 %v14793_v4  ;;  %v3887_v1 = vld [vmem:[#allocation3 + $0x1f98] sm:$0xff]  ;;  %v14857_v43 = vcombine.high %v3886_v46, %v3890_v23 }
 0x6a9   :  { %13722 = vmatprep.subr.bf16.mxu1 %v14795_v57  ;;  %v3891_v4 = vld [vmem:[#allocation3 + $0x1fb8] sm:$0xff]  ;;  %v14848_v57 = vcombine.low %v3878_v34, %v3882_v52 }
 0x6aa   :  { %v14859_v60 = vcombine.high %v3887_v1, %v3891_v4  ;;  %v14858_v53 = vcombine.low %v3887_v1, %v3891_v4 }
 0x6ab   :  { %13395 = vmatpush1.bf16.msra.mxu0 %v14792_v10  ;;  %v3898_v10 = vld [vmem:[#allocation3 + $0x1ff0] sm:$0xff] }
 0x6ac   :  { %13723 = vmatpush1.bf16.msra.mxu1 %v14794_v6  ;;  %13396 = vmatprep.subr.bf16.mxu0 %v14801_v54  ;;  %v3895_v6 = vld [vmem:[#allocation3 + $0x1fd8] sm:$0xff]  ;;  %v14865_v25 = vcombine.high %v3894_v0, %v3898_v10  ;;  %v14864_v28 = vcombine.low %v3894_v0, %v3898_v10 }
 0x6ad   :  { %13724 = vmatprep.subr.bf16.mxu1 %v14803_v13  ;;  %v3899_v54 = vld [vmem:[#allocation3 + $0x1ff8] sm:$0xff]  ;;  %v14856_v13 = vcombine.low %v3886_v46, %v3890_v23 }
 0x6ae   :  { %v14867_v35 = vcombine.high %v3895_v6, %v3899_v54 }
 0x6af   :  { %13397 = vmatpush1.bf16.msra.mxu0 %v14800_v26  ;;  %v14866_v26 = vcombine.low %v3895_v6, %v3899_v54 }
 0x6b0   :  { %13725 = vmatpush1.bf16.msra.mxu1 %v14802_v55  ;;  %13398 = vmatprep.subr.bf16.mxu0 %v14809_v32  ;;  %v3920_v55 = vsub.s32 4, %v21268_v38  ;;  %v3928_v32 = vsub.s32 6, %v21268_v38 }
 0x6b1   :  { %13726 = vmatprep.subr.bf16.mxu1 %v14811_v62  ;;  %v3924_v62 = vsub.s32 5, %v21268_v38 }
 0x6b2   :  { %v3921_v31 = vrot.slane %v14998_v45, %v3920_v55  ;;  %v3929_v29 = vrot.slane %v14998_v45, %v3928_v32  ;;  %v13780_v56 = vrot.slane %v14999_v27, %v3920_v55  ;;  %v13788_v12 = vrot.slane %v14999_v27, %v3928_v32 }
 0x6b3   :  { %13399 = vmatpush1.bf16.msra.mxu0 %v14808_v30  ;;  %v3925_v30 = vrot.slane %v14998_v45, %v3924_v62 }
 0x6b4   :  { %13727 = vmatpush1.bf16.msra.mxu1 %v14810_v2  ;;  %13400 = vmatprep.subr.bf16.mxu0 %v14817_v9  ;;  %v3933_v2 = vrot.slane %v14998_v45, %v3932_v63 }
 0x6b5   :  { %13728 = vmatprep.subr.bf16.mxu1 %v14819_v14 }
 0x6b7   :  { %13401 = vmatpush1.bf16.msra.mxu0 %v14816_v33 }
 0x6b8   :  { %13729 = vmatpush1.bf16.msra.mxu1 %v14818_v11  ;;  %13402 = vmatprep.subr.bf16.mxu0 %v14825_v36  ;;  %v13784_v11 = vrot.slane %v14999_v27, %v3924_v62 }
 0x6b9   :  { %13730 = vmatprep.subr.bf16.mxu1 %v14827_v58 }
 0x6bb   :  { %13403 = vmatpush1.bf16.msra.mxu0 %v14824_v19 }
 0x6bc   :  { %13731 = vmatpush1.bf16.msra.mxu1 %v14826_v17  ;;  %13404 = vmatprep.subr.bf16.mxu0 %v14833_v44 }
 0x6bd   :  { %13732 = vmatprep.subr.bf16.mxu1 %v14835_v47 }
 0x6bf   :  { %13405 = vmatpush1.bf16.msra.mxu0 %v14832_v51 }
 0x6c0   :  { %13733 = vmatpush1.bf16.msra.mxu1 %v14834_v48  ;;  %13406 = vmatprep.subr.bf16.mxu0 %v14841_v41 }
 0x6c1   :  { %13734 = vmatprep.subr.bf16.mxu1 %v14843_v8 }
 0x6c3   :  { %13407 = vmatpush1.bf16.msra.mxu0 %v14840_v15 }
 0x6c4   :  { %13735 = vmatpush1.bf16.msra.mxu1 %v14842_v50  ;;  %13408 = vmatprep.subr.bf16.mxu0 %v14849_v49  ;;  %v13828_v50 = vstv %s20922_s4 }
 0x6c5   :  { %13736 = vmatprep.subr.bf16.mxu1 %v14851_v21 }
 0x6c7   :  { %13409 = vmatpush1.bf16.msra.mxu0 %v14848_v57 }
 0x6c8   :  { %13737 = vmatpush1.bf16.msra.mxu1 %v14850_v61  ;;  %13410 = vmatprep.subr.bf16.mxu0 %v14857_v43 }
 0x6c9   :  { %13738 = vmatprep.subr.bf16.mxu1 %v14859_v60 }
 0x6cb   :  { %13411 = vmatpush1.bf16.msra.mxu0 %v14856_v13 }
 0x6cc   :  { %13739 = vmatpush1.bf16.msra.mxu1 %v14858_v53  ;;  %13412 = vmatprep.subr.bf16.mxu0 %v14865_v25 }
 0x6cd   :  { %13740 = vmatprep.subr.bf16.mxu1 %v14867_v35 }
 0x6cf   :  { %13413 = vmatpush1.bf16.msra.mxu0 %v14864_v28 }
 0x6d0   :  { %13741 = vmatpush1.bf16.msra.mxu1 %v14866_v26 }
 0x6d2   :  { %13415 = vmatmul.mubr.bf16.vlgmr.msra.gmra.mrb[4].mxu0 %v20851_v7 }
 0x6d3   :  { %13743 = vmatmul.mubr.bf16.vlgmr.msra.gmra.mrb[4].mxu1 %v20851_v7 }
 0x7a5   :  { %v13416_v9 = vpop.f32.mrb[4].mxu0 }
 0x7a6   :  { %v14873_v14 = vadd.f32 %v13416_v9, %v3921_v31  ;;  %v13744_v22 = vpop.f32.mrb[4].mxu1  ;;  %v13418_v24 = vpop.f32.mrb[5].mxu0 }
 0x7a7   :  { %v14875_v7 = vadd.f32 %v13744_v22, %v3929_v29  ;;  %v14874_v33 = vadd.f32 %v13418_v24, %v3925_v30  ;;  %v13746_v36 = vpop.f32.mrb[5].mxu1  ;;  %v13420_v58 = vpop.f32.mrb[6].mxu0 }
 0x7a8   :  { %v13755_v3 = vmax.f32 %v14873_v14, 0.0  ;;  %v14876_v20 = vadd.f32 %v13746_v36, %v3933_v2  ;;  %v13748_v38 = vpop.f32.mrb[6].mxu1  ;;  %v13421_v59 = vpop.f32.mrb[7].mxu0 }
 0x7a9   :  { %v13757_v19 = vmax.f32 %v14875_v7, 0.0  ;;  %v13756_v17 = vmax.f32 %v14874_v33, 0.0  ;;  %v13749_v44 = vpop.f32.mrb[7].mxu1 }
 0x7aa   :  { %v13805_v47 = vmul.f32 %v13780_v56, %v13755_v3  ;;  %v13758_v16 = vmax.f32 %v14876_v20, 0.0 }
 0x7ab   :  { %v13806_v5 = vmul.f32 %v13784_v11, %v13756_v17  ;;  %v13807_v51 = vmul.f32 %v13788_v12, %v13757_v19 }
 0x7ac   :  { %v13817_v40 = vsel %vm13809_vm8, %v13805_v47, 0.0  ;;  %v13808_v8 = vmul.f32 %v13792_v37, %v13758_v16 }
 0x7ad   :  { %v13818_v48 = vadd.f32 %v13817_v40, %v20883_v42  ;;  %v13819_v41 = vsel %vm13809_vm8, %v13806_v5, 0.0  ;;  %v13821_v52 = vsel %vm13809_vm8, %v13807_v51, 0.0 }
 0x7ae   :  { %v13823_v18 = vsel %vm13809_vm8, %v13808_v8, 0.0 }
 0x7af   :  { %v13820_v34 = vadd.f32 %v13819_v41, %v13818_v48 }
 0x7b1   :  { %v13822_v39 = vadd.f32 %v13821_v52, %v13820_v34 }
 0x7b3   :  { %v13824_v15 = vadd.f32 %v13823_v18, %v13822_v39 }
 0x7b5   :  { %13825 = vadd.xlane.f32.xlu0 %v13824_v15 }
 0x842   :  { %v13826_v49 = vpop.xlane.xlu0 %13825 }
 0x843   :  { %v13829_v21 = vadd.f32 %v13828_v50, %v13826_v49 }
 0x845   :  { %v14868_v46 = vmul.f32 -1.442695, %v13829_v21 }
 0x847   :  { %14994 = vpow2.f32 %v14868_v46 }
 0x851   :  { %v14995_v42 = vpop.eup %14994 }
 0x852   :  { %v13833_v23 = vadd.f32 1.0, %v14995_v42 }
 0x854   :  { %14996 = vrcp.f32 %v13833_v23 }
 0x85e   :  { %v14997_v1 = vpop.eup %14996 }
 0x85f   :  { %13837 = vst.msk [vmem:[%s20923_s5] sm:$0x3] %vm13836_vm9, %v14997_v1 }
 0x860   :  { %13842 = vsyncpa [#allocation4], 1 }
 0x861   :  { %13843 = vsyncpa [#allocation6], 1 }

</bundles_post_ra>
